<compile_context>
chip_gen: v6e
topology: v6e:2x2x1
jax: 0.10.0
libtpu: 0.0.40
codegen_flags: <defaults>
</compile_context>

<pallas_src>
import functools

import numpy as np
import jax
import jax.numpy as jnp
from jax import lax
from jax.experimental import pallas as pl
from jax.experimental.pallas import tpu as pltpu


# 3x3 taps in PyTorch (kh, kw) row-major order: k == (dh+1)*3 + (dw+1)
_TAPS = tuple((dh, dw) for dh in (-1, 0, 1) for dw in (-1, 0, 1))

# Cp-row chunk indices inside the packed 1x1 weight/bias slab.  Chunks that
# feed one fused matmul are packed contiguously.
_J_ATT1 = 0    # 4 chunks: [skip1, conv1-g0, conv1-g1, conv1-g2]  (input xn1)
_J_ATT2 = 4    # 3 chunks: [conv2-g0, conv2-g1, conv2-g2]          (input t1)
_J_SCA = 7     # 1 chunk  (1/HW folded into the weight)            (input pooled)
_J_CONV3 = 8   # 1 chunk                                           (input xa)
_J_FFN1 = 9    # 4 chunks: [skip2, conv4-g0, conv4-g1, conv4-g2]   (input xn2)
_J_FFN2 = 13   # 3 chunks: [conv5-g0, conv5-g1, conv5-g2]          (input u)
_J_CONV6 = 16  # 1 chunk                                           (input z)

# Cp-row chunk indices inside the packed per-channel vector slab
_V_LN1W, _V_LN1B, _V_LN2W, _V_LN2B, _V_BETA, _V_GAMMA = range(6)


# ---------------------------------------------------------------------------
# Pallas kernel (one image per grid step; layout (Cp, HW), channels on
# sublanes, spatial lane-dense on lanes)
# ---------------------------------------------------------------------------
def daf_kernel(x_ref, w1_ref, b1_ref, wdw_ref, bdw_ref, vec_ref, mask_ref,
               out_ref, *, C, Cp, H, W):
    HW = H * W
    eps = 1e-6
    inv_c = 1.0 / C
    f32 = jnp.float32

    x = x_ref[...].astype(f32)                            # (Cp, HW)

    def wrows(j, n):
        return w1_ref[j * Cp:(j + n) * Cp, :]             # (n*Cp, Cp) aligned view

    def brows(j, n):
        return b1_ref[j * Cp:(j + n) * Cp, :]             # (n*Cp, 1)

    def vecc(j):
        return vec_ref[j * Cp:(j + 1) * Cp, :]            # (Cp, 1)

    def conv1x1(j, n, t):
        # n fused Cp-row output groups in a single MXU matmul.
        return jnp.dot(wrows(j, n), t, preferred_element_type=f32) + brows(j, n)

    def lnorm(t, jw, jb):
        # LayerNorm2d: per-pixel stats over the channel axis (axis 0), one
        # pass (var = E[t^2] - mu^2).  Padded channel rows are zero, so the
        # sums only see the C real channels -> divide by C, not Cp.
        s1 = jnp.sum(t, axis=0, keepdims=True)
        s2 = jnp.sum(t * t, axis=0, keepdims=True)
        mu = s1 * inv_c
        var = s2 * inv_c - mu * mu
        return vecc(jw) * ((t - mu) * lax.rsqrt(var + eps)) + vecc(jb)

    def dwconv(g, t):
        # Depthwise 3x3 (stride 1, zero pad 1) on one gate group (Cp, HW).
        # Shifted taps are lane rolls (wrap stays inside this one image); the
        # (9, 1, HW) 0/1 boundary mask (shared across channels) kills the
        # out-of-image taps with a single multiply per tap.
        r0 = g * Cp
        acc = wdw_ref[r0:r0 + Cp, 4:5] * t                 # centre tap
        for k, (dh, dw) in enumerate(_TAPS):
            if dh == 0 and dw == 0:
                continue
            shift = (-(dh * W + dw)) % HW
            src = pltpu.roll(t, shift=shift, axis=1)
            acc = acc + wdw_ref[r0:r0 + Cp, k:k + 1] * (mask_ref[k] * src)
        return acc + bdw_ref[r0:r0 + Cp, :]

    # ----------------- attention half -----------------
    xn1 = lnorm(x, _V_LN1W, _V_LN1B)
    m1 = conv1x1(_J_ATT1, 4, xn1)                          # [skip1 | conv1 g0..g2]
    sk1 = m1[0:Cp]
    d0 = dwconv(0, m1[Cp:2 * Cp])
    d1 = dwconv(1, m1[2 * Cp:3 * Cp])
    d2 = dwconv(2, m1[3 * Cp:4 * Cp])
    t1 = d0 * d1 + d2                                      # SimpleGate(bias=True)

    m2 = conv1x1(_J_ATT2, 3, t1)                           # conv2 g0..g2
    e0 = dwconv(3, m2[0:Cp])
    e1 = dwconv(4, m2[Cp:2 * Cp])
    e2 = dwconv(5, m2[2 * Cp:3 * Cp])
    t2 = e0 * e1 + e2

    xa = t2 * sk1                                          # concat + SimpleGate(False)

    # SCA: global average pool (lane reduce; 1/HW is folded into the weight)
    # + 1x1 conv, then a lane-broadcast multiply (no segment matmul).
    pooled = jnp.sum(xa, axis=1, keepdims=True)            # (Cp, 1)
    att = jnp.dot(wrows(_J_SCA, 1), pooled,
                  preferred_element_type=f32) + brows(_J_SCA, 1)
    xa = xa * att
    xa = conv1x1(_J_CONV3, 1, xa)
    # dropout1 is Identity (drop_out_rate = 0.0)
    y = x + xa * vecc(_V_BETA)

    # ----------------- FFN half -----------------
    xn2 = lnorm(y, _V_LN2W, _V_LN2B)
    m3 = conv1x1(_J_FFN1, 4, xn2)                          # [skip2 | conv4 g0..g2]
    sk2 = m3[0:Cp]
    u = m3[Cp:2 * Cp] * m3[2 * Cp:3 * Cp] + m3[3 * Cp:4 * Cp]
    m4 = conv1x1(_J_FFN2, 3, u)                            # conv5 g0..g2
    v = m4[0:Cp] * m4[Cp:2 * Cp] + m4[2 * Cp:3 * Cp]
    z = v * sk2                                            # concat + SimpleGate(False)
    z = conv1x1(_J_CONV6, 1, z)
    # dropout2 is Identity (drop_out_rate = 0.0)

    out = y + z * vecc(_V_GAMMA)
    out_ref[...] = out[0:C, :].astype(out_ref.dtype)       # drop padded channels


# ---------------------------------------------------------------------------
# Host-side parameter packing / constants
# ---------------------------------------------------------------------------
def _f32(a):
    return jnp.asarray(a, jnp.float32)


def pack_params(P, C, Cp, HW):
    """Pack the 28 tiny DAFBlock parameters into 5 slabs.  Every chunk is
    padded to Cp rows (multiple of 8 sublanes) so all in-kernel slices are
    aligned views; padded rows/cols are zero so padded channels stay zero."""

    def pw(w):                                     # (C, C) 1x1 weight -> (Cp, Cp)
        w = _f32(w)
        return jnp.pad(w, ((0, Cp - w.shape[0]), (0, Cp - w.shape[1])))

    def pb(b):                                     # (C,) -> (Cp, 1)
        b = _f32(b).reshape(-1, 1)
        return jnp.pad(b, ((0, Cp - b.shape[0]), (0, 0)))

    def pdw(w):                                    # (C, 3, 3) -> (Cp, 9)
        w = _f32(w).reshape(-1, 9)
        return jnp.pad(w, ((0, Cp - w.shape[0]), (0, 0)))

    def split3(a):
        return [a[0:C], a[C:2 * C], a[2 * C:3 * C]]

    w_chunks = ([P['skip1_w']] + split3(P['c1_w1']) + split3(P['c2_w1'])
                + [P['sca_w'] / float(HW), P['conv3_w'], P['skip2_w']]
                + split3(P['conv4_w']) + split3(P['conv5_w']) + [P['conv6_w']])
    b_chunks = ([P['skip1_b']] + split3(P['c1_b1']) + split3(P['c2_b1'])
                + [P['sca_b'], P['conv3_b'], P['skip2_b']]
                + split3(P['conv4_b']) + split3(P['conv5_b']) + [P['conv6_b']])
    w1x1 = jnp.concatenate([pw(w) for w in w_chunks], axis=0)     # (17*Cp, Cp)
    b1x1 = jnp.concatenate([pb(b) for b in b_chunks], axis=0)     # (17*Cp, 1)

    wdw = jnp.concatenate(
        [pdw(w) for w in split3(P['c1_wdw']) + split3(P['c2_wdw'])], axis=0)
    bdw = jnp.concatenate(
        [pb(b) for b in split3(P['c1_bdw']) + split3(P['c2_bdw'])], axis=0)

    vec = jnp.concatenate(
        [pb(P[k]) for k in ('ln1_w', 'ln1_b', 'ln2_w', 'ln2_b',
                            'beta', 'gamma')], axis=0)            # (6*Cp, 1)
    return w1x1, b1x1, wdw, bdw, vec


def build_mask(H, W):
    """(9, 1, HW) 0/1 validity of each 3x3 tap; shared across channels/batch."""
    HW = H * W
    hh = np.arange(HW) // W
    ww = np.arange(HW) % W
    m = np.zeros((9, 1, HW), np.float32)
    for k, (dh, dw) in enumerate(_TAPS):
        valid = (((hh + dh) >= 0) & ((hh + dh) < H) &
                 ((ww + dw) >= 0) & ((ww + dw) < W))
        m[k, 0, :] = valid.astype(np.float32)
    return jnp.asarray(m)


def _vmem_limit_bytes(Cp, C, HW, consts, io_itemsize):
    tile_io = 2 * (Cp + C) * HW * io_itemsize          # double-buffered in + out
    const_b = 2 * sum(int(a.size) * a.dtype.itemsize for a in consts)
    work = 48 * Cp * HW * 4                            # f32 in-kernel temporaries
    est = int(1.25 * (tile_io + const_b + work))
    # Floor at the v6e/v7x default, cap v7x-safe (below 64 MiB physical).
    return min(60 * 2 ** 20, max(32 * 2 ** 20, est))


# ---------------------------------------------------------------------------
# Wrapper: layout plumbing + pallas_call
# ---------------------------------------------------------------------------
def daf_block_pallas(x_nchw, P, *, io_dtype=jnp.float32):
    """DAFBlock forward.  x_nchw: (N, C, H, W) -> (N, C, H, W).
    io_dtype=jnp.bfloat16 halves HBM traffic (in-kernel math stays f32)."""
    N, C, H, W = x_nchw.shape
    HW = H * W
    Cp = max(8, ((C + 7) // 8) * 8)                    # 8-sublane aligned channels

    # Natural layout: (N, C, HW).  No host transposes; only a channel zero-pad
    # when C is not already a multiple of 8 (production C usually is).
    x3 = x_nchw.reshape(N, C, HW).astype(io_dtype)
    if Cp != C:
        x3 = jnp.pad(x3, ((0, 0), (0, Cp - C), (0, 0)))

    w1x1, b1x1, wdw, bdw, vec = pack_params(P, C, Cp, HW)
    mask = build_mask(H, W)
    consts = (w1x1, b1x1, wdw, bdw, vec, mask)

    vmem_bytes = _vmem_limit_bytes(Cp, C, HW, consts, np.dtype(io_dtype).itemsize)

    def const_spec(a, buffered):
        idx = lambda n, r=a.ndim: (0,) * r
        if buffered:
            # Constant index map -> single buffer (no wasted double-buffer VMEM).
            return pl.BlockSpec(a.shape, idx, pipeline_mode=pl.Buffered(1))
        return pl.BlockSpec(a.shape, idx)

    def build(buffered):
        return pl.pallas_call(
            functools.partial(daf_kernel, C=C, Cp=Cp, H=H, W=W),
            out_shape=jax.ShapeDtypeStruct((N, C, HW), io_dtype),
            grid=(N,),
            in_specs=[pl.BlockSpec((None, Cp, HW), lambda n: (n, 0, 0))]
                     + [const_spec(a, buffered) for a in consts],
            out_specs=pl.BlockSpec((None, C, HW), lambda n: (n, 0, 0)),
            compiler_params=pltpu.CompilerParams(
                dimension_semantics=("parallel",),
                vmem_limit_bytes=vmem_bytes),
        )

    try:
        out3 = build(True)(x3, *consts)
    except Exception:
        # pl.Buffered(1) not supported by this jax version -> default buffering.
        out3 = build(False)(x3, *consts)

    return out3.reshape(N, C, H, W).astype(x_nchw.dtype)


# ---------------------------------------------------------------------------
# Pure-JAX reference (mirrors the PyTorch forward, NCHW)
# ---------------------------------------------------------------------------
def daf_block_reference(inp, P):
    eps = 1e-6
    HIGH = jax.lax.Precision.HIGHEST

    def ln(x, w, b):
        mu = jnp.mean(x, axis=1, keepdims=True)
        var = jnp.mean((x - mu) ** 2, axis=1, keepdims=True)
        return w.reshape(1, -1, 1, 1) * ((x - mu) / jnp.sqrt(var + eps)) \
            + b.reshape(1, -1, 1, 1)

    def c1x1(x, w, b):
        return jnp.einsum('nchw,oc->nohw', x, w, precision=HIGH) \
            + b.reshape(1, -1, 1, 1)

    def dconv(x, w, b):
        y = jax.lax.conv_general_dilated(
            x, w.reshape(w.shape[0], 1, 3, 3), (1, 1), ((1, 1), (1, 1)),
            dimension_numbers=('NCHW', 'OIHW', 'NCHW'),
            feature_group_count=w.shape[0], precision=HIGH)
        return y + b.reshape(1, -1, 1, 1)

    def sg3(x):
        c = x.shape[1] // 3
        return x[:, :c] * x[:, c:2 * c] + x[:, 2 * c:]

    x = ln(inp, P['ln1_w'], P['ln1_b'])
    sk1 = c1x1(x, P['skip1_w'], P['skip1_b'])
    t = sg3(dconv(c1x1(x, P['c1_w1'], P['c1_b1']), P['c1_wdw'], P['c1_bdw']))
    t = sg3(dconv(c1x1(t, P['c2_w1'], P['c2_b1']), P['c2_wdw'], P['c2_bdw']))
    x = t * sk1
    pooled = jnp.mean(x, axis=(2, 3), keepdims=True)
    att = c1x1(pooled, P['sca_w'], P['sca_b'])
    x = x * att
    x = c1x1(x, P['conv3_w'], P['conv3_b'])
    y = inp + x * P['beta'].reshape(1, -1, 1, 1)

    xn = ln(y, P['ln2_w'], P['ln2_b'])
    sk2 = c1x1(xn, P['skip2_w'], P['skip2_b'])
    x = sg3(c1x1(xn, P['conv4_w'], P['conv4_b']))
    x = sg3(c1x1(x, P['conv5_w'], P['conv5_b']))
    x = x * sk2
    x = c1x1(x, P['conv6_w'], P['conv6_b'])
    return y + x * P['gamma'].reshape(1, -1, 1, 1)


# ---------------------------------------------------------------------------
# Deterministic parameter init (shapes from DAFBlock.__init__, DW/FFN expand 3)
# ---------------------------------------------------------------------------
def init_params(key, c):
    C3 = 3 * c
    names_shapes = [
        ("ln1_w", (c,)), ("ln1_b", (c,)),
        ("skip1_w", (c, c)), ("skip1_b", (c,)),
        ("c1_w1", (C3, c)), ("c1_b1", (C3,)), ("c1_wdw", (C3, 3, 3)), ("c1_bdw", (C3,)),
        ("c2_w1", (C3, c)), ("c2_b1", (C3,)), ("c2_wdw", (C3, 3, 3)), ("c2_bdw", (C3,)),
        ("sca_w", (c, c)), ("sca_b", (c,)),
        ("conv3_w", (c, c)), ("conv3_b", (c,)),
        ("beta", (c,)),
        ("ln2_w", (c,)), ("ln2_b", (c,)),
        ("conv4_w", (C3, c)), ("conv4_b", (C3,)),
        ("conv5_w", (C3, c)), ("conv5_b", (C3,)),
        ("skip2_w", (c, c)), ("skip2_b", (c,)),
        ("conv6_w", (c, c)), ("conv6_b", (c,)),
        ("gamma", (c,)),
    ]
    keys = jax.random.split(key, len(names_shapes))
    P = {}
    for (name, shape), k in zip(names_shapes, keys):
        P[name] = 0.1 * jax.random.normal(k, shape, jnp.float32)
    P["ln1_w"] = 1.0 + P["ln1_w"]
    P["ln2_w"] = 1.0 + P["ln2_w"]
    # TODO(synk): PyTorch inits beta/gamma to zeros (output would equal input);
    # use small nonzero values here so the full datapath is exercised.
    P["beta"] = 3.0 * P["beta"]
    P["gamma"] = 3.0 * P["gamma"]
    return P


if __name__ == "__main__":
    N, C, H, W = 2, 4, 16, 16
    key = jax.random.PRNGKey(0)
    kp, kx = jax.random.split(key)
    P = init_params(kp, C)
    x = jax.random.normal(kx, (N, C, H, W), jnp.float32)

    out = daf_block_pallas(x, P)
    jax.block_until_ready(out)

    ref = daf_block_reference(x, P)
    err = float(jnp.max(jnp.abs(out - ref)))
    assert out.shape == (N, C, H, W)
    assert err < 1e-2, f"mismatch vs reference: max abs err = {err}"
    print("KERNEL_OK")
</pallas_src>

<mosaic_0001>
module attributes {stable_mosaic.version = 11 : i64} {
  func.func @daf_kernel(%arg0: i32, %arg1: memref<1x8x256xf32, #tpu.memory_space<vmem>>, %arg2: memref<136x8xf32, #tpu.memory_space<vmem>>, %arg3: memref<136x1xf32, #tpu.memory_space<vmem>>, %arg4: memref<48x9xf32, #tpu.memory_space<vmem>>, %arg5: memref<48x1xf32, #tpu.memory_space<vmem>>, %arg6: memref<48x1xf32, #tpu.memory_space<vmem>>, %arg7: memref<9x1x256xf32, #tpu.memory_space<vmem>>, %arg8: memref<1x4x256xf32, #tpu.memory_space<vmem>>) attributes {dimension_semantics = [#tpu.dimension_semantics<parallel>], iteration_bounds = array<i64: 2>, scalar_prefetch = 0 : i64, scratch_operands = 0 : i64, tpu.core_type = #tpu.core_type<tc>, window_params = [{transform_indices = @transform_0, window_bounds = array<i64: 1, 8, 256>}, {pipeline_mode = #tpu.pipeline_mode<synchronous>, transform_indices = @transform_1, window_bounds = array<i64: 136, 8>}, {pipeline_mode = #tpu.pipeline_mode<synchronous>, transform_indices = @transform_2, window_bounds = array<i64: 136, 1>}, {pipeline_mode = #tpu.pipeline_mode<synchronous>, transform_indices = @transform_3, window_bounds = array<i64: 48, 9>}, {pipeline_mode = #tpu.pipeline_mode<synchronous>, transform_indices = @transform_4, window_bounds = array<i64: 48, 1>}, {pipeline_mode = #tpu.pipeline_mode<synchronous>, transform_indices = @transform_5, window_bounds = array<i64: 48, 1>}, {pipeline_mode = #tpu.pipeline_mode<synchronous>, transform_indices = @transform_6, window_bounds = array<i64: 9, 1, 256>}, {transform_indices = @transform_7, window_bounds = array<i64: 1, 4, 256>}]} {
    %c0 = arith.constant 0 : index
    %c0_0 = arith.constant 0 : index
    %c0_1 = arith.constant 0 : index
    %0 = vector.load %arg1[%c0, %c0_0, %c0_1] : memref<1x8x256xf32, #tpu.memory_space<vmem>>, vector<1x8x256xf32>
    %1 = vector.shape_cast %0 : vector<1x8x256xf32> to vector<8x256xf32>
    %cst = arith.constant dense<0.000000e+00> : vector<256xf32>
    %2 = vector.multi_reduction <add>, %1, %cst [0] : vector<8x256xf32> to vector<256xf32>
    %3 = vector.shape_cast %2 : vector<256xf32> to vector<1x256xf32>
    %4 = arith.mulf %1, %1 : vector<8x256xf32>
    %cst_2 = arith.constant dense<0.000000e+00> : vector<256xf32>
    %5 = vector.multi_reduction <add>, %4, %cst_2 [0] : vector<8x256xf32> to vector<256xf32>
    %6 = vector.shape_cast %5 : vector<256xf32> to vector<1x256xf32>
    %cst_3 = arith.constant 2.500000e-01 : f32
    %7 = vector.broadcast %cst_3 : f32 to vector<1x256xf32>
    %8 = arith.mulf %3, %7 : vector<1x256xf32>
    %cst_4 = arith.constant 2.500000e-01 : f32
    %9 = vector.broadcast %cst_4 : f32 to vector<1x256xf32>
    %10 = arith.mulf %6, %9 : vector<1x256xf32>
    %11 = arith.mulf %8, %8 : vector<1x256xf32>
    %12 = arith.subf %10, %11 : vector<1x256xf32>
    %c0_5 = arith.constant 0 : index
    %c0_6 = arith.constant 0 : index
    %13 = vector.load %arg6[%c0_5, %c0_6] : memref<48x1xf32, #tpu.memory_space<vmem>>, vector<8x1xf32>
    %14 = vector.broadcast %8 : vector<1x256xf32> to vector<8x256xf32>
    %15 = arith.subf %1, %14 : vector<8x256xf32>
    %cst_7 = arith.constant 9.99999997E-7 : f32
    %16 = vector.broadcast %cst_7 : f32 to vector<1x256xf32>
    %17 = arith.addf %12, %16 : vector<1x256xf32>
    %18 = math.rsqrt %17 : vector<1x256xf32>
    %19 = vector.broadcast %18 : vector<1x256xf32> to vector<8x256xf32>
    %20 = arith.mulf %15, %19 : vector<8x256xf32>
    %21 = vector.broadcast %13 : vector<8x1xf32> to vector<8x256xf32>
    %22 = arith.mulf %21, %20 : vector<8x256xf32>
    %c8 = arith.constant 8 : index
    %c0_8 = arith.constant 0 : index
    %23 = vector.load %arg6[%c8, %c0_8] : memref<48x1xf32, #tpu.memory_space<vmem>>, vector<8x1xf32>
    %24 = vector.broadcast %23 : vector<8x1xf32> to vector<8x256xf32>
    %25 = arith.addf %22, %24 : vector<8x256xf32>
    %c0_9 = arith.constant 0 : index
    %c0_10 = arith.constant 0 : index
    %26 = vector.load %arg2[%c0_9, %c0_10] : memref<136x8xf32, #tpu.memory_space<vmem>>, vector<32x8xf32>
    %cst_11 = arith.constant dense<0.000000e+00> : vector<32x256xf32>
    %27 = tpu.matmul %26, %25, %cst_11 {dimension_numbers = #tpu.dot_dimension_numbers<[1], [0], [0], [1], [0, 0, 1, 1], [], []>} : vector<32x8xf32>, vector<8x256xf32>, vector<32x256xf32> -> vector<32x256xf32>
    %c0_12 = arith.constant 0 : index
    %c0_13 = arith.constant 0 : index
    %28 = vector.load %arg3[%c0_12, %c0_13] : memref<136x1xf32, #tpu.memory_space<vmem>>, vector<32x1xf32>
    %29 = vector.broadcast %28 : vector<32x1xf32> to vector<32x256xf32>
    %30 = arith.addf %27, %29 : vector<32x256xf32>
    %31 = vector.extract_strided_slice %30 {offsets = [0, 0], sizes = [8, 256], strides = [1, 1]} : vector<32x256xf32> to vector<8x256xf32>
    %32 = vector.extract_strided_slice %30 {offsets = [8, 0], sizes = [8, 256], strides = [1, 1]} : vector<32x256xf32> to vector<8x256xf32>
    %c0_14 = arith.constant 0 : index
    %c4 = arith.constant 4 : index
    %33 = vector.load %arg4[%c0_14, %c4] : memref<48x9xf32, #tpu.memory_space<vmem>>, vector<8x1xf32>
    %34 = vector.broadcast %33 : vector<8x1xf32> to vector<8x256xf32>
    %35 = arith.mulf %34, %32 : vector<8x256xf32>
    %c17_i32 = arith.constant 17 : i32
    %36 = tpu.dynamic_rotate %32 by %c17_i32 dim 1 : vector<8x256xf32>, i32 -> vector<8x256xf32>
    %c0_15 = arith.constant 0 : index
    %c0_16 = arith.constant 0 : index
    %37 = vector.load %arg4[%c0_15, %c0_16] : memref<48x9xf32, #tpu.memory_space<vmem>>, vector<8x1xf32>
    %c0_17 = arith.constant 0 : index
    %c0_18 = arith.constant 0 : index
    %c0_19 = arith.constant 0 : index
    %38 = vector.load %arg7[%c0_17, %c0_18, %c0_19] : memref<9x1x256xf32, #tpu.memory_space<vmem>>, vector<1x1x256xf32>
    %39 = vector.shape_cast %38 : vector<1x1x256xf32> to vector<1x256xf32>
    %40 = vector.broadcast %39 : vector<1x256xf32> to vector<8x256xf32>
    %41 = arith.mulf %40, %36 : vector<8x256xf32>
    %42 = vector.broadcast %37 : vector<8x1xf32> to vector<8x256xf32>
    %43 = arith.mulf %42, %41 : vector<8x256xf32>
    %44 = arith.addf %35, %43 : vector<8x256xf32>
    %c16_i32 = arith.constant 16 : i32
    %45 = tpu.dynamic_rotate %32 by %c16_i32 dim 1 : vector<8x256xf32>, i32 -> vector<8x256xf32>
    %c0_20 = arith.constant 0 : index
    %c1 = arith.constant 1 : index
    %46 = vector.load %arg4[%c0_20, %c1] : memref<48x9xf32, #tpu.memory_space<vmem>>, vector<8x1xf32>
    %c1_21 = arith.constant 1 : index
    %c0_22 = arith.constant 0 : index
    %c0_23 = arith.constant 0 : index
    %47 = vector.load %arg7[%c1_21, %c0_22, %c0_23] : memref<9x1x256xf32, #tpu.memory_space<vmem>>, vector<1x1x256xf32>
    %48 = vector.shape_cast %47 : vector<1x1x256xf32> to vector<1x256xf32>
    %49 = vector.broadcast %48 : vector<1x256xf32> to vector<8x256xf32>
    %50 = arith.mulf %49, %45 : vector<8x256xf32>
    %51 = vector.broadcast %46 : vector<8x1xf32> to vector<8x256xf32>
    %52 = arith.mulf %51, %50 : vector<8x256xf32>
    %53 = arith.addf %44, %52 : vector<8x256xf32>
    %c15_i32 = arith.constant 15 : i32
    %54 = tpu.dynamic_rotate %32 by %c15_i32 dim 1 : vector<8x256xf32>, i32 -> vector<8x256xf32>
    %c0_24 = arith.constant 0 : index
    %c2 = arith.constant 2 : index
    %55 = vector.load %arg4[%c0_24, %c2] : memref<48x9xf32, #tpu.memory_space<vmem>>, vector<8x1xf32>
    %c2_25 = arith.constant 2 : index
    %c0_26 = arith.constant 0 : index
    %c0_27 = arith.constant 0 : index
    %56 = vector.load %arg7[%c2_25, %c0_26, %c0_27] : memref<9x1x256xf32, #tpu.memory_space<vmem>>, vector<1x1x256xf32>
    %57 = vector.shape_cast %56 : vector<1x1x256xf32> to vector<1x256xf32>
    %58 = vector.broadcast %57 : vector<1x256xf32> to vector<8x256xf32>
    %59 = arith.mulf %58, %54 : vector<8x256xf32>
    %60 = vector.broadcast %55 : vector<8x1xf32> to vector<8x256xf32>
    %61 = arith.mulf %60, %59 : vector<8x256xf32>
    %62 = arith.addf %53, %61 : vector<8x256xf32>
    %c1_i32 = arith.constant 1 : i32
    %63 = tpu.dynamic_rotate %32 by %c1_i32 dim 1 : vector<8x256xf32>, i32 -> vector<8x256xf32>
    %c0_28 = arith.constant 0 : index
    %c3 = arith.constant 3 : index
    %64 = vector.load %arg4[%c0_28, %c3] : memref<48x9xf32, #tpu.memory_space<vmem>>, vector<8x1xf32>
    %c3_29 = arith.constant 3 : index
    %c0_30 = arith.constant 0 : index
    %c0_31 = arith.constant 0 : index
    %65 = vector.load %arg7[%c3_29, %c0_30, %c0_31] : memref<9x1x256xf32, #tpu.memory_space<vmem>>, vector<1x1x256xf32>
    %66 = vector.shape_cast %65 : vector<1x1x256xf32> to vector<1x256xf32>
    %67 = vector.broadcast %66 : vector<1x256xf32> to vector<8x256xf32>
    %68 = arith.mulf %67, %63 : vector<8x256xf32>
    %69 = vector.broadcast %64 : vector<8x1xf32> to vector<8x256xf32>
    %70 = arith.mulf %69, %68 : vector<8x256xf32>
    %71 = arith.addf %62, %70 : vector<8x256xf32>
    %c255_i32 = arith.constant 255 : i32
    %72 = tpu.dynamic_rotate %32 by %c255_i32 dim 1 : vector<8x256xf32>, i32 -> vector<8x256xf32>
    %c0_32 = arith.constant 0 : index
    %c5 = arith.constant 5 : index
    %73 = vector.load %arg4[%c0_32, %c5] : memref<48x9xf32, #tpu.memory_space<vmem>>, vector<8x1xf32>
    %c5_33 = arith.constant 5 : index
    %c0_34 = arith.constant 0 : index
    %c0_35 = arith.constant 0 : index
    %74 = vector.load %arg7[%c5_33, %c0_34, %c0_35] : memref<9x1x256xf32, #tpu.memory_space<vmem>>, vector<1x1x256xf32>
    %75 = vector.shape_cast %74 : vector<1x1x256xf32> to vector<1x256xf32>
    %76 = vector.broadcast %75 : vector<1x256xf32> to vector<8x256xf32>
    %77 = arith.mulf %76, %72 : vector<8x256xf32>
    %78 = vector.broadcast %73 : vector<8x1xf32> to vector<8x256xf32>
    %79 = arith.mulf %78, %77 : vector<8x256xf32>
    %80 = arith.addf %71, %79 : vector<8x256xf32>
    %c241_i32 = arith.constant 241 : i32
    %81 = tpu.dynamic_rotate %32 by %c241_i32 dim 1 : vector<8x256xf32>, i32 -> vector<8x256xf32>
    %c0_36 = arith.constant 0 : index
    %c6 = arith.constant 6 : index
    %82 = vector.load %arg4[%c0_36, %c6] : memref<48x9xf32, #tpu.memory_space<vmem>>, vector<8x1xf32>
    %c6_37 = arith.constant 6 : index
    %c0_38 = arith.constant 0 : index
    %c0_39 = arith.constant 0 : index
    %83 = vector.load %arg7[%c6_37, %c0_38, %c0_39] : memref<9x1x256xf32, #tpu.memory_space<vmem>>, vector<1x1x256xf32>
    %84 = vector.shape_cast %83 : vector<1x1x256xf32> to vector<1x256xf32>
    %85 = vector.broadcast %84 : vector<1x256xf32> to vector<8x256xf32>
    %86 = arith.mulf %85, %81 : vector<8x256xf32>
    %87 = vector.broadcast %82 : vector<8x1xf32> to vector<8x256xf32>
    %88 = arith.mulf %87, %86 : vector<8x256xf32>
    %89 = arith.addf %80, %88 : vector<8x256xf32>
    %c240_i32 = arith.constant 240 : i32
    %90 = tpu.dynamic_rotate %32 by %c240_i32 dim 1 : vector<8x256xf32>, i32 -> vector<8x256xf32>
    %c0_40 = arith.constant 0 : index
    %c7 = arith.constant 7 : index
    %91 = vector.load %arg4[%c0_40, %c7] : memref<48x9xf32, #tpu.memory_space<vmem>>, vector<8x1xf32>
    %c7_41 = arith.constant 7 : index
    %c0_42 = arith.constant 0 : index
    %c0_43 = arith.constant 0 : index
    %92 = vector.load %arg7[%c7_41, %c0_42, %c0_43] : memref<9x1x256xf32, #tpu.memory_space<vmem>>, vector<1x1x256xf32>
    %93 = vector.shape_cast %92 : vector<1x1x256xf32> to vector<1x256xf32>
    %94 = vector.broadcast %93 : vector<1x256xf32> to vector<8x256xf32>
    %95 = arith.mulf %94, %90 : vector<8x256xf32>
    %96 = vector.broadcast %91 : vector<8x1xf32> to vector<8x256xf32>
    %97 = arith.mulf %96, %95 : vector<8x256xf32>
    %98 = arith.addf %89, %97 : vector<8x256xf32>
    %c239_i32 = arith.constant 239 : i32
    %99 = tpu.dynamic_rotate %32 by %c239_i32 dim 1 : vector<8x256xf32>, i32 -> vector<8x256xf32>
    %c0_44 = arith.constant 0 : index
    %c8_45 = arith.constant 8 : index
    %100 = vector.load %arg4[%c0_44, %c8_45] : memref<48x9xf32, #tpu.memory_space<vmem>>, vector<8x1xf32>
    %c8_46 = arith.constant 8 : index
    %c0_47 = arith.constant 0 : index
    %c0_48 = arith.constant 0 : index
    %101 = vector.load %arg7[%c8_46, %c0_47, %c0_48] : memref<9x1x256xf32, #tpu.memory_space<vmem>>, vector<1x1x256xf32>
    %102 = vector.shape_cast %101 : vector<1x1x256xf32> to vector<1x256xf32>
    %103 = vector.broadcast %102 : vector<1x256xf32> to vector<8x256xf32>
    %104 = arith.mulf %103, %99 : vector<8x256xf32>
    %105 = vector.broadcast %100 : vector<8x1xf32> to vector<8x256xf32>
    %106 = arith.mulf %105, %104 : vector<8x256xf32>
    %107 = arith.addf %98, %106 : vector<8x256xf32>
    %c0_49 = arith.constant 0 : index
    %c0_50 = arith.constant 0 : index
    %108 = vector.load %arg5[%c0_49, %c0_50] : memref<48x1xf32, #tpu.memory_space<vmem>>, vector<8x1xf32>
    %109 = vector.broadcast %108 : vector<8x1xf32> to vector<8x256xf32>
    %110 = arith.addf %107, %109 : vector<8x256xf32>
    %111 = vector.extract_strided_slice %30 {offsets = [16, 0], sizes = [8, 256], strides = [1, 1]} : vector<32x256xf32> to vector<8x256xf32>
    %c8_51 = arith.constant 8 : index
    %c4_52 = arith.constant 4 : index
    %112 = vector.load %arg4[%c8_51, %c4_52] : memref<48x9xf32, #tpu.memory_space<vmem>>, vector<8x1xf32>
    %113 = vector.broadcast %112 : vector<8x1xf32> to vector<8x256xf32>
    %114 = arith.mulf %113, %111 : vector<8x256xf32>
    %c17_i32_53 = arith.constant 17 : i32
    %115 = tpu.dynamic_rotate %111 by %c17_i32_53 dim 1 : vector<8x256xf32>, i32 -> vector<8x256xf32>
    %c8_54 = arith.constant 8 : index
    %c0_55 = arith.constant 0 : index
    %116 = vector.load %arg4[%c8_54, %c0_55] : memref<48x9xf32, #tpu.memory_space<vmem>>, vector<8x1xf32>
    %c0_56 = arith.constant 0 : index
    %c0_57 = arith.constant 0 : index
    %c0_58 = arith.constant 0 : index
    %117 = vector.load %arg7[%c0_56, %c0_57, %c0_58] : memref<9x1x256xf32, #tpu.memory_space<vmem>>, vector<1x1x256xf32>
    %118 = vector.shape_cast %117 : vector<1x1x256xf32> to vector<1x256xf32>
    %119 = vector.broadcast %118 : vector<1x256xf32> to vector<8x256xf32>
    %120 = arith.mulf %119, %115 : vector<8x256xf32>
    %121 = vector.broadcast %116 : vector<8x1xf32> to vector<8x256xf32>
    %122 = arith.mulf %121, %120 : vector<8x256xf32>
    %123 = arith.addf %114, %122 : vector<8x256xf32>
    %c16_i32_59 = arith.constant 16 : i32
    %124 = tpu.dynamic_rotate %111 by %c16_i32_59 dim 1 : vector<8x256xf32>, i32 -> vector<8x256xf32>
    %c8_60 = arith.constant 8 : index
    %c1_61 = arith.constant 1 : index
    %125 = vector.load %arg4[%c8_60, %c1_61] : memref<48x9xf32, #tpu.memory_space<vmem>>, vector<8x1xf32>
    %c1_62 = arith.constant 1 : index
    %c0_63 = arith.constant 0 : index
    %c0_64 = arith.constant 0 : index
    %126 = vector.load %arg7[%c1_62, %c0_63, %c0_64] : memref<9x1x256xf32, #tpu.memory_space<vmem>>, vector<1x1x256xf32>
    %127 = vector.shape_cast %126 : vector<1x1x256xf32> to vector<1x256xf32>
    %128 = vector.broadcast %127 : vector<1x256xf32> to vector<8x256xf32>
    %129 = arith.mulf %128, %124 : vector<8x256xf32>
    %130 = vector.broadcast %125 : vector<8x1xf32> to vector<8x256xf32>
    %131 = arith.mulf %130, %129 : vector<8x256xf32>
    %132 = arith.addf %123, %131 : vector<8x256xf32>
    %c15_i32_65 = arith.constant 15 : i32
    %133 = tpu.dynamic_rotate %111 by %c15_i32_65 dim 1 : vector<8x256xf32>, i32 -> vector<8x256xf32>
    %c8_66 = arith.constant 8 : index
    %c2_67 = arith.constant 2 : index
    %134 = vector.load %arg4[%c8_66, %c2_67] : memref<48x9xf32, #tpu.memory_space<vmem>>, vector<8x1xf32>
    %c2_68 = arith.constant 2 : index
    %c0_69 = arith.constant 0 : index
    %c0_70 = arith.constant 0 : index
    %135 = vector.load %arg7[%c2_68, %c0_69, %c0_70] : memref<9x1x256xf32, #tpu.memory_space<vmem>>, vector<1x1x256xf32>
    %136 = vector.shape_cast %135 : vector<1x1x256xf32> to vector<1x256xf32>
    %137 = vector.broadcast %136 : vector<1x256xf32> to vector<8x256xf32>
    %138 = arith.mulf %137, %133 : vector<8x256xf32>
    %139 = vector.broadcast %134 : vector<8x1xf32> to vector<8x256xf32>
    %140 = arith.mulf %139, %138 : vector<8x256xf32>
    %141 = arith.addf %132, %140 : vector<8x256xf32>
    %c1_i32_71 = arith.constant 1 : i32
    %142 = tpu.dynamic_rotate %111 by %c1_i32_71 dim 1 : vector<8x256xf32>, i32 -> vector<8x256xf32>
    %c8_72 = arith.constant 8 : index
    %c3_73 = arith.constant 3 : index
    %143 = vector.load %arg4[%c8_72, %c3_73] : memref<48x9xf32, #tpu.memory_space<vmem>>, vector<8x1xf32>
    %c3_74 = arith.constant 3 : index
    %c0_75 = arith.constant 0 : index
    %c0_76 = arith.constant 0 : index
    %144 = vector.load %arg7[%c3_74, %c0_75, %c0_76] : memref<9x1x256xf32, #tpu.memory_space<vmem>>, vector<1x1x256xf32>
    %145 = vector.shape_cast %144 : vector<1x1x256xf32> to vector<1x256xf32>
    %146 = vector.broadcast %145 : vector<1x256xf32> to vector<8x256xf32>
    %147 = arith.mulf %146, %142 : vector<8x256xf32>
    %148 = vector.broadcast %143 : vector<8x1xf32> to vector<8x256xf32>
    %149 = arith.mulf %148, %147 : vector<8x256xf32>
    %150 = arith.addf %141, %149 : vector<8x256xf32>
    %c255_i32_77 = arith.constant 255 : i32
    %151 = tpu.dynamic_rotate %111 by %c255_i32_77 dim 1 : vector<8x256xf32>, i32 -> vector<8x256xf32>
    %c8_78 = arith.constant 8 : index
    %c5_79 = arith.constant 5 : index
    %152 = vector.load %arg4[%c8_78, %c5_79] : memref<48x9xf32, #tpu.memory_space<vmem>>, vector<8x1xf32>
    %c5_80 = arith.constant 5 : index
    %c0_81 = arith.constant 0 : index
    %c0_82 = arith.constant 0 : index
    %153 = vector.load %arg7[%c5_80, %c0_81, %c0_82] : memref<9x1x256xf32, #tpu.memory_space<vmem>>, vector<1x1x256xf32>
    %154 = vector.shape_cast %153 : vector<1x1x256xf32> to vector<1x256xf32>
    %155 = vector.broadcast %154 : vector<1x256xf32> to vector<8x256xf32>
    %156 = arith.mulf %155, %151 : vector<8x256xf32>
    %157 = vector.broadcast %152 : vector<8x1xf32> to vector<8x256xf32>
    %158 = arith.mulf %157, %156 : vector<8x256xf32>
    %159 = arith.addf %150, %158 : vector<8x256xf32>
    %c241_i32_83 = arith.constant 241 : i32
    %160 = tpu.dynamic_rotate %111 by %c241_i32_83 dim 1 : vector<8x256xf32>, i32 -> vector<8x256xf32>
    %c8_84 = arith.constant 8 : index
    %c6_85 = arith.constant 6 : index
    %161 = vector.load %arg4[%c8_84, %c6_85] : memref<48x9xf32, #tpu.memory_space<vmem>>, vector<8x1xf32>
    %c6_86 = arith.constant 6 : index
    %c0_87 = arith.constant 0 : index
    %c0_88 = arith.constant 0 : index
    %162 = vector.load %arg7[%c6_86, %c0_87, %c0_88] : memref<9x1x256xf32, #tpu.memory_space<vmem>>, vector<1x1x256xf32>
    %163 = vector.shape_cast %162 : vector<1x1x256xf32> to vector<1x256xf32>
    %164 = vector.broadcast %163 : vector<1x256xf32> to vector<8x256xf32>
    %165 = arith.mulf %164, %160 : vector<8x256xf32>
    %166 = vector.broadcast %161 : vector<8x1xf32> to vector<8x256xf32>
    %167 = arith.mulf %166, %165 : vector<8x256xf32>
    %168 = arith.addf %159, %167 : vector<8x256xf32>
    %c240_i32_89 = arith.constant 240 : i32
    %169 = tpu.dynamic_rotate %111 by %c240_i32_89 dim 1 : vector<8x256xf32>, i32 -> vector<8x256xf32>
    %c8_90 = arith.constant 8 : index
    %c7_91 = arith.constant 7 : index
    %170 = vector.load %arg4[%c8_90, %c7_91] : memref<48x9xf32, #tpu.memory_space<vmem>>, vector<8x1xf32>
    %c7_92 = arith.constant 7 : index
    %c0_93 = arith.constant 0 : index
    %c0_94 = arith.constant 0 : index
    %171 = vector.load %arg7[%c7_92, %c0_93, %c0_94] : memref<9x1x256xf32, #tpu.memory_space<vmem>>, vector<1x1x256xf32>
    %172 = vector.shape_cast %171 : vector<1x1x256xf32> to vector<1x256xf32>
    %173 = vector.broadcast %172 : vector<1x256xf32> to vector<8x256xf32>
    %174 = arith.mulf %173, %169 : vector<8x256xf32>
    %175 = vector.broadcast %170 : vector<8x1xf32> to vector<8x256xf32>
    %176 = arith.mulf %175, %174 : vector<8x256xf32>
    %177 = arith.addf %168, %176 : vector<8x256xf32>
    %c239_i32_95 = arith.constant 239 : i32
    %178 = tpu.dynamic_rotate %111 by %c239_i32_95 dim 1 : vector<8x256xf32>, i32 -> vector<8x256xf32>
    %c8_96 = arith.constant 8 : index
    %c8_97 = arith.constant 8 : index
    %179 = vector.load %arg4[%c8_96, %c8_97] : memref<48x9xf32, #tpu.memory_space<vmem>>, vector<8x1xf32>
    %c8_98 = arith.constant 8 : index
    %c0_99 = arith.constant 0 : index
    %c0_100 = arith.constant 0 : index
    %180 = vector.load %arg7[%c8_98, %c0_99, %c0_100] : memref<9x1x256xf32, #tpu.memory_space<vmem>>, vector<1x1x256xf32>
    %181 = vector.shape_cast %180 : vector<1x1x256xf32> to vector<1x256xf32>
    %182 = vector.broadcast %181 : vector<1x256xf32> to vector<8x256xf32>
    %183 = arith.mulf %182, %178 : vector<8x256xf32>
    %184 = vector.broadcast %179 : vector<8x1xf32> to vector<8x256xf32>
    %185 = arith.mulf %184, %183 : vector<8x256xf32>
    %186 = arith.addf %177, %185 : vector<8x256xf32>
    %c8_101 = arith.constant 8 : index
    %c0_102 = arith.constant 0 : index
    %187 = vector.load %arg5[%c8_101, %c0_102] : memref<48x1xf32, #tpu.memory_space<vmem>>, vector<8x1xf32>
    %188 = vector.broadcast %187 : vector<8x1xf32> to vector<8x256xf32>
    %189 = arith.addf %186, %188 : vector<8x256xf32>
    %190 = vector.extract_strided_slice %30 {offsets = [24, 0], sizes = [8, 256], strides = [1, 1]} : vector<32x256xf32> to vector<8x256xf32>
    %c16 = arith.constant 16 : index
    %c4_103 = arith.constant 4 : index
    %191 = vector.load %arg4[%c16, %c4_103] : memref<48x9xf32, #tpu.memory_space<vmem>>, vector<8x1xf32>
    %192 = vector.broadcast %191 : vector<8x1xf32> to vector<8x256xf32>
    %193 = arith.mulf %192, %190 : vector<8x256xf32>
    %c17_i32_104 = arith.constant 17 : i32
    %194 = tpu.dynamic_rotate %190 by %c17_i32_104 dim 1 : vector<8x256xf32>, i32 -> vector<8x256xf32>
    %c16_105 = arith.constant 16 : index
    %c0_106 = arith.constant 0 : index
    %195 = vector.load %arg4[%c16_105, %c0_106] : memref<48x9xf32, #tpu.memory_space<vmem>>, vector<8x1xf32>
    %c0_107 = arith.constant 0 : index
    %c0_108 = arith.constant 0 : index
    %c0_109 = arith.constant 0 : index
    %196 = vector.load %arg7[%c0_107, %c0_108, %c0_109] : memref<9x1x256xf32, #tpu.memory_space<vmem>>, vector<1x1x256xf32>
    %197 = vector.shape_cast %196 : vector<1x1x256xf32> to vector<1x256xf32>
    %198 = vector.broadcast %197 : vector<1x256xf32> to vector<8x256xf32>
    %199 = arith.mulf %198, %194 : vector<8x256xf32>
    %200 = vector.broadcast %195 : vector<8x1xf32> to vector<8x256xf32>
    %201 = arith.mulf %200, %199 : vector<8x256xf32>
    %202 = arith.addf %193, %201 : vector<8x256xf32>
    %c16_i32_110 = arith.constant 16 : i32
    %203 = tpu.dynamic_rotate %190 by %c16_i32_110 dim 1 : vector<8x256xf32>, i32 -> vector<8x256xf32>
    %c16_111 = arith.constant 16 : index
    %c1_112 = arith.constant 1 : index
    %204 = vector.load %arg4[%c16_111, %c1_112] : memref<48x9xf32, #tpu.memory_space<vmem>>, vector<8x1xf32>
    %c1_113 = arith.constant 1 : index
    %c0_114 = arith.constant 0 : index
    %c0_115 = arith.constant 0 : index
    %205 = vector.load %arg7[%c1_113, %c0_114, %c0_115] : memref<9x1x256xf32, #tpu.memory_space<vmem>>, vector<1x1x256xf32>
    %206 = vector.shape_cast %205 : vector<1x1x256xf32> to vector<1x256xf32>
    %207 = vector.broadcast %206 : vector<1x256xf32> to vector<8x256xf32>
    %208 = arith.mulf %207, %203 : vector<8x256xf32>
    %209 = vector.broadcast %204 : vector<8x1xf32> to vector<8x256xf32>
    %210 = arith.mulf %209, %208 : vector<8x256xf32>
    %211 = arith.addf %202, %210 : vector<8x256xf32>
    %c15_i32_116 = arith.constant 15 : i32
    %212 = tpu.dynamic_rotate %190 by %c15_i32_116 dim 1 : vector<8x256xf32>, i32 -> vector<8x256xf32>
    %c16_117 = arith.constant 16 : index
    %c2_118 = arith.constant 2 : index
    %213 = vector.load %arg4[%c16_117, %c2_118] : memref<48x9xf32, #tpu.memory_space<vmem>>, vector<8x1xf32>
    %c2_119 = arith.constant 2 : index
    %c0_120 = arith.constant 0 : index
    %c0_121 = arith.constant 0 : index
    %214 = vector.load %arg7[%c2_119, %c0_120, %c0_121] : memref<9x1x256xf32, #tpu.memory_space<vmem>>, vector<1x1x256xf32>
    %215 = vector.shape_cast %214 : vector<1x1x256xf32> to vector<1x256xf32>
    %216 = vector.broadcast %215 : vector<1x256xf32> to vector<8x256xf32>
    %217 = arith.mulf %216, %212 : vector<8x256xf32>
    %218 = vector.broadcast %213 : vector<8x1xf32> to vector<8x256xf32>
    %219 = arith.mulf %218, %217 : vector<8x256xf32>
    %220 = arith.addf %211, %219 : vector<8x256xf32>
    %c1_i32_122 = arith.constant 1 : i32
    %221 = tpu.dynamic_rotate %190 by %c1_i32_122 dim 1 : vector<8x256xf32>, i32 -> vector<8x256xf32>
    %c16_123 = arith.constant 16 : index
    %c3_124 = arith.constant 3 : index
    %222 = vector.load %arg4[%c16_123, %c3_124] : memref<48x9xf32, #tpu.memory_space<vmem>>, vector<8x1xf32>
    %c3_125 = arith.constant 3 : index
    %c0_126 = arith.constant 0 : index
    %c0_127 = arith.constant 0 : index
    %223 = vector.load %arg7[%c3_125, %c0_126, %c0_127] : memref<9x1x256xf32, #tpu.memory_space<vmem>>, vector<1x1x256xf32>
    %224 = vector.shape_cast %223 : vector<1x1x256xf32> to vector<1x256xf32>
    %225 = vector.broadcast %224 : vector<1x256xf32> to vector<8x256xf32>
    %226 = arith.mulf %225, %221 : vector<8x256xf32>
    %227 = vector.broadcast %222 : vector<8x1xf32> to vector<8x256xf32>
    %228 = arith.mulf %227, %226 : vector<8x256xf32>
    %229 = arith.addf %220, %228 : vector<8x256xf32>
    %c255_i32_128 = arith.constant 255 : i32
    %230 = tpu.dynamic_rotate %190 by %c255_i32_128 dim 1 : vector<8x256xf32>, i32 -> vector<8x256xf32>
    %c16_129 = arith.constant 16 : index
    %c5_130 = arith.constant 5 : index
    %231 = vector.load %arg4[%c16_129, %c5_130] : memref<48x9xf32, #tpu.memory_space<vmem>>, vector<8x1xf32>
    %c5_131 = arith.constant 5 : index
    %c0_132 = arith.constant 0 : index
    %c0_133 = arith.constant 0 : index
    %232 = vector.load %arg7[%c5_131, %c0_132, %c0_133] : memref<9x1x256xf32, #tpu.memory_space<vmem>>, vector<1x1x256xf32>
    %233 = vector.shape_cast %232 : vector<1x1x256xf32> to vector<1x256xf32>
    %234 = vector.broadcast %233 : vector<1x256xf32> to vector<8x256xf32>
    %235 = arith.mulf %234, %230 : vector<8x256xf32>
    %236 = vector.broadcast %231 : vector<8x1xf32> to vector<8x256xf32>
    %237 = arith.mulf %236, %235 : vector<8x256xf32>
    %238 = arith.addf %229, %237 : vector<8x256xf32>
    %c241_i32_134 = arith.constant 241 : i32
    %239 = tpu.dynamic_rotate %190 by %c241_i32_134 dim 1 : vector<8x256xf32>, i32 -> vector<8x256xf32>
    %c16_135 = arith.constant 16 : index
    %c6_136 = arith.constant 6 : index
    %240 = vector.load %arg4[%c16_135, %c6_136] : memref<48x9xf32, #tpu.memory_space<vmem>>, vector<8x1xf32>
    %c6_137 = arith.constant 6 : index
    %c0_138 = arith.constant 0 : index
    %c0_139 = arith.constant 0 : index
    %241 = vector.load %arg7[%c6_137, %c0_138, %c0_139] : memref<9x1x256xf32, #tpu.memory_space<vmem>>, vector<1x1x256xf32>
    %242 = vector.shape_cast %241 : vector<1x1x256xf32> to vector<1x256xf32>
    %243 = vector.broadcast %242 : vector<1x256xf32> to vector<8x256xf32>
    %244 = arith.mulf %243, %239 : vector<8x256xf32>
    %245 = vector.broadcast %240 : vector<8x1xf32> to vector<8x256xf32>
    %246 = arith.mulf %245, %244 : vector<8x256xf32>
    %247 = arith.addf %238, %246 : vector<8x256xf32>
    %c240_i32_140 = arith.constant 240 : i32
    %248 = tpu.dynamic_rotate %190 by %c240_i32_140 dim 1 : vector<8x256xf32>, i32 -> vector<8x256xf32>
    %c16_141 = arith.constant 16 : index
    %c7_142 = arith.constant 7 : index
    %249 = vector.load %arg4[%c16_141, %c7_142] : memref<48x9xf32, #tpu.memory_space<vmem>>, vector<8x1xf32>
    %c7_143 = arith.constant 7 : index
    %c0_144 = arith.constant 0 : index
    %c0_145 = arith.constant 0 : index
    %250 = vector.load %arg7[%c7_143, %c0_144, %c0_145] : memref<9x1x256xf32, #tpu.memory_space<vmem>>, vector<1x1x256xf32>
    %251 = vector.shape_cast %250 : vector<1x1x256xf32> to vector<1x256xf32>
    %252 = vector.broadcast %251 : vector<1x256xf32> to vector<8x256xf32>
    %253 = arith.mulf %252, %248 : vector<8x256xf32>
    %254 = vector.broadcast %249 : vector<8x1xf32> to vector<8x256xf32>
    %255 = arith.mulf %254, %253 : vector<8x256xf32>
    %256 = arith.addf %247, %255 : vector<8x256xf32>
    %c239_i32_146 = arith.constant 239 : i32
    %257 = tpu.dynamic_rotate %190 by %c239_i32_146 dim 1 : vector<8x256xf32>, i32 -> vector<8x256xf32>
    %c16_147 = arith.constant 16 : index
    %c8_148 = arith.constant 8 : index
    %258 = vector.load %arg4[%c16_147, %c8_148] : memref<48x9xf32, #tpu.memory_space<vmem>>, vector<8x1xf32>
    %c8_149 = arith.constant 8 : index
    %c0_150 = arith.constant 0 : index
    %c0_151 = arith.constant 0 : index
    %259 = vector.load %arg7[%c8_149, %c0_150, %c0_151] : memref<9x1x256xf32, #tpu.memory_space<vmem>>, vector<1x1x256xf32>
    %260 = vector.shape_cast %259 : vector<1x1x256xf32> to vector<1x256xf32>
    %261 = vector.broadcast %260 : vector<1x256xf32> to vector<8x256xf32>
    %262 = arith.mulf %261, %257 : vector<8x256xf32>
    %263 = vector.broadcast %258 : vector<8x1xf32> to vector<8x256xf32>
    %264 = arith.mulf %263, %262 : vector<8x256xf32>
    %265 = arith.addf %256, %264 : vector<8x256xf32>
    %c16_152 = arith.constant 16 : index
    %c0_153 = arith.constant 0 : index
    %266 = vector.load %arg5[%c16_152, %c0_153] : memref<48x1xf32, #tpu.memory_space<vmem>>, vector<8x1xf32>
    %267 = vector.broadcast %266 : vector<8x1xf32> to vector<8x256xf32>
    %268 = arith.addf %265, %267 : vector<8x256xf32>
    %269 = arith.mulf %110, %189 : vector<8x256xf32>
    %270 = arith.addf %269, %268 : vector<8x256xf32>
    %c32 = arith.constant 32 : index
    %c0_154 = arith.constant 0 : index
    %271 = vector.load %arg2[%c32, %c0_154] : memref<136x8xf32, #tpu.memory_space<vmem>>, vector<24x8xf32>
    %cst_155 = arith.constant dense<0.000000e+00> : vector<24x256xf32>
    %272 = tpu.matmul %271, %270, %cst_155 {dimension_numbers = #tpu.dot_dimension_numbers<[1], [0], [0], [1], [0, 0, 1, 1], [], []>} : vector<24x8xf32>, vector<8x256xf32>, vector<24x256xf32> -> vector<24x256xf32>
    %c32_156 = arith.constant 32 : index
    %c0_157 = arith.constant 0 : index
    %273 = vector.load %arg3[%c32_156, %c0_157] : memref<136x1xf32, #tpu.memory_space<vmem>>, vector<24x1xf32>
    %274 = vector.broadcast %273 : vector<24x1xf32> to vector<24x256xf32>
    %275 = arith.addf %272, %274 : vector<24x256xf32>
    %276 = vector.extract_strided_slice %275 {offsets = [0, 0], sizes = [8, 256], strides = [1, 1]} : vector<24x256xf32> to vector<8x256xf32>
    %c24 = arith.constant 24 : index
    %c4_158 = arith.constant 4 : index
    %277 = vector.load %arg4[%c24, %c4_158] : memref<48x9xf32, #tpu.memory_space<vmem>>, vector<8x1xf32>
    %278 = vector.broadcast %277 : vector<8x1xf32> to vector<8x256xf32>
    %279 = arith.mulf %278, %276 : vector<8x256xf32>
    %c17_i32_159 = arith.constant 17 : i32
    %280 = tpu.dynamic_rotate %276 by %c17_i32_159 dim 1 : vector<8x256xf32>, i32 -> vector<8x256xf32>
    %c24_160 = arith.constant 24 : index
    %c0_161 = arith.constant 0 : index
    %281 = vector.load %arg4[%c24_160, %c0_161] : memref<48x9xf32, #tpu.memory_space<vmem>>, vector<8x1xf32>
    %c0_162 = arith.constant 0 : index
    %c0_163 = arith.constant 0 : index
    %c0_164 = arith.constant 0 : index
    %282 = vector.load %arg7[%c0_162, %c0_163, %c0_164] : memref<9x1x256xf32, #tpu.memory_space<vmem>>, vector<1x1x256xf32>
    %283 = vector.shape_cast %282 : vector<1x1x256xf32> to vector<1x256xf32>
    %284 = vector.broadcast %283 : vector<1x256xf32> to vector<8x256xf32>
    %285 = arith.mulf %284, %280 : vector<8x256xf32>
    %286 = vector.broadcast %281 : vector<8x1xf32> to vector<8x256xf32>
    %287 = arith.mulf %286, %285 : vector<8x256xf32>
    %288 = arith.addf %279, %287 : vector<8x256xf32>
    %c16_i32_165 = arith.constant 16 : i32
    %289 = tpu.dynamic_rotate %276 by %c16_i32_165 dim 1 : vector<8x256xf32>, i32 -> vector<8x256xf32>
    %c24_166 = arith.constant 24 : index
    %c1_167 = arith.constant 1 : index
    %290 = vector.load %arg4[%c24_166, %c1_167] : memref<48x9xf32, #tpu.memory_space<vmem>>, vector<8x1xf32>
    %c1_168 = arith.constant 1 : index
    %c0_169 = arith.constant 0 : index
    %c0_170 = arith.constant 0 : index
    %291 = vector.load %arg7[%c1_168, %c0_169, %c0_170] : memref<9x1x256xf32, #tpu.memory_space<vmem>>, vector<1x1x256xf32>
    %292 = vector.shape_cast %291 : vector<1x1x256xf32> to vector<1x256xf32>
    %293 = vector.broadcast %292 : vector<1x256xf32> to vector<8x256xf32>
    %294 = arith.mulf %293, %289 : vector<8x256xf32>
    %295 = vector.broadcast %290 : vector<8x1xf32> to vector<8x256xf32>
    %296 = arith.mulf %295, %294 : vector<8x256xf32>
    %297 = arith.addf %288, %296 : vector<8x256xf32>
    %c15_i32_171 = arith.constant 15 : i32
    %298 = tpu.dynamic_rotate %276 by %c15_i32_171 dim 1 : vector<8x256xf32>, i32 -> vector<8x256xf32>
    %c24_172 = arith.constant 24 : index
    %c2_173 = arith.constant 2 : index
    %299 = vector.load %arg4[%c24_172, %c2_173] : memref<48x9xf32, #tpu.memory_space<vmem>>, vector<8x1xf32>
    %c2_174 = arith.constant 2 : index
    %c0_175 = arith.constant 0 : index
    %c0_176 = arith.constant 0 : index
    %300 = vector.load %arg7[%c2_174, %c0_175, %c0_176] : memref<9x1x256xf32, #tpu.memory_space<vmem>>, vector<1x1x256xf32>
    %301 = vector.shape_cast %300 : vector<1x1x256xf32> to vector<1x256xf32>
    %302 = vector.broadcast %301 : vector<1x256xf32> to vector<8x256xf32>
    %303 = arith.mulf %302, %298 : vector<8x256xf32>
    %304 = vector.broadcast %299 : vector<8x1xf32> to vector<8x256xf32>
    %305 = arith.mulf %304, %303 : vector<8x256xf32>
    %306 = arith.addf %297, %305 : vector<8x256xf32>
    %c1_i32_177 = arith.constant 1 : i32
    %307 = tpu.dynamic_rotate %276 by %c1_i32_177 dim 1 : vector<8x256xf32>, i32 -> vector<8x256xf32>
    %c24_178 = arith.constant 24 : index
    %c3_179 = arith.constant 3 : index
    %308 = vector.load %arg4[%c24_178, %c3_179] : memref<48x9xf32, #tpu.memory_space<vmem>>, vector<8x1xf32>
    %c3_180 = arith.constant 3 : index
    %c0_181 = arith.constant 0 : index
    %c0_182 = arith.constant 0 : index
    %309 = vector.load %arg7[%c3_180, %c0_181, %c0_182] : memref<9x1x256xf32, #tpu.memory_space<vmem>>, vector<1x1x256xf32>
    %310 = vector.shape_cast %309 : vector<1x1x256xf32> to vector<1x256xf32>
    %311 = vector.broadcast %310 : vector<1x256xf32> to vector<8x256xf32>
    %312 = arith.mulf %311, %307 : vector<8x256xf32>
    %313 = vector.broadcast %308 : vector<8x1xf32> to vector<8x256xf32>
    %314 = arith.mulf %313, %312 : vector<8x256xf32>
    %315 = arith.addf %306, %314 : vector<8x256xf32>
    %c255_i32_183 = arith.constant 255 : i32
    %316 = tpu.dynamic_rotate %276 by %c255_i32_183 dim 1 : vector<8x256xf32>, i32 -> vector<8x256xf32>
    %c24_184 = arith.constant 24 : index
    %c5_185 = arith.constant 5 : index
    %317 = vector.load %arg4[%c24_184, %c5_185] : memref<48x9xf32, #tpu.memory_space<vmem>>, vector<8x1xf32>
    %c5_186 = arith.constant 5 : index
    %c0_187 = arith.constant 0 : index
    %c0_188 = arith.constant 0 : index
    %318 = vector.load %arg7[%c5_186, %c0_187, %c0_188] : memref<9x1x256xf32, #tpu.memory_space<vmem>>, vector<1x1x256xf32>
    %319 = vector.shape_cast %318 : vector<1x1x256xf32> to vector<1x256xf32>
    %320 = vector.broadcast %319 : vector<1x256xf32> to vector<8x256xf32>
    %321 = arith.mulf %320, %316 : vector<8x256xf32>
    %322 = vector.broadcast %317 : vector<8x1xf32> to vector<8x256xf32>
    %323 = arith.mulf %322, %321 : vector<8x256xf32>
    %324 = arith.addf %315, %323 : vector<8x256xf32>
    %c241_i32_189 = arith.constant 241 : i32
    %325 = tpu.dynamic_rotate %276 by %c241_i32_189 dim 1 : vector<8x256xf32>, i32 -> vector<8x256xf32>
    %c24_190 = arith.constant 24 : index
    %c6_191 = arith.constant 6 : index
    %326 = vector.load %arg4[%c24_190, %c6_191] : memref<48x9xf32, #tpu.memory_space<vmem>>, vector<8x1xf32>
    %c6_192 = arith.constant 6 : index
    %c0_193 = arith.constant 0 : index
    %c0_194 = arith.constant 0 : index
    %327 = vector.load %arg7[%c6_192, %c0_193, %c0_194] : memref<9x1x256xf32, #tpu.memory_space<vmem>>, vector<1x1x256xf32>
    %328 = vector.shape_cast %327 : vector<1x1x256xf32> to vector<1x256xf32>
    %329 = vector.broadcast %328 : vector<1x256xf32> to vector<8x256xf32>
    %330 = arith.mulf %329, %325 : vector<8x256xf32>
    %331 = vector.broadcast %326 : vector<8x1xf32> to vector<8x256xf32>
    %332 = arith.mulf %331, %330 : vector<8x256xf32>
    %333 = arith.addf %324, %332 : vector<8x256xf32>
    %c240_i32_195 = arith.constant 240 : i32
    %334 = tpu.dynamic_rotate %276 by %c240_i32_195 dim 1 : vector<8x256xf32>, i32 -> vector<8x256xf32>
    %c24_196 = arith.constant 24 : index
    %c7_197 = arith.constant 7 : index
    %335 = vector.load %arg4[%c24_196, %c7_197] : memref<48x9xf32, #tpu.memory_space<vmem>>, vector<8x1xf32>
    %c7_198 = arith.constant 7 : index
    %c0_199 = arith.constant 0 : index
    %c0_200 = arith.constant 0 : index
    %336 = vector.load %arg7[%c7_198, %c0_199, %c0_200] : memref<9x1x256xf32, #tpu.memory_space<vmem>>, vector<1x1x256xf32>
    %337 = vector.shape_cast %336 : vector<1x1x256xf32> to vector<1x256xf32>
    %338 = vector.broadcast %337 : vector<1x256xf32> to vector<8x256xf32>
    %339 = arith.mulf %338, %334 : vector<8x256xf32>
    %340 = vector.broadcast %335 : vector<8x1xf32> to vector<8x256xf32>
    %341 = arith.mulf %340, %339 : vector<8x256xf32>
    %342 = arith.addf %333, %341 : vector<8x256xf32>
    %c239_i32_201 = arith.constant 239 : i32
    %343 = tpu.dynamic_rotate %276 by %c239_i32_201 dim 1 : vector<8x256xf32>, i32 -> vector<8x256xf32>
    %c24_202 = arith.constant 24 : index
    %c8_203 = arith.constant 8 : index
    %344 = vector.load %arg4[%c24_202, %c8_203] : memref<48x9xf32, #tpu.memory_space<vmem>>, vector<8x1xf32>
    %c8_204 = arith.constant 8 : index
    %c0_205 = arith.constant 0 : index
    %c0_206 = arith.constant 0 : index
    %345 = vector.load %arg7[%c8_204, %c0_205, %c0_206] : memref<9x1x256xf32, #tpu.memory_space<vmem>>, vector<1x1x256xf32>
    %346 = vector.shape_cast %345 : vector<1x1x256xf32> to vector<1x256xf32>
    %347 = vector.broadcast %346 : vector<1x256xf32> to vector<8x256xf32>
    %348 = arith.mulf %347, %343 : vector<8x256xf32>
    %349 = vector.broadcast %344 : vector<8x1xf32> to vector<8x256xf32>
    %350 = arith.mulf %349, %348 : vector<8x256xf32>
    %351 = arith.addf %342, %350 : vector<8x256xf32>
    %c24_207 = arith.constant 24 : index
    %c0_208 = arith.constant 0 : index
    %352 = vector.load %arg5[%c24_207, %c0_208] : memref<48x1xf32, #tpu.memory_space<vmem>>, vector<8x1xf32>
    %353 = vector.broadcast %352 : vector<8x1xf32> to vector<8x256xf32>
    %354 = arith.addf %351, %353 : vector<8x256xf32>
    %355 = vector.extract_strided_slice %275 {offsets = [8, 0], sizes = [8, 256], strides = [1, 1]} : vector<24x256xf32> to vector<8x256xf32>
    %c32_209 = arith.constant 32 : index
    %c4_210 = arith.constant 4 : index
    %356 = vector.load %arg4[%c32_209, %c4_210] : memref<48x9xf32, #tpu.memory_space<vmem>>, vector<8x1xf32>
    %357 = vector.broadcast %356 : vector<8x1xf32> to vector<8x256xf32>
    %358 = arith.mulf %357, %355 : vector<8x256xf32>
    %c17_i32_211 = arith.constant 17 : i32
    %359 = tpu.dynamic_rotate %355 by %c17_i32_211 dim 1 : vector<8x256xf32>, i32 -> vector<8x256xf32>
    %c32_212 = arith.constant 32 : index
    %c0_213 = arith.constant 0 : index
    %360 = vector.load %arg4[%c32_212, %c0_213] : memref<48x9xf32, #tpu.memory_space<vmem>>, vector<8x1xf32>
    %c0_214 = arith.constant 0 : index
    %c0_215 = arith.constant 0 : index
    %c0_216 = arith.constant 0 : index
    %361 = vector.load %arg7[%c0_214, %c0_215, %c0_216] : memref<9x1x256xf32, #tpu.memory_space<vmem>>, vector<1x1x256xf32>
    %362 = vector.shape_cast %361 : vector<1x1x256xf32> to vector<1x256xf32>
    %363 = vector.broadcast %362 : vector<1x256xf32> to vector<8x256xf32>
    %364 = arith.mulf %363, %359 : vector<8x256xf32>
    %365 = vector.broadcast %360 : vector<8x1xf32> to vector<8x256xf32>
    %366 = arith.mulf %365, %364 : vector<8x256xf32>
    %367 = arith.addf %358, %366 : vector<8x256xf32>
    %c16_i32_217 = arith.constant 16 : i32
    %368 = tpu.dynamic_rotate %355 by %c16_i32_217 dim 1 : vector<8x256xf32>, i32 -> vector<8x256xf32>
    %c32_218 = arith.constant 32 : index
    %c1_219 = arith.constant 1 : index
    %369 = vector.load %arg4[%c32_218, %c1_219] : memref<48x9xf32, #tpu.memory_space<vmem>>, vector<8x1xf32>
    %c1_220 = arith.constant 1 : index
    %c0_221 = arith.constant 0 : index
    %c0_222 = arith.constant 0 : index
    %370 = vector.load %arg7[%c1_220, %c0_221, %c0_222] : memref<9x1x256xf32, #tpu.memory_space<vmem>>, vector<1x1x256xf32>
    %371 = vector.shape_cast %370 : vector<1x1x256xf32> to vector<1x256xf32>
    %372 = vector.broadcast %371 : vector<1x256xf32> to vector<8x256xf32>
    %373 = arith.mulf %372, %368 : vector<8x256xf32>
    %374 = vector.broadcast %369 : vector<8x1xf32> to vector<8x256xf32>
    %375 = arith.mulf %374, %373 : vector<8x256xf32>
    %376 = arith.addf %367, %375 : vector<8x256xf32>
    %c15_i32_223 = arith.constant 15 : i32
    %377 = tpu.dynamic_rotate %355 by %c15_i32_223 dim 1 : vector<8x256xf32>, i32 -> vector<8x256xf32>
    %c32_224 = arith.constant 32 : index
    %c2_225 = arith.constant 2 : index
    %378 = vector.load %arg4[%c32_224, %c2_225] : memref<48x9xf32, #tpu.memory_space<vmem>>, vector<8x1xf32>
    %c2_226 = arith.constant 2 : index
    %c0_227 = arith.constant 0 : index
    %c0_228 = arith.constant 0 : index
    %379 = vector.load %arg7[%c2_226, %c0_227, %c0_228] : memref<9x1x256xf32, #tpu.memory_space<vmem>>, vector<1x1x256xf32>
    %380 = vector.shape_cast %379 : vector<1x1x256xf32> to vector<1x256xf32>
    %381 = vector.broadcast %380 : vector<1x256xf32> to vector<8x256xf32>
    %382 = arith.mulf %381, %377 : vector<8x256xf32>
    %383 = vector.broadcast %378 : vector<8x1xf32> to vector<8x256xf32>
    %384 = arith.mulf %383, %382 : vector<8x256xf32>
    %385 = arith.addf %376, %384 : vector<8x256xf32>
    %c1_i32_229 = arith.constant 1 : i32
    %386 = tpu.dynamic_rotate %355 by %c1_i32_229 dim 1 : vector<8x256xf32>, i32 -> vector<8x256xf32>
    %c32_230 = arith.constant 32 : index
    %c3_231 = arith.constant 3 : index
    %387 = vector.load %arg4[%c32_230, %c3_231] : memref<48x9xf32, #tpu.memory_space<vmem>>, vector<8x1xf32>
    %c3_232 = arith.constant 3 : index
    %c0_233 = arith.constant 0 : index
    %c0_234 = arith.constant 0 : index
    %388 = vector.load %arg7[%c3_232, %c0_233, %c0_234] : memref<9x1x256xf32, #tpu.memory_space<vmem>>, vector<1x1x256xf32>
    %389 = vector.shape_cast %388 : vector<1x1x256xf32> to vector<1x256xf32>
    %390 = vector.broadcast %389 : vector<1x256xf32> to vector<8x256xf32>
    %391 = arith.mulf %390, %386 : vector<8x256xf32>
    %392 = vector.broadcast %387 : vector<8x1xf32> to vector<8x256xf32>
    %393 = arith.mulf %392, %391 : vector<8x256xf32>
    %394 = arith.addf %385, %393 : vector<8x256xf32>
    %c255_i32_235 = arith.constant 255 : i32
    %395 = tpu.dynamic_rotate %355 by %c255_i32_235 dim 1 : vector<8x256xf32>, i32 -> vector<8x256xf32>
    %c32_236 = arith.constant 32 : index
    %c5_237 = arith.constant 5 : index
    %396 = vector.load %arg4[%c32_236, %c5_237] : memref<48x9xf32, #tpu.memory_space<vmem>>, vector<8x1xf32>
    %c5_238 = arith.constant 5 : index
    %c0_239 = arith.constant 0 : index
    %c0_240 = arith.constant 0 : index
    %397 = vector.load %arg7[%c5_238, %c0_239, %c0_240] : memref<9x1x256xf32, #tpu.memory_space<vmem>>, vector<1x1x256xf32>
    %398 = vector.shape_cast %397 : vector<1x1x256xf32> to vector<1x256xf32>
    %399 = vector.broadcast %398 : vector<1x256xf32> to vector<8x256xf32>
    %400 = arith.mulf %399, %395 : vector<8x256xf32>
    %401 = vector.broadcast %396 : vector<8x1xf32> to vector<8x256xf32>
    %402 = arith.mulf %401, %400 : vector<8x256xf32>
    %403 = arith.addf %394, %402 : vector<8x256xf32>
    %c241_i32_241 = arith.constant 241 : i32
    %404 = tpu.dynamic_rotate %355 by %c241_i32_241 dim 1 : vector<8x256xf32>, i32 -> vector<8x256xf32>
    %c32_242 = arith.constant 32 : index
    %c6_243 = arith.constant 6 : index
    %405 = vector.load %arg4[%c32_242, %c6_243] : memref<48x9xf32, #tpu.memory_space<vmem>>, vector<8x1xf32>
    %c6_244 = arith.constant 6 : index
    %c0_245 = arith.constant 0 : index
    %c0_246 = arith.constant 0 : index
    %406 = vector.load %arg7[%c6_244, %c0_245, %c0_246] : memref<9x1x256xf32, #tpu.memory_space<vmem>>, vector<1x1x256xf32>
    %407 = vector.shape_cast %406 : vector<1x1x256xf32> to vector<1x256xf32>
    %408 = vector.broadcast %407 : vector<1x256xf32> to vector<8x256xf32>
    %409 = arith.mulf %408, %404 : vector<8x256xf32>
    %410 = vector.broadcast %405 : vector<8x1xf32> to vector<8x256xf32>
    %411 = arith.mulf %410, %409 : vector<8x256xf32>
    %412 = arith.addf %403, %411 : vector<8x256xf32>
    %c240_i32_247 = arith.constant 240 : i32
    %413 = tpu.dynamic_rotate %355 by %c240_i32_247 dim 1 : vector<8x256xf32>, i32 -> vector<8x256xf32>
    %c32_248 = arith.constant 32 : index
    %c7_249 = arith.constant 7 : index
    %414 = vector.load %arg4[%c32_248, %c7_249] : memref<48x9xf32, #tpu.memory_space<vmem>>, vector<8x1xf32>
    %c7_250 = arith.constant 7 : index
    %c0_251 = arith.constant 0 : index
    %c0_252 = arith.constant 0 : index
    %415 = vector.load %arg7[%c7_250, %c0_251, %c0_252] : memref<9x1x256xf32, #tpu.memory_space<vmem>>, vector<1x1x256xf32>
    %416 = vector.shape_cast %415 : vector<1x1x256xf32> to vector<1x256xf32>
    %417 = vector.broadcast %416 : vector<1x256xf32> to vector<8x256xf32>
    %418 = arith.mulf %417, %413 : vector<8x256xf32>
    %419 = vector.broadcast %414 : vector<8x1xf32> to vector<8x256xf32>
    %420 = arith.mulf %419, %418 : vector<8x256xf32>
    %421 = arith.addf %412, %420 : vector<8x256xf32>
    %c239_i32_253 = arith.constant 239 : i32
    %422 = tpu.dynamic_rotate %355 by %c239_i32_253 dim 1 : vector<8x256xf32>, i32 -> vector<8x256xf32>
    %c32_254 = arith.constant 32 : index
    %c8_255 = arith.constant 8 : index
    %423 = vector.load %arg4[%c32_254, %c8_255] : memref<48x9xf32, #tpu.memory_space<vmem>>, vector<8x1xf32>
    %c8_256 = arith.constant 8 : index
    %c0_257 = arith.constant 0 : index
    %c0_258 = arith.constant 0 : index
    %424 = vector.load %arg7[%c8_256, %c0_257, %c0_258] : memref<9x1x256xf32, #tpu.memory_space<vmem>>, vector<1x1x256xf32>
    %425 = vector.shape_cast %424 : vector<1x1x256xf32> to vector<1x256xf32>
    %426 = vector.broadcast %425 : vector<1x256xf32> to vector<8x256xf32>
    %427 = arith.mulf %426, %422 : vector<8x256xf32>
    %428 = vector.broadcast %423 : vector<8x1xf32> to vector<8x256xf32>
    %429 = arith.mulf %428, %427 : vector<8x256xf32>
    %430 = arith.addf %421, %429 : vector<8x256xf32>
    %c32_259 = arith.constant 32 : index
    %c0_260 = arith.constant 0 : index
    %431 = vector.load %arg5[%c32_259, %c0_260] : memref<48x1xf32, #tpu.memory_space<vmem>>, vector<8x1xf32>
    %432 = vector.broadcast %431 : vector<8x1xf32> to vector<8x256xf32>
    %433 = arith.addf %430, %432 : vector<8x256xf32>
    %434 = vector.extract_strided_slice %275 {offsets = [16, 0], sizes = [8, 256], strides = [1, 1]} : vector<24x256xf32> to vector<8x256xf32>
    %c40 = arith.constant 40 : index
    %c4_261 = arith.constant 4 : index
    %435 = vector.load %arg4[%c40, %c4_261] : memref<48x9xf32, #tpu.memory_space<vmem>>, vector<8x1xf32>
    %436 = vector.broadcast %435 : vector<8x1xf32> to vector<8x256xf32>
    %437 = arith.mulf %436, %434 : vector<8x256xf32>
    %c17_i32_262 = arith.constant 17 : i32
    %438 = tpu.dynamic_rotate %434 by %c17_i32_262 dim 1 : vector<8x256xf32>, i32 -> vector<8x256xf32>
    %c40_263 = arith.constant 40 : index
    %c0_264 = arith.constant 0 : index
    %439 = vector.load %arg4[%c40_263, %c0_264] : memref<48x9xf32, #tpu.memory_space<vmem>>, vector<8x1xf32>
    %c0_265 = arith.constant 0 : index
    %c0_266 = arith.constant 0 : index
    %c0_267 = arith.constant 0 : index
    %440 = vector.load %arg7[%c0_265, %c0_266, %c0_267] : memref<9x1x256xf32, #tpu.memory_space<vmem>>, vector<1x1x256xf32>
    %441 = vector.shape_cast %440 : vector<1x1x256xf32> to vector<1x256xf32>
    %442 = vector.broadcast %441 : vector<1x256xf32> to vector<8x256xf32>
    %443 = arith.mulf %442, %438 : vector<8x256xf32>
    %444 = vector.broadcast %439 : vector<8x1xf32> to vector<8x256xf32>
    %445 = arith.mulf %444, %443 : vector<8x256xf32>
    %446 = arith.addf %437, %445 : vector<8x256xf32>
    %c16_i32_268 = arith.constant 16 : i32
    %447 = tpu.dynamic_rotate %434 by %c16_i32_268 dim 1 : vector<8x256xf32>, i32 -> vector<8x256xf32>
    %c40_269 = arith.constant 40 : index
    %c1_270 = arith.constant 1 : index
    %448 = vector.load %arg4[%c40_269, %c1_270] : memref<48x9xf32, #tpu.memory_space<vmem>>, vector<8x1xf32>
    %c1_271 = arith.constant 1 : index
    %c0_272 = arith.constant 0 : index
    %c0_273 = arith.constant 0 : index
    %449 = vector.load %arg7[%c1_271, %c0_272, %c0_273] : memref<9x1x256xf32, #tpu.memory_space<vmem>>, vector<1x1x256xf32>
    %450 = vector.shape_cast %449 : vector<1x1x256xf32> to vector<1x256xf32>
    %451 = vector.broadcast %450 : vector<1x256xf32> to vector<8x256xf32>
    %452 = arith.mulf %451, %447 : vector<8x256xf32>
    %453 = vector.broadcast %448 : vector<8x1xf32> to vector<8x256xf32>
    %454 = arith.mulf %453, %452 : vector<8x256xf32>
    %455 = arith.addf %446, %454 : vector<8x256xf32>
    %c15_i32_274 = arith.constant 15 : i32
    %456 = tpu.dynamic_rotate %434 by %c15_i32_274 dim 1 : vector<8x256xf32>, i32 -> vector<8x256xf32>
    %c40_275 = arith.constant 40 : index
    %c2_276 = arith.constant 2 : index
    %457 = vector.load %arg4[%c40_275, %c2_276] : memref<48x9xf32, #tpu.memory_space<vmem>>, vector<8x1xf32>
    %c2_277 = arith.constant 2 : index
    %c0_278 = arith.constant 0 : index
    %c0_279 = arith.constant 0 : index
    %458 = vector.load %arg7[%c2_277, %c0_278, %c0_279] : memref<9x1x256xf32, #tpu.memory_space<vmem>>, vector<1x1x256xf32>
    %459 = vector.shape_cast %458 : vector<1x1x256xf32> to vector<1x256xf32>
    %460 = vector.broadcast %459 : vector<1x256xf32> to vector<8x256xf32>
    %461 = arith.mulf %460, %456 : vector<8x256xf32>
    %462 = vector.broadcast %457 : vector<8x1xf32> to vector<8x256xf32>
    %463 = arith.mulf %462, %461 : vector<8x256xf32>
    %464 = arith.addf %455, %463 : vector<8x256xf32>
    %c1_i32_280 = arith.constant 1 : i32
    %465 = tpu.dynamic_rotate %434 by %c1_i32_280 dim 1 : vector<8x256xf32>, i32 -> vector<8x256xf32>
    %c40_281 = arith.constant 40 : index
    %c3_282 = arith.constant 3 : index
    %466 = vector.load %arg4[%c40_281, %c3_282] : memref<48x9xf32, #tpu.memory_space<vmem>>, vector<8x1xf32>
    %c3_283 = arith.constant 3 : index
    %c0_284 = arith.constant 0 : index
    %c0_285 = arith.constant 0 : index
    %467 = vector.load %arg7[%c3_283, %c0_284, %c0_285] : memref<9x1x256xf32, #tpu.memory_space<vmem>>, vector<1x1x256xf32>
    %468 = vector.shape_cast %467 : vector<1x1x256xf32> to vector<1x256xf32>
    %469 = vector.broadcast %468 : vector<1x256xf32> to vector<8x256xf32>
    %470 = arith.mulf %469, %465 : vector<8x256xf32>
    %471 = vector.broadcast %466 : vector<8x1xf32> to vector<8x256xf32>
    %472 = arith.mulf %471, %470 : vector<8x256xf32>
    %473 = arith.addf %464, %472 : vector<8x256xf32>
    %c255_i32_286 = arith.constant 255 : i32
    %474 = tpu.dynamic_rotate %434 by %c255_i32_286 dim 1 : vector<8x256xf32>, i32 -> vector<8x256xf32>
    %c40_287 = arith.constant 40 : index
    %c5_288 = arith.constant 5 : index
    %475 = vector.load %arg4[%c40_287, %c5_288] : memref<48x9xf32, #tpu.memory_space<vmem>>, vector<8x1xf32>
    %c5_289 = arith.constant 5 : index
    %c0_290 = arith.constant 0 : index
    %c0_291 = arith.constant 0 : index
    %476 = vector.load %arg7[%c5_289, %c0_290, %c0_291] : memref<9x1x256xf32, #tpu.memory_space<vmem>>, vector<1x1x256xf32>
    %477 = vector.shape_cast %476 : vector<1x1x256xf32> to vector<1x256xf32>
    %478 = vector.broadcast %477 : vector<1x256xf32> to vector<8x256xf32>
    %479 = arith.mulf %478, %474 : vector<8x256xf32>
    %480 = vector.broadcast %475 : vector<8x1xf32> to vector<8x256xf32>
    %481 = arith.mulf %480, %479 : vector<8x256xf32>
    %482 = arith.addf %473, %481 : vector<8x256xf32>
    %c241_i32_292 = arith.constant 241 : i32
    %483 = tpu.dynamic_rotate %434 by %c241_i32_292 dim 1 : vector<8x256xf32>, i32 -> vector<8x256xf32>
    %c40_293 = arith.constant 40 : index
    %c6_294 = arith.constant 6 : index
    %484 = vector.load %arg4[%c40_293, %c6_294] : memref<48x9xf32, #tpu.memory_space<vmem>>, vector<8x1xf32>
    %c6_295 = arith.constant 6 : index
    %c0_296 = arith.constant 0 : index
    %c0_297 = arith.constant 0 : index
    %485 = vector.load %arg7[%c6_295, %c0_296, %c0_297] : memref<9x1x256xf32, #tpu.memory_space<vmem>>, vector<1x1x256xf32>
    %486 = vector.shape_cast %485 : vector<1x1x256xf32> to vector<1x256xf32>
    %487 = vector.broadcast %486 : vector<1x256xf32> to vector<8x256xf32>
    %488 = arith.mulf %487, %483 : vector<8x256xf32>
    %489 = vector.broadcast %484 : vector<8x1xf32> to vector<8x256xf32>
    %490 = arith.mulf %489, %488 : vector<8x256xf32>
    %491 = arith.addf %482, %490 : vector<8x256xf32>
    %c240_i32_298 = arith.constant 240 : i32
    %492 = tpu.dynamic_rotate %434 by %c240_i32_298 dim 1 : vector<8x256xf32>, i32 -> vector<8x256xf32>
    %c40_299 = arith.constant 40 : index
    %c7_300 = arith.constant 7 : index
    %493 = vector.load %arg4[%c40_299, %c7_300] : memref<48x9xf32, #tpu.memory_space<vmem>>, vector<8x1xf32>
    %c7_301 = arith.constant 7 : index
    %c0_302 = arith.constant 0 : index
    %c0_303 = arith.constant 0 : index
    %494 = vector.load %arg7[%c7_301, %c0_302, %c0_303] : memref<9x1x256xf32, #tpu.memory_space<vmem>>, vector<1x1x256xf32>
    %495 = vector.shape_cast %494 : vector<1x1x256xf32> to vector<1x256xf32>
    %496 = vector.broadcast %495 : vector<1x256xf32> to vector<8x256xf32>
    %497 = arith.mulf %496, %492 : vector<8x256xf32>
    %498 = vector.broadcast %493 : vector<8x1xf32> to vector<8x256xf32>
    %499 = arith.mulf %498, %497 : vector<8x256xf32>
    %500 = arith.addf %491, %499 : vector<8x256xf32>
    %c239_i32_304 = arith.constant 239 : i32
    %501 = tpu.dynamic_rotate %434 by %c239_i32_304 dim 1 : vector<8x256xf32>, i32 -> vector<8x256xf32>
    %c40_305 = arith.constant 40 : index
    %c8_306 = arith.constant 8 : index
    %502 = vector.load %arg4[%c40_305, %c8_306] : memref<48x9xf32, #tpu.memory_space<vmem>>, vector<8x1xf32>
    %c8_307 = arith.constant 8 : index
    %c0_308 = arith.constant 0 : index
    %c0_309 = arith.constant 0 : index
    %503 = vector.load %arg7[%c8_307, %c0_308, %c0_309] : memref<9x1x256xf32, #tpu.memory_space<vmem>>, vector<1x1x256xf32>
    %504 = vector.shape_cast %503 : vector<1x1x256xf32> to vector<1x256xf32>
    %505 = vector.broadcast %504 : vector<1x256xf32> to vector<8x256xf32>
    %506 = arith.mulf %505, %501 : vector<8x256xf32>
    %507 = vector.broadcast %502 : vector<8x1xf32> to vector<8x256xf32>
    %508 = arith.mulf %507, %506 : vector<8x256xf32>
    %509 = arith.addf %500, %508 : vector<8x256xf32>
    %c40_310 = arith.constant 40 : index
    %c0_311 = arith.constant 0 : index
    %510 = vector.load %arg5[%c40_310, %c0_311] : memref<48x1xf32, #tpu.memory_space<vmem>>, vector<8x1xf32>
    %511 = vector.broadcast %510 : vector<8x1xf32> to vector<8x256xf32>
    %512 = arith.addf %509, %511 : vector<8x256xf32>
    %513 = arith.mulf %354, %433 : vector<8x256xf32>
    %514 = arith.addf %513, %512 : vector<8x256xf32>
    %515 = arith.mulf %514, %31 : vector<8x256xf32>
    %cst_312 = arith.constant dense<0.000000e+00> : vector<8xf32>
    %516 = vector.multi_reduction <add>, %515, %cst_312 [1] : vector<8x256xf32> to vector<8xf32>
    %517 = vector.shape_cast %516 : vector<8xf32> to vector<8x1xf32>
    %c56 = arith.constant 56 : index
    %c0_313 = arith.constant 0 : index
    %518 = vector.load %arg2[%c56, %c0_313] : memref<136x8xf32, #tpu.memory_space<vmem>>, vector<8x8xf32>
    %cst_314 = arith.constant dense<0.000000e+00> : vector<8x1xf32>
    %519 = tpu.matmul %518, %517, %cst_314 {dimension_numbers = #tpu.dot_dimension_numbers<[1], [0], [0], [1], [0, 0, 1, 1], [], []>} : vector<8x8xf32>, vector<8x1xf32>, vector<8x1xf32> -> vector<8x1xf32>
    %c56_315 = arith.constant 56 : index
    %c0_316 = arith.constant 0 : index
    %520 = vector.load %arg3[%c56_315, %c0_316] : memref<136x1xf32, #tpu.memory_space<vmem>>, vector<8x1xf32>
    %521 = arith.addf %519, %520 : vector<8x1xf32>
    %522 = vector.broadcast %521 : vector<8x1xf32> to vector<8x256xf32>
    %523 = arith.mulf %515, %522 : vector<8x256xf32>
    %c64 = arith.constant 64 : index
    %c0_317 = arith.constant 0 : index
    %524 = vector.load %arg2[%c64, %c0_317] : memref<136x8xf32, #tpu.memory_space<vmem>>, vector<8x8xf32>
    %cst_318 = arith.constant dense<0.000000e+00> : vector<8x256xf32>
    %525 = tpu.matmul %524, %523, %cst_318 {dimension_numbers = #tpu.dot_dimension_numbers<[1], [0], [0], [1], [0, 0, 1, 1], [], []>} : vector<8x8xf32>, vector<8x256xf32>, vector<8x256xf32> -> vector<8x256xf32>
    %c64_319 = arith.constant 64 : index
    %c0_320 = arith.constant 0 : index
    %526 = vector.load %arg3[%c64_319, %c0_320] : memref<136x1xf32, #tpu.memory_space<vmem>>, vector<8x1xf32>
    %527 = vector.broadcast %526 : vector<8x1xf32> to vector<8x256xf32>
    %528 = arith.addf %525, %527 : vector<8x256xf32>
    %c32_321 = arith.constant 32 : index
    %c0_322 = arith.constant 0 : index
    %529 = vector.load %arg6[%c32_321, %c0_322] : memref<48x1xf32, #tpu.memory_space<vmem>>, vector<8x1xf32>
    %530 = vector.broadcast %529 : vector<8x1xf32> to vector<8x256xf32>
    %531 = arith.mulf %528, %530 : vector<8x256xf32>
    %532 = arith.addf %1, %531 : vector<8x256xf32>
    %cst_323 = arith.constant dense<0.000000e+00> : vector<256xf32>
    %533 = vector.multi_reduction <add>, %532, %cst_323 [0] : vector<8x256xf32> to vector<256xf32>
    %534 = vector.shape_cast %533 : vector<256xf32> to vector<1x256xf32>
    %535 = arith.mulf %532, %532 : vector<8x256xf32>
    %cst_324 = arith.constant dense<0.000000e+00> : vector<256xf32>
    %536 = vector.multi_reduction <add>, %535, %cst_324 [0] : vector<8x256xf32> to vector<256xf32>
    %537 = vector.shape_cast %536 : vector<256xf32> to vector<1x256xf32>
    %cst_325 = arith.constant 2.500000e-01 : f32
    %538 = vector.broadcast %cst_325 : f32 to vector<1x256xf32>
    %539 = arith.mulf %534, %538 : vector<1x256xf32>
    %cst_326 = arith.constant 2.500000e-01 : f32
    %540 = vector.broadcast %cst_326 : f32 to vector<1x256xf32>
    %541 = arith.mulf %537, %540 : vector<1x256xf32>
    %542 = arith.mulf %539, %539 : vector<1x256xf32>
    %543 = arith.subf %541, %542 : vector<1x256xf32>
    %c16_327 = arith.constant 16 : index
    %c0_328 = arith.constant 0 : index
    %544 = vector.load %arg6[%c16_327, %c0_328] : memref<48x1xf32, #tpu.memory_space<vmem>>, vector<8x1xf32>
    %545 = vector.broadcast %539 : vector<1x256xf32> to vector<8x256xf32>
    %546 = arith.subf %532, %545 : vector<8x256xf32>
    %cst_329 = arith.constant 9.99999997E-7 : f32
    %547 = vector.broadcast %cst_329 : f32 to vector<1x256xf32>
    %548 = arith.addf %543, %547 : vector<1x256xf32>
    %549 = math.rsqrt %548 : vector<1x256xf32>
    %550 = vector.broadcast %549 : vector<1x256xf32> to vector<8x256xf32>
    %551 = arith.mulf %546, %550 : vector<8x256xf32>
    %552 = vector.broadcast %544 : vector<8x1xf32> to vector<8x256xf32>
    %553 = arith.mulf %552, %551 : vector<8x256xf32>
    %c24_330 = arith.constant 24 : index
    %c0_331 = arith.constant 0 : index
    %554 = vector.load %arg6[%c24_330, %c0_331] : memref<48x1xf32, #tpu.memory_space<vmem>>, vector<8x1xf32>
    %555 = vector.broadcast %554 : vector<8x1xf32> to vector<8x256xf32>
    %556 = arith.addf %553, %555 : vector<8x256xf32>
    %c72 = arith.constant 72 : index
    %c0_332 = arith.constant 0 : index
    %557 = vector.load %arg2[%c72, %c0_332] : memref<136x8xf32, #tpu.memory_space<vmem>>, vector<32x8xf32>
    %cst_333 = arith.constant dense<0.000000e+00> : vector<32x256xf32>
    %558 = tpu.matmul %557, %556, %cst_333 {dimension_numbers = #tpu.dot_dimension_numbers<[1], [0], [0], [1], [0, 0, 1, 1], [], []>} : vector<32x8xf32>, vector<8x256xf32>, vector<32x256xf32> -> vector<32x256xf32>
    %c72_334 = arith.constant 72 : index
    %c0_335 = arith.constant 0 : index
    %559 = vector.load %arg3[%c72_334, %c0_335] : memref<136x1xf32, #tpu.memory_space<vmem>>, vector<32x1xf32>
    %560 = vector.broadcast %559 : vector<32x1xf32> to vector<32x256xf32>
    %561 = arith.addf %558, %560 : vector<32x256xf32>
    %562 = vector.extract_strided_slice %561 {offsets = [0, 0], sizes = [8, 256], strides = [1, 1]} : vector<32x256xf32> to vector<8x256xf32>
    %563 = vector.extract_strided_slice %561 {offsets = [8, 0], sizes = [8, 256], strides = [1, 1]} : vector<32x256xf32> to vector<8x256xf32>
    %564 = vector.extract_strided_slice %561 {offsets = [16, 0], sizes = [8, 256], strides = [1, 1]} : vector<32x256xf32> to vector<8x256xf32>
    %565 = arith.mulf %563, %564 : vector<8x256xf32>
    %566 = vector.extract_strided_slice %561 {offsets = [24, 0], sizes = [8, 256], strides = [1, 1]} : vector<32x256xf32> to vector<8x256xf32>
    %567 = arith.addf %565, %566 : vector<8x256xf32>
    %c104 = arith.constant 104 : index
    %c0_336 = arith.constant 0 : index
    %568 = vector.load %arg2[%c104, %c0_336] : memref<136x8xf32, #tpu.memory_space<vmem>>, vector<24x8xf32>
    %cst_337 = arith.constant dense<0.000000e+00> : vector<24x256xf32>
    %569 = tpu.matmul %568, %567, %cst_337 {dimension_numbers = #tpu.dot_dimension_numbers<[1], [0], [0], [1], [0, 0, 1, 1], [], []>} : vector<24x8xf32>, vector<8x256xf32>, vector<24x256xf32> -> vector<24x256xf32>
    %c104_338 = arith.constant 104 : index
    %c0_339 = arith.constant 0 : index
    %570 = vector.load %arg3[%c104_338, %c0_339] : memref<136x1xf32, #tpu.memory_space<vmem>>, vector<24x1xf32>
    %571 = vector.broadcast %570 : vector<24x1xf32> to vector<24x256xf32>
    %572 = arith.addf %569, %571 : vector<24x256xf32>
    %573 = vector.extract_strided_slice %572 {offsets = [0, 0], sizes = [8, 256], strides = [1, 1]} : vector<24x256xf32> to vector<8x256xf32>
    %574 = vector.extract_strided_slice %572 {offsets = [8, 0], sizes = [8, 256], strides = [1, 1]} : vector<24x256xf32> to vector<8x256xf32>
    %575 = arith.mulf %573, %574 : vector<8x256xf32>
    %576 = vector.extract_strided_slice %572 {offsets = [16, 0], sizes = [8, 256], strides = [1, 1]} : vector<24x256xf32> to vector<8x256xf32>
    %577 = arith.addf %575, %576 : vector<8x256xf32>
    %578 = arith.mulf %577, %562 : vector<8x256xf32>
    %c128 = arith.constant 128 : index
    %c0_340 = arith.constant 0 : index
    %579 = vector.load %arg2[%c128, %c0_340] : memref<136x8xf32, #tpu.memory_space<vmem>>, vector<8x8xf32>
    %cst_341 = arith.constant dense<0.000000e+00> : vector<8x256xf32>
    %580 = tpu.matmul %579, %578, %cst_341 {dimension_numbers = #tpu.dot_dimension_numbers<[1], [0], [0], [1], [0, 0, 1, 1], [], []>} : vector<8x8xf32>, vector<8x256xf32>, vector<8x256xf32> -> vector<8x256xf32>
    %c128_342 = arith.constant 128 : index
    %c0_343 = arith.constant 0 : index
    %581 = vector.load %arg3[%c128_342, %c0_343] : memref<136x1xf32, #tpu.memory_space<vmem>>, vector<8x1xf32>
    %582 = vector.broadcast %581 : vector<8x1xf32> to vector<8x256xf32>
    %583 = arith.addf %580, %582 : vector<8x256xf32>
    %c40_344 = arith.constant 40 : index
    %c0_345 = arith.constant 0 : index
    %584 = vector.load %arg6[%c40_344, %c0_345] : memref<48x1xf32, #tpu.memory_space<vmem>>, vector<8x1xf32>
    %585 = vector.broadcast %584 : vector<8x1xf32> to vector<8x256xf32>
    %586 = arith.mulf %583, %585 : vector<8x256xf32>
    %587 = arith.addf %532, %586 : vector<8x256xf32>
    %588 = vector.extract_strided_slice %587 {offsets = [0, 0], sizes = [4, 256], strides = [1, 1]} : vector<8x256xf32> to vector<4x256xf32>
    %c0_346 = arith.constant 0 : index
    %c0_347 = arith.constant 0 : index
    %c0_348 = arith.constant 0 : index
    %589 = vector.load %arg8[%c0_346, %c0_347, %c0_348] : memref<1x4x256xf32, #tpu.memory_space<vmem>>, vector<1x4x256xf32>
    %590 = vector.shape_cast %589 : vector<1x4x256xf32> to vector<4x256xf32>
    %591 = vector.shape_cast %588 : vector<4x256xf32> to vector<1x4x256xf32>
    tpu.vector_store %arg8[%c0_346, %c0_347, %c0_348], %591 {strides = array<i32>} : memref<1x4x256xf32, #tpu.memory_space<vmem>>, vector<1x4x256xf32>,
    return
  }
  func.func @transform_0(%arg0: i32) -> (i32, i32, i32) {
    %c0_i32 = arith.constant 0 : i32
    %c0_i32_0 = arith.constant 0 : i32
    %c0_i32_1 = arith.constant 0 : i32
    return %arg0, %c0_i32, %c0_i32_0 : i32, i32, i32
  }
  func.func @transform_1(%arg0: i32) -> (i32, i32) {
    %c0_i32 = arith.constant 0 : i32
    %c0_i32_0 = arith.constant 0 : i32
    %c0_i32_1 = arith.constant 0 : i32
    return %c0_i32, %c0_i32_0 : i32, i32
  }
  func.func @transform_2(%arg0: i32) -> (i32, i32) {
    %c0_i32 = arith.constant 0 : i32
    %c0_i32_0 = arith.constant 0 : i32
    %c0_i32_1 = arith.constant 0 : i32
    return %c0_i32, %c0_i32_0 : i32, i32
  }
  func.func @transform_3(%arg0: i32) -> (i32, i32) {
    %c0_i32 = arith.constant 0 : i32
    %c0_i32_0 = arith.constant 0 : i32
    %c0_i32_1 = arith.constant 0 : i32
    return %c0_i32, %c0_i32_0 : i32, i32
  }
  func.func @transform_4(%arg0: i32) -> (i32, i32) {
    %c0_i32 = arith.constant 0 : i32
    %c0_i32_0 = arith.constant 0 : i32
    %c0_i32_1 = arith.constant 0 : i32
    return %c0_i32, %c0_i32_0 : i32, i32
  }
  func.func @transform_5(%arg0: i32) -> (i32, i32) {
    %c0_i32 = arith.constant 0 : i32
    %c0_i32_0 = arith.constant 0 : i32
    %c0_i32_1 = arith.constant 0 : i32
    return %c0_i32, %c0_i32_0 : i32, i32
  }
  func.func @transform_6(%arg0: i32) -> (i32, i32, i32) {
    %c0_i32 = arith.constant 0 : i32
    %c0_i32_0 = arith.constant 0 : i32
    %c0_i32_1 = arith.constant 0 : i32
    %c0_i32_2 = arith.constant 0 : i32
    return %c0_i32, %c0_i32_0, %c0_i32_1 : i32, i32, i32
  }
  func.func @transform_7(%arg0: i32) -> (i32, i32, i32) {
    %c0_i32 = arith.constant 0 : i32
    %c0_i32_0 = arith.constant 0 : i32
    %c0_i32_1 = arith.constant 0 : i32
    return %arg0, %c0_i32, %c0_i32_0 : i32, i32, i32
  }
}

module attributes {stable_mosaic.version = 11 : i64} {
  func.func @daf_kernel(%arg0: i32, %arg1: memref<1x8x256xf32, #tpu.memory_space<vmem>>, %arg2: memref<136x8xf32, #tpu.memory_space<vmem>>, %arg3: memref<136x1xf32, #tpu.memory_space<vmem>>, %arg4: memref<48x9xf32, #tpu.memory_space<vmem>>, %arg5: memref<48x1xf32, #tpu.memory_space<vmem>>, %arg6: memref<48x1xf32, #tpu.memory_space<vmem>>, %arg7: memref<9x1x256xf32, #tpu.memory_space<vmem>>, %arg8: memref<1x4x256xf32, #tpu.memory_space<vmem>>) attributes {dimension_semantics = [#tpu.dimension_semantics<parallel>], iteration_bounds = array<i64: 2>, scalar_prefetch = 0 : i64, scratch_operands = 0 : i64, tpu.core_type = #tpu.core_type<tc>, window_params = [{transform_indices = @transform_0, window_bounds = array<i64: 1, 8, 256>}, {pipeline_mode = #tpu.pipeline_mode<synchronous>, transform_indices = @transform_1, window_bounds = array<i64: 136, 8>}, {pipeline_mode = #tpu.pipeline_mode<synchronous>, transform_indices = @transform_2, window_bounds = array<i64: 136, 1>}, {pipeline_mode = #tpu.pipeline_mode<synchronous>, transform_indices = @transform_3, window_bounds = array<i64: 48, 9>}, {pipeline_mode = #tpu.pipeline_mode<synchronous>, transform_indices = @transform_4, window_bounds = array<i64: 48, 1>}, {pipeline_mode = #tpu.pipeline_mode<synchronous>, transform_indices = @transform_5, window_bounds = array<i64: 48, 1>}, {pipeline_mode = #tpu.pipeline_mode<synchronous>, transform_indices = @transform_6, window_bounds = array<i64: 9, 1, 256>}, {transform_indices = @transform_7, window_bounds = array<i64: 1, 4, 256>}]} {
    %c0 = arith.constant 0 : index
    %c0_0 = arith.constant 0 : index
    %c0_1 = arith.constant 0 : index
    %0 = vector.load %arg1[%c0, %c0_0, %c0_1] : memref<1x8x256xf32, #tpu.memory_space<vmem>>, vector<1x8x256xf32>
    %1 = vector.shape_cast %0 : vector<1x8x256xf32> to vector<8x256xf32>
    %cst = arith.constant dense<0.000000e+00> : vector<256xf32>
    %2 = vector.multi_reduction <add>, %1, %cst [0] : vector<8x256xf32> to vector<256xf32>
    %3 = vector.shape_cast %2 : vector<256xf32> to vector<1x256xf32>
    %4 = arith.mulf %1, %1 : vector<8x256xf32>
    %cst_2 = arith.constant dense<0.000000e+00> : vector<256xf32>
    %5 = vector.multi_reduction <add>, %4, %cst_2 [0] : vector<8x256xf32> to vector<256xf32>
    %6 = vector.shape_cast %5 : vector<256xf32> to vector<1x256xf32>
    %cst_3 = arith.constant 2.500000e-01 : f32
    %7 = vector.broadcast %cst_3 : f32 to vector<1x256xf32>
    %8 = arith.mulf %3, %7 : vector<1x256xf32>
    %cst_4 = arith.constant 2.500000e-01 : f32
    %9 = vector.broadcast %cst_4 : f32 to vector<1x256xf32>
    %10 = arith.mulf %6, %9 : vector<1x256xf32>
    %11 = arith.mulf %8, %8 : vector<1x256xf32>
    %12 = arith.subf %10, %11 : vector<1x256xf32>
    %c0_5 = arith.constant 0 : index
    %c0_6 = arith.constant 0 : index
    %13 = vector.load %arg6[%c0_5, %c0_6] : memref<48x1xf32, #tpu.memory_space<vmem>>, vector<8x1xf32>
    %14 = vector.broadcast %8 : vector<1x256xf32> to vector<8x256xf32>
    %15 = arith.subf %1, %14 : vector<8x256xf32>
    %cst_7 = arith.constant 9.99999997E-7 : f32
    %16 = vector.broadcast %cst_7 : f32 to vector<1x256xf32>
    %17 = arith.addf %12, %16 : vector<1x256xf32>
    %18 = math.rsqrt %17 : vector<1x256xf32>
    %19 = vector.broadcast %18 : vector<1x256xf32> to vector<8x256xf32>
    %20 = arith.mulf %15, %19 : vector<8x256xf32>
    %21 = vector.broadcast %13 : vector<8x1xf32> to vector<8x256xf32>
    %22 = arith.mulf %21, %20 : vector<8x256xf32>
    %c8 = arith.constant 8 : index
    %c0_8 = arith.constant 0 : index
    %23 = vector.load %arg6[%c8, %c0_8] : memref<48x1xf32, #tpu.memory_space<vmem>>, vector<8x1xf32>
    %24 = vector.broadcast %23 : vector<8x1xf32> to vector<8x256xf32>
    %25 = arith.addf %22, %24 : vector<8x256xf32>
    %c0_9 = arith.constant 0 : index
    %c0_10 = arith.constant 0 : index
    %26 = vector.load %arg2[%c0_9, %c0_10] : memref<136x8xf32, #tpu.memory_space<vmem>>, vector<32x8xf32>
    %cst_11 = arith.constant dense<0.000000e+00> : vector<32x256xf32>
    %27 = tpu.matmul %26, %25, %cst_11 {dimension_numbers = #tpu.dot_dimension_numbers<[1], [0], [0], [1], [0, 0, 1, 1], [], []>} : vector<32x8xf32>, vector<8x256xf32>, vector<32x256xf32> -> vector<32x256xf32>
    %c0_12 = arith.constant 0 : index
    %c0_13 = arith.constant 0 : index
    %28 = vector.load %arg3[%c0_12, %c0_13] : memref<136x1xf32, #tpu.memory_space<vmem>>, vector<32x1xf32>
    %29 = vector.broadcast %28 : vector<32x1xf32> to vector<32x256xf32>
    %30 = arith.addf %27, %29 : vector<32x256xf32>
    %31 = vector.extract_strided_slice %30 {offsets = [0, 0], sizes = [8, 256], strides = [1, 1]} : vector<32x256xf32> to vector<8x256xf32>
    %32 = vector.extract_strided_slice %30 {offsets = [8, 0], sizes = [8, 256], strides = [1, 1]} : vector<32x256xf32> to vector<8x256xf32>
    %c0_14 = arith.constant 0 : index
    %c4 = arith.constant 4 : index
    %33 = vector.load %arg4[%c0_14, %c4] : memref<48x9xf32, #tpu.memory_space<vmem>>, vector<8x1xf32>
    %34 = vector.broadcast %33 : vector<8x1xf32> to vector<8x256xf32>
    %35 = arith.mulf %34, %32 : vector<8x256xf32>
    %c17_i32 = arith.constant 17 : i32
    %36 = tpu.dynamic_rotate %32 by %c17_i32 dim 1 : vector<8x256xf32>, i32 -> vector<8x256xf32>
    %c0_15 = arith.constant 0 : index
    %c0_16 = arith.constant 0 : index
    %37 = vector.load %arg4[%c0_15, %c0_16] : memref<48x9xf32, #tpu.memory_space<vmem>>, vector<8x1xf32>
    %c0_17 = arith.constant 0 : index
    %c0_18 = arith.constant 0 : index
    %c0_19 = arith.constant 0 : index
    %38 = vector.load %arg7[%c0_17, %c0_18, %c0_19] : memref<9x1x256xf32, #tpu.memory_space<vmem>>, vector<1x1x256xf32>
    %39 = vector.shape_cast %38 : vector<1x1x256xf32> to vector<1x256xf32>
    %40 = vector.broadcast %39 : vector<1x256xf32> to vector<8x256xf32>
    %41 = arith.mulf %40, %36 : vector<8x256xf32>
    %42 = vector.broadcast %37 : vector<8x1xf32> to vector<8x256xf32>
    %43 = arith.mulf %42, %41 : vector<8x256xf32>
    %44 = arith.addf %35, %43 : vector<8x256xf32>
    %c16_i32 = arith.constant 16 : i32
    %45 = tpu.dynamic_rotate %32 by %c16_i32 dim 1 : vector<8x256xf32>, i32 -> vector<8x256xf32>
    %c0_20 = arith.constant 0 : index
    %c1 = arith.constant 1 : index
    %46 = vector.load %arg4[%c0_20, %c1] : memref<48x9xf32, #tpu.memory_space<vmem>>, vector<8x1xf32>
    %c1_21 = arith.constant 1 : index
    %c0_22 = arith.constant 0 : index
    %c0_23 = arith.constant 0 : index
    %47 = vector.load %arg7[%c1_21, %c0_22, %c0_23] : memref<9x1x256xf32, #tpu.memory_space<vmem>>, vector<1x1x256xf32>
    %48 = vector.shape_cast %47 : vector<1x1x256xf32> to vector<1x256xf32>
    %49 = vector.broadcast %48 : vector<1x256xf32> to vector<8x256xf32>
    %50 = arith.mulf %49, %45 : vector<8x256xf32>
    %51 = vector.broadcast %46 : vector<8x1xf32> to vector<8x256xf32>
    %52 = arith.mulf %51, %50 : vector<8x256xf32>
    %53 = arith.addf %44, %52 : vector<8x256xf32>
    %c15_i32 = arith.constant 15 : i32
    %54 = tpu.dynamic_rotate %32 by %c15_i32 dim 1 : vector<8x256xf32>, i32 -> vector<8x256xf32>
    %c0_24 = arith.constant 0 : index
    %c2 = arith.constant 2 : index
    %55 = vector.load %arg4[%c0_24, %c2] : memref<48x9xf32, #tpu.memory_space<vmem>>, vector<8x1xf32>
    %c2_25 = arith.constant 2 : index
    %c0_26 = arith.constant 0 : index
    %c0_27 = arith.constant 0 : index
    %56 = vector.load %arg7[%c2_25, %c0_26, %c0_27] : memref<9x1x256xf32, #tpu.memory_space<vmem>>, vector<1x1x256xf32>
    %57 = vector.shape_cast %56 : vector<1x1x256xf32> to vector<1x256xf32>
    %58 = vector.broadcast %57 : vector<1x256xf32> to vector<8x256xf32>
    %59 = arith.mulf %58, %54 : vector<8x256xf32>
    %60 = vector.broadcast %55 : vector<8x1xf32> to vector<8x256xf32>
    %61 = arith.mulf %60, %59 : vector<8x256xf32>
    %62 = arith.addf %53, %61 : vector<8x256xf32>
    %c1_i32 = arith.constant 1 : i32
    %63 = tpu.dynamic_rotate %32 by %c1_i32 dim 1 : vector<8x256xf32>, i32 -> vector<8x256xf32>
    %c0_28 = arith.constant 0 : index
    %c3 = arith.constant 3 : index
    %64 = vector.load %arg4[%c0_28, %c3] : memref<48x9xf32, #tpu.memory_space<vmem>>, vector<8x1xf32>
    %c3_29 = arith.constant 3 : index
    %c0_30 = arith.constant 0 : index
    %c0_31 = arith.constant 0 : index
    %65 = vector.load %arg7[%c3_29, %c0_30, %c0_31] : memref<9x1x256xf32, #tpu.memory_space<vmem>>, vector<1x1x256xf32>
    %66 = vector.shape_cast %65 : vector<1x1x256xf32> to vector<1x256xf32>
    %67 = vector.broadcast %66 : vector<1x256xf32> to vector<8x256xf32>
    %68 = arith.mulf %67, %63 : vector<8x256xf32>
    %69 = vector.broadcast %64 : vector<8x1xf32> to vector<8x256xf32>
    %70 = arith.mulf %69, %68 : vector<8x256xf32>
    %71 = arith.addf %62, %70 : vector<8x256xf32>
    %c255_i32 = arith.constant 255 : i32
    %72 = tpu.dynamic_rotate %32 by %c255_i32 dim 1 : vector<8x256xf32>, i32 -> vector<8x256xf32>
    %c0_32 = arith.constant 0 : index
    %c5 = arith.constant 5 : index
    %73 = vector.load %arg4[%c0_32, %c5] : memref<48x9xf32, #tpu.memory_space<vmem>>, vector<8x1xf32>
    %c5_33 = arith.constant 5 : index
    %c0_34 = arith.constant 0 : index
    %c0_35 = arith.constant 0 : index
    %74 = vector.load %arg7[%c5_33, %c0_34, %c0_35] : memref<9x1x256xf32, #tpu.memory_space<vmem>>, vector<1x1x256xf32>
    %75 = vector.shape_cast %74 : vector<1x1x256xf32> to vector<1x256xf32>
    %76 = vector.broadcast %75 : vector<1x256xf32> to vector<8x256xf32>
    %77 = arith.mulf %76, %72 : vector<8x256xf32>
    %78 = vector.broadcast %73 : vector<8x1xf32> to vector<8x256xf32>
    %79 = arith.mulf %78, %77 : vector<8x256xf32>
    %80 = arith.addf %71, %79 : vector<8x256xf32>
    %c241_i32 = arith.constant 241 : i32
    %81 = tpu.dynamic_rotate %32 by %c241_i32 dim 1 : vector<8x256xf32>, i32 -> vector<8x256xf32>
    %c0_36 = arith.constant 0 : index
    %c6 = arith.constant 6 : index
    %82 = vector.load %arg4[%c0_36, %c6] : memref<48x9xf32, #tpu.memory_space<vmem>>, vector<8x1xf32>
    %c6_37 = arith.constant 6 : index
    %c0_38 = arith.constant 0 : index
    %c0_39 = arith.constant 0 : index
    %83 = vector.load %arg7[%c6_37, %c0_38, %c0_39] : memref<9x1x256xf32, #tpu.memory_space<vmem>>, vector<1x1x256xf32>
    %84 = vector.shape_cast %83 : vector<1x1x256xf32> to vector<1x256xf32>
    %85 = vector.broadcast %84 : vector<1x256xf32> to vector<8x256xf32>
    %86 = arith.mulf %85, %81 : vector<8x256xf32>
    %87 = vector.broadcast %82 : vector<8x1xf32> to vector<8x256xf32>
    %88 = arith.mulf %87, %86 : vector<8x256xf32>
    %89 = arith.addf %80, %88 : vector<8x256xf32>
    %c240_i32 = arith.constant 240 : i32
    %90 = tpu.dynamic_rotate %32 by %c240_i32 dim 1 : vector<8x256xf32>, i32 -> vector<8x256xf32>
    %c0_40 = arith.constant 0 : index
    %c7 = arith.constant 7 : index
    %91 = vector.load %arg4[%c0_40, %c7] : memref<48x9xf32, #tpu.memory_space<vmem>>, vector<8x1xf32>
    %c7_41 = arith.constant 7 : index
    %c0_42 = arith.constant 0 : index
    %c0_43 = arith.constant 0 : index
    %92 = vector.load %arg7[%c7_41, %c0_42, %c0_43] : memref<9x1x256xf32, #tpu.memory_space<vmem>>, vector<1x1x256xf32>
    %93 = vector.shape_cast %92 : vector<1x1x256xf32> to vector<1x256xf32>
    %94 = vector.broadcast %93 : vector<1x256xf32> to vector<8x256xf32>
    %95 = arith.mulf %94, %90 : vector<8x256xf32>
    %96 = vector.broadcast %91 : vector<8x1xf32> to vector<8x256xf32>
    %97 = arith.mulf %96, %95 : vector<8x256xf32>
    %98 = arith.addf %89, %97 : vector<8x256xf32>
    %c239_i32 = arith.constant 239 : i32
    %99 = tpu.dynamic_rotate %32 by %c239_i32 dim 1 : vector<8x256xf32>, i32 -> vector<8x256xf32>
    %c0_44 = arith.constant 0 : index
    %c8_45 = arith.constant 8 : index
    %100 = vector.load %arg4[%c0_44, %c8_45] : memref<48x9xf32, #tpu.memory_space<vmem>>, vector<8x1xf32>
    %c8_46 = arith.constant 8 : index
    %c0_47 = arith.constant 0 : index
    %c0_48 = arith.constant 0 : index
    %101 = vector.load %arg7[%c8_46, %c0_47, %c0_48] : memref<9x1x256xf32, #tpu.memory_space<vmem>>, vector<1x1x256xf32>
    %102 = vector.shape_cast %101 : vector<1x1x256xf32> to vector<1x256xf32>
    %103 = vector.broadcast %102 : vector<1x256xf32> to vector<8x256xf32>
    %104 = arith.mulf %103, %99 : vector<8x256xf32>
    %105 = vector.broadcast %100 : vector<8x1xf32> to vector<8x256xf32>
    %106 = arith.mulf %105, %104 : vector<8x256xf32>
    %107 = arith.addf %98, %106 : vector<8x256xf32>
    %c0_49 = arith.constant 0 : index
    %c0_50 = arith.constant 0 : index
    %108 = vector.load %arg5[%c0_49, %c0_50] : memref<48x1xf32, #tpu.memory_space<vmem>>, vector<8x1xf32>
    %109 = vector.broadcast %108 : vector<8x1xf32> to vector<8x256xf32>
    %110 = arith.addf %107, %109 : vector<8x256xf32>
    %111 = vector.extract_strided_slice %30 {offsets = [16, 0], sizes = [8, 256], strides = [1, 1]} : vector<32x256xf32> to vector<8x256xf32>
    %c8_51 = arith.constant 8 : index
    %c4_52 = arith.constant 4 : index
    %112 = vector.load %arg4[%c8_51, %c4_52] : memref<48x9xf32, #tpu.memory_space<vmem>>, vector<8x1xf32>
    %113 = vector.broadcast %112 : vector<8x1xf32> to vector<8x256xf32>
    %114 = arith.mulf %113, %111 : vector<8x256xf32>
    %c17_i32_53 = arith.constant 17 : i32
    %115 = tpu.dynamic_rotate %111 by %c17_i32_53 dim 1 : vector<8x256xf32>, i32 -> vector<8x256xf32>
    %c8_54 = arith.constant 8 : index
    %c0_55 = arith.constant 0 : index
    %116 = vector.load %arg4[%c8_54, %c0_55] : memref<48x9xf32, #tpu.memory_space<vmem>>, vector<8x1xf32>
    %c0_56 = arith.constant 0 : index
    %c0_57 = arith.constant 0 : index
    %c0_58 = arith.constant 0 : index
    %117 = vector.load %arg7[%c0_56, %c0_57, %c0_58] : memref<9x1x256xf32, #tpu.memory_space<vmem>>, vector<1x1x256xf32>
    %118 = vector.shape_cast %117 : vector<1x1x256xf32> to vector<1x256xf32>
    %119 = vector.broadcast %118 : vector<1x256xf32> to vector<8x256xf32>
    %120 = arith.mulf %119, %115 : vector<8x256xf32>
    %121 = vector.broadcast %116 : vector<8x1xf32> to vector<8x256xf32>
    %122 = arith.mulf %121, %120 : vector<8x256xf32>
    %123 = arith.addf %114, %122 : vector<8x256xf32>
    %c16_i32_59 = arith.constant 16 : i32
    %124 = tpu.dynamic_rotate %111 by %c16_i32_59 dim 1 : vector<8x256xf32>, i32 -> vector<8x256xf32>
    %c8_60 = arith.constant 8 : index
    %c1_61 = arith.constant 1 : index
    %125 = vector.load %arg4[%c8_60, %c1_61] : memref<48x9xf32, #tpu.memory_space<vmem>>, vector<8x1xf32>
    %c1_62 = arith.constant 1 : index
    %c0_63 = arith.constant 0 : index
    %c0_64 = arith.constant 0 : index
    %126 = vector.load %arg7[%c1_62, %c0_63, %c0_64] : memref<9x1x256xf32, #tpu.memory_space<vmem>>, vector<1x1x256xf32>
    %127 = vector.shape_cast %126 : vector<1x1x256xf32> to vector<1x256xf32>
    %128 = vector.broadcast %127 : vector<1x256xf32> to vector<8x256xf32>
    %129 = arith.mulf %128, %124 : vector<8x256xf32>
    %130 = vector.broadcast %125 : vector<8x1xf32> to vector<8x256xf32>
    %131 = arith.mulf %130, %129 : vector<8x256xf32>
    %132 = arith.addf %123, %131 : vector<8x256xf32>
    %c15_i32_65 = arith.constant 15 : i32
    %133 = tpu.dynamic_rotate %111 by %c15_i32_65 dim 1 : vector<8x256xf32>, i32 -> vector<8x256xf32>
    %c8_66 = arith.constant 8 : index
    %c2_67 = arith.constant 2 : index
    %134 = vector.load %arg4[%c8_66, %c2_67] : memref<48x9xf32, #tpu.memory_space<vmem>>, vector<8x1xf32>
    %c2_68 = arith.constant 2 : index
    %c0_69 = arith.constant 0 : index
    %c0_70 = arith.constant 0 : index
    %135 = vector.load %arg7[%c2_68, %c0_69, %c0_70] : memref<9x1x256xf32, #tpu.memory_space<vmem>>, vector<1x1x256xf32>
    %136 = vector.shape_cast %135 : vector<1x1x256xf32> to vector<1x256xf32>
    %137 = vector.broadcast %136 : vector<1x256xf32> to vector<8x256xf32>
    %138 = arith.mulf %137, %133 : vector<8x256xf32>
    %139 = vector.broadcast %134 : vector<8x1xf32> to vector<8x256xf32>
    %140 = arith.mulf %139, %138 : vector<8x256xf32>
    %141 = arith.addf %132, %140 : vector<8x256xf32>
    %c1_i32_71 = arith.constant 1 : i32
    %142 = tpu.dynamic_rotate %111 by %c1_i32_71 dim 1 : vector<8x256xf32>, i32 -> vector<8x256xf32>
    %c8_72 = arith.constant 8 : index
    %c3_73 = arith.constant 3 : index
    %143 = vector.load %arg4[%c8_72, %c3_73] : memref<48x9xf32, #tpu.memory_space<vmem>>, vector<8x1xf32>
    %c3_74 = arith.constant 3 : index
    %c0_75 = arith.constant 0 : index
    %c0_76 = arith.constant 0 : index
    %144 = vector.load %arg7[%c3_74, %c0_75, %c0_76] : memref<9x1x256xf32, #tpu.memory_space<vmem>>, vector<1x1x256xf32>
    %145 = vector.shape_cast %144 : vector<1x1x256xf32> to vector<1x256xf32>
    %146 = vector.broadcast %145 : vector<1x256xf32> to vector<8x256xf32>
    %147 = arith.mulf %146, %142 : vector<8x256xf32>
    %148 = vector.broadcast %143 : vector<8x1xf32> to vector<8x256xf32>
    %149 = arith.mulf %148, %147 : vector<8x256xf32>
    %150 = arith.addf %141, %149 : vector<8x256xf32>
    %c255_i32_77 = arith.constant 255 : i32
    %151 = tpu.dynamic_rotate %111 by %c255_i32_77 dim 1 : vector<8x256xf32>, i32 -> vector<8x256xf32>
    %c8_78 = arith.constant 8 : index
    %c5_79 = arith.constant 5 : index
    %152 = vector.load %arg4[%c8_78, %c5_79] : memref<48x9xf32, #tpu.memory_space<vmem>>, vector<8x1xf32>
    %c5_80 = arith.constant 5 : index
    %c0_81 = arith.constant 0 : index
    %c0_82 = arith.constant 0 : index
    %153 = vector.load %arg7[%c5_80, %c0_81, %c0_82] : memref<9x1x256xf32, #tpu.memory_space<vmem>>, vector<1x1x256xf32>
    %154 = vector.shape_cast %153 : vector<1x1x256xf32> to vector<1x256xf32>
    %155 = vector.broadcast %154 : vector<1x256xf32> to vector<8x256xf32>
    %156 = arith.mulf %155, %151 : vector<8x256xf32>
    %157 = vector.broadcast %152 : vector<8x1xf32> to vector<8x256xf32>
    %158 = arith.mulf %157, %156 : vector<8x256xf32>
    %159 = arith.addf %150, %158 : vector<8x256xf32>
    %c241_i32_83 = arith.constant 241 : i32
    %160 = tpu.dynamic_rotate %111 by %c241_i32_83 dim 1 : vector<8x256xf32>, i32 -> vector<8x256xf32>
    %c8_84 = arith.constant 8 : index
    %c6_85 = arith.constant 6 : index
    %161 = vector.load %arg4[%c8_84, %c6_85] : memref<48x9xf32, #tpu.memory_space<vmem>>, vector<8x1xf32>
    %c6_86 = arith.constant 6 : index
    %c0_87 = arith.constant 0 : index
    %c0_88 = arith.constant 0 : index
    %162 = vector.load %arg7[%c6_86, %c0_87, %c0_88] : memref<9x1x256xf32, #tpu.memory_space<vmem>>, vector<1x1x256xf32>
    %163 = vector.shape_cast %162 : vector<1x1x256xf32> to vector<1x256xf32>
    %164 = vector.broadcast %163 : vector<1x256xf32> to vector<8x256xf32>
    %165 = arith.mulf %164, %160 : vector<8x256xf32>
    %166 = vector.broadcast %161 : vector<8x1xf32> to vector<8x256xf32>
    %167 = arith.mulf %166, %165 : vector<8x256xf32>
    %168 = arith.addf %159, %167 : vector<8x256xf32>
    %c240_i32_89 = arith.constant 240 : i32
    %169 = tpu.dynamic_rotate %111 by %c240_i32_89 dim 1 : vector<8x256xf32>, i32 -> vector<8x256xf32>
    %c8_90 = arith.constant 8 : index
    %c7_91 = arith.constant 7 : index
    %170 = vector.load %arg4[%c8_90, %c7_91] : memref<48x9xf32, #tpu.memory_space<vmem>>, vector<8x1xf32>
    %c7_92 = arith.constant 7 : index
    %c0_93 = arith.constant 0 : index
    %c0_94 = arith.constant 0 : index
    %171 = vector.load %arg7[%c7_92, %c0_93, %c0_94] : memref<9x1x256xf32, #tpu.memory_space<vmem>>, vector<1x1x256xf32>
    %172 = vector.shape_cast %171 : vector<1x1x256xf32> to vector<1x256xf32>
    %173 = vector.broadcast %172 : vector<1x256xf32> to vector<8x256xf32>
    %174 = arith.mulf %173, %169 : vector<8x256xf32>
    %175 = vector.broadcast %170 : vector<8x1xf32> to vector<8x256xf32>
    %176 = arith.mulf %175, %174 : vector<8x256xf32>
    %177 = arith.addf %168, %176 : vector<8x256xf32>
    %c239_i32_95 = arith.constant 239 : i32
    %178 = tpu.dynamic_rotate %111 by %c239_i32_95 dim 1 : vector<8x256xf32>, i32 -> vector<8x256xf32>
    %c8_96 = arith.constant 8 : index
    %c8_97 = arith.constant 8 : index
    %179 = vector.load %arg4[%c8_96, %c8_97] : memref<48x9xf32, #tpu.memory_space<vmem>>, vector<8x1xf32>
    %c8_98 = arith.constant 8 : index
    %c0_99 = arith.constant 0 : index
    %c0_100 = arith.constant 0 : index
    %180 = vector.load %arg7[%c8_98, %c0_99, %c0_100] : memref<9x1x256xf32, #tpu.memory_space<vmem>>, vector<1x1x256xf32>
    %181 = vector.shape_cast %180 : vector<1x1x256xf32> to vector<1x256xf32>
    %182 = vector.broadcast %181 : vector<1x256xf32> to vector<8x256xf32>
    %183 = arith.mulf %182, %178 : vector<8x256xf32>
    %184 = vector.broadcast %179 : vector<8x1xf32> to vector<8x256xf32>
    %185 = arith.mulf %184, %183 : vector<8x256xf32>
    %186 = arith.addf %177, %185 : vector<8x256xf32>
    %c8_101 = arith.constant 8 : index
    %c0_102 = arith.constant 0 : index
    %187 = vector.load %arg5[%c8_101, %c0_102] : memref<48x1xf32, #tpu.memory_space<vmem>>, vector<8x1xf32>
    %188 = vector.broadcast %187 : vector<8x1xf32> to vector<8x256xf32>
    %189 = arith.addf %186, %188 : vector<8x256xf32>
    %190 = vector.extract_strided_slice %30 {offsets = [24, 0], sizes = [8, 256], strides = [1, 1]} : vector<32x256xf32> to vector<8x256xf32>
    %c16 = arith.constant 16 : index
    %c4_103 = arith.constant 4 : index
    %191 = vector.load %arg4[%c16, %c4_103] : memref<48x9xf32, #tpu.memory_space<vmem>>, vector<8x1xf32>
    %192 = vector.broadcast %191 : vector<8x1xf32> to vector<8x256xf32>
    %193 = arith.mulf %192, %190 : vector<8x256xf32>
    %c17_i32_104 = arith.constant 17 : i32
    %194 = tpu.dynamic_rotate %190 by %c17_i32_104 dim 1 : vector<8x256xf32>, i32 -> vector<8x256xf32>
    %c16_105 = arith.constant 16 : index
    %c0_106 = arith.constant 0 : index
    %195 = vector.load %arg4[%c16_105, %c0_106] : memref<48x9xf32, #tpu.memory_space<vmem>>, vector<8x1xf32>
    %c0_107 = arith.constant 0 : index
    %c0_108 = arith.constant 0 : index
    %c0_109 = arith.constant 0 : index
    %196 = vector.load %arg7[%c0_107, %c0_108, %c0_109] : memref<9x1x256xf32, #tpu.memory_space<vmem>>, vector<1x1x256xf32>
    %197 = vector.shape_cast %196 : vector<1x1x256xf32> to vector<1x256xf32>
    %198 = vector.broadcast %197 : vector<1x256xf32> to vector<8x256xf32>
    %199 = arith.mulf %198, %194 : vector<8x256xf32>
    %200 = vector.broadcast %195 : vector<8x1xf32> to vector<8x256xf32>
    %201 = arith.mulf %200, %199 : vector<8x256xf32>
    %202 = arith.addf %193, %201 : vector<8x256xf32>
    %c16_i32_110 = arith.constant 16 : i32
    %203 = tpu.dynamic_rotate %190 by %c16_i32_110 dim 1 : vector<8x256xf32>, i32 -> vector<8x256xf32>
    %c16_111 = arith.constant 16 : index
    %c1_112 = arith.constant 1 : index
    %204 = vector.load %arg4[%c16_111, %c1_112] : memref<48x9xf32, #tpu.memory_space<vmem>>, vector<8x1xf32>
    %c1_113 = arith.constant 1 : index
    %c0_114 = arith.constant 0 : index
    %c0_115 = arith.constant 0 : index
    %205 = vector.load %arg7[%c1_113, %c0_114, %c0_115] : memref<9x1x256xf32, #tpu.memory_space<vmem>>, vector<1x1x256xf32>
    %206 = vector.shape_cast %205 : vector<1x1x256xf32> to vector<1x256xf32>
    %207 = vector.broadcast %206 : vector<1x256xf32> to vector<8x256xf32>
    %208 = arith.mulf %207, %203 : vector<8x256xf32>
    %209 = vector.broadcast %204 : vector<8x1xf32> to vector<8x256xf32>
    %210 = arith.mulf %209, %208 : vector<8x256xf32>
    %211 = arith.addf %202, %210 : vector<8x256xf32>
    %c15_i32_116 = arith.constant 15 : i32
    %212 = tpu.dynamic_rotate %190 by %c15_i32_116 dim 1 : vector<8x256xf32>, i32 -> vector<8x256xf32>
    %c16_117 = arith.constant 16 : index
    %c2_118 = arith.constant 2 : index
    %213 = vector.load %arg4[%c16_117, %c2_118] : memref<48x9xf32, #tpu.memory_space<vmem>>, vector<8x1xf32>
    %c2_119 = arith.constant 2 : index
    %c0_120 = arith.constant 0 : index
    %c0_121 = arith.constant 0 : index
    %214 = vector.load %arg7[%c2_119, %c0_120, %c0_121] : memref<9x1x256xf32, #tpu.memory_space<vmem>>, vector<1x1x256xf32>
    %215 = vector.shape_cast %214 : vector<1x1x256xf32> to vector<1x256xf32>
    %216 = vector.broadcast %215 : vector<1x256xf32> to vector<8x256xf32>
    %217 = arith.mulf %216, %212 : vector<8x256xf32>
    %218 = vector.broadcast %213 : vector<8x1xf32> to vector<8x256xf32>
    %219 = arith.mulf %218, %217 : vector<8x256xf32>
    %220 = arith.addf %211, %219 : vector<8x256xf32>
    %c1_i32_122 = arith.constant 1 : i32
    %221 = tpu.dynamic_rotate %190 by %c1_i32_122 dim 1 : vector<8x256xf32>, i32 -> vector<8x256xf32>
    %c16_123 = arith.constant 16 : index
    %c3_124 = arith.constant 3 : index
    %222 = vector.load %arg4[%c16_123, %c3_124] : memref<48x9xf32, #tpu.memory_space<vmem>>, vector<8x1xf32>
    %c3_125 = arith.constant 3 : index
    %c0_126 = arith.constant 0 : index
    %c0_127 = arith.constant 0 : index
    %223 = vector.load %arg7[%c3_125, %c0_126, %c0_127] : memref<9x1x256xf32, #tpu.memory_space<vmem>>, vector<1x1x256xf32>
    %224 = vector.shape_cast %223 : vector<1x1x256xf32> to vector<1x256xf32>
    %225 = vector.broadcast %224 : vector<1x256xf32> to vector<8x256xf32>
    %226 = arith.mulf %225, %221 : vector<8x256xf32>
    %227 = vector.broadcast %222 : vector<8x1xf32> to vector<8x256xf32>
    %228 = arith.mulf %227, %226 : vector<8x256xf32>
    %229 = arith.addf %220, %228 : vector<8x256xf32>
    %c255_i32_128 = arith.constant 255 : i32
    %230 = tpu.dynamic_rotate %190 by %c255_i32_128 dim 1 : vector<8x256xf32>, i32 -> vector<8x256xf32>
    %c16_129 = arith.constant 16 : index
    %c5_130 = arith.constant 5 : index
    %231 = vector.load %arg4[%c16_129, %c5_130] : memref<48x9xf32, #tpu.memory_space<vmem>>, vector<8x1xf32>
    %c5_131 = arith.constant 5 : index
    %c0_132 = arith.constant 0 : index
    %c0_133 = arith.constant 0 : index
    %232 = vector.load %arg7[%c5_131, %c0_132, %c0_133] : memref<9x1x256xf32, #tpu.memory_space<vmem>>, vector<1x1x256xf32>
    %233 = vector.shape_cast %232 : vector<1x1x256xf32> to vector<1x256xf32>
    %234 = vector.broadcast %233 : vector<1x256xf32> to vector<8x256xf32>
    %235 = arith.mulf %234, %230 : vector<8x256xf32>
    %236 = vector.broadcast %231 : vector<8x1xf32> to vector<8x256xf32>
    %237 = arith.mulf %236, %235 : vector<8x256xf32>
    %238 = arith.addf %229, %237 : vector<8x256xf32>
    %c241_i32_134 = arith.constant 241 : i32
    %239 = tpu.dynamic_rotate %190 by %c241_i32_134 dim 1 : vector<8x256xf32>, i32 -> vector<8x256xf32>
    %c16_135 = arith.constant 16 : index
    %c6_136 = arith.constant 6 : index
    %240 = vector.load %arg4[%c16_135, %c6_136] : memref<48x9xf32, #tpu.memory_space<vmem>>, vector<8x1xf32>
    %c6_137 = arith.constant 6 : index
    %c0_138 = arith.constant 0 : index
    %c0_139 = arith.constant 0 : index
    %241 = vector.load %arg7[%c6_137, %c0_138, %c0_139] : memref<9x1x256xf32, #tpu.memory_space<vmem>>, vector<1x1x256xf32>
    %242 = vector.shape_cast %241 : vector<1x1x256xf32> to vector<1x256xf32>
    %243 = vector.broadcast %242 : vector<1x256xf32> to vector<8x256xf32>
    %244 = arith.mulf %243, %239 : vector<8x256xf32>
    %245 = vector.broadcast %240 : vector<8x1xf32> to vector<8x256xf32>
    %246 = arith.mulf %245, %244 : vector<8x256xf32>
    %247 = arith.addf %238, %246 : vector<8x256xf32>
    %c240_i32_140 = arith.constant 240 : i32
    %248 = tpu.dynamic_rotate %190 by %c240_i32_140 dim 1 : vector<8x256xf32>, i32 -> vector<8x256xf32>
    %c16_141 = arith.constant 16 : index
    %c7_142 = arith.constant 7 : index
    %249 = vector.load %arg4[%c16_141, %c7_142] : memref<48x9xf32, #tpu.memory_space<vmem>>, vector<8x1xf32>
    %c7_143 = arith.constant 7 : index
    %c0_144 = arith.constant 0 : index
    %c0_145 = arith.constant 0 : index
    %250 = vector.load %arg7[%c7_143, %c0_144, %c0_145] : memref<9x1x256xf32, #tpu.memory_space<vmem>>, vector<1x1x256xf32>
    %251 = vector.shape_cast %250 : vector<1x1x256xf32> to vector<1x256xf32>
    %252 = vector.broadcast %251 : vector<1x256xf32> to vector<8x256xf32>
    %253 = arith.mulf %252, %248 : vector<8x256xf32>
    %254 = vector.broadcast %249 : vector<8x1xf32> to vector<8x256xf32>
    %255 = arith.mulf %254, %253 : vector<8x256xf32>
    %256 = arith.addf %247, %255 : vector<8x256xf32>
    %c239_i32_146 = arith.constant 239 : i32
    %257 = tpu.dynamic_rotate %190 by %c239_i32_146 dim 1 : vector<8x256xf32>, i32 -> vector<8x256xf32>
    %c16_147 = arith.constant 16 : index
    %c8_148 = arith.constant 8 : index
    %258 = vector.load %arg4[%c16_147, %c8_148] : memref<48x9xf32, #tpu.memory_space<vmem>>, vector<8x1xf32>
    %c8_149 = arith.constant 8 : index
    %c0_150 = arith.constant 0 : index
    %c0_151 = arith.constant 0 : index
    %259 = vector.load %arg7[%c8_149, %c0_150, %c0_151] : memref<9x1x256xf32, #tpu.memory_space<vmem>>, vector<1x1x256xf32>
    %260 = vector.shape_cast %259 : vector<1x1x256xf32> to vector<1x256xf32>
    %261 = vector.broadcast %260 : vector<1x256xf32> to vector<8x256xf32>
    %262 = arith.mulf %261, %257 : vector<8x256xf32>
    %263 = vector.broadcast %258 : vector<8x1xf32> to vector<8x256xf32>
    %264 = arith.mulf %263, %262 : vector<8x256xf32>
    %265 = arith.addf %256, %264 : vector<8x256xf32>
    %c16_152 = arith.constant 16 : index
    %c0_153 = arith.constant 0 : index
    %266 = vector.load %arg5[%c16_152, %c0_153] : memref<48x1xf32, #tpu.memory_space<vmem>>, vector<8x1xf32>
    %267 = vector.broadcast %266 : vector<8x1xf32> to vector<8x256xf32>
    %268 = arith.addf %265, %267 : vector<8x256xf32>
    %269 = arith.mulf %110, %189 : vector<8x256xf32>
    %270 = arith.addf %269, %268 : vector<8x256xf32>
    %c32 = arith.constant 32 : index
    %c0_154 = arith.constant 0 : index
    %271 = vector.load %arg2[%c32, %c0_154] : memref<136x8xf32, #tpu.memory_space<vmem>>, vector<24x8xf32>
    %cst_155 = arith.constant dense<0.000000e+00> : vector<24x256xf32>
    %272 = tpu.matmul %271, %270, %cst_155 {dimension_numbers = #tpu.dot_dimension_numbers<[1], [0], [0], [1], [0, 0, 1, 1], [], []>} : vector<24x8xf32>, vector<8x256xf32>, vector<24x256xf32> -> vector<24x256xf32>
    %c32_156 = arith.constant 32 : index
    %c0_157 = arith.constant 0 : index
    %273 = vector.load %arg3[%c32_156, %c0_157] : memref<136x1xf32, #tpu.memory_space<vmem>>, vector<24x1xf32>
    %274 = vector.broadcast %273 : vector<24x1xf32> to vector<24x256xf32>
    %275 = arith.addf %272, %274 : vector<24x256xf32>
    %276 = vector.extract_strided_slice %275 {offsets = [0, 0], sizes = [8, 256], strides = [1, 1]} : vector<24x256xf32> to vector<8x256xf32>
    %c24 = arith.constant 24 : index
    %c4_158 = arith.constant 4 : index
    %277 = vector.load %arg4[%c24, %c4_158] : memref<48x9xf32, #tpu.memory_space<vmem>>, vector<8x1xf32>
    %278 = vector.broadcast %277 : vector<8x1xf32> to vector<8x256xf32>
    %279 = arith.mulf %278, %276 : vector<8x256xf32>
    %c17_i32_159 = arith.constant 17 : i32
    %280 = tpu.dynamic_rotate %276 by %c17_i32_159 dim 1 : vector<8x256xf32>, i32 -> vector<8x256xf32>
    %c24_160 = arith.constant 24 : index
    %c0_161 = arith.constant 0 : index
    %281 = vector.load %arg4[%c24_160, %c0_161] : memref<48x9xf32, #tpu.memory_space<vmem>>, vector<8x1xf32>
    %c0_162 = arith.constant 0 : index
    %c0_163 = arith.constant 0 : index
    %c0_164 = arith.constant 0 : index
    %282 = vector.load %arg7[%c0_162, %c0_163, %c0_164] : memref<9x1x256xf32, #tpu.memory_space<vmem>>, vector<1x1x256xf32>
    %283 = vector.shape_cast %282 : vector<1x1x256xf32> to vector<1x256xf32>
    %284 = vector.broadcast %283 : vector<1x256xf32> to vector<8x256xf32>
    %285 = arith.mulf %284, %280 : vector<8x256xf32>
    %286 = vector.broadcast %281 : vector<8x1xf32> to vector<8x256xf32>
    %287 = arith.mulf %286, %285 : vector<8x256xf32>
    %288 = arith.addf %279, %287 : vector<8x256xf32>
    %c16_i32_165 = arith.constant 16 : i32
    %289 = tpu.dynamic_rotate %276 by %c16_i32_165 dim 1 : vector<8x256xf32>, i32 -> vector<8x256xf32>
    %c24_166 = arith.constant 24 : index
    %c1_167 = arith.constant 1 : index
    %290 = vector.load %arg4[%c24_166, %c1_167] : memref<48x9xf32, #tpu.memory_space<vmem>>, vector<8x1xf32>
    %c1_168 = arith.constant 1 : index
    %c0_169 = arith.constant 0 : index
    %c0_170 = arith.constant 0 : index
    %291 = vector.load %arg7[%c1_168, %c0_169, %c0_170] : memref<9x1x256xf32, #tpu.memory_space<vmem>>, vector<1x1x256xf32>
    %292 = vector.shape_cast %291 : vector<1x1x256xf32> to vector<1x256xf32>
    %293 = vector.broadcast %292 : vector<1x256xf32> to vector<8x256xf32>
    %294 = arith.mulf %293, %289 : vector<8x256xf32>
    %295 = vector.broadcast %290 : vector<8x1xf32> to vector<8x256xf32>
    %296 = arith.mulf %295, %294 : vector<8x256xf32>
    %297 = arith.addf %288, %296 : vector<8x256xf32>
    %c15_i32_171 = arith.constant 15 : i32
    %298 = tpu.dynamic_rotate %276 by %c15_i32_171 dim 1 : vector<8x256xf32>, i32 -> vector<8x256xf32>
    %c24_172 = arith.constant 24 : index
    %c2_173 = arith.constant 2 : index
    %299 = vector.load %arg4[%c24_172, %c2_173] : memref<48x9xf32, #tpu.memory_space<vmem>>, vector<8x1xf32>
    %c2_174 = arith.constant 2 : index
    %c0_175 = arith.constant 0 : index
    %c0_176 = arith.constant 0 : index
    %300 = vector.load %arg7[%c2_174, %c0_175, %c0_176] : memref<9x1x256xf32, #tpu.memory_space<vmem>>, vector<1x1x256xf32>
    %301 = vector.shape_cast %300 : vector<1x1x256xf32> to vector<1x256xf32>
    %302 = vector.broadcast %301 : vector<1x256xf32> to vector<8x256xf32>
    %303 = arith.mulf %302, %298 : vector<8x256xf32>
    %304 = vector.broadcast %299 : vector<8x1xf32> to vector<8x256xf32>
    %305 = arith.mulf %304, %303 : vector<8x256xf32>
    %306 = arith.addf %297, %305 : vector<8x256xf32>
    %c1_i32_177 = arith.constant 1 : i32
    %307 = tpu.dynamic_rotate %276 by %c1_i32_177 dim 1 : vector<8x256xf32>, i32 -> vector<8x256xf32>
    %c24_178 = arith.constant 24 : index
    %c3_179 = arith.constant 3 : index
    %308 = vector.load %arg4[%c24_178, %c3_179] : memref<48x9xf32, #tpu.memory_space<vmem>>, vector<8x1xf32>
    %c3_180 = arith.constant 3 : index
    %c0_181 = arith.constant 0 : index
    %c0_182 = arith.constant 0 : index
    %309 = vector.load %arg7[%c3_180, %c0_181, %c0_182] : memref<9x1x256xf32, #tpu.memory_space<vmem>>, vector<1x1x256xf32>
    %310 = vector.shape_cast %309 : vector<1x1x256xf32> to vector<1x256xf32>
    %311 = vector.broadcast %310 : vector<1x256xf32> to vector<8x256xf32>
    %312 = arith.mulf %311, %307 : vector<8x256xf32>
    %313 = vector.broadcast %308 : vector<8x1xf32> to vector<8x256xf32>
    %314 = arith.mulf %313, %312 : vector<8x256xf32>
    %315 = arith.addf %306, %314 : vector<8x256xf32>
    %c255_i32_183 = arith.constant 255 : i32
    %316 = tpu.dynamic_rotate %276 by %c255_i32_183 dim 1 : vector<8x256xf32>, i32 -> vector<8x256xf32>
    %c24_184 = arith.constant 24 : index
    %c5_185 = arith.constant 5 : index
    %317 = vector.load %arg4[%c24_184, %c5_185] : memref<48x9xf32, #tpu.memory_space<vmem>>, vector<8x1xf32>
    %c5_186 = arith.constant 5 : index
    %c0_187 = arith.constant 0 : index
    %c0_188 = arith.constant 0 : index
    %318 = vector.load %arg7[%c5_186, %c0_187, %c0_188] : memref<9x1x256xf32, #tpu.memory_space<vmem>>, vector<1x1x256xf32>
    %319 = vector.shape_cast %318 : vector<1x1x256xf32> to vector<1x256xf32>
    %320 = vector.broadcast %319 : vector<1x256xf32> to vector<8x256xf32>
    %321 = arith.mulf %320, %316 : vector<8x256xf32>
    %322 = vector.broadcast %317 : vector<8x1xf32> to vector<8x256xf32>
    %323 = arith.mulf %322, %321 : vector<8x256xf32>
    %324 = arith.addf %315, %323 : vector<8x256xf32>
    %c241_i32_189 = arith.constant 241 : i32
    %325 = tpu.dynamic_rotate %276 by %c241_i32_189 dim 1 : vector<8x256xf32>, i32 -> vector<8x256xf32>
    %c24_190 = arith.constant 24 : index
    %c6_191 = arith.constant 6 : index
    %326 = vector.load %arg4[%c24_190, %c6_191] : memref<48x9xf32, #tpu.memory_space<vmem>>, vector<8x1xf32>
    %c6_192 = arith.constant 6 : index
    %c0_193 = arith.constant 0 : index
    %c0_194 = arith.constant 0 : index
    %327 = vector.load %arg7[%c6_192, %c0_193, %c0_194] : memref<9x1x256xf32, #tpu.memory_space<vmem>>, vector<1x1x256xf32>
    %328 = vector.shape_cast %327 : vector<1x1x256xf32> to vector<1x256xf32>
    %329 = vector.broadcast %328 : vector<1x256xf32> to vector<8x256xf32>
    %330 = arith.mulf %329, %325 : vector<8x256xf32>
    %331 = vector.broadcast %326 : vector<8x1xf32> to vector<8x256xf32>
    %332 = arith.mulf %331, %330 : vector<8x256xf32>
    %333 = arith.addf %324, %332 : vector<8x256xf32>
    %c240_i32_195 = arith.constant 240 : i32
    %334 = tpu.dynamic_rotate %276 by %c240_i32_195 dim 1 : vector<8x256xf32>, i32 -> vector<8x256xf32>
    %c24_196 = arith.constant 24 : index
    %c7_197 = arith.constant 7 : index
    %335 = vector.load %arg4[%c24_196, %c7_197] : memref<48x9xf32, #tpu.memory_space<vmem>>, vector<8x1xf32>
    %c7_198 = arith.constant 7 : index
    %c0_199 = arith.constant 0 : index
    %c0_200 = arith.constant 0 : index
    %336 = vector.load %arg7[%c7_198, %c0_199, %c0_200] : memref<9x1x256xf32, #tpu.memory_space<vmem>>, vector<1x1x256xf32>
    %337 = vector.shape_cast %336 : vector<1x1x256xf32> to vector<1x256xf32>
    %338 = vector.broadcast %337 : vector<1x256xf32> to vector<8x256xf32>
    %339 = arith.mulf %338, %334 : vector<8x256xf32>
    %340 = vector.broadcast %335 : vector<8x1xf32> to vector<8x256xf32>
    %341 = arith.mulf %340, %339 : vector<8x256xf32>
    %342 = arith.addf %333, %341 : vector<8x256xf32>
    %c239_i32_201 = arith.constant 239 : i32
    %343 = tpu.dynamic_rotate %276 by %c239_i32_201 dim 1 : vector<8x256xf32>, i32 -> vector<8x256xf32>
    %c24_202 = arith.constant 24 : index
    %c8_203 = arith.constant 8 : index
    %344 = vector.load %arg4[%c24_202, %c8_203] : memref<48x9xf32, #tpu.memory_space<vmem>>, vector<8x1xf32>
    %c8_204 = arith.constant 8 : index
    %c0_205 = arith.constant 0 : index
    %c0_206 = arith.constant 0 : index
    %345 = vector.load %arg7[%c8_204, %c0_205, %c0_206] : memref<9x1x256xf32, #tpu.memory_space<vmem>>, vector<1x1x256xf32>
    %346 = vector.shape_cast %345 : vector<1x1x256xf32> to vector<1x256xf32>
    %347 = vector.broadcast %346 : vector<1x256xf32> to vector<8x256xf32>
    %348 = arith.mulf %347, %343 : vector<8x256xf32>
    %349 = vector.broadcast %344 : vector<8x1xf32> to vector<8x256xf32>
    %350 = arith.mulf %349, %348 : vector<8x256xf32>
    %351 = arith.addf %342, %350 : vector<8x256xf32>
    %c24_207 = arith.constant 24 : index
    %c0_208 = arith.constant 0 : index
    %352 = vector.load %arg5[%c24_207, %c0_208] : memref<48x1xf32, #tpu.memory_space<vmem>>, vector<8x1xf32>
    %353 = vector.broadcast %352 : vector<8x1xf32> to vector<8x256xf32>
    %354 = arith.addf %351, %353 : vector<8x256xf32>
    %355 = vector.extract_strided_slice %275 {offsets = [8, 0], sizes = [8, 256], strides = [1, 1]} : vector<24x256xf32> to vector<8x256xf32>
    %c32_209 = arith.constant 32 : index
    %c4_210 = arith.constant 4 : index
    %356 = vector.load %arg4[%c32_209, %c4_210] : memref<48x9xf32, #tpu.memory_space<vmem>>, vector<8x1xf32>
    %357 = vector.broadcast %356 : vector<8x1xf32> to vector<8x256xf32>
    %358 = arith.mulf %357, %355 : vector<8x256xf32>
    %c17_i32_211 = arith.constant 17 : i32
    %359 = tpu.dynamic_rotate %355 by %c17_i32_211 dim 1 : vector<8x256xf32>, i32 -> vector<8x256xf32>
    %c32_212 = arith.constant 32 : index
    %c0_213 = arith.constant 0 : index
    %360 = vector.load %arg4[%c32_212, %c0_213] : memref<48x9xf32, #tpu.memory_space<vmem>>, vector<8x1xf32>
    %c0_214 = arith.constant 0 : index
    %c0_215 = arith.constant 0 : index
    %c0_216 = arith.constant 0 : index
    %361 = vector.load %arg7[%c0_214, %c0_215, %c0_216] : memref<9x1x256xf32, #tpu.memory_space<vmem>>, vector<1x1x256xf32>
    %362 = vector.shape_cast %361 : vector<1x1x256xf32> to vector<1x256xf32>
    %363 = vector.broadcast %362 : vector<1x256xf32> to vector<8x256xf32>
    %364 = arith.mulf %363, %359 : vector<8x256xf32>
    %365 = vector.broadcast %360 : vector<8x1xf32> to vector<8x256xf32>
    %366 = arith.mulf %365, %364 : vector<8x256xf32>
    %367 = arith.addf %358, %366 : vector<8x256xf32>
    %c16_i32_217 = arith.constant 16 : i32
    %368 = tpu.dynamic_rotate %355 by %c16_i32_217 dim 1 : vector<8x256xf32>, i32 -> vector<8x256xf32>
    %c32_218 = arith.constant 32 : index
    %c1_219 = arith.constant 1 : index
    %369 = vector.load %arg4[%c32_218, %c1_219] : memref<48x9xf32, #tpu.memory_space<vmem>>, vector<8x1xf32>
    %c1_220 = arith.constant 1 : index
    %c0_221 = arith.constant 0 : index
    %c0_222 = arith.constant 0 : index
    %370 = vector.load %arg7[%c1_220, %c0_221, %c0_222] : memref<9x1x256xf32, #tpu.memory_space<vmem>>, vector<1x1x256xf32>
    %371 = vector.shape_cast %370 : vector<1x1x256xf32> to vector<1x256xf32>
    %372 = vector.broadcast %371 : vector<1x256xf32> to vector<8x256xf32>
    %373 = arith.mulf %372, %368 : vector<8x256xf32>
    %374 = vector.broadcast %369 : vector<8x1xf32> to vector<8x256xf32>
    %375 = arith.mulf %374, %373 : vector<8x256xf32>
    %376 = arith.addf %367, %375 : vector<8x256xf32>
    %c15_i32_223 = arith.constant 15 : i32
    %377 = tpu.dynamic_rotate %355 by %c15_i32_223 dim 1 : vector<8x256xf32>, i32 -> vector<8x256xf32>
    %c32_224 = arith.constant 32 : index
    %c2_225 = arith.constant 2 : index
    %378 = vector.load %arg4[%c32_224, %c2_225] : memref<48x9xf32, #tpu.memory_space<vmem>>, vector<8x1xf32>
    %c2_226 = arith.constant 2 : index
    %c0_227 = arith.constant 0 : index
    %c0_228 = arith.constant 0 : index
    %379 = vector.load %arg7[%c2_226, %c0_227, %c0_228] : memref<9x1x256xf32, #tpu.memory_space<vmem>>, vector<1x1x256xf32>
    %380 = vector.shape_cast %379 : vector<1x1x256xf32> to vector<1x256xf32>
    %381 = vector.broadcast %380 : vector<1x256xf32> to vector<8x256xf32>
    %382 = arith.mulf %381, %377 : vector<8x256xf32>
    %383 = vector.broadcast %378 : vector<8x1xf32> to vector<8x256xf32>
    %384 = arith.mulf %383, %382 : vector<8x256xf32>
    %385 = arith.addf %376, %384 : vector<8x256xf32>
    %c1_i32_229 = arith.constant 1 : i32
    %386 = tpu.dynamic_rotate %355 by %c1_i32_229 dim 1 : vector<8x256xf32>, i32 -> vector<8x256xf32>
    %c32_230 = arith.constant 32 : index
    %c3_231 = arith.constant 3 : index
    %387 = vector.load %arg4[%c32_230, %c3_231] : memref<48x9xf32, #tpu.memory_space<vmem>>, vector<8x1xf32>
    %c3_232 = arith.constant 3 : index
    %c0_233 = arith.constant 0 : index
    %c0_234 = arith.constant 0 : index
    %388 = vector.load %arg7[%c3_232, %c0_233, %c0_234] : memref<9x1x256xf32, #tpu.memory_space<vmem>>, vector<1x1x256xf32>
    %389 = vector.shape_cast %388 : vector<1x1x256xf32> to vector<1x256xf32>
    %390 = vector.broadcast %389 : vector<1x256xf32> to vector<8x256xf32>
    %391 = arith.mulf %390, %386 : vector<8x256xf32>
    %392 = vector.broadcast %387 : vector<8x1xf32> to vector<8x256xf32>
    %393 = arith.mulf %392, %391 : vector<8x256xf32>
    %394 = arith.addf %385, %393 : vector<8x256xf32>
    %c255_i32_235 = arith.constant 255 : i32
    %395 = tpu.dynamic_rotate %355 by %c255_i32_235 dim 1 : vector<8x256xf32>, i32 -> vector<8x256xf32>
    %c32_236 = arith.constant 32 : index
    %c5_237 = arith.constant 5 : index
    %396 = vector.load %arg4[%c32_236, %c5_237] : memref<48x9xf32, #tpu.memory_space<vmem>>, vector<8x1xf32>
    %c5_238 = arith.constant 5 : index
    %c0_239 = arith.constant 0 : index
    %c0_240 = arith.constant 0 : index
    %397 = vector.load %arg7[%c5_238, %c0_239, %c0_240] : memref<9x1x256xf32, #tpu.memory_space<vmem>>, vector<1x1x256xf32>
    %398 = vector.shape_cast %397 : vector<1x1x256xf32> to vector<1x256xf32>
    %399 = vector.broadcast %398 : vector<1x256xf32> to vector<8x256xf32>
    %400 = arith.mulf %399, %395 : vector<8x256xf32>
    %401 = vector.broadcast %396 : vector<8x1xf32> to vector<8x256xf32>
    %402 = arith.mulf %401, %400 : vector<8x256xf32>
    %403 = arith.addf %394, %402 : vector<8x256xf32>
    %c241_i32_241 = arith.constant 241 : i32
    %404 = tpu.dynamic_rotate %355 by %c241_i32_241 dim 1 : vector<8x256xf32>, i32 -> vector<8x256xf32>
    %c32_242 = arith.constant 32 : index
    %c6_243 = arith.constant 6 : index
    %405 = vector.load %arg4[%c32_242, %c6_243] : memref<48x9xf32, #tpu.memory_space<vmem>>, vector<8x1xf32>
    %c6_244 = arith.constant 6 : index
    %c0_245 = arith.constant 0 : index
    %c0_246 = arith.constant 0 : index
    %406 = vector.load %arg7[%c6_244, %c0_245, %c0_246] : memref<9x1x256xf32, #tpu.memory_space<vmem>>, vector<1x1x256xf32>
    %407 = vector.shape_cast %406 : vector<1x1x256xf32> to vector<1x256xf32>
    %408 = vector.broadcast %407 : vector<1x256xf32> to vector<8x256xf32>
    %409 = arith.mulf %408, %404 : vector<8x256xf32>
    %410 = vector.broadcast %405 : vector<8x1xf32> to vector<8x256xf32>
    %411 = arith.mulf %410, %409 : vector<8x256xf32>
    %412 = arith.addf %403, %411 : vector<8x256xf32>
    %c240_i32_247 = arith.constant 240 : i32
    %413 = tpu.dynamic_rotate %355 by %c240_i32_247 dim 1 : vector<8x256xf32>, i32 -> vector<8x256xf32>
    %c32_248 = arith.constant 32 : index
    %c7_249 = arith.constant 7 : index
    %414 = vector.load %arg4[%c32_248, %c7_249] : memref<48x9xf32, #tpu.memory_space<vmem>>, vector<8x1xf32>
    %c7_250 = arith.constant 7 : index
    %c0_251 = arith.constant 0 : index
    %c0_252 = arith.constant 0 : index
    %415 = vector.load %arg7[%c7_250, %c0_251, %c0_252] : memref<9x1x256xf32, #tpu.memory_space<vmem>>, vector<1x1x256xf32>
    %416 = vector.shape_cast %415 : vector<1x1x256xf32> to vector<1x256xf32>
    %417 = vector.broadcast %416 : vector<1x256xf32> to vector<8x256xf32>
    %418 = arith.mulf %417, %413 : vector<8x256xf32>
    %419 = vector.broadcast %414 : vector<8x1xf32> to vector<8x256xf32>
    %420 = arith.mulf %419, %418 : vector<8x256xf32>
    %421 = arith.addf %412, %420 : vector<8x256xf32>
    %c239_i32_253 = arith.constant 239 : i32
    %422 = tpu.dynamic_rotate %355 by %c239_i32_253 dim 1 : vector<8x256xf32>, i32 -> vector<8x256xf32>
    %c32_254 = arith.constant 32 : index
    %c8_255 = arith.constant 8 : index
    %423 = vector.load %arg4[%c32_254, %c8_255] : memref<48x9xf32, #tpu.memory_space<vmem>>, vector<8x1xf32>
    %c8_256 = arith.constant 8 : index
    %c0_257 = arith.constant 0 : index
    %c0_258 = arith.constant 0 : index
    %424 = vector.load %arg7[%c8_256, %c0_257, %c0_258] : memref<9x1x256xf32, #tpu.memory_space<vmem>>, vector<1x1x256xf32>
    %425 = vector.shape_cast %424 : vector<1x1x256xf32> to vector<1x256xf32>
    %426 = vector.broadcast %425 : vector<1x256xf32> to vector<8x256xf32>
    %427 = arith.mulf %426, %422 : vector<8x256xf32>
    %428 = vector.broadcast %423 : vector<8x1xf32> to vector<8x256xf32>
    %429 = arith.mulf %428, %427 : vector<8x256xf32>
    %430 = arith.addf %421, %429 : vector<8x256xf32>
    %c32_259 = arith.constant 32 : index
    %c0_260 = arith.constant 0 : index
    %431 = vector.load %arg5[%c32_259, %c0_260] : memref<48x1xf32, #tpu.memory_space<vmem>>, vector<8x1xf32>
    %432 = vector.broadcast %431 : vector<8x1xf32> to vector<8x256xf32>
    %433 = arith.addf %430, %432 : vector<8x256xf32>
    %434 = vector.extract_strided_slice %275 {offsets = [16, 0], sizes = [8, 256], strides = [1, 1]} : vector<24x256xf32> to vector<8x256xf32>
    %c40 = arith.constant 40 : index
    %c4_261 = arith.constant 4 : index
    %435 = vector.load %arg4[%c40, %c4_261] : memref<48x9xf32, #tpu.memory_space<vmem>>, vector<8x1xf32>
    %436 = vector.broadcast %435 : vector<8x1xf32> to vector<8x256xf32>
    %437 = arith.mulf %436, %434 : vector<8x256xf32>
    %c17_i32_262 = arith.constant 17 : i32
    %438 = tpu.dynamic_rotate %434 by %c17_i32_262 dim 1 : vector<8x256xf32>, i32 -> vector<8x256xf32>
    %c40_263 = arith.constant 40 : index
    %c0_264 = arith.constant 0 : index
    %439 = vector.load %arg4[%c40_263, %c0_264] : memref<48x9xf32, #tpu.memory_space<vmem>>, vector<8x1xf32>
    %c0_265 = arith.constant 0 : index
    %c0_266 = arith.constant 0 : index
    %c0_267 = arith.constant 0 : index
    %440 = vector.load %arg7[%c0_265, %c0_266, %c0_267] : memref<9x1x256xf32, #tpu.memory_space<vmem>>, vector<1x1x256xf32>
    %441 = vector.shape_cast %440 : vector<1x1x256xf32> to vector<1x256xf32>
    %442 = vector.broadcast %441 : vector<1x256xf32> to vector<8x256xf32>
    %443 = arith.mulf %442, %438 : vector<8x256xf32>
    %444 = vector.broadcast %439 : vector<8x1xf32> to vector<8x256xf32>
    %445 = arith.mulf %444, %443 : vector<8x256xf32>
    %446 = arith.addf %437, %445 : vector<8x256xf32>
    %c16_i32_268 = arith.constant 16 : i32
    %447 = tpu.dynamic_rotate %434 by %c16_i32_268 dim 1 : vector<8x256xf32>, i32 -> vector<8x256xf32>
    %c40_269 = arith.constant 40 : index
    %c1_270 = arith.constant 1 : index
    %448 = vector.load %arg4[%c40_269, %c1_270] : memref<48x9xf32, #tpu.memory_space<vmem>>, vector<8x1xf32>
    %c1_271 = arith.constant 1 : index
    %c0_272 = arith.constant 0 : index
    %c0_273 = arith.constant 0 : index
    %449 = vector.load %arg7[%c1_271, %c0_272, %c0_273] : memref<9x1x256xf32, #tpu.memory_space<vmem>>, vector<1x1x256xf32>
    %450 = vector.shape_cast %449 : vector<1x1x256xf32> to vector<1x256xf32>
    %451 = vector.broadcast %450 : vector<1x256xf32> to vector<8x256xf32>
    %452 = arith.mulf %451, %447 : vector<8x256xf32>
    %453 = vector.broadcast %448 : vector<8x1xf32> to vector<8x256xf32>
    %454 = arith.mulf %453, %452 : vector<8x256xf32>
    %455 = arith.addf %446, %454 : vector<8x256xf32>
    %c15_i32_274 = arith.constant 15 : i32
    %456 = tpu.dynamic_rotate %434 by %c15_i32_274 dim 1 : vector<8x256xf32>, i32 -> vector<8x256xf32>
    %c40_275 = arith.constant 40 : index
    %c2_276 = arith.constant 2 : index
    %457 = vector.load %arg4[%c40_275, %c2_276] : memref<48x9xf32, #tpu.memory_space<vmem>>, vector<8x1xf32>
    %c2_277 = arith.constant 2 : index
    %c0_278 = arith.constant 0 : index
    %c0_279 = arith.constant 0 : index
    %458 = vector.load %arg7[%c2_277, %c0_278, %c0_279] : memref<9x1x256xf32, #tpu.memory_space<vmem>>, vector<1x1x256xf32>
    %459 = vector.shape_cast %458 : vector<1x1x256xf32> to vector<1x256xf32>
    %460 = vector.broadcast %459 : vector<1x256xf32> to vector<8x256xf32>
    %461 = arith.mulf %460, %456 : vector<8x256xf32>
    %462 = vector.broadcast %457 : vector<8x1xf32> to vector<8x256xf32>
    %463 = arith.mulf %462, %461 : vector<8x256xf32>
    %464 = arith.addf %455, %463 : vector<8x256xf32>
    %c1_i32_280 = arith.constant 1 : i32
    %465 = tpu.dynamic_rotate %434 by %c1_i32_280 dim 1 : vector<8x256xf32>, i32 -> vector<8x256xf32>
    %c40_281 = arith.constant 40 : index
    %c3_282 = arith.constant 3 : index
    %466 = vector.load %arg4[%c40_281, %c3_282] : memref<48x9xf32, #tpu.memory_space<vmem>>, vector<8x1xf32>
    %c3_283 = arith.constant 3 : index
    %c0_284 = arith.constant 0 : index
    %c0_285 = arith.constant 0 : index
    %467 = vector.load %arg7[%c3_283, %c0_284, %c0_285] : memref<9x1x256xf32, #tpu.memory_space<vmem>>, vector<1x1x256xf32>
    %468 = vector.shape_cast %467 : vector<1x1x256xf32> to vector<1x256xf32>
    %469 = vector.broadcast %468 : vector<1x256xf32> to vector<8x256xf32>
    %470 = arith.mulf %469, %465 : vector<8x256xf32>
    %471 = vector.broadcast %466 : vector<8x1xf32> to vector<8x256xf32>
    %472 = arith.mulf %471, %470 : vector<8x256xf32>
    %473 = arith.addf %464, %472 : vector<8x256xf32>
    %c255_i32_286 = arith.constant 255 : i32
    %474 = tpu.dynamic_rotate %434 by %c255_i32_286 dim 1 : vector<8x256xf32>, i32 -> vector<8x256xf32>
    %c40_287 = arith.constant 40 : index
    %c5_288 = arith.constant 5 : index
    %475 = vector.load %arg4[%c40_287, %c5_288] : memref<48x9xf32, #tpu.memory_space<vmem>>, vector<8x1xf32>
    %c5_289 = arith.constant 5 : index
    %c0_290 = arith.constant 0 : index
    %c0_291 = arith.constant 0 : index
    %476 = vector.load %arg7[%c5_289, %c0_290, %c0_291] : memref<9x1x256xf32, #tpu.memory_space<vmem>>, vector<1x1x256xf32>
    %477 = vector.shape_cast %476 : vector<1x1x256xf32> to vector<1x256xf32>
    %478 = vector.broadcast %477 : vector<1x256xf32> to vector<8x256xf32>
    %479 = arith.mulf %478, %474 : vector<8x256xf32>
    %480 = vector.broadcast %475 : vector<8x1xf32> to vector<8x256xf32>
    %481 = arith.mulf %480, %479 : vector<8x256xf32>
    %482 = arith.addf %473, %481 : vector<8x256xf32>
    %c241_i32_292 = arith.constant 241 : i32
    %483 = tpu.dynamic_rotate %434 by %c241_i32_292 dim 1 : vector<8x256xf32>, i32 -> vector<8x256xf32>
    %c40_293 = arith.constant 40 : index
    %c6_294 = arith.constant 6 : index
    %484 = vector.load %arg4[%c40_293, %c6_294] : memref<48x9xf32, #tpu.memory_space<vmem>>, vector<8x1xf32>
    %c6_295 = arith.constant 6 : index
    %c0_296 = arith.constant 0 : index
    %c0_297 = arith.constant 0 : index
    %485 = vector.load %arg7[%c6_295, %c0_296, %c0_297] : memref<9x1x256xf32, #tpu.memory_space<vmem>>, vector<1x1x256xf32>
    %486 = vector.shape_cast %485 : vector<1x1x256xf32> to vector<1x256xf32>
    %487 = vector.broadcast %486 : vector<1x256xf32> to vector<8x256xf32>
    %488 = arith.mulf %487, %483 : vector<8x256xf32>
    %489 = vector.broadcast %484 : vector<8x1xf32> to vector<8x256xf32>
    %490 = arith.mulf %489, %488 : vector<8x256xf32>
    %491 = arith.addf %482, %490 : vector<8x256xf32>
    %c240_i32_298 = arith.constant 240 : i32
    %492 = tpu.dynamic_rotate %434 by %c240_i32_298 dim 1 : vector<8x256xf32>, i32 -> vector<8x256xf32>
    %c40_299 = arith.constant 40 : index
    %c7_300 = arith.constant 7 : index
    %493 = vector.load %arg4[%c40_299, %c7_300] : memref<48x9xf32, #tpu.memory_space<vmem>>, vector<8x1xf32>
    %c7_301 = arith.constant 7 : index
    %c0_302 = arith.constant 0 : index
    %c0_303 = arith.constant 0 : index
    %494 = vector.load %arg7[%c7_301, %c0_302, %c0_303] : memref<9x1x256xf32, #tpu.memory_space<vmem>>, vector<1x1x256xf32>
    %495 = vector.shape_cast %494 : vector<1x1x256xf32> to vector<1x256xf32>
    %496 = vector.broadcast %495 : vector<1x256xf32> to vector<8x256xf32>
    %497 = arith.mulf %496, %492 : vector<8x256xf32>
    %498 = vector.broadcast %493 : vector<8x1xf32> to vector<8x256xf32>
    %499 = arith.mulf %498, %497 : vector<8x256xf32>
    %500 = arith.addf %491, %499 : vector<8x256xf32>
    %c239_i32_304 = arith.constant 239 : i32
    %501 = tpu.dynamic_rotate %434 by %c239_i32_304 dim 1 : vector<8x256xf32>, i32 -> vector<8x256xf32>
    %c40_305 = arith.constant 40 : index
    %c8_306 = arith.constant 8 : index
    %502 = vector.load %arg4[%c40_305, %c8_306] : memref<48x9xf32, #tpu.memory_space<vmem>>, vector<8x1xf32>
    %c8_307 = arith.constant 8 : index
    %c0_308 = arith.constant 0 : index
    %c0_309 = arith.constant 0 : index
    %503 = vector.load %arg7[%c8_307, %c0_308, %c0_309] : memref<9x1x256xf32, #tpu.memory_space<vmem>>, vector<1x1x256xf32>
    %504 = vector.shape_cast %503 : vector<1x1x256xf32> to vector<1x256xf32>
    %505 = vector.broadcast %504 : vector<1x256xf32> to vector<8x256xf32>
    %506 = arith.mulf %505, %501 : vector<8x256xf32>
    %507 = vector.broadcast %502 : vector<8x1xf32> to vector<8x256xf32>
    %508 = arith.mulf %507, %506 : vector<8x256xf32>
    %509 = arith.addf %500, %508 : vector<8x256xf32>
    %c40_310 = arith.constant 40 : index
    %c0_311 = arith.constant 0 : index
    %510 = vector.load %arg5[%c40_310, %c0_311] : memref<48x1xf32, #tpu.memory_space<vmem>>, vector<8x1xf32>
    %511 = vector.broadcast %510 : vector<8x1xf32> to vector<8x256xf32>
    %512 = arith.addf %509, %511 : vector<8x256xf32>
    %513 = arith.mulf %354, %433 : vector<8x256xf32>
    %514 = arith.addf %513, %512 : vector<8x256xf32>
    %515 = arith.mulf %514, %31 : vector<8x256xf32>
    %cst_312 = arith.constant dense<0.000000e+00> : vector<8xf32>
    %516 = vector.multi_reduction <add>, %515, %cst_312 [1] : vector<8x256xf32> to vector<8xf32>
    %517 = vector.shape_cast %516 : vector<8xf32> to vector<8x1xf32>
    %c56 = arith.constant 56 : index
    %c0_313 = arith.constant 0 : index
    %518 = vector.load %arg2[%c56, %c0_313] : memref<136x8xf32, #tpu.memory_space<vmem>>, vector<8x8xf32>
    %cst_314 = arith.constant dense<0.000000e+00> : vector<8x1xf32>
    %519 = tpu.matmul %518, %517, %cst_314 {dimension_numbers = #tpu.dot_dimension_numbers<[1], [0], [0], [1], [0, 0, 1, 1], [], []>} : vector<8x8xf32>, vector<8x1xf32>, vector<8x1xf32> -> vector<8x1xf32>
    %c56_315 = arith.constant 56 : index
    %c0_316 = arith.constant 0 : index
    %520 = vector.load %arg3[%c56_315, %c0_316] : memref<136x1xf32, #tpu.memory_space<vmem>>, vector<8x1xf32>
    %521 = arith.addf %519, %520 : vector<8x1xf32>
    %522 = vector.broadcast %521 : vector<8x1xf32> to vector<8x256xf32>
    %523 = arith.mulf %515, %522 : vector<8x256xf32>
    %c64 = arith.constant 64 : index
    %c0_317 = arith.constant 0 : index
    %524 = vector.load %arg2[%c64, %c0_317] : memref<136x8xf32, #tpu.memory_space<vmem>>, vector<8x8xf32>
    %cst_318 = arith.constant dense<0.000000e+00> : vector<8x256xf32>
    %525 = tpu.matmul %524, %523, %cst_318 {dimension_numbers = #tpu.dot_dimension_numbers<[1], [0], [0], [1], [0, 0, 1, 1], [], []>} : vector<8x8xf32>, vector<8x256xf32>, vector<8x256xf32> -> vector<8x256xf32>
    %c64_319 = arith.constant 64 : index
    %c0_320 = arith.constant 0 : index
    %526 = vector.load %arg3[%c64_319, %c0_320] : memref<136x1xf32, #tpu.memory_space<vmem>>, vector<8x1xf32>
    %527 = vector.broadcast %526 : vector<8x1xf32> to vector<8x256xf32>
    %528 = arith.addf %525, %527 : vector<8x256xf32>
    %c32_321 = arith.constant 32 : index
    %c0_322 = arith.constant 0 : index
    %529 = vector.load %arg6[%c32_321, %c0_322] : memref<48x1xf32, #tpu.memory_space<vmem>>, vector<8x1xf32>
    %530 = vector.broadcast %529 : vector<8x1xf32> to vector<8x256xf32>
    %531 = arith.mulf %528, %530 : vector<8x256xf32>
    %532 = arith.addf %1, %531 : vector<8x256xf32>
    %cst_323 = arith.constant dense<0.000000e+00> : vector<256xf32>
    %533 = vector.multi_reduction <add>, %532, %cst_323 [0] : vector<8x256xf32> to vector<256xf32>
    %534 = vector.shape_cast %533 : vector<256xf32> to vector<1x256xf32>
    %535 = arith.mulf %532, %532 : vector<8x256xf32>
    %cst_324 = arith.constant dense<0.000000e+00> : vector<256xf32>
    %536 = vector.multi_reduction <add>, %535, %cst_324 [0] : vector<8x256xf32> to vector<256xf32>
    %537 = vector.shape_cast %536 : vector<256xf32> to vector<1x256xf32>
    %cst_325 = arith.constant 2.500000e-01 : f32
    %538 = vector.broadcast %cst_325 : f32 to vector<1x256xf32>
    %539 = arith.mulf %534, %538 : vector<1x256xf32>
    %cst_326 = arith.constant 2.500000e-01 : f32
    %540 = vector.broadcast %cst_326 : f32 to vector<1x256xf32>
    %541 = arith.mulf %537, %540 : vector<1x256xf32>
    %542 = arith.mulf %539, %539 : vector<1x256xf32>
    %543 = arith.subf %541, %542 : vector<1x256xf32>
    %c16_327 = arith.constant 16 : index
    %c0_328 = arith.constant 0 : index
    %544 = vector.load %arg6[%c16_327, %c0_328] : memref<48x1xf32, #tpu.memory_space<vmem>>, vector<8x1xf32>
    %545 = vector.broadcast %539 : vector<1x256xf32> to vector<8x256xf32>
    %546 = arith.subf %532, %545 : vector<8x256xf32>
    %cst_329 = arith.constant 9.99999997E-7 : f32
    %547 = vector.broadcast %cst_329 : f32 to vector<1x256xf32>
    %548 = arith.addf %543, %547 : vector<1x256xf32>
    %549 = math.rsqrt %548 : vector<1x256xf32>
    %550 = vector.broadcast %549 : vector<1x256xf32> to vector<8x256xf32>
    %551 = arith.mulf %546, %550 : vector<8x256xf32>
    %552 = vector.broadcast %544 : vector<8x1xf32> to vector<8x256xf32>
    %553 = arith.mulf %552, %551 : vector<8x256xf32>
    %c24_330 = arith.constant 24 : index
    %c0_331 = arith.constant 0 : index
    %554 = vector.load %arg6[%c24_330, %c0_331] : memref<48x1xf32, #tpu.memory_space<vmem>>, vector<8x1xf32>
    %555 = vector.broadcast %554 : vector<8x1xf32> to vector<8x256xf32>
    %556 = arith.addf %553, %555 : vector<8x256xf32>
    %c72 = arith.constant 72 : index
    %c0_332 = arith.constant 0 : index
    %557 = vector.load %arg2[%c72, %c0_332] : memref<136x8xf32, #tpu.memory_space<vmem>>, vector<32x8xf32>
    %cst_333 = arith.constant dense<0.000000e+00> : vector<32x256xf32>
    %558 = tpu.matmul %557, %556, %cst_333 {dimension_numbers = #tpu.dot_dimension_numbers<[1], [0], [0], [1], [0, 0, 1, 1], [], []>} : vector<32x8xf32>, vector<8x256xf32>, vector<32x256xf32> -> vector<32x256xf32>
    %c72_334 = arith.constant 72 : index
    %c0_335 = arith.constant 0 : index
    %559 = vector.load %arg3[%c72_334, %c0_335] : memref<136x1xf32, #tpu.memory_space<vmem>>, vector<32x1xf32>
    %560 = vector.broadcast %559 : vector<32x1xf32> to vector<32x256xf32>
    %561 = arith.addf %558, %560 : vector<32x256xf32>
    %562 = vector.extract_strided_slice %561 {offsets = [0, 0], sizes = [8, 256], strides = [1, 1]} : vector<32x256xf32> to vector<8x256xf32>
    %563 = vector.extract_strided_slice %561 {offsets = [8, 0], sizes = [8, 256], strides = [1, 1]} : vector<32x256xf32> to vector<8x256xf32>
    %564 = vector.extract_strided_slice %561 {offsets = [16, 0], sizes = [8, 256], strides = [1, 1]} : vector<32x256xf32> to vector<8x256xf32>
    %565 = arith.mulf %563, %564 : vector<8x256xf32>
    %566 = vector.extract_strided_slice %561 {offsets = [24, 0], sizes = [8, 256], strides = [1, 1]} : vector<32x256xf32> to vector<8x256xf32>
    %567 = arith.addf %565, %566 : vector<8x256xf32>
    %c104 = arith.constant 104 : index
    %c0_336 = arith.constant 0 : index
    %568 = vector.load %arg2[%c104, %c0_336] : memref<136x8xf32, #tpu.memory_space<vmem>>, vector<24x8xf32>
    %cst_337 = arith.constant dense<0.000000e+00> : vector<24x256xf32>
    %569 = tpu.matmul %568, %567, %cst_337 {dimension_numbers = #tpu.dot_dimension_numbers<[1], [0], [0], [1], [0, 0, 1, 1], [], []>} : vector<24x8xf32>, vector<8x256xf32>, vector<24x256xf32> -> vector<24x256xf32>
    %c104_338 = arith.constant 104 : index
    %c0_339 = arith.constant 0 : index
    %570 = vector.load %arg3[%c104_338, %c0_339] : memref<136x1xf32, #tpu.memory_space<vmem>>, vector<24x1xf32>
    %571 = vector.broadcast %570 : vector<24x1xf32> to vector<24x256xf32>
    %572 = arith.addf %569, %571 : vector<24x256xf32>
    %573 = vector.extract_strided_slice %572 {offsets = [0, 0], sizes = [8, 256], strides = [1, 1]} : vector<24x256xf32> to vector<8x256xf32>
    %574 = vector.extract_strided_slice %572 {offsets = [8, 0], sizes = [8, 256], strides = [1, 1]} : vector<24x256xf32> to vector<8x256xf32>
    %575 = arith.mulf %573, %574 : vector<8x256xf32>
    %576 = vector.extract_strided_slice %572 {offsets = [16, 0], sizes = [8, 256], strides = [1, 1]} : vector<24x256xf32> to vector<8x256xf32>
    %577 = arith.addf %575, %576 : vector<8x256xf32>
    %578 = arith.mulf %577, %562 : vector<8x256xf32>
    %c128 = arith.constant 128 : index
    %c0_340 = arith.constant 0 : index
    %579 = vector.load %arg2[%c128, %c0_340] : memref<136x8xf32, #tpu.memory_space<vmem>>, vector<8x8xf32>
    %cst_341 = arith.constant dense<0.000000e+00> : vector<8x256xf32>
    %580 = tpu.matmul %579, %578, %cst_341 {dimension_numbers = #tpu.dot_dimension_numbers<[1], [0], [0], [1], [0, 0, 1, 1], [], []>} : vector<8x8xf32>, vector<8x256xf32>, vector<8x256xf32> -> vector<8x256xf32>
    %c128_342 = arith.constant 128 : index
    %c0_343 = arith.constant 0 : index
    %581 = vector.load %arg3[%c128_342, %c0_343] : memref<136x1xf32, #tpu.memory_space<vmem>>, vector<8x1xf32>
    %582 = vector.broadcast %581 : vector<8x1xf32> to vector<8x256xf32>
    %583 = arith.addf %580, %582 : vector<8x256xf32>
    %c40_344 = arith.constant 40 : index
    %c0_345 = arith.constant 0 : index
    %584 = vector.load %arg6[%c40_344, %c0_345] : memref<48x1xf32, #tpu.memory_space<vmem>>, vector<8x1xf32>
    %585 = vector.broadcast %584 : vector<8x1xf32> to vector<8x256xf32>
    %586 = arith.mulf %583, %585 : vector<8x256xf32>
    %587 = arith.addf %532, %586 : vector<8x256xf32>
    %588 = vector.extract_strided_slice %587 {offsets = [0, 0], sizes = [4, 256], strides = [1, 1]} : vector<8x256xf32> to vector<4x256xf32>
    %c0_346 = arith.constant 0 : index
    %c0_347 = arith.constant 0 : index
    %c0_348 = arith.constant 0 : index
    %589 = vector.load %arg8[%c0_346, %c0_347, %c0_348] : memref<1x4x256xf32, #tpu.memory_space<vmem>>, vector<1x4x256xf32>
    %590 = vector.shape_cast %589 : vector<1x4x256xf32> to vector<4x256xf32>
    %591 = vector.shape_cast %588 : vector<4x256xf32> to vector<1x4x256xf32>
    tpu.vector_store %arg8[%c0_346, %c0_347, %c0_348], %591 {strides = array<i32>} : memref<1x4x256xf32, #tpu.memory_space<vmem>>, vector<1x4x256xf32>,
    return
  }
  func.func @transform_0(%arg0: i32) -> (i32, i32, i32) {
    %c0_i32 = arith.constant 0 : i32
    %c0_i32_0 = arith.constant 0 : i32
    %c0_i32_1 = arith.constant 0 : i32
    return %arg0, %c0_i32, %c0_i32_0 : i32, i32, i32
  }
  func.func @transform_1(%arg0: i32) -> (i32, i32) {
    %c0_i32 = arith.constant 0 : i32
    %c0_i32_0 = arith.constant 0 : i32
    %c0_i32_1 = arith.constant 0 : i32
    return %c0_i32, %c0_i32_0 : i32, i32
  }
  func.func @transform_2(%arg0: i32) -> (i32, i32) {
    %c0_i32 = arith.constant 0 : i32
    %c0_i32_0 = arith.constant 0 : i32
    %c0_i32_1 = arith.constant 0 : i32
    return %c0_i32, %c0_i32_0 : i32, i32
  }
  func.func @transform_3(%arg0: i32) -> (i32, i32) {
    %c0_i32 = arith.constant 0 : i32
    %c0_i32_0 = arith.constant 0 : i32
    %c0_i32_1 = arith.constant 0 : i32
    return %c0_i32, %c0_i32_0 : i32, i32
  }
  func.func @transform_4(%arg0: i32) -> (i32, i32) {
    %c0_i32 = arith.constant 0 : i32
    %c0_i32_0 = arith.constant 0 : i32
    %c0_i32_1 = arith.constant 0 : i32
    return %c0_i32, %c0_i32_0 : i32, i32
  }
  func.func @transform_5(%arg0: i32) -> (i32, i32) {
    %c0_i32 = arith.constant 0 : i32
    %c0_i32_0 = arith.constant 0 : i32
    %c0_i32_1 = arith.constant 0 : i32
    return %c0_i32, %c0_i32_0 : i32, i32
  }
  func.func @transform_6(%arg0: i32) -> (i32, i32, i32) {
    %c0_i32 = arith.constant 0 : i32
    %c0_i32_0 = arith.constant 0 : i32
    %c0_i32_1 = arith.constant 0 : i32
    %c0_i32_2 = arith.constant 0 : i32
    return %c0_i32, %c0_i32_0, %c0_i32_1 : i32, i32, i32
  }
  func.func @transform_7(%arg0: i32) -> (i32, i32, i32) {
    %c0_i32 = arith.constant 0 : i32
    %c0_i32_0 = arith.constant 0 : i32
    %c0_i32_1 = arith.constant 0 : i32
    return %arg0, %c0_i32, %c0_i32_0 : i32, i32, i32
  }
}

</mosaic_0001>

<bundles_post_ra>
// kernel: tpu_custom_call.1
= control target key start
LH: loop header
LB: loop body
LE: loop exit
PB: predicated region body
PF: predicated region fallthrough
CT: control target
= control target key end

     0   :  { %12 = vsyncpa [#allocation3], 0  ;;  %s3966_s0 = inlined_call_operand.vmem [shape: f32[2,8,256], index: 0, kind: input, shape index: {}]   ;;  %s3967_s1 = inlined_call_operand.vmem [shape: f32[136,8], index: 1, kind: input, shape index: {}]   ;;  %s3968_s2 = inlined_call_operand.vmem [shape: f32[136,1], index: 2, kind: input, shape index: {}]   ;;  %s3969_s3 = inlined_call_operand.vmem [shape: f32[48,9], index: 3, kind: input, shape index: {}]   ;;  %s3970_s4 = inlined_call_operand.vmem [shape: f32[48,1], index: 4, kind: input, shape index: {}]   ;;  %s3971_s5 = inlined_call_operand.vmem [shape: f32[48,1], index: 5, kind: input, shape index: {}]   ;;  %s3972_s6 = inlined_call_operand.vmem [shape: f32[9,1,256], index: 6, kind: input, shape index: {}]   ;;  %s3973_s7 = inlined_call_operand.hbm [shape: f32[2,4,256], index: 7, kind: output, shape index: {}]  }
   0x1   :  { %14 = vsyncpa [#allocation3 + $0x1], 0  ;;  %s2496_s24 = smov 0   ;;  %s2498_s25 = smov 0  }
   0x2   :  { %s2500_s26 = smov 0   ;;  %s2502_s27 = smov 0  }
   0x3 LB: > { %s2517_s28 = sadd.s32 4294967295, %s2434_s27   ;;  %s2223_s29 = sadd.s32 4294967294, %s2434_s27   ;;  %s2434_s27 = sphi %s2502_s27, %s4157_s27   ;;  %s2430_s26 = sphi %s2500_s26, %s4156_s26   ;;  %s2426_s25 = sphi %s2498_s25, %s4155_s25   ;;  %s2422_s24 = sphi %s2496_s24, %s4154_s24  }
   0x4   : > { %s2521_s30 = sadd.s32 1, %s2434_s27   ;;  %s179_s8 = sadd.s32 1, %s2430_s26 }
   0x5   : > { %s176_s9 = ssub.s32 %s2434_s27, %s2521_s30  ;;  %p189_p0 = scmp.ne.s32.totalorder %s2430_s26, %s2426_s25 }
   0x6   : > { %p177_p1 = scmp.eq.s32.totalorder %s176_s9, 0  ;;  %p190_p2 = scmp.eq.s32.totalorder %s2517_s28, 1 }
   0x7   : > { %p195_p3 = scmp.ne.s32.totalorder %s2426_s25, %s2422_s24  ;;  %p196_p4 = scmp.eq.s32.totalorder %s2223_s29, 1 }
   0x8   : > { %s2532_s10 = scalar_select %p177_p1, %s2430_s26, %s179_s8  }
   0x9   : > { %p2534_p5 = por %p190_p2, %p189_p0  ;;  %p2538_p6 = por %p196_p4, %p195_p3 }
   0xa   : > { %p2226_p7 = scmp.ge.s32.totalorder %s2434_s27, 1  ;;  %p240_p8 = scmp.lt.s32.totalorder %s2434_s27, 3 }
   0xc   : > { %p241_p9 = pnand %p2226_p7, %p240_p8 }
   0xe   : > { %244 = sbr.rel (%p241_p9) target bundleno = 2406 (0x966), region = 48 }
  0x13   : > { %v313_v0 = vld [vmem:[%s3971_s5] sm:$0xff]  ;;  %v3981_v1 = vmov 0   ;;  %v329_v2 = vld [vmem:[%s3971_s5 + $0x8] sm:$0xff]  ;;  %v3978_v3 = vmov 0.0   ;;  %v2438_v6 = vmov 1   ;;  %v343_v7 = vld [vmem:[%s3968_s2 + $0x10] sm:$0xff] }
  0x14   : > { %2326 = vset.pattern.permute.xlu0 %v3981_v1  ;;  %2327 = vset.pattern.permute.xlu1 %v3981_v1  ;;  %v2557_v4 = vld [vmem:[%s3969_s3 + $0x8] sm:$0xff]  ;;  %v2570_v8 = vld [vmem:[%s3969_s3] sm:$0xff]  ;;  %v2439_v9 = vmov 2   ;;  %v2440_v10 = vmov 4   ;;  %v2441_v11 = vmov 3   ;;  %v868_v12 = vld [vmem:[%s3969_s3 + $0x10] sm:$0xff] }
  0x15   : > { %324 = vperm.xlu0 %2326, %v313_v0   ;;  %442 = vmatprep.mubr.f32.mxu0 %v3978_v3  ;;  %v342_v5 = vld [vmem:[%s3968_s2 + $0x8] sm:$0xff]  ;;  %v3987_v13 = vmov 5   ;;  %p272_p10 = scmp.lt.s32.totalorder %s2517_s28, 1  ;;  %v3985_v14 = vmov 6   ;;  %v3983_v15 = vmov 7   ;;  %v3980_v22 = vmov 8  }
  0x16   : > { %1110 = vmatprep.mubr.f32.mxu1 %v3978_v3  ;;  %352 = vperm.xlu1 %2327, %v342_v5   ;;  %v716_v33 = vld [vmem:[%s3970_s4] sm:$0xff]  ;;  %v344_v36 = vld [vmem:[%s3968_s2 + $0x18] sm:$0xff]  ;;  %vm365_vm0 = vcmask 64512   ;;  %s2446_s16 = smov 16   ;;  %s2447_s18 = smov 17   ;;  %vm2454_vm9 = vmmov 0  }
  0x17   : > { %s273_s13 = scalar_select %p272_p10, %s2517_s28, 1 }
  0x18   : > { %s3974_s19 = smov 15   ;;  %s2449_s20 = smov 1  }
  0x19   : > { %332 = vperm.xlu0 %2326, %v329_v2   ;;  %s2259_s14 = sshll.u32 %s273_s13, 4  ;;  %s2450_s21 = smov 127  }
  0x1a   : > { %357 = vperm.xlu1 %2327, %v343_v7   ;;  %s2602_s17 = scalar_lea.vmem %s3966_s0, %s2259_s14  ;;  %s2451_s22 = smov 113  }
  0x1b   : > { %v2607_v16 = vld [vmem:[%s2602_s17 + $0x8] sm:$0xff]  ;;  %v2610_v17 = vld [vmem:[%s2602_s17] sm:$0xff]  ;;  %s2452_s23 = smov 112   ;;  %s3976_s29 = smov 111  }
  0x1c   : > { %v285_v18 = vrot.slane %v2607_v16, 4  ;;  %v292_v19 = vmul.f32 %v2607_v16, %v2607_v16  ;;  %v279_v20 = vrot.slane %v2610_v17, 4  ;;  %v291_v21 = vmul.f32 %v2610_v17, %v2610_v17  ;;  %s4144_s14 = smov 111   ;;  %s269_s15 = sand.u32 1, %s2426_s25  }
  0x1d   : > { %2330 = vset.pattern.permute.xlu0 %v2438_v6  ;;  %s2227_s8 = sshll.u32 %s269_s15, 3  ;;  %s2260_s9 = sshll.u32 %s2517_s28, 7 }
  0x1e   : > { %757 = vperm.xlu0 %2330, %v2557_v4   ;;  %2328 = vset.pattern.permute.xlu1 %v2440_v10  ;;  %v286_v23 = vadd.f32 %v285_v18, %v2607_v16  ;;  %v299_v24 = vrot.slane %v292_v19, 4  ;;  %v280_v25 = vadd.f32 %v279_v20, %v2610_v17  ;;  %v293_v26 = vrot.slane %v291_v21, 4  ;;  %s2455_s28 = smov [#allocation2]  }
  0x1f   : > { %470 = vperm.xlu1 %2328, %v2570_v8  }
  0x20   : > { %v287_v27 = vrot.slane %v286_v23, 2  ;;  %v300_v28 = vadd.f32 %v299_v24, %v292_v19  ;;  %v281_v29 = vrot.slane %v280_v25, 2  ;;  %v294_v30 = vadd.f32 %v293_v26, %v291_v21 }
  0x22   : > { %2333 = vset.pattern.permute.xlu0 %v2439_v9  ;;  %v288_v31 = vadd.f32 %v287_v27, %v286_v23  ;;  %v301_v32 = vrot.slane %v300_v28, 2  ;;  %v282_v34 = vadd.f32 %v281_v29, %v280_v25  ;;  %v295_v35 = vrot.slane %v294_v30, 2 }
  0x23   : > { %559 = vperm.xlu0 %2333, %v2570_v8   ;;  %727 = vperm.xlu1 %2328, %v2557_v4  }
  0x24   : > { %v289_v37 = vrot.slane %v288_v31, 1  ;;  %v302_v38 = vadd.f32 %v301_v32, %v300_v28  ;;  %v283_v39 = vrot.slane %v282_v34, 1  ;;  %v296_v40 = vadd.f32 %v295_v35, %v294_v30 }
  0x26   : > { %v290_v41 = vadd.f32 %v289_v37, %v288_v31  ;;  %v303_v42 = vrot.slane %v302_v38, 1  ;;  %v284_v43 = vadd.f32 %v283_v39, %v282_v34  ;;  %v297_v44 = vrot.slane %v296_v40, 1 }
  0x27   : > { %773 = vperm.xlu0 %2333, %v2557_v4   ;;  %2329 = vset.pattern.permute.xlu1 %v2438_v6 }
  0x28   : > { %529 = vperm.xlu1 %2329, %v2570_v8   ;;  %v304_v45 = vadd.f32 %v303_v42, %v302_v38  ;;  %v306_v46 = vmul.f32 0.25, %v290_v41  ;;  %v298_v47 = vadd.f32 %v297_v44, %v296_v40  ;;  %v305_v48 = vmul.f32 0.25, %v284_v43 }
  0x2a   : > { %v308_v49 = vmul.f32 0.25, %v304_v45  ;;  %v310_v50 = vmul.f32 %v306_v46, %v306_v46  ;;  %v307_v51 = vmul.f32 0.25, %v298_v47  ;;  %v309_v52 = vmul.f32 %v305_v48, %v305_v48 }
  0x2b   : > { %2335 = vset.pattern.permute.xlu0 %v2441_v11  ;;  %v315_v58 = vsub.f32 %v2607_v16, %v306_v46  ;;  %v314_v59 = vsub.f32 %v2610_v17, %v305_v48  ;;  %v339_v16 = vld [vmem:[%s3967_s1 + $0x10] sm:$0xff]  ;;  %v340_v17 = vld [vmem:[%s3967_s1 + $0x18] sm:$0xff] }
  0x2c   : > { %589 = vperm.xlu0 %2335, %v2570_v8   ;;  %2331 = vset.pattern.permute.xlu1 %v2440_v10  ;;  %v312_v53 = vsub.f32 %v308_v49, %v310_v50  ;;  %v311_v54 = vsub.f32 %v307_v51, %v309_v52 }
  0x2d   : > { %871 = vperm.xlu1 %2331, %v868_v12  }
  0x2e   : > { %v317_v55 = vadd.f32 1e-06, %v312_v53  ;;  %v316_v56 = vadd.f32 1e-06, %v311_v54  ;;  %v860_v54 = vld [vmem:[%s3970_s4 + $0x8] sm:$0xff] }
  0x30   : > { %789 = vperm.xlu0 %2335, %v2557_v4   ;;  %2364 = vrsqrt.f32 %v317_v55 }
  0x31   : > { %2332 = vset.pattern.permute.xlu1 %v3981_v1  ;;  %2366 = vrsqrt.f32 %v316_v56  ;;  %v1004_v56 = vld [vmem:[%s3970_s4 + $0x10] sm:$0xff] }
  0x32   : > { %885 = vperm.xlu1 %2332, %v868_v12  }
  0x34   : > { %2337 = vset.pattern.permute.xlu0 %v3987_v13 }
  0x35   : > { %619 = vperm.xlu0 %2337, %v2570_v8  }
  0x36   : > { %2334 = vset.pattern.permute.xlu1 %v2438_v6 }
  0x37   : > { %901 = vperm.xlu1 %2334, %v868_v12  }
  0x39   : > { %805 = vperm.xlu0 %2337, %v2557_v4  }
  0x3b   : > { %2336 = vset.pattern.permute.xlu1 %v2439_v9 }
  0x3c   : > { %917 = vperm.xlu1 %2336, %v868_v12  }
  0x3d   : > { %2339 = vset.pattern.permute.xlu0 %v3985_v14  ;;  %v2365_v57 = vpop.eup %2364 }
  0x3e   : > { %649 = vperm.xlu0 %2339, %v2570_v8   ;;  %v2367_v60 = vpop.eup %2366  ;;  %v321_v61 = vmul.f32 %v2365_v57, %v315_v58  ;;  %v1020_v58 = vld [vmem:[%s3968_s2 + $0x28] sm:$0xff] }
  0x3f   : > { %v320_v62 = vmul.f32 %v2367_v60, %v314_v59  ;;  %v2805_v60 = vld [vmem:[%s3969_s3 + $0x18] sm:$0xff] }
  0x40   : > { %2338 = vset.pattern.permute.xlu1 %v2441_v11 }
  0x41   : > { %933 = vperm.xlu1 %2338, %v868_v12  }
  0x42   : > { %821 = vperm.xlu0 %2339, %v2557_v4  }
  0x45   : > { %2340 = vset.pattern.permute.xlu1 %v3987_v13 }
  0x46   : > { %2341 = vset.pattern.permute.xlu0 %v3983_v15  ;;  %949 = vperm.xlu1 %2340, %v868_v12  }
  0x47   : > { %679 = vperm.xlu0 %2341, %v2570_v8  }
  0x4a   : > { %2342 = vset.pattern.permute.xlu1 %v3985_v14 }
  0x4b   : > { %837 = vperm.xlu0 %2341, %v2557_v4   ;;  %965 = vperm.xlu1 %2342, %v868_v12  }
  0x4f   : > { %2343 = vset.pattern.permute.xlu0 %v3980_v22  ;;  %2344 = vset.pattern.permute.xlu1 %v3983_v15 }
  0x50   : > { %709 = vperm.xlu0 %2343, %v2570_v8   ;;  %981 = vperm.xlu1 %2344, %v868_v12  }
  0x54   : > { %853 = vperm.xlu0 %2343, %v2557_v4   ;;  %2346 = vset.pattern.permute.xlu1 %v3981_v1 }
  0x55   : > { %719 = vperm.xlu1 %2346, %v716_v33  }
  0x58   : > { %997 = vperm.xlu0 %2343, %v868_v12   ;;  %v338_v12 = vld [vmem:[%s3967_s1 + $0x8] sm:$0xff] }
  0x5c   : > { %2345 = vset.pattern.permute.xlu0 %v3981_v1  ;;  %v479_v1 = vlaneseq }
  0x5d   : > { %362 = vperm.xlu0 %2345, %v344_v36  }
  0x5e   : > { %v2921_v14 = vshrl.u32 %v479_v1, 7 }
  0x61   : > { %499 = vperm.xlu0 %2345, %v2570_v8   ;;  %v337_v8 = vld [vmem:[%s3967_s1] sm:$0xff] }
  0x65   : > { %741 = vperm.xlu0 %2345, %v2557_v4  }
  0x90   : > { %v325_v63 = vpop.permute.xlu0 %324 }
  0x91   : > { %v328_v0 = vmul.f32 %v325_v63, %v321_v61  ;;  %v327_v2 = vmul.f32 %v325_v63, %v320_v62  ;;  %v353_v29 = vpop.permute.xlu1 %352 }
  0x94   : > { %v333_v4 = vpop.permute.xlu0 %332 }
  0x95   : > { %v336_v5 = vadd.f32 %v333_v4, %v328_v0  ;;  %v335_v7 = vadd.f32 %v333_v4, %v327_v2  ;;  %v358_v41 = vpop.permute.xlu1 %357 }
  0x97   : > { %408 = vmatprep.subr.mxu0 %v336_v5 }
  0x98   : > { %409 = vmatpush1.msra.mxu0 %v335_v7 }
  0x99   : > { %2230 = vmatmul.mubr.msk.f32.vlgmr.msra.gmra.mxu0 %vm365_vm0, %v337_v8  ;;  %v2659_v18 = vpop.permute.xlu0 %757 }
  0x9a   : > { %448 = vmatprep.mubr.f32.mxu0 %v3978_v3  ;;  %v2745_v49 = vpop.permute.xlu1 %470 }
  0x9d   : > { %2231 = vmatmul.mubr.msk.f32.gmra.mxu0 %vm365_vm0, %v338_v12 }
  0x9e   : > { %454 = vmatprep.mubr.f32.mxu0 %v3978_v3  ;;  %v2661_v19 = vpop.permute.xlu0 %559  ;;  %v2755_v50 = vpop.permute.xlu1 %727 }
  0xa1   : > { %2232 = vmatmul.mubr.msk.f32.gmra.mxu0 %vm365_vm0, %v339_v16 }
  0xa2   : > { %460 = vmatprep.mubr.f32.mxu0 %v3978_v3  ;;  %v2663_v20 = vpop.permute.xlu0 %773 }
  0xa3   : > { %v2763_v52 = vpop.permute.xlu1 %529 }
  0xa5   : > { %2233 = vmatmul.mubr.msk.f32.gmra.mxu0 %vm365_vm0, %v340_v17  ;;  %v1019_v17 = vld [vmem:[%s3968_s2 + $0x20] sm:$0xff] }
  0xa6   : > { %1726 = vmatprep.mubr.f32.mxu0 %v3978_v3 }
  0xa7   : > { %v2665_v21 = vpop.permute.xlu0 %589 }
  0xa8   : > { %v2773_v53 = vpop.permute.xlu1 %871 }
  0xa9   : > { %4056 = vst [vmem:[#allocation16_spill] sm:$0xff] %v2773_v53 }
  0xab   : > { %v2667_v23 = vpop.permute.xlu0 %789 }
  0xad   : > { %v2782_v55 = vpop.permute.xlu1 %885 }
  0xae   : > { %4057 = vst [vmem:[#allocation17_spill] sm:$0xff] %v2782_v55 }
  0xb0   : > { %v2669_v24 = vpop.permute.xlu0 %619 }
  0xb2   : > { %v2791_v57 = vpop.permute.xlu1 %901 }
  0xb3   : > { %4058 = vst [vmem:[#allocation18_spill] sm:$0xff] %v2791_v57 }
  0xb4   : > { %v2671_v25 = vpop.permute.xlu0 %805 }
  0xb7   : > { %v2798_v59 = vpop.permute.xlu1 %917 }
  0xb8   : > { %4059 = vst [vmem:[#allocation19_spill] sm:$0xff] %v2798_v59 }
  0xb9   : > { %v2673_v26 = vpop.permute.xlu0 %649 }
  0xbc   : > { %v2811_v61 = vpop.permute.xlu1 %933 }
  0xbd   : > { %v2679_v31 = vpop.permute.xlu0 %821  ;;  %4060 = vst [vmem:[#allocation20_spill] sm:$0xff] %v2811_v61  ;;  %v2959_v61 = vld [vmem:[%s3972_s6 + $0x2] sm:$0x3] }
  0xbe   : > { %4047 = vst [vmem:[#allocation7_spill] sm:$0xff] %v2679_v31 }
  0xc1   : > { %v2817_v62 = vpop.permute.xlu1 %949 }
  0xc2   : > { %v2689_v35 = vpop.permute.xlu0 %679  ;;  %4061 = vst [vmem:[#allocation21_spill] sm:$0xff] %v2817_v62 }
  0xc3   : > { %4048 = vst [vmem:[#allocation8_spill] sm:$0xff] %v2689_v35 }
  0xc6   : > { %v2699_v36 = vpop.permute.xlu0 %837  ;;  %v2823_v63 = vpop.permute.xlu1 %965 }
  0xc7   : > { %4049 = vst [vmem:[#allocation9_spill] sm:$0xff] %v2699_v36  ;;  %4063 = vst [vmem:[#allocation22_spill] sm:$0xff] %v2823_v63 }
  0xcb   : > { %v2705_v37 = vpop.permute.xlu0 %709  ;;  %v2827_v0 = vpop.permute.xlu1 %981 }
  0xcc   : > { %4050 = vst [vmem:[#allocation10_spill] sm:$0xff] %v2705_v37  ;;  %4064 = vst [vmem:[#allocation23_spill] sm:$0xff] %v2827_v0  ;;  %v2937_v0 = vsub.s32 0, %v2921_v14 }
  0xce   : > { %v2968_v57 = vrot.slane %v2959_v61, %v2937_v0 }
  0xcf   : > { %v2715_v38 = vpop.permute.xlu0 %853 }
  0xd0   : > { %4051 = vst [vmem:[#allocation11_spill] sm:$0xff] %v2715_v38  ;;  %v2835_v4 = vpop.permute.xlu1 %719  ;;  %4080 = vst [vmem:[#allocation37_spill] sm:$0xff] %v2968_v57  ;;  %v1265_v38 = vld [vmem:[%s3970_s4 + $0x18] sm:$0xff] }
  0xd1   : > { %4065 = vst [vmem:[#allocation24_spill] sm:$0xff] %v2835_v4 }
  0xd3   : > { %v2721_v40 = vpop.permute.xlu0 %997 }
  0xd4   : > { %4052 = vst [vmem:[#allocation12_spill] sm:$0xff] %v2721_v40  ;;  %v4076_v40 = vmov 6  }
  0xd8   : > { %v363_v44 = vpop.permute.xlu0 %362 }
  0xdc   : > { %v2829_v2 = vpop.permute.xlu0 %499 }
  0xe0   : > { %v2837_v5 = vpop.permute.xlu0 %741 }
  0xe1   : > { %4066 = vst [vmem:[#allocation25_spill] sm:$0xff] %v2837_v5 }
 0x159   : > { %v2675_v27 = vpop.f32.mrf.mxu0 }
 0x15a   : > { %4045 = vst [vmem:[#allocation5_spill] sm:$0xff] %v2675_v27  ;;  %v2932_v27 = vld [vmem:[%s3972_s6] sm:$0x3] }
 0x15b   : > { %v2677_v28 = vpop.f32.mrf.mxu0  ;;  %v2946_v63 = vrot.slane %v2932_v27, %v2937_v0 }
 0x15c   : > { %4046 = vst [vmem:[#allocation6_spill] sm:$0xff] %v2677_v28 }
 0x15d   : > { %v450_v30 = vpop.f32.mrf.mxu0  ;;  %4078 = vst [vmem:[#allocation35_spill] sm:$0xff] %v2946_v63 }
 0x15e   : > { %v2681_v32 = vadd.f32 %v450_v30, %v353_v29 }
 0x15f   : > { %v452_v33 = vpop.f32.mrf.mxu0 }
 0x160   : > { %506 = vrot.lane.b32.xlu0 %v2681_v32, %s2446_s16  ;;  %475 = vrot.lane.b32.xlu1 %v2681_v32, %s2447_s18  ;;  %v2687_v34 = vadd.f32 %v452_v33, %v353_v29  ;;  %v1021_v33 = vld [vmem:[%s3968_s2 + $0x30] sm:$0xff] }
 0x161   : > { %v456_v39 = vpop.f32.mrf.mxu0 }
 0x162   : > { %v2727_v42 = vadd.f32 %v456_v39, %v358_v41 }
 0x163   : > { %v458_v43 = vpop.f32.mrf.mxu0 }
 0x164   : > { %536 = vrot.lane.b32.xlu0 %v2681_v32, %s3974_s19  ;;  %508 = vrot.lane.b32.xlu1 %v2687_v34, %s2446_s16  ;;  %v2761_v51 = vadd.f32 %v458_v43, %v358_v41  ;;  %v2870_v43 = vld [vmem:[%s3969_s3 + $0x20] sm:$0xff] }
 0x165   : > { %v462_v45 = vpop.f32.mrf.mxu0 }
 0x166   : > { %v2737_v46 = vadd.f32 %v462_v45, %v363_v44  ;;  %4055 = vst [vmem:[#allocation15_spill] sm:$0xff] %v2761_v51 }
 0x167   : > { %v464_v47 = vpop.f32.mrf.mxu0 }
 0x168   : > { %566 = vrot.lane.b32.xlu0 %v2681_v32, %s2449_s20  ;;  %538 = vrot.lane.b32.xlu1 %v2687_v34, %s3974_s19  ;;  %4053 = vst [vmem:[#allocation13_spill] sm:$0xff] %v2737_v46  ;;  %v2743_v48 = vadd.f32 %v464_v47, %v363_v44 }
 0x16a   : > { %4054 = vst [vmem:[#allocation14_spill] sm:$0xff] %v2743_v48 }
 0x16c   : > { %596 = vrot.lane.b32.xlu0 %v2681_v32, %s2450_s21  ;;  %568 = vrot.lane.b32.xlu1 %v2687_v34, %s2449_s20 }
 0x170   : > { %626 = vrot.lane.b32.xlu0 %v2681_v32, %s2451_s22  ;;  %598 = vrot.lane.b32.xlu1 %v2687_v34, %s2450_s21 }
 0x174   : > { %656 = vrot.lane.b32.xlu0 %v2681_v32, %s2452_s23  ;;  %628 = vrot.lane.b32.xlu1 %v2687_v34, %s2451_s22 }
 0x178   : > { %686 = vrot.lane.b32.xlu0 %v2681_v32, %s3976_s29  ;;  %658 = vrot.lane.b32.xlu1 %v2687_v34, %s2452_s23 }
 0x17c   : > { %477 = vrot.lane.b32.xlu0 %v2687_v34, %s2447_s18  ;;  %688 = vrot.lane.b32.xlu1 %v2687_v34, %s3976_s29 }
 0x180   : > { %732 = vrot.lane.b32.xlu0 %v2727_v42, %s2447_s18  ;;  %748 = vrot.lane.b32.xlu1 %v2727_v42, %s2446_s16 }
 0x184   : > { %844 = vrot.lane.b32.xlu0 %v2727_v42, %s3976_s29  ;;  %764 = vrot.lane.b32.xlu1 %v2727_v42, %s3974_s19 }
 0x188   : > { %972 = vrot.lane.b32.xlu0 %v2737_v46, %s2452_s23  ;;  %780 = vrot.lane.b32.xlu1 %v2727_v42, %s2449_s20 }
 0x18c   : > { %878 = vrot.lane.b32.xlu0 %v2743_v48, %s2447_s18  ;;  %796 = vrot.lane.b32.xlu1 %v2727_v42, %s2450_s21 }
 0x190   : > { %894 = vrot.lane.b32.xlu0 %v2743_v48, %s2446_s16  ;;  %812 = vrot.lane.b32.xlu1 %v2727_v42, %s2451_s22 }
 0x194   : > { %910 = vrot.lane.b32.xlu0 %v2743_v48, %s3974_s19  ;;  %828 = vrot.lane.b32.xlu1 %v2727_v42, %s2452_s23 }
 0x198   : > { %926 = vrot.lane.b32.xlu0 %v2743_v48, %s2449_s20  ;;  %734 = vrot.lane.b32.xlu1 %v2761_v51, %s2447_s18 }
 0x19c   : > { %942 = vrot.lane.b32.xlu0 %v2743_v48, %s2450_s21  ;;  %750 = vrot.lane.b32.xlu1 %v2761_v51, %s2446_s16 }
 0x1a0   : > { %958 = vrot.lane.b32.xlu0 %v2743_v48, %s2451_s22  ;;  %766 = vrot.lane.b32.xlu1 %v2761_v51, %s3974_s19  ;;  %s4062_s19 = smov 15  }
 0x1a4   : > { %863 = vperm.xlu0 %2345, %v860_v54   ;;  %782 = vrot.lane.b32.xlu1 %v2761_v51, %s2449_s20 }
 0x1a8   : > { %1007 = vperm.xlu0 %2345, %v1004_v56   ;;  %798 = vrot.lane.b32.xlu1 %v2761_v51, %s2450_s21 }
 0x1ac   : > { %1029 = vperm.xlu0 %2345, %v1020_v58   ;;  %814 = vrot.lane.b32.xlu1 %v2761_v51, %s2451_s22  ;;  %v2891_v58 = vld [vmem:[%s3969_s3 + $0x28] sm:$0xff] }
 0x1b0   : > { %830 = vrot.lane.b32.xlu1 %v2761_v51, %s2452_s23  ;;  %2347 = vset.pattern.permute.xlu0 %v2440_v10 }
 0x1b1   : > { %1132 = vperm.xlu0 %2347, %v2805_v60  }
 0x1b4   : > { %846 = vrot.lane.b32.xlu1 %v2761_v51, %s3976_s29  ;;  %v2980_v51 = vld [vmem:[%s3972_s6 + $0x4] sm:$0x3] }
 0x1b5   : > { %2349 = vset.pattern.permute.xlu0 %v2438_v6  ;;  %v2994_v4 = vrot.slane %v2980_v51, %v2937_v0 }
 0x1b6   : > { %1162 = vperm.xlu0 %2349, %v2805_v60  }
 0x1b7   : > { %4084 = vst [vmem:[#allocation40_spill] sm:$0xff] %v2994_v4 }
 0x1b8   : > { %876 = vrot.lane.b32.xlu1 %v2737_v46, %s2447_s18 }
 0x1ba   : > { %1306 = vperm.xlu0 %2349, %v2870_v43  }
 0x1bc   : > { %892 = vrot.lane.b32.xlu1 %v2737_v46, %s2446_s16 }
 0x1be   : > { %2350 = vset.pattern.permute.xlu0 %v2439_v9 }
 0x1bf   : > { %1178 = vperm.xlu0 %2350, %v2805_v60  }
 0x1c0   : > { %908 = vrot.lane.b32.xlu1 %v2737_v46, %s4062_s19 }
 0x1c3   : > { %1322 = vperm.xlu0 %2350, %v2870_v43  }
 0x1c4   : > { %924 = vrot.lane.b32.xlu1 %v2737_v46, %s2449_s20 }
 0x1c7   : > { %2352 = vset.pattern.permute.xlu0 %v2441_v11 }
 0x1c8   : > { %940 = vrot.lane.b32.xlu1 %v2737_v46, %s2450_s21  ;;  %1194 = vperm.xlu0 %2352, %v2805_v60  }
 0x1cc   : > { %956 = vrot.lane.b32.xlu1 %v2737_v46, %s2451_s22  ;;  %1338 = vperm.xlu0 %2352, %v2870_v43  }
 0x1d0   : > { %988 = vrot.lane.b32.xlu1 %v2737_v46, %s3976_s29  ;;  %2354 = vset.pattern.permute.xlu0 %v3987_v13  ;;  %v2925_v13 = vand.u32 127, %v479_v1 }
 0x1d1   : > { %1210 = vperm.xlu0 %2354, %v2805_v60  }
 0x1d2   : > { %v2841_v7 = vpop.permute.xlu0 %506  ;;  %v2843_v8 = vpop.permute.xlu1 %475  ;;  %vm481_vm1 = vcmp.lt.s32.totalorder %v2925_v13, 17  ;;  %vm510_vm2 = vcmp.lt.s32.totalorder %v2925_v13, 16  ;;  %vm540_vm3 = vcmp.lt.s32.totalorder %v2925_v13, 15  ;;  %vm570_vm4 = vcmp.lt.s32.totalorder %v2925_v13, 1 }
 0x1d3   : > { %vm600_vm5 = vcmp.lt.s32.totalorder %v2925_v13, 127  ;;  %vm630_vm6 = vcmp.lt.s32.totalorder %v2925_v13, 113  ;;  %vm660_vm7 = vcmp.lt.s32.totalorder %v2925_v13, 112  ;;  %vm690_vm8 = vcmp.lt.s32.totalorder %v2925_v13, 111 }
 0x1d4   : > { %974 = vrot.lane.b32.xlu1 %v2743_v48, %s2452_s23 }
 0x1d5   : > { %1354 = vperm.xlu0 %2354, %v2870_v43  }
 0x1d6   : > { %v2847_v12 = vpop.permute.xlu0 %536  ;;  %v2849_v16 = vpop.permute.xlu1 %508 }
 0x1d7   : > { %4067 = vst [vmem:[#allocation26_spill] sm:$0xff] %v2847_v12 }
 0x1d8   : > { %990 = vrot.lane.b32.xlu1 %v2743_v48, %s3976_s29  ;;  %v512_v48 = vsel %vm510_vm2, %v2849_v16, %v2841_v7  ;;  %s271_s29 = scalar_lea.vmem [#allocation2], %s2227_s8 }
 0x1d9   : > { %2356 = vset.pattern.permute.xlu0 %v4076_v40  ;;  %v526_v46 = vmul.f32 %v2968_v57, %v512_v48 }
 0x1da   : > { %v2856_v29 = vpop.permute.xlu0 %566  ;;  %v2858_v30 = vpop.permute.xlu1 %538  ;;  %1226 = vperm.xlu0 %2356, %v2805_v60  }
 0x1db   : > { %4068 = vst [vmem:[#allocation27_spill] sm:$0xff] %v2856_v29  ;;  %4069 = vst [vmem:[#allocation28_spill] sm:$0xff] %v2858_v30  ;;  %v532_v36 = vmul.f32 %v2763_v52, %v526_v46 }
 0x1dc   : > { %1024 = vperm.xlu1 %2346, %v1019_v17  }
 0x1de   : > { %v2863_v39 = vpop.permute.xlu0 %596  ;;  %v2865_v41 = vpop.permute.xlu1 %568  ;;  %1370 = vperm.xlu0 %2356, %v2870_v43  }
 0x1df   : > { %4070 = vst [vmem:[#allocation29_spill] sm:$0xff] %v2865_v41 }
 0x1e0   : > { %1034 = vperm.xlu1 %2346, %v1021_v33  }
 0x1e2   : > { %v2873_v44 = vpop.permute.xlu0 %626  ;;  %v2875_v45 = vpop.permute.xlu1 %598 }
 0x1e4   : > { %1146 = vperm.xlu1 %2346, %v2805_v60  }
 0x1e6   : > { %v2879_v47 = vpop.permute.xlu1 %628  ;;  %v2882_v54 = vpop.permute.xlu0 %656 }
 0x1e8   : > { %2348 = vset.pattern.permute.xlu1 %v2440_v10 }
 0x1e9   : > { %1276 = vperm.xlu1 %2348, %v2870_v43  }
 0x1ea   : > { %v2886_v56 = vpop.permute.xlu1 %658  ;;  %v2894_v17 = vpop.permute.xlu0 %686 }
 0x1ed   : > { %1420 = vperm.xlu1 %2348, %v2891_v58  }
 0x1ee   : > { %v2897_v33 = vpop.permute.xlu1 %688  ;;  %v2905_v3 = vpop.permute.xlu0 %477 }
 0x1f1   : > { %2351 = vset.pattern.permute.xlu1 %v2438_v6 }
 0x1f2   : > { %v2902_v10 = vpop.permute.xlu1 %748  ;;  %1450 = vperm.xlu1 %2351, %v2891_v58   ;;  %v2914_v6 = vpop.permute.xlu0 %732 }
 0x1f3   : > { %4071 = vst [vmem:[#allocation30_spill] sm:$0xff] %v2902_v10  ;;  %4073 = vst [vmem:[#allocation32_spill] sm:$0xff] %v2914_v6 }
 0x1f6   : > { %v2908_v22 = vpop.permute.xlu1 %764  ;;  %2353 = vset.pattern.permute.xlu1 %v2439_v9  ;;  %v2927_v28 = vpop.permute.xlu0 %844 }
 0x1f7   : > { %4072 = vst [vmem:[#allocation31_spill] sm:$0xff] %v2908_v22  ;;  %1466 = vperm.xlu1 %2353, %v2891_v58   ;;  %4075 = vst [vmem:[#allocation34_spill] sm:$0xff] %v2927_v28  ;;  %v4086_v28 = vmov 0  }
 0x1fa   : > { %v2916_v15 = vpop.permute.xlu1 %780  ;;  %v2948_v62 = vpop.permute.xlu0 %972 }
 0x1fb   : > { %4074 = vst [vmem:[#allocation33_spill] sm:$0xff] %v2916_v15  ;;  %2355 = vset.pattern.permute.xlu1 %v2441_v11  ;;  %v4077_v11 = vmov 5   ;;  %4079 = vst [vmem:[#allocation36_spill] sm:$0xff] %v2948_v62 }
 0x1fc   : > { %1482 = vperm.xlu1 %2355, %v2891_v58  }
 0x1fe   : > { %v2923_v9 = vpop.permute.xlu1 %796  ;;  %v2970_v55 = vpop.permute.xlu0 %878 }
 0x1ff   : > { %4081 = vst [vmem:[#allocation38_spill] sm:$0xff] %v2970_v55  ;;  %v473_v55 = vmul.f32 %v2745_v49, %v2681_v32 }
 0x200   : > { %2357 = vset.pattern.permute.xlu1 %v4077_v11  ;;  %v483_v11 = vsel %vm481_vm1, %v2905_v3, %v2843_v8 }
 0x201   : > { %1498 = vperm.xlu1 %2357, %v2891_v58   ;;  %v496_v62 = vmul.f32 %v2946_v63, %v483_v11 }
 0x202   : > { %v2942_v1 = vpop.permute.xlu1 %812  ;;  %v3012_v37 = vpop.permute.xlu0 %894 }
 0x203   : > { %v502_v11 = vmul.f32 %v2829_v2, %v496_v62  ;;  %v542_v62 = vsel %vm540_vm3, %v2858_v30, %v2847_v12  ;;  %4085 = vst [vmem:[#allocation41_spill] sm:$0xff] %v3012_v37  ;;  %v572_v30 = vsel %vm570_vm4, %v2865_v41, %v2856_v29 }
 0x204   : > { %v556_v35 = vmul.f32 %v2994_v4, %v542_v62 }
 0x205   : > { %2359 = vset.pattern.permute.xlu1 %v4076_v40  ;;  %v4082_v40 = vmov 7   ;;  %v504_v48 = vadd.f32 %v502_v11, %v473_v55  ;;  %v3028_v55 = vld [vmem:[%s3972_s6 + $0xa] sm:$0x3] }
 0x206   : > { %v2961_v59 = vpop.permute.xlu1 %828  ;;  %1514 = vperm.xlu1 %2359, %v2891_v58   ;;  %2358 = vset.pattern.permute.xlu0 %v4082_v40  ;;  %v562_v37 = vmul.f32 %v2661_v19, %v556_v35  ;;  %v3043_v41 = vrot.slane %v3028_v55, %v2937_v0  ;;  %v601_v35 = vsel %vm600_vm5, %v2863_v39, %v2875_v45 }
 0x207   : > { %1242 = vperm.xlu0 %2358, %v2805_v60   ;;  %v534_v46 = vadd.f32 %v532_v36, %v504_v48  ;;  %v3054_v48 = vpop.permute.xlu0 %910 }
 0x208   : > { %4090 = vst [vmem:[#allocation44_spill] sm:$0xff] %v3043_v41  ;;  %4091 = vst [vmem:[#allocation45_spill] sm:$0xff] %v3054_v48  ;;  %v3070_v48 = vsub.s32 1, %v2921_v14  ;;  %v631_v14 = vsel %vm630_vm6, %v2873_v44, %v2879_v47 }
 0x20a   : > { %v2982_v53 = vpop.permute.xlu1 %734  ;;  %2361 = vset.pattern.permute.xlu1 %v4082_v40  ;;  %v3006_v40 = vld [vmem:[%s3972_s6 + $0x6] sm:$0x3] }
 0x20b   : > { %4083 = vst [vmem:[#allocation39_spill] sm:$0xff] %v2982_v53  ;;  %1530 = vperm.xlu1 %2361, %v2891_v58   ;;  %1386 = vperm.xlu0 %2358, %v2870_v43   ;;  %v3019_v12 = vrot.slane %v3006_v40, %v2937_v0  ;;  %v737_v62 = vsel %vm481_vm1, %v2982_v53, %v2914_v6 }
 0x20c   : > { %v564_v6 = vadd.f32 %v562_v37, %v534_v46  ;;  %v616_v37 = vmul.f32 %v3043_v41, %v601_v35 }
 0x20d   : > { %4087 = vst [vmem:[#allocation42_spill] sm:$0xff] %v3019_v12  ;;  %v586_v29 = vmul.f32 %v3019_v12, %v572_v30 }
 0x20e   : > { %v3008_v32 = vpop.permute.xlu1 %750 }
 0x20f   : > { %2363 = vset.pattern.permute.xlu1 %v4086_v28  ;;  %v753_v36 = vsel %vm510_vm2, %v3008_v32, %v2902_v10 }
 0x210   : > { %1268 = vperm.xlu1 %2363, %v1265_v38   ;;  %v4089_v38 = vmov 8  }
 0x211   : > { %2360 = vset.pattern.permute.xlu0 %v4089_v38  ;;  %v3048_v38 = vld [vmem:[%s3972_s6 + $0xc] sm:$0x3] }
 0x212   : > { %v3030_v11 = vpop.permute.xlu1 %766  ;;  %1258 = vperm.xlu0 %2360, %v2805_v60   ;;  %v738_v60 = vmul.f32 %v737_v62, %v2946_v63  ;;  %v3074_v10 = vrot.slane %v3048_v38, %v2937_v0  ;;  %v754_v62 = vmul.f32 %v753_v36, %v2968_v57  ;;  %v592_v63 = vmul.f32 %v2665_v21, %v586_v29  ;;  %v3091_v36 = vld [vmem:[%s3972_s6 + $0xe] sm:$0x3] }
 0x213   : > { %4088 = vst [vmem:[#allocation43_spill] sm:$0xff] %v3030_v11  ;;  %v769_v53 = vsel %vm540_vm3, %v3030_v11, %v2908_v22  ;;  %v3095_v29 = vrot.slane %v2932_v27, %v3070_v48  ;;  %v3105_v11 = vpop.permute.xlu0 %926 }
 0x214   : > { %4093 = vst [vmem:[#allocation47_spill] sm:$0xff] %v3074_v10  ;;  %v744_v35 = vmul.f32 %v2837_v5, %v738_v60  ;;  %v770_v57 = vmul.f32 %v769_v53, %v2994_v4  ;;  %4094 = vst [vmem:[#allocation48_spill] sm:$0xff] %v3105_v11  ;;  %v730_v53 = vmul.f32 %v2755_v50, %v2727_v42  ;;  %v3130_v42 = vld [vmem:[%s3972_s6 + $0x10] sm:$0x3] }
 0x215   : > { %v760_v60 = vmul.f32 %v2659_v18, %v754_v62  ;;  %v622_v5 = vmul.f32 %v2669_v24, %v616_v37  ;;  %v3144_v11 = vrot.slane %v2959_v61, %v3070_v48  ;;  %v3157_v61 = vrot.slane %v3130_v42, %v2937_v0 }
 0x216   : > { %v3061_v30 = vpop.permute.xlu1 %782  ;;  %1402 = vperm.xlu0 %2360, %v2870_v43   ;;  %v746_v62 = vadd.f32 %v744_v35, %v730_v53  ;;  %v776_v37 = vmul.f32 %v2663_v20, %v770_v57  ;;  %v511_v53 = vsel %vm510_vm2, %v2841_v7, %v2849_v16 }
 0x217   : > { %4092 = vst [vmem:[#allocation46_spill] sm:$0xff] %v3061_v30  ;;  %v785_v46 = vsel %vm570_vm4, %v3061_v30, %v2916_v15  ;;  %v482_v15 = vsel %vm481_vm1, %v2843_v8, %v2905_v3  ;;  %v594_v30 = vadd.f32 %v592_v63, %v564_v6  ;;  %v646_v3 = vmul.f32 %v3074_v10, %v631_v14 }
 0x218   : > { %v786_v4 = vmul.f32 %v785_v46, %v3019_v12  ;;  %v3120_v63 = vrot.slane %v3091_v36, %v2937_v0  ;;  %v661_v8 = vsel %vm660_vm7, %v2882_v54, %v2886_v56  ;;  %v497_v6 = vmul.f32 %v3095_v29, %v482_v15 }
 0x219   : > { %v624_v15 = vadd.f32 %v622_v5, %v594_v30  ;;  %v762_v35 = vadd.f32 %v760_v60, %v746_v62  ;;  %v652_v5 = vmul.f32 %v2673_v26, %v646_v3  ;;  %v3159_v30 = vpop.permute.xlu0 %942  ;;  %v3171_v60 = vrot.slane %v2980_v51, %v3070_v48  ;;  %v4096_v51 = vld [vmem:[#allocation28_spill] sm:$0xff] }
 0x21a   : > { %v3099_v22 = vpop.permute.xlu1 %798  ;;  %1546 = vperm.xlu0 %2360, %v2891_v58   ;;  %4095 = vst [vmem:[#allocation49_spill] sm:$0xff] %v3120_v63  ;;  %v792_v57 = vmul.f32 %v2667_v23, %v786_v4  ;;  %v503_v4 = vmul.f32 %v2829_v2, %v497_v6  ;;  %v474_v0 = vmul.f32 %v2745_v49, %v2687_v34  ;;  %v4098_v49 = vld [vmem:[#allocation8_spill] sm:$0xff] }
 0x21b   : > { %v800_v27 = vsel %vm600_vm5, %v2923_v9, %v3099_v22  ;;  %v654_v3 = vadd.f32 %v652_v5, %v624_v15  ;;  %v4099_v5 = vld [vmem:[#allocation9_spill] sm:$0xff] }
 0x21c   : > { %v802_v46 = vmul.f32 %v800_v27, %v3043_v41  ;;  %v505_v41 = vadd.f32 %v503_v4, %v474_v0 }
 0x21e   : > { %v3134_v14 = vpop.permute.xlu1 %814  ;;  %2362 = vset.pattern.permute.xlu0 %v4086_v28  ;;  %v676_v28 = vmul.f32 %v3120_v63, %v661_v8  ;;  %v808_v7 = vmul.f32 %v2671_v25, %v802_v46  ;;  %v527_v8 = vmul.f32 %v3144_v11, %v511_v53  ;;  %v4097_v46 = vld [vmem:[#allocation26_spill] sm:$0xff] }
 0x21f   : > { %v816_v12 = vsel %vm630_vm6, %v2942_v1, %v3134_v14  ;;  %1290 = vperm.xlu0 %2362, %v2870_v43   ;;  %v778_v43 = vadd.f32 %v776_v37, %v762_v35  ;;  %v541_v34 = vsel %vm540_vm3, %v4097_v46, %v4096_v51  ;;  %v4104_v51 = vld [vmem:[#allocation10_spill] sm:$0xff] }
 0x220   : > { %v818_v27 = vmul.f32 %v816_v12, %v3074_v10  ;;  %v691_v12 = vsel %vm690_vm8, %v2894_v17, %v2897_v33  ;;  %v682_v35 = vmul.f32 %v4098_v49, %v676_v28  ;;  %v557_v4 = vmul.f32 %v3171_v60, %v541_v34  ;;  %v4106_v34 = vld [vmem:[#allocation39_spill] sm:$0xff] }
 0x221   : > { %v794_v6 = vadd.f32 %v792_v57, %v778_v43  ;;  %v706_v10 = vmul.f32 %v3157_v61, %v691_v12  ;;  %v4101_v43 = vld [vmem:[#allocation34_spill] sm:$0xff]  ;;  %v533_v12 = vmul.f32 %v2763_v52, %v527_v8  ;;  %v3213_v52 = vrot.slane %v3028_v55, %v3070_v48 }
 0x222   : > { %v3167_v16 = vpop.permute.xlu1 %830  ;;  %v824_v62 = vmul.f32 %v2679_v31, %v818_v27  ;;  %v3194_v27 = vrot.slane %v3006_v40, %v3070_v48  ;;  %v684_v28 = vadd.f32 %v682_v35, %v654_v3  ;;  %v563_v8 = vmul.f32 %v2661_v19, %v557_v4  ;;  %v4107_v35 = vld [vmem:[#allocation32_spill] sm:$0xff] }
 0x223   : > { %v832_v2 = vsel %vm660_vm7, %v2961_v59, %v3167_v16  ;;  %1434 = vperm.xlu0 %2362, %v2891_v58   ;;  %v810_v15 = vadd.f32 %v808_v7, %v794_v6  ;;  %v3196_v58 = vpop.permute.xlu0 %958  ;;  %v4102_v6 = vld [vmem:[#allocation29_spill] sm:$0xff]  ;;  %v712_v46 = vmul.f32 %v4104_v51, %v706_v10  ;;  %v3229_v55 = vrot.slane %v3048_v38, %v3070_v48 }
 0x224   : > { %v834_v37 = vmul.f32 %v832_v2, %v3120_v63  ;;  %4100 = vst [vmem:[#allocation28_spill] sm:$0xff] %v3196_v58  ;;  %v535_v63 = vadd.f32 %v533_v12, %v505_v41  ;;  %v602_v41 = vsel %vm600_vm5, %v2875_v45, %v2863_v39  ;;  %v632_v39 = vsel %vm630_vm6, %v2879_v47, %v2873_v44  ;;  %v4112_v47 = vld [vmem:[#allocation46_spill] sm:$0xff] }
 0x225   : > { %v826_v7 = vadd.f32 %v824_v62, %v810_v15  ;;  %v714_v3 = vadd.f32 %v712_v46, %v684_v28  ;;  %v736_v15 = vsel %vm481_vm1, %v4107_v35, %v4106_v34  ;;  %v4113_v46 = vld [vmem:[#allocation33_spill] sm:$0xff]  ;;  %v4116_v35 = vld [vmem:[#allocation15_spill] sm:$0xff] }
 0x226   : > { %v840_v53 = vmul.f32 %v4099_v5, %v834_v37  ;;  %v3190_v57 = vpop.permute.xlu1 %846  ;;  %v4103_v37 = vld [vmem:[#allocation27_spill] sm:$0xff]  ;;  %v565_v19 = vadd.f32 %v563_v8, %v535_v63  ;;  %v739_v45 = vmul.f32 %v736_v15, %v3095_v29  ;;  %v617_v63 = vmul.f32 %v3213_v52, %v602_v41  ;;  %v4114_v8 = vld [vmem:[#allocation13_spill] sm:$0xff] }
 0x227   : > { %v848_v2 = vsel %vm690_vm8, %v4101_v43, %v3190_v57  ;;  %v571_v40 = vsel %vm570_vm4, %v4103_v37, %v4102_v6  ;;  %v4105_v5 = vld [vmem:[#allocation11_spill] sm:$0xff]  ;;  %v731_v15 = vmul.f32 %v2755_v50, %v4116_v35 }
 0x228   : > { %v850_v0 = vmul.f32 %v848_v2, %v3157_v61  ;;  %v842_v49 = vadd.f32 %v840_v53, %v826_v7  ;;  %v587_v62 = vmul.f32 %v3194_v27, %v571_v40  ;;  %v3225_v53 = vpop.permute.xlu0 %863  ;;  %v4108_v2 = vld [vmem:[#allocation30_spill] sm:$0xff]  ;;  %v4110_v7 = vld [vmem:[#allocation43_spill] sm:$0xff]  ;;  %v647_v40 = vmul.f32 %v3229_v55, %v632_v39 }
 0x229   : > { %v752_v28 = vsel %vm510_vm2, %v4108_v2, %v3008_v32  ;;  %v3267_v39 = vrot.slane %v3091_v36, %v3070_v48 }
 0x22a   : > { %v856_v58 = vmul.f32 %v4105_v5, %v850_v0  ;;  %v877_v31 = vpop.permute.xlu1 %876  ;;  %v593_v38 = vmul.f32 %v2665_v21, %v587_v62  ;;  %v4111_v0 = vld [vmem:[#allocation31_spill] sm:$0xff]  ;;  %v755_v6 = vmul.f32 %v752_v28, %v3144_v11  ;;  %v4115_v62 = vld [vmem:[#allocation16_spill] sm:$0xff]  ;;  %v4118_v28 = vld [vmem:[#allocation14_spill] sm:$0xff]  ;;  %v653_v36 = vmul.f32 %v2673_v26, %v647_v40 }
 0x22b   : > { %v768_v32 = vsel %vm540_vm3, %v4111_v0, %v4110_v7  ;;  %v874_v34 = vmul.f32 %v4115_v62, %v4114_v8 }
 0x22c   : > { %v858_v10 = vadd.f32 %v856_v58, %v842_v49  ;;  %v4109_v58 = vld [vmem:[#allocation24_spill] sm:$0xff]  ;;  %v595_v44 = vadd.f32 %v593_v38, %v565_v19  ;;  %v771_v2 = vmul.f32 %v768_v32, %v3171_v60  ;;  %v623_v19 = vmul.f32 %v2669_v24, %v617_v63  ;;  %v4119_v38 = vld [vmem:[#allocation38_spill] sm:$0xff] }
 0x22d   : > { %v722_v4 = vadd.f32 %v4109_v58, %v714_v3  ;;  %v784_v3 = vsel %vm570_vm4, %v4113_v46, %v4112_v47  ;;  %v761_v50 = vmul.f32 %v2659_v18, %v755_v6  ;;  %v880_v7 = vsel %vm481_vm1, %v877_v31, %v4119_v38  ;;  %v4120_v6 = vld [vmem:[#allocation41_spill] sm:$0xff] }
 0x22e   : > { %v893_v12 = vpop.permute.xlu1 %892  ;;  %v866_v49 = vadd.f32 %v3225_v53, %v858_v10  ;;  %v4117_v10 = vld [vmem:[#allocation25_spill] sm:$0xff]  ;;  %v881_v24 = vsel %vm481_vm1, %v4119_v38, %v877_v31  ;;  %v3284_v63 = vrot.slane %v3130_v42, %v3070_v48  ;;  %v801_v18 = vsel %vm600_vm5, %v3099_v22, %v2923_v9  ;;  %v4121_v9 = vld [vmem:[#allocation35_spill] sm:$0xff] }
 0x22f   : > { %v745_v41 = vmul.f32 %v4117_v10, %v739_v45  ;;  %v787_v45 = vmul.f32 %v784_v3, %v3194_v27  ;;  %v777_v32 = vmul.f32 %v2663_v20, %v771_v2  ;;  %v896_v31 = vsel %vm510_vm2, %v893_v12, %v4120_v6  ;;  %v4122_v46 = vld [vmem:[#allocation37_spill] sm:$0xff] }
 0x230   : > { %v3249_v37 = vmul.f32 %v866_v49, %v722_v4  ;;  %v875_v49 = vmul.f32 %v4115_v62, %v4118_v28  ;;  %v662_v4 = vsel %vm660_vm7, %v2886_v56, %v2882_v54  ;;  %v625_v56 = vadd.f32 %v623_v19, %v595_v44  ;;  %v4123_v62 = vld [vmem:[#allocation45_spill] sm:$0xff]  ;;  %v4125_v28 = vld [vmem:[#allocation48_spill] sm:$0xff] }
 0x231   : > { %v747_v0 = vadd.f32 %v745_v41, %v731_v15  ;;  %v897_v26 = vsel %vm510_vm2, %v4120_v6, %v893_v12  ;;  %v677_v48 = vmul.f32 %v3267_v39, %v662_v4  ;;  %v817_v22 = vsel %vm630_vm6, %v3134_v14, %v2942_v1  ;;  %v4124_v10 = vld [vmem:[#allocation17_spill] sm:$0xff] }
 0x232   : > { %v909_v21 = vpop.permute.xlu1 %908  ;;  %v882_v42 = vmul.f32 %v881_v24, %v4121_v9  ;;  %v883_v40 = vmul.f32 %v880_v7, %v3095_v29  ;;  %v692_v20 = vsel %vm690_vm8, %v2897_v33, %v2894_v17  ;;  %v793_v47 = vmul.f32 %v2667_v23, %v787_v45  ;;  %v4127_v24 = vld [vmem:[#allocation18_spill] sm:$0xff] }
 0x233   : > { %v763_v44 = vadd.f32 %v761_v50, %v747_v0  ;;  %v803_v12 = vmul.f32 %v801_v18, %v3213_v52  ;;  %v898_v3 = vmul.f32 %v897_v26, %v4122_v46  ;;  %v899_v8 = vmul.f32 %v896_v31, %v3144_v11 }
 0x234   : > { %v912_v1 = vsel %vm540_vm3, %v909_v21, %v4123_v62  ;;  %v913_v14 = vsel %vm540_vm3, %v4123_v62, %v909_v21  ;;  %v819_v17 = vmul.f32 %v817_v22, %v3229_v55  ;;  %v833_v23 = vsel %vm660_vm7, %v3167_v16, %v2961_v59  ;;  %v4126_v59 = vld [vmem:[#allocation40_spill] sm:$0xff] }
 0x235   : > { %v779_v15 = vadd.f32 %v777_v32, %v763_v44  ;;  %v655_v33 = vadd.f32 %v653_v36, %v625_v56  ;;  %v888_v41 = vmul.f32 %v4124_v10, %v882_v42  ;;  %v889_v2 = vmul.f32 %v4124_v10, %v883_v40  ;;  %v4130_v42 = vld [vmem:[#allocation19_spill] sm:$0xff] }
 0x236   : > { %v925_v54 = vpop.permute.xlu1 %924  ;;  %v849_v50 = vsel %vm690_vm8, %v3190_v57, %v4101_v43  ;;  %v914_v16 = vmul.f32 %v913_v14, %v4126_v59  ;;  %v915_v45 = vmul.f32 %v912_v1, %v3171_v60  ;;  %v809_v38 = vmul.f32 %v2671_v25, %v803_v12  ;;  %v4129_v25 = vld [vmem:[#allocation7_spill] sm:$0xff]  ;;  %v4133_v1 = vld [vmem:[#allocation44_spill] sm:$0xff] }
 0x237   : > { %v928_v19 = vsel %vm570_vm4, %v925_v54, %v4125_v28  ;;  %v929_v21 = vsel %vm570_vm4, %v4125_v28, %v925_v54  ;;  %v795_v4 = vadd.f32 %v793_v47, %v779_v15  ;;  %v835_v7 = vmul.f32 %v833_v23, %v3267_v39  ;;  %v4128_v54 = vld [vmem:[#allocation42_spill] sm:$0xff]  ;;  %v4131_v47 = vld [vmem:[#allocation28_spill] sm:$0xff] }
 0x238   : > { %v904_v36 = vmul.f32 %v4127_v24, %v898_v3  ;;  %v905_v18 = vmul.f32 %v4127_v24, %v899_v8  ;;  %v930_v0 = vmul.f32 %v929_v21, %v4128_v54  ;;  %v931_v32 = vmul.f32 %v928_v19, %v3194_v27  ;;  %v4136_v19 = vld [vmem:[#allocation47_spill] sm:$0xff] }
 0x239   : > { %v825_v6 = vmul.f32 %v4129_v25, %v819_v17  ;;  %v851_v31 = vmul.f32 %v849_v50, %v3284_v63  ;;  %v890_v26 = vadd.f32 %v888_v41, %v874_v34  ;;  %v891_v22 = vadd.f32 %v889_v2, %v875_v49  ;;  %v4134_v17 = vld [vmem:[#allocation20_spill] sm:$0xff] }
 0x23a   : > { %v941_v35 = vpop.permute.xlu1 %940  ;;  %v920_v40 = vmul.f32 %v4130_v42, %v914_v16  ;;  %v921_v44 = vmul.f32 %v4130_v42, %v915_v45  ;;  %v811_v8 = vadd.f32 %v809_v38, %v795_v4  ;;  %v936_v23 = vmul.f32 %v4134_v17, %v930_v0  ;;  %v4135_v41 = vld [vmem:[#allocation8_spill] sm:$0xff] }
 0x23b   : > { %v944_v57 = vsel %vm600_vm5, %v941_v35, %v3159_v30  ;;  %v945_v43 = vsel %vm600_vm5, %v3159_v30, %v941_v35  ;;  %v4132_v30 = vld [vmem:[#allocation9_spill] sm:$0xff]  ;;  %v906_v35 = vadd.f32 %v904_v36, %v890_v26  ;;  %v907_v15 = vadd.f32 %v905_v18, %v891_v22 }
 0x23c   : > { %v841_v62 = vmul.f32 %v4132_v30, %v835_v7  ;;  %v946_v14 = vmul.f32 %v944_v57, %v4133_v1  ;;  %v947_v34 = vmul.f32 %v945_v43, %v3213_v52  ;;  %v937_v10 = vmul.f32 %v4134_v17, %v931_v32  ;;  %v4137_v7 = vld [vmem:[#allocation21_spill] sm:$0xff]  ;;  %v4138_v57 = vld [vmem:[#allocation36_spill] sm:$0xff] }
 0x23d   : > { %v683_v2 = vmul.f32 %v4135_v41, %v677_v48  ;;  %v827_v28 = vadd.f32 %v825_v6, %v811_v8  ;;  %v707_v50 = vmul.f32 %v3284_v63, %v692_v20  ;;  %v857_v16 = vmul.f32 %v4105_v5, %v851_v31  ;;  %v4139_v5 = vld [vmem:[#allocation22_spill] sm:$0xff]  ;;  %v4140_v31 = vld [vmem:[#allocation49_spill] sm:$0xff] }
 0x23e   : > { %v957_v56 = vpop.permute.xlu1 %956  ;;  %v922_v45 = vadd.f32 %v920_v40, %v906_v35  ;;  %v923_v38 = vadd.f32 %v921_v44, %v907_v15  ;;  %v952_v24 = vmul.f32 %v4137_v7, %v946_v14  ;;  %v953_v36 = vmul.f32 %v4137_v7, %v947_v34 }
 0x23f   : > { %v960_v12 = vsel %vm630_vm6, %v957_v56, %v4131_v47  ;;  %v961_v3 = vsel %vm630_vm6, %v4131_v47, %v957_v56  ;;  %v685_v56 = vadd.f32 %v683_v2, %v655_v33  ;;  %v843_v0 = vadd.f32 %v841_v62, %v827_v28  ;;  %v4141_v47 = vld [vmem:[#allocation23_spill] sm:$0xff] }
 0x240   : > { %v962_v21 = vmul.f32 %v960_v12, %v4136_v19  ;;  %v963_v4 = vmul.f32 %v961_v3, %v3229_v55  ;;  %v938_v32 = vadd.f32 %v936_v23, %v922_v45  ;;  %v939_v48 = vadd.f32 %v937_v10, %v923_v38  ;;  %v4142_v23 = vld [vmem:[#allocation12_spill] sm:$0xff] }
 0x241   : > { %v713_v33 = vmul.f32 %v4104_v51, %v707_v50  ;;  %v859_v42 = vadd.f32 %v857_v16, %v843_v0 }
 0x242   : > { %v989_v49 = vpop.permute.xlu1 %988  ;;  %v968_v25 = vmul.f32 %v4139_v5, %v962_v21  ;;  %v969_v6 = vmul.f32 %v4139_v5, %v963_v4  ;;  %v954_v40 = vadd.f32 %v952_v24, %v938_v32  ;;  %v955_v44 = vadd.f32 %v953_v36, %v939_v48 }
 0x243   : > { %v715_v14 = vadd.f32 %v713_v33, %v685_v56  ;;  %v867_v17 = vadd.f32 %v3225_v53, %v859_v42  ;;  %v1016_v53 = vld [vmem:[%s3967_s1 + $0x20] sm:$0xff]  ;;  %v4143_v36 = vmov 0.0  }
 0x244   : > { %v970_v34 = vadd.f32 %v968_v25, %v954_v40  ;;  %v971_v15 = vadd.f32 %v969_v6, %v955_v44 }
 0x245   : > { %v723_v21 = vadd.f32 %v4109_v58, %v715_v14  ;;  %v1017_v58 = vld [vmem:[%s3967_s1 + $0x28] sm:$0xff] }
 0x246   : > { %v975_v18 = vpop.permute.xlu1 %974  ;;  %v1553_v14 = vld [vmem:[%s3970_s4 + $0x28] sm:$0xff] }
 0x247   : > { %v976_v43 = vsel %vm660_vm7, %v4138_v57, %v975_v18  ;;  %v977_v20 = vsel %vm660_vm7, %v975_v18, %v4138_v57  ;;  %v1013_v45 = vmul.f32 %v867_v17, %v723_v21 }
 0x248   : > { %v978_v26 = vmul.f32 %v976_v43, %v4140_v31  ;;  %v979_v22 = vmul.f32 %v977_v20, %v3267_v39 }
 0x24a   : > { %v984_v12 = vmul.f32 %v4141_v47, %v978_v26  ;;  %v985_v3 = vmul.f32 %v4141_v47, %v979_v22  ;;  %v991_v8 = vpop.permute.xlu1 %990 }
 0x24b   : > { %v992_v30 = vsel %vm690_vm8, %v989_v49, %v991_v8  ;;  %v993_v62 = vsel %vm690_vm8, %v991_v8, %v989_v49  ;;  %v1008_v49 = vpop.permute.xlu0 %1007 }
 0x24c   : > { %v994_v35 = vmul.f32 %v992_v30, %v3157_v61  ;;  %v995_v51 = vmul.f32 %v993_v62, %v3284_v63  ;;  %v987_v41 = vadd.f32 %v985_v3, %v971_v15  ;;  %v986_v28 = vadd.f32 %v984_v12, %v970_v34  ;;  %v1409_v30 = vld [vmem:[%s3970_s4 + $0x20] sm:$0xff] }
 0x24e   : > { %v1000_v10 = vmul.f32 %v4142_v23, %v994_v35  ;;  %v1001_v2 = vmul.f32 %v4142_v23, %v995_v51 }
 0x24f   : > { %v1030_v57 = vpop.permute.xlu0 %1029 }
 0x250   : > { %v1003_v4 = vadd.f32 %v1001_v2, %v987_v41  ;;  %v1002_v50 = vadd.f32 %v1000_v10, %v986_v28 }
 0x252   : > { %v1011_v16 = vadd.f32 %v1008_v49, %v1003_v4  ;;  %v1010_v38 = vadd.f32 %v1008_v49, %v1002_v50 }
 0x253   : > { %v3430_v43 = vpop.permute.xlu0 %1132 }
 0x254   : > { %v1015_v7 = vadd.f32 %v1013_v45, %v1011_v16  ;;  %v1014_v24 = vadd.f32 %v3249_v37, %v1010_v38  ;;  %v1018_v37 = vld [vmem:[%s3967_s1 + $0x30] sm:$0xff] }
 0x256   : > { %1076 = vmatprep.subr.mxu1 %v1015_v7 }
 0x257   : > { %1077 = vmatpush1.msra.mxu1 %v1014_v24  ;;  %v1025_v18 = vpop.permute.xlu1 %1024  ;;  %v3436_v5 = vpop.permute.xlu0 %1162 }
 0x258   : > { %2241 = vmatmul.mubr.msk.f32.vlgmr.msra.gmra.mxu1 %vm365_vm0, %v1016_v53  ;;  %2263 = vmatprep.subr.mxu1 %v4143_v36 }
 0x259   : > { %1116 = vmatprep.mubr.f32.mxu1 %v4143_v36 }
 0x25b   : > { %v3448_v22 = vpop.permute.xlu0 %1306  ;;  %v1035_v33 = vpop.permute.xlu1 %1034 }
 0x25c   : > { %2242 = vmatmul.mubr.msk.f32.gmra.mxu1 %vm365_vm0, %v1017_v58 }
 0x25d   : > { %1122 = vmatprep.mubr.f32.mxu1 %v4143_v36 }
 0x25f   : > { %v3458_v47 = vpop.permute.xlu0 %1178  ;;  %v1147_v34 = vpop.permute.xlu1 %1146 }
 0x260   : > { %2243 = vmatmul.mubr.msk.f32.gmra.mxu1 %vm365_vm0, %v1018_v37 }
 0x263   : > { %v3468_v12 = vpop.permute.xlu0 %1322 }
 0x264   : > { %v3504_v51 = vpop.permute.xlu1 %1276 }
 0x267   : > { %v3474_v3 = vpop.permute.xlu0 %1194 }
 0x268   : > { %v3512_v23 = vpop.permute.xlu1 %1420 }
 0x26b   : > { %v3484_v8 = vpop.permute.xlu0 %1338 }
 0x26d   : > { %v3520_v41 = vpop.permute.xlu1 %1450 }
 0x26f   : > { %v3493_v62 = vpop.permute.xlu0 %1210 }
 0x272   : > { %v3526_v28 = vpop.permute.xlu1 %1466 }
 0x273   : > { %v3502_v35 = vpop.permute.xlu0 %1354 }
 0x277   : > { %v3510_v17 = vpop.permute.xlu0 %1226  ;;  %v3534_v4 = vpop.permute.xlu1 %1482 }
 0x27b   : > { %v3518_v10 = vpop.permute.xlu0 %1370 }
 0x27c   : > { %v3540_v49 = vpop.permute.xlu1 %1498 }
 0x281   : > { %v3548_v45 = vpop.permute.xlu1 %1514 }
 0x282   : > { %v3524_v2 = vpop.permute.xlu0 %1242  ;;  %4145 = vst [vmem:[#allocation26_spill] sm:$0xff] %v3548_v45 }
 0x286   : > { %v3532_v21 = vpop.permute.xlu0 %1386  ;;  %v3554_v7 = vpop.permute.xlu1 %1530 }
 0x287   : > { %4147 = vst [vmem:[#allocation29_spill] sm:$0xff] %v3554_v7 }
 0x28b   : > { %v3562_v53 = vpop.permute.xlu1 %1268 }
 0x28d   : > { %v3538_v50 = vpop.permute.xlu0 %1258 }
 0x291   : > { %v3546_v16 = vpop.permute.xlu0 %1402 }
 0x295   : > { %v3552_v38 = vpop.permute.xlu0 %1546 }
 0x296   : > { %4146 = vst [vmem:[#allocation34_spill] sm:$0xff] %v3552_v38 }
 0x29a   : > { %v3558_v24 = vpop.permute.xlu0 %1290 }
 0x29e   : > { %v3566_v58 = vpop.permute.xlu0 %1434 }
 0x318   : > { %v1112_v56 = vpop.f32.mrf.mxu1 }
 0x319   : > { %v3410_v0 = vadd.f32 %v1112_v56, %v1025_v18 }
 0x31a   : > { %v1114_v32 = vpop.f32.mrf.mxu1 }
 0x31b   : > { %1169 = vrot.lane.b32.xlu0 %v3410_v0, %s4062_s19  ;;  %1137 = vrot.lane.b32.xlu1 %v3410_v0, %s2447_s18  ;;  %v3420_v48 = vadd.f32 %v1114_v32, %v1025_v18 }
 0x31c   : > { %v1118_v20 = vpop.f32.mrf.mxu1 }
 0x31d   : > { %v3442_v6 = vadd.f32 %v1118_v20, %v1030_v57 }
 0x31e   : > { %v1120_v25 = vpop.f32.mrf.mxu1 }
 0x31f   : > { %1185 = vrot.lane.b32.xlu0 %v3410_v0, %s2449_s20  ;;  %1153 = vrot.lane.b32.xlu1 %v3410_v0, %s2446_s16  ;;  %v3508_v15 = vadd.f32 %v1120_v25, %v1030_v57 }
 0x320   : > { %v1124_v26 = vpop.f32.mrf.mxu1 }
 0x321   : > { %v3450_v42 = vadd.f32 %v1124_v26, %v1035_v33 }
 0x322   : > { %v1126_v40 = vpop.f32.mrf.mxu1 }
 0x323   : > { %1201 = vrot.lane.b32.xlu0 %v3410_v0, %s2450_s21  ;;  %1139 = vrot.lane.b32.xlu1 %v3420_v48, %s2447_s18  ;;  %v3456_v44 = vadd.f32 %v1126_v40, %v1035_v33  ;;  %v1135_v33 = vmul.f32 %v3430_v43, %v3410_v0 }
 0x327   : > { %1217 = vrot.lane.b32.xlu0 %v3410_v0, %s2451_s22  ;;  %1155 = vrot.lane.b32.xlu1 %v3420_v48, %s2446_s16 }
 0x32b   : > { %1233 = vrot.lane.b32.xlu0 %v3410_v0, %s2452_s23  ;;  %1171 = vrot.lane.b32.xlu1 %v3420_v48, %s4062_s19 }
 0x32f   : > { %1249 = vrot.lane.b32.xlu0 %v3410_v0, %s4144_s14  ;;  %1187 = vrot.lane.b32.xlu1 %v3420_v48, %s2449_s20 }
 0x333   : > { %1393 = vrot.lane.b32.xlu0 %v3442_v6, %s4144_s14  ;;  %1203 = vrot.lane.b32.xlu1 %v3420_v48, %s2450_s21 }
 0x337   : > { %1521 = vrot.lane.b32.xlu0 %v3450_v42, %s2452_s23  ;;  %1219 = vrot.lane.b32.xlu1 %v3420_v48, %s2451_s22 }
 0x33b   : > { %1427 = vrot.lane.b32.xlu0 %v3456_v44, %s2447_s18  ;;  %1235 = vrot.lane.b32.xlu1 %v3420_v48, %s2452_s23 }
 0x33f   : > { %1443 = vrot.lane.b32.xlu0 %v3456_v44, %s2446_s16  ;;  %1251 = vrot.lane.b32.xlu1 %v3420_v48, %s4144_s14 }
 0x343   : > { %1459 = vrot.lane.b32.xlu0 %v3456_v44, %s4062_s19  ;;  %1281 = vrot.lane.b32.xlu1 %v3442_v6, %s2447_s18 }
 0x347   : > { %1475 = vrot.lane.b32.xlu0 %v3456_v44, %s2449_s20  ;;  %1297 = vrot.lane.b32.xlu1 %v3442_v6, %s2446_s16 }
 0x34b   : > { %1491 = vrot.lane.b32.xlu0 %v3456_v44, %s2450_s21  ;;  %1313 = vrot.lane.b32.xlu1 %v3442_v6, %s4062_s19 }
 0x34f   : > { %1507 = vrot.lane.b32.xlu0 %v3456_v44, %s2451_s22  ;;  %1329 = vrot.lane.b32.xlu1 %v3442_v6, %s2449_s20 }
 0x353   : > { %1345 = vrot.lane.b32.xlu1 %v3442_v6, %s2450_s21  ;;  %1412 = vperm.xlu0 %2362, %v1409_v30   ;;  %v1136_v30 = vmul.f32 %v3430_v43, %v3420_v48 }
 0x357   : > { %1361 = vrot.lane.b32.xlu1 %v3442_v6, %s2451_s22  ;;  %1556 = vperm.xlu0 %2362, %v1553_v14  }
 0x35b   : > { %1377 = vrot.lane.b32.xlu1 %v3442_v6, %s2452_s23 }
 0x35f   : > { %1283 = vrot.lane.b32.xlu1 %v3508_v15, %s2447_s18 }
 0x363   : > { %1299 = vrot.lane.b32.xlu1 %v3508_v15, %s2446_s16 }
 0x367   : > { %1315 = vrot.lane.b32.xlu1 %v3508_v15, %s4062_s19 }
 0x36b   : > { %1331 = vrot.lane.b32.xlu1 %v3508_v15, %s2449_s20 }
 0x36f   : > { %1347 = vrot.lane.b32.xlu1 %v3508_v15, %s2450_s21 }
 0x373   : > { %1363 = vrot.lane.b32.xlu1 %v3508_v15, %s2451_s22 }
 0x377   : > { %1379 = vrot.lane.b32.xlu1 %v3508_v15, %s2452_s23 }
 0x37b   : > { %1395 = vrot.lane.b32.xlu1 %v3508_v15, %s4144_s14 }
 0x37f   : > { %1425 = vrot.lane.b32.xlu1 %v3450_v42, %s2447_s18 }
 0x383   : > { %1441 = vrot.lane.b32.xlu1 %v3450_v42, %s2446_s16  ;;  %s2164_s16 = sshll.u32 %s271_s29, 4  ;;  %s2165_s16 = int_to_ptr.vmem [resolvable:$true] %s2164_s16 }
 0x387   : > { %1457 = vrot.lane.b32.xlu1 %v3450_v42, %s4062_s19  ;;  %s2378_s19 = sshll.u32 %s2455_s28, 4  ;;  %s2379_s19 = int_to_ptr.vmem [resolvable:$false] %s2378_s19 }
 0x388   : > { %s2380_s13 = scalar_lea.vmem %s2379_s19, 256  ;;  %p2381_p0 = scmp.lt.s32.totalorder %s2165_s16, %s2379_s19 }
 0x38b   : > { %1473 = vrot.lane.b32.xlu1 %v3450_v42, %s2449_s20 }
 0x38d   : > { %v1138_v37 = vpop.permute.xlu1 %1137  ;;  %v1170_v56 = vpop.permute.xlu0 %1169 }
 0x38f   : > { %1489 = vrot.lane.b32.xlu1 %v3450_v42, %s2450_s21  ;;  %s2162_s21 = scalar_lea.hbm %s3973_s7, %s2260_s9 }
 0x391   : > { %v1154_v18 = vpop.permute.xlu1 %1153  ;;  %v1186_v40 = vpop.permute.xlu0 %1185 }
 0x393   : > { %1505 = vrot.lane.b32.xlu1 %v3450_v42, %s2451_s22  ;;  %s2150_s22 = scalar_lea.sflag [#allocation3], %s269_s15 }
 0x395   : > { %v1140_v32 = vpop.permute.xlu1 %1139 }
 0x396   : > { %v1141_v57 = vsel %vm481_vm1, %v1138_v37, %v1140_v32  ;;  %v1142_v20 = vsel %vm481_vm1, %v1140_v32, %v1138_v37 }
 0x397   : > { %v1143_v25 = vmul.f32 %v1142_v20, %v4121_v9  ;;  %v1144_v26 = vmul.f32 %v1141_v57, %v3095_v29  ;;  %1537 = vrot.lane.b32.xlu1 %v3450_v42, %s4144_s14 }
 0x399   : > { %v1149_v14 = vmul.f32 %v1147_v34, %v1143_v25  ;;  %v1150_v36 = vmul.f32 %v1147_v34, %v1144_v26  ;;  %v1156_v38 = vpop.permute.xlu1 %1155 }
 0x39a   : > { %v1157_v37 = vsel %vm510_vm2, %v1154_v18, %v1156_v38  ;;  %v1158_v32 = vsel %vm510_vm2, %v1156_v38, %v1154_v18  ;;  %v1202_v18 = vpop.permute.xlu0 %1201 }
 0x39b   : > { %v1151_v57 = vadd.f32 %v1149_v14, %v1135_v33  ;;  %v1152_v20 = vadd.f32 %v1150_v36, %v1136_v30  ;;  %v1159_v7 = vmul.f32 %v1158_v32, %v4122_v46  ;;  %v1160_v45 = vmul.f32 %v1157_v37, %v3144_v11  ;;  %1523 = vrot.lane.b32.xlu1 %v3456_v44, %s2452_s23  ;;  %s2374_s23 = scalar_lea.vmem %s2165_s16, 128 }
 0x39c   : > { %p2375_p11 = scmp.ne.s32.totalorder %s2165_s16, %s2374_s23  ;;  %p2382_p1 = scmp.lt.s32.totalorder %s2380_s13, %s2374_s23 }
 0x39d   : > { %v1165_v0 = vmul.f32 %v3436_v5, %v1159_v7  ;;  %v1166_v48 = vmul.f32 %v3436_v5, %v1160_v45  ;;  %v1172_v43 = vpop.permute.xlu1 %1171  ;;  %v341_v5 = vld [vmem:[%s3968_s2] sm:$0xff] }
 0x39e   : > { %v1173_v34 = vsel %vm540_vm3, %v1170_v56, %v1172_v43  ;;  %v1174_v38 = vsel %vm540_vm3, %v1172_v43, %v1170_v56  ;;  %p2376_p12 = pnand %p2375_p11, %p2534_p5  ;;  %p2383_p2 = por %p2382_p1, %p2381_p0 }
 0x39f   : > { %v1167_v36 = vadd.f32 %v1165_v0, %v1151_v57  ;;  %v1168_v25 = vadd.f32 %v1166_v48, %v1152_v20  ;;  %v1175_v26 = vmul.f32 %v1174_v38, %v4126_v59  ;;  %v1176_v33 = vmul.f32 %v1173_v34, %v3171_v60  ;;  %1539 = vrot.lane.b32.xlu1 %v3456_v44, %s4144_s14  ;;  %v1218_v0 = vpop.permute.xlu0 %1217 }
 0x3a0   : > { %p2377_p13 = pneg %p2376_p12 }
 0x3a1   : > { %v1181_v45 = vmul.f32 %v3458_v47, %v1175_v26  ;;  %v1182_v7 = vmul.f32 %v3458_v47, %v1176_v33  ;;  %v1188_v30 = vpop.permute.xlu1 %1187 }
 0x3a2   : > { %v1189_v56 = vsel %vm570_vm4, %v1186_v40, %v1188_v30  ;;  %v1190_v14 = vsel %vm570_vm4, %v1188_v30, %v1186_v40  ;;  %p2384_p3 = pnand %p2383_p2, %p2377_p13 }
 0x3a3   : > { %v1183_v37 = vadd.f32 %v1181_v45, %v1167_v36  ;;  %v1184_v32 = vadd.f32 %v1182_v7, %v1168_v25  ;;  %v1191_v57 = vmul.f32 %v1190_v14, %v4128_v54  ;;  %v1192_v20 = vmul.f32 %v1189_v56, %v3194_v27  ;;  %347 = vperm.xlu1 %2363, %v341_v5   ;;  %v1234_v30 = vpop.permute.xlu0 %1233 }
 0x3a5   : > { %v1197_v48 = vmul.f32 %v3474_v3, %v1191_v57  ;;  %v1198_v43 = vmul.f32 %v3474_v3, %v1192_v20  ;;  %v1204_v47 = vpop.permute.xlu1 %1203 }
 0x3a6   : > { %v1205_v34 = vsel %vm600_vm5, %v1202_v18, %v1204_v47  ;;  %v1206_v38 = vsel %vm600_vm5, %v1204_v47, %v1202_v18 }
 0x3a7   : > { %v1199_v40 = vadd.f32 %v1197_v48, %v1183_v37  ;;  %v1200_v36 = vadd.f32 %v1198_v43, %v1184_v32  ;;  %v1207_v25 = vmul.f32 %v1205_v34, %v4133_v1  ;;  %v1208_v26 = vmul.f32 %v1206_v38, %v3213_v52  ;;  %v1250_v38 = vpop.permute.xlu0 %1249 }
 0x3a9   : > { %v1213_v33 = vmul.f32 %v3493_v62, %v1207_v25  ;;  %v1214_v5 = vmul.f32 %v3493_v62, %v1208_v26  ;;  %v1220_v45 = vpop.permute.xlu1 %1219 }
 0x3aa   : > { %v1221_v3 = vsel %vm630_vm6, %v1218_v0, %v1220_v45  ;;  %v1222_v7 = vsel %vm630_vm6, %v1220_v45, %v1218_v0 }
 0x3ab   : > { %v1215_v56 = vadd.f32 %v1213_v33, %v1199_v40  ;;  %v1216_v18 = vadd.f32 %v1214_v5, %v1200_v36  ;;  %v1223_v14 = vmul.f32 %v1221_v3, %v4136_v19  ;;  %v1224_v37 = vmul.f32 %v1222_v7, %v3229_v55 }
 0x3ad   : > { %v1229_v32 = vmul.f32 %v3510_v17, %v1223_v14  ;;  %v1230_v57 = vmul.f32 %v3510_v17, %v1224_v37  ;;  %v1236_v20 = vpop.permute.xlu1 %1235 }
 0x3ae   : > { %v1237_v62 = vsel %vm660_vm7, %v1234_v30, %v1236_v20  ;;  %v1238_v48 = vsel %vm660_vm7, %v1236_v20, %v1234_v30 }
 0x3af   : > { %v1231_v43 = vadd.f32 %v1229_v32, %v1215_v56  ;;  %v1232_v0 = vadd.f32 %v1230_v57, %v1216_v18  ;;  %v1239_v47 = vmul.f32 %v1237_v62, %v4140_v31  ;;  %v1240_v34 = vmul.f32 %v1238_v48, %v3267_v39  ;;  %v3653_v48 = vpop.permute.xlu0 %1393 }
 0x3b1   : > { %v1245_v40 = vmul.f32 %v3524_v2, %v1239_v47  ;;  %v1246_v36 = vmul.f32 %v3524_v2, %v1240_v34  ;;  %v1252_v25 = vpop.permute.xlu1 %1251 }
 0x3b2   : > { %v1253_v17 = vsel %vm690_vm8, %v1250_v38, %v1252_v25  ;;  %v1254_v26 = vsel %vm690_vm8, %v1252_v25, %v1250_v38  ;;  %v1279_v25 = vmul.f32 %v3504_v51, %v3442_v6 }
 0x3b3   : > { %v1247_v33 = vadd.f32 %v1245_v40, %v1231_v43  ;;  %v1248_v5 = vadd.f32 %v1246_v36, %v1232_v0  ;;  %v1255_v45 = vmul.f32 %v1253_v17, %v3157_v61  ;;  %v1256_v3 = vmul.f32 %v1254_v26, %v3284_v63  ;;  %v3655_v0 = vpop.permute.xlu0 %1521 }
 0x3b5   : > { %v1261_v7 = vmul.f32 %v3538_v50, %v1255_v45  ;;  %v1262_v30 = vmul.f32 %v3538_v50, %v1256_v3  ;;  %v1282_v56 = vpop.permute.xlu1 %1281  ;;  %v1280_v3 = vmul.f32 %v3504_v51, %v3508_v15 }
 0x3b7   : > { %v1263_v18 = vadd.f32 %v1261_v7, %v1247_v33  ;;  %v1264_v2 = vadd.f32 %v1262_v30, %v1248_v5  ;;  %v3659_v34 = vpop.permute.xlu0 %1427 }
 0x3b9   : > { %v3648_v14 = vadd.f32 %v3562_v53, %v1263_v18  ;;  %v3651_v37 = vadd.f32 %v3562_v53, %v1264_v2  ;;  %v1298_v32 = vpop.permute.xlu1 %1297 }
 0x3bb   : > { %v3679_v6 = vpop.permute.xlu0 %1443 }
 0x3bd   : > { %v1314_v57 = vpop.permute.xlu1 %1313 }
 0x3c1   : > { %v1330_v20 = vpop.permute.xlu1 %1329 }
 0x3c5   : > { %v1346_v62 = vpop.permute.xlu1 %1345 }
 0x3c9   : > { %v1362_v43 = vpop.permute.xlu1 %1361 }
 0x3cd   : > { %v3657_v47 = vpop.permute.xlu1 %1377 }
 0x3d1   : > { %v1284_v50 = vpop.permute.xlu1 %1283 }
 0x3d2   : > { %v1285_v38 = vsel %vm481_vm1, %v1282_v56, %v1284_v50  ;;  %v1286_v53 = vsel %vm481_vm1, %v1284_v50, %v1282_v56 }
 0x3d3   : > { %v1287_v40 = vmul.f32 %v1286_v53, %v4121_v9  ;;  %v1288_v36 = vmul.f32 %v1285_v38, %v3095_v29 }
 0x3d5   : > { %v1293_v17 = vmul.f32 %v3558_v24, %v1287_v40  ;;  %v1294_v26 = vmul.f32 %v3558_v24, %v1288_v36  ;;  %v1300_v33 = vpop.permute.xlu1 %1299 }
 0x3d6   : > { %v1301_v5 = vsel %vm510_vm2, %v1298_v32, %v1300_v33  ;;  %v1302_v45 = vsel %vm510_vm2, %v1300_v33, %v1298_v32 }
 0x3d7   : > { %v1295_v7 = vadd.f32 %v1293_v17, %v1279_v25  ;;  %v1303_v30 = vmul.f32 %v1302_v45, %v4122_v46  ;;  %v1304_v56 = vmul.f32 %v1301_v5, %v3144_v11  ;;  %v1296_v18 = vadd.f32 %v1294_v26, %v1280_v3  ;;  %v3691_v26 = vpop.permute.xlu0 %1459 }
 0x3d9   : > { %v1309_v24 = vmul.f32 %v3448_v22, %v1303_v30  ;;  %v1310_v2 = vmul.f32 %v3448_v22, %v1304_v56  ;;  %v1316_v50 = vpop.permute.xlu1 %1315 }
 0x3da   : > { %v1317_v38 = vsel %vm540_vm3, %v1314_v57, %v1316_v50  ;;  %v1318_v32 = vsel %vm540_vm3, %v1316_v50, %v1314_v57 }
 0x3db   : > { %v1311_v51 = vadd.f32 %v1309_v24, %v1295_v7  ;;  %v1312_v15 = vadd.f32 %v1310_v2, %v1296_v18  ;;  %v1319_v53 = vmul.f32 %v1318_v32, %v4126_v59  ;;  %v1320_v40 = vmul.f32 %v1317_v38, %v3171_v60  ;;  %v1476_v38 = vpop.permute.xlu0 %1475 }
 0x3dd   : > { %v1325_v36 = vmul.f32 %v3468_v12, %v1319_v53  ;;  %v1326_v25 = vmul.f32 %v3468_v12, %v1320_v40  ;;  %v1332_v17 = vpop.permute.xlu1 %1331 }
 0x3de   : > { %v1333_v22 = vsel %vm570_vm4, %v1330_v20, %v1332_v17  ;;  %v1334_v33 = vsel %vm570_vm4, %v1332_v17, %v1330_v20 }
 0x3df   : > { %v1327_v57 = vadd.f32 %v1325_v36, %v1311_v51  ;;  %v1328_v5 = vadd.f32 %v1326_v25, %v1312_v15  ;;  %v1335_v45 = vmul.f32 %v1334_v33, %v4128_v54  ;;  %v1336_v3 = vmul.f32 %v1333_v22, %v3194_v27 }
 0x3e1   : > { %v1341_v7 = vmul.f32 %v3484_v8, %v1335_v45  ;;  %v1342_v30 = vmul.f32 %v3484_v8, %v1336_v3  ;;  %v1348_v12 = vpop.permute.xlu1 %1347 }
 0x3e2   : > { %v1349_v56 = vsel %vm600_vm5, %v1346_v62, %v1348_v12  ;;  %v1350_v18 = vsel %vm600_vm5, %v1348_v12, %v1346_v62 }
 0x3e3   : > { %v1343_v24 = vadd.f32 %v1341_v7, %v1327_v57  ;;  %v1344_v2 = vadd.f32 %v1342_v30, %v1328_v5  ;;  %v1351_v20 = vmul.f32 %v1349_v56, %v4133_v1  ;;  %v1352_v50 = vmul.f32 %v1350_v18, %v3213_v52  ;;  %v1492_v57 = vpop.permute.xlu0 %1491 }
 0x3e5   : > { %v1357_v32 = vmul.f32 %v3502_v35, %v1351_v20  ;;  %v1358_v51 = vmul.f32 %v3502_v35, %v1352_v50  ;;  %v1364_v15 = vpop.permute.xlu1 %1363 }
 0x3e6   : > { %v1365_v8 = vsel %vm630_vm6, %v1362_v43, %v1364_v15  ;;  %v1366_v53 = vsel %vm630_vm6, %v1364_v15, %v1362_v43 }
 0x3e7   : > { %v1359_v40 = vadd.f32 %v1357_v32, %v1343_v24  ;;  %v1360_v62 = vadd.f32 %v1358_v51, %v1344_v2  ;;  %v1367_v36 = vmul.f32 %v1365_v8, %v4136_v19  ;;  %v1368_v25 = vmul.f32 %v1366_v53, %v3229_v55  ;;  %v1508_v50 = vpop.permute.xlu0 %1507 }
 0x3e9   : > { %v1373_v17 = vmul.f32 %v3518_v10, %v1367_v36  ;;  %v1374_v22 = vmul.f32 %v3518_v10, %v1368_v25  ;;  %v1380_v33 = vpop.permute.xlu1 %1379 }
 0x3ea   : > { %v1381_v35 = vsel %vm660_vm7, %v3657_v47, %v1380_v33  ;;  %v1382_v43 = vsel %vm660_vm7, %v1380_v33, %v3657_v47 }
 0x3eb   : > { %v1375_v5 = vadd.f32 %v1373_v17, %v1359_v40  ;;  %v1376_v45 = vadd.f32 %v1374_v22, %v1360_v62  ;;  %v1383_v3 = vmul.f32 %v1381_v35, %v4140_v31  ;;  %v1384_v7 = vmul.f32 %v1382_v43, %v3267_v39  ;;  %v1413_v53 = vpop.permute.xlu0 %1412 }
 0x3ed   : > { %v1389_v30 = vmul.f32 %v3532_v21, %v1383_v3  ;;  %v1390_v10 = vmul.f32 %v3532_v21, %v1384_v7  ;;  %v1396_v12 = vpop.permute.xlu1 %1395 }
 0x3ee   : > { %v1397_v56 = vsel %vm690_vm8, %v3653_v48, %v1396_v12  ;;  %v1398_v18 = vsel %vm690_vm8, %v1396_v12, %v3653_v48 }
 0x3ef   : > { %v1391_v47 = vadd.f32 %v1389_v30, %v1375_v5  ;;  %v1392_v24 = vadd.f32 %v1390_v10, %v1376_v45  ;;  %v1399_v2 = vmul.f32 %v1397_v56, %v3157_v61  ;;  %v1400_v20 = vmul.f32 %v1398_v18, %v3284_v63 }
 0x3f0   : > { %v1423_v10 = vmul.f32 %v3512_v23, %v3450_v42 }
 0x3f1   : > { %v1405_v32 = vmul.f32 %v3546_v16, %v1399_v2  ;;  %v1406_v21 = vmul.f32 %v3546_v16, %v1400_v20  ;;  %v1426_v51 = vpop.permute.xlu1 %1425 }
 0x3f2   : > { %v1429_v22 = vsel %vm481_vm1, %v1426_v51, %v3659_v34  ;;  %v1430_v16 = vsel %vm481_vm1, %v3659_v34, %v1426_v51 }
 0x3f3   : > { %v1407_v15 = vadd.f32 %v1405_v32, %v1391_v47  ;;  %v1408_v8 = vadd.f32 %v1406_v21, %v1392_v24  ;;  %v1432_v43 = vmul.f32 %v1429_v22, %v3095_v29 }
 0x3f5   : > { %v1415_v40 = vadd.f32 %v1413_v53, %v1407_v15  ;;  %v1416_v62 = vadd.f32 %v1413_v53, %v1408_v8  ;;  %v1442_v36 = vpop.permute.xlu1 %1441 }
 0x3f6   : > { %v1445_v35 = vsel %vm510_vm2, %v1442_v36, %v3679_v6 }
 0x3f7   : > { %v3738_v48 = vmul.f32 %v1416_v62, %v3651_v37  ;;  %v3741_v25 = vmul.f32 %v1415_v40, %v3648_v14  ;;  %v1446_v37 = vsel %vm510_vm2, %v3679_v6, %v1442_v36  ;;  %v1431_v14 = vmul.f32 %v1430_v16, %v4121_v9 }
 0x3f8   : > { %v1447_v5 = vmul.f32 %v1446_v37, %v4122_v46  ;;  %v1448_v45 = vmul.f32 %v1445_v35, %v3144_v11  ;;  %v1438_v6 = vmul.f32 %v3566_v58, %v1432_v43 }
 0x3f9   : > { %v1458_v17 = vpop.permute.xlu1 %1457  ;;  %v1437_v30 = vmul.f32 %v3566_v58, %v1431_v14 }
 0x3fa   : > { %v1461_v34 = vsel %vm540_vm3, %v1458_v17, %v3691_v26  ;;  %v1462_v3 = vsel %vm540_vm3, %v3691_v26, %v1458_v17  ;;  %v1424_v26 = vmul.f32 %v3512_v23, %v3456_v44  ;;  %v1453_v12 = vmul.f32 %v3520_v41, %v1447_v5 }
 0x3fb   : > { %v1463_v11 = vmul.f32 %v1462_v3, %v4126_v59  ;;  %v1464_v46 = vmul.f32 %v1461_v34, %v3171_v60  ;;  %v1454_v58 = vmul.f32 %v3520_v41, %v1448_v45 }
 0x3fc   : > { %v1440_v42 = vadd.f32 %v1438_v6, %v1424_v26 }
 0x3fd   : > { %v1474_v33 = vpop.permute.xlu1 %1473  ;;  %v1469_v24 = vmul.f32 %v3526_v28, %v1463_v11  ;;  %v1470_v44 = vmul.f32 %v3526_v28, %v1464_v46  ;;  %v1557_v11 = vpop.permute.xlu0 %1556 }
 0x3fe   : > { %v1477_v29 = vsel %vm570_vm4, %v1474_v33, %v1476_v38  ;;  %v1478_v9 = vsel %vm570_vm4, %v1476_v38, %v1474_v33  ;;  %v1439_v38 = vadd.f32 %v1437_v30, %v1423_v10  ;;  %v1456_v32 = vadd.f32 %v1454_v58, %v1440_v42  ;;  %v4149_v33 = vld [vmem:[#allocation29_spill] sm:$0xff] }
 0x3ff   : > { %v1479_v18 = vmul.f32 %v1478_v9, %v4128_v54  ;;  %v1480_v47 = vmul.f32 %v1477_v29, %v3194_v27 }
 0x400   : > { %v1455_v20 = vadd.f32 %v1453_v12, %v1439_v38  ;;  %v1472_v8 = vadd.f32 %v1470_v44, %v1456_v32  ;;  %v4151_v12 = vld [vmem:[#allocation5_spill] sm:$0xff]  ;;  %v1937_v38 = vld [vmem:[%s3968_s2 + $0x68] sm:$0xff]  ;;  %v1807_v32 = vld [vmem:[%s3968_s2 + $0x58] sm:$0xff] }
 0x401   : > { %v1490_v7 = vpop.permute.xlu1 %1489  ;;  %v1486_v21 = vmul.f32 %v3534_v4, %v1480_v47 }
 0x402   : > { %v1493_v59 = vsel %vm600_vm5, %v1490_v7, %v1492_v57  ;;  %v1494_v60 = vsel %vm600_vm5, %v1492_v57, %v1490_v7  ;;  %v1485_v57 = vmul.f32 %v3534_v4, %v1479_v18  ;;  %v1471_v15 = vadd.f32 %v1469_v24, %v1455_v20  ;;  %v4150_v7 = vld [vmem:[#allocation34_spill] sm:$0xff]  ;;  %v1806_v20 = vld [vmem:[%s3968_s2 + $0x50] sm:$0xff] }
 0x403   : > { %v1495_v27 = vmul.f32 %v1493_v59, %v4133_v1  ;;  %v1496_v41 = vmul.f32 %v1494_v60, %v3213_v52  ;;  %v1488_v52 = vadd.f32 %v1486_v21, %v1472_v8  ;;  %v4153_v60 = vmov 0.0   ;;  %v1938_v21 = vld [vmem:[%s3968_s2 + $0x70] sm:$0xff]  ;;  %v2134_v8 = vld [vmem:[%s3971_s5 + $0x28] sm:$0xff] }
 0x404   : > { %v1487_v40 = vadd.f32 %v1485_v57, %v1471_v15  ;;  %2265 = vmatprep.mubr.msk.f32.mxu1 %vm2454_vm9, %v4153_v60  ;;  %v1808_v57 = vld [vmem:[%s3968_s2 + $0x60] sm:$0xff] }
 0x405   : > { %v1506_v56 = vpop.permute.xlu1 %1505  ;;  %v1501_v53 = vmul.f32 %v3540_v49, %v1495_v27  ;;  %v1733_v27 = vld [vmem:[%s3971_s5 + $0x20] sm:$0xff] }
 0x406   : > { %v1509_v23 = vsel %vm630_vm6, %v1506_v56, %v1508_v50  ;;  %v1510_v54 = vsel %vm630_vm6, %v1508_v50, %v1506_v56  ;;  %v1502_v50 = vmul.f32 %v3540_v49, %v1496_v41  ;;  %v4152_v56 = vld [vmem:[#allocation6_spill] sm:$0xff]  ;;  %v1777_v41 = vld [vmem:[%s3971_s5 + $0x10] sm:$0xff]  ;;  %v2054_v15 = vld [vmem:[%s3968_s2 + $0x80] sm:$0xff] }
 0x407   : > { %v1511_v51 = vmul.f32 %v1509_v23, %v4136_v19  ;;  %v1512_v28 = vmul.f32 %v1510_v54, %v3229_v55  ;;  %v4148_v19 = vld [vmem:[#allocation26_spill] sm:$0xff]  ;;  %v1503_v49 = vadd.f32 %v1501_v53, %v1487_v40  ;;  %v1653_v54 = vld [vmem:[%s3968_s2 + $0x40] sm:$0xff] }
 0x408   : > { %v1504_v16 = vadd.f32 %v1502_v50, %v1488_v52  ;;  %v1652_v40 = vld [vmem:[%s3967_s1 + $0x40] sm:$0xff] }
 0x409   : > { %v1538_v2 = vpop.permute.xlu1 %1537  ;;  %v1517_v36 = vmul.f32 %v4148_v19, %v1511_v51  ;;  %v1518_v55 = vmul.f32 %v4148_v19, %v1512_v28  ;;  %v1939_v51 = vld [vmem:[%s3968_s2 + $0x78] sm:$0xff]  ;;  %v1805_v28 = vld [vmem:[%s3968_s2 + $0x48] sm:$0xff] }
 0x40b   : > { %v1519_v5 = vadd.f32 %v1517_v36, %v1503_v49  ;;  %v1520_v45 = vadd.f32 %v1518_v55, %v1504_v16 }
 0x40d   : > { %v1524_v1 = vpop.permute.xlu1 %1523 }
 0x40e   : > { %v1525_v62 = vsel %vm660_vm7, %v3655_v0, %v1524_v1  ;;  %v1526_v4 = vsel %vm660_vm7, %v1524_v1, %v3655_v0 }
 0x40f   : > { %v1527_v17 = vmul.f32 %v1525_v62, %v4140_v31  ;;  %v1528_v22 = vmul.f32 %v1526_v4, %v3267_v39 }
 0x411   : > { %v1533_v35 = vmul.f32 %v4149_v33, %v1527_v17  ;;  %v1534_v37 = vmul.f32 %v4149_v33, %v1528_v22  ;;  %v1540_v14 = vpop.permute.xlu1 %1539  ;;  %v2372_v22 = vld [vmem:[%s2602_s17] sm:$0xff] }
 0x412   : > { %v1541_v43 = vsel %vm690_vm8, %v1538_v2, %v1540_v14  ;;  %v1542_v0 = vsel %vm690_vm8, %v1540_v14, %v1538_v2  ;;  %v1793_v2 = vld [vmem:[%s3971_s5 + $0x18] sm:$0xff] }
 0x413   : > { %v1543_v34 = vmul.f32 %v1541_v43, %v3157_v61  ;;  %v1544_v31 = vmul.f32 %v1542_v0, %v3284_v63  ;;  %v1535_v39 = vadd.f32 %v1533_v35, %v1519_v5  ;;  %v1536_v3 = vadd.f32 %v1534_v37, %v1520_v45  ;;  %v2373_v37 = vld [vmem:[%s2602_s17 + $0x8] sm:$0xff] }
 0x415   : > { %v1549_v30 = vmul.f32 %v4150_v7, %v1543_v34  ;;  %v1550_v6 = vmul.f32 %v4150_v7, %v1544_v31 }
 0x417   : > { %v1551_v29 = vadd.f32 %v1549_v30, %v1535_v39  ;;  %v1552_v9 = vadd.f32 %v1550_v6, %v1536_v3 }
 0x419   : > { %v1559_v46 = vadd.f32 %v1557_v11, %v1551_v29  ;;  %v1560_v10 = vadd.f32 %v1557_v11, %v1552_v9 }
 0x41b   : > { %v1564_v13 = vadd.f32 %v3738_v48, %v1560_v10  ;;  %v1563_v63 = vadd.f32 %v3741_v25, %v1559_v46  ;;  %v1570_v48 = vld [vmem:[%s3967_s1 + $0x38] sm:$0xff] }
 0x41c   : > { %v1571_v25 = vld [vmem:[%s3968_s2 + $0x38] sm:$0xff] }
 0x41e   : > { %v348_v26 = vpop.permute.xlu1 %347 }
 0x41f   : > { %v445_v58 = vadd.f32 %v4151_v12, %v348_v26  ;;  %v447_v61 = vadd.f32 %v4152_v56, %v348_v26 }
 0x421   : > { %v1565_v18 = vmul.f32 %v1563_v63, %v445_v58  ;;  %v1566_v47 = vmul.f32 %v1564_v13, %v447_v61 }
 0x423   : > { %v1567_v59 = vadd.f32 %v1566_v47, %v1565_v18 }
 0x425   : > { %1568 = vadd.xlane.f32.xlu0 %v1567_v59 }
 0x43b   : > { %1942 = vperm.xlu0 %2362, %v1937_v38  }
 0x4ae   : > { %v1569_v42 = vpop.xlane.xlu0 %1568 }
 0x4af   : > { %2264 = vmatpush3.msra.mxu1 %v1569_v42 }
 0x4b0   : > { %2266 = vmatmul.mubr.msk.f32.vlgmr.msra.gmra.mxu1 %vm365_vm0, %v1570_v48 }
 0x4b1   : > { %1905 = vmatprep.mubr.f32.mxu1 %v4153_v60 }
 0x570   : > { %v1641_v24 = vpop.f32.mrf.mxu1 }
 0x571   : > { %v1642_v44 = vadd.f32 %v1641_v24, %v1571_v25 }
 0x572   : > { %v2267_v23 = vpop.f32.mrf.mxu1 }
 0x573   : > { %1647 = vperm.xlu1 %2363, %v1642_v44  }
 0x577   : > { %1656 = vperm.xlu1 %2363, %v1653_v54  }
 0x57b   : > { %1736 = vperm.xlu1 %2363, %v1733_v27  }
 0x57f   : > { %1788 = vperm.xlu1 %2363, %v1777_v41  }
 0x583   : > { %1796 = vperm.xlu1 %2363, %v1793_v2  }
 0x587   : > { %1816 = vperm.xlu1 %2363, %v1806_v20  }
 0x58b   : > { %1821 = vperm.xlu1 %2363, %v1807_v32  }
 0x58f   : > { %1826 = vperm.xlu1 %2363, %v1808_v57  }
 0x593   : > { %1947 = vperm.xlu1 %2363, %v1938_v21  }
 0x597   : > { %1952 = vperm.xlu1 %2363, %v1939_v51  }
 0x59b   : > { %1811 = vperm.xlu1 %2363, %v1805_v28  }
 0x59f   : > { %2057 = vperm.xlu1 %2363, %v2054_v15  }
 0x5a3   : > { %2137 = vperm.xlu1 %2363, %v2134_v8  }
 0x5ee   : > { %v1648_v53 = vpop.permute.xlu1 %1647 }
 0x5ef   : > { %v1650_v50 = vmul.f32 %v1648_v53, %v1565_v18  ;;  %v1651_v1 = vmul.f32 %v1648_v53, %v1566_v47 }
 0x5f1   : > { %1692 = vmatprep.subr.mxu0 %v1651_v1  ;;  %v1802_v1 = vld [vmem:[%s3967_s1 + $0x50] sm:$0xff] }
 0x5f2   : > { %1693 = vmatpush1.msra.mxu0 %v1650_v50  ;;  %v1657_v52 = vpop.permute.xlu1 %1656  ;;  %v1801_v50 = vld [vmem:[%s3967_s1 + $0x48] sm:$0xff] }
 0x5f3   : > { %2245 = vmatmul.mubr.msk.f32.vlgmr.msra.gmra.mxu0 %vm365_vm0, %v1652_v40  ;;  %v1803_v40 = vld [vmem:[%s3967_s1 + $0x58] sm:$0xff] }
 0x5f4   : > { %2028 = vmatprep.mubr.f32.mxu0 %v4153_v60 }
 0x5f6   : > { %v1737_v19 = vpop.permute.xlu1 %1736 }
 0x5fa   : > { %v1789_v2 = vpop.permute.xlu1 %1788 }
 0x5fe   : > { %v1797_v15 = vpop.permute.xlu1 %1796 }
 0x6b3   : > { %v1728_v62 = vpop.f32.mrf.mxu0 }
 0x6b4   : > { %v1729_v4 = vadd.f32 %v1728_v62, %v1657_v52 }
 0x6b5   : > { %v1730_v36 = vpop.f32.mrf.mxu0 }
 0x6b6   : > { %v1739_v55 = vmul.f32 %v1737_v19, %v1729_v4  ;;  %v1731_v17 = vadd.f32 %v1730_v36, %v1657_v52  ;;  %v1804_v52 = vld [vmem:[%s3967_s1 + $0x60] sm:$0xff]  ;;  %v1817_v4 = vpop.permute.xlu1 %1816 }
 0x6b8   : > { %v3877_v49 = vadd.f32 %v2372_v22, %v1739_v55  ;;  %v1740_v16 = vmul.f32 %v1737_v19, %v1731_v17 }
 0x6ba   : > { %v1743_v33 = vrot.slane %v3877_v49, 4  ;;  %v1755_v35 = vmul.f32 %v3877_v49, %v3877_v49  ;;  %v3883_v14 = vadd.f32 %v2373_v37, %v1740_v16  ;;  %v1822_v17 = vpop.permute.xlu1 %1821 }
 0x6bc   : > { %v1744_v43 = vadd.f32 %v1743_v33, %v3877_v49  ;;  %v1757_v0 = vrot.slane %v1755_v35, 4  ;;  %v1749_v5 = vrot.slane %v3883_v14, 4  ;;  %v1756_v45 = vmul.f32 %v3883_v14, %v3883_v14 }
 0x6be   : > { %v1745_v34 = vrot.slane %v1744_v43, 2  ;;  %v1758_v31 = vadd.f32 %v1757_v0, %v1755_v35  ;;  %v1763_v39 = vrot.slane %v1756_v45, 4  ;;  %v1750_v3 = vadd.f32 %v1749_v5, %v3883_v14 }
 0x6c0   : > { %v1759_v7 = vrot.slane %v1758_v31, 2  ;;  %v1764_v30 = vadd.f32 %v1763_v39, %v1756_v45  ;;  %v1751_v6 = vrot.slane %v1750_v3, 2  ;;  %v1746_v29 = vadd.f32 %v1745_v34, %v1744_v43  ;;  %v1827_v43 = vpop.permute.xlu1 %1826 }
 0x6c2   : > { %v1760_v9 = vadd.f32 %v1759_v7, %v1758_v31  ;;  %v1765_v11 = vrot.slane %v1764_v30, 2  ;;  %v1752_v46 = vadd.f32 %v1751_v6, %v1750_v3  ;;  %v1747_v10 = vrot.slane %v1746_v29, 1  ;;  %v1934_v6 = vld [vmem:[%s3967_s1 + $0x68] sm:$0xff] }
 0x6c4   : > { %v1761_v26 = vrot.slane %v1760_v9, 1  ;;  %v1753_v13 = vrot.slane %v1752_v46, 1  ;;  %v1766_v12 = vadd.f32 %v1765_v11, %v1764_v30  ;;  %v1748_v58 = vadd.f32 %v1747_v10, %v1746_v29  ;;  %v1935_v29 = vld [vmem:[%s3967_s1 + $0x70] sm:$0xff]  ;;  %v1948_v11 = vpop.permute.xlu1 %1947 }
 0x6c6   : > { %v1754_v56 = vadd.f32 %v1753_v13, %v1752_v46  ;;  %v1767_v61 = vrot.slane %v1766_v12, 1  ;;  %v1762_v63 = vadd.f32 %v1761_v26, %v1760_v9  ;;  %v1769_v18 = vmul.f32 0.25, %v1748_v58  ;;  %v1936_v9 = vld [vmem:[%s3967_s1 + $0x78] sm:$0xff] }
 0x6c8   : > { %v1768_v47 = vadd.f32 %v1767_v61, %v1766_v12  ;;  %v1770_v59 = vmul.f32 0.25, %v1754_v56  ;;  %v1771_v38 = vmul.f32 0.25, %v1762_v63  ;;  %v1773_v48 = vmul.f32 %v1769_v18, %v1769_v18  ;;  %v1953_v13 = vpop.permute.xlu1 %1952  ;;  %v1943_v56 = vpop.permute.xlu0 %1942 }
 0x6c9   : > { %v1778_v27 = vsub.f32 %v3877_v49, %v1769_v18 }
 0x6ca   : > { %v1772_v42 = vmul.f32 0.25, %v1768_v47  ;;  %v1774_v25 = vmul.f32 %v1770_v59, %v1770_v59  ;;  %v1775_v24 = vsub.f32 %v1771_v38, %v1773_v48  ;;  %v1779_v20 = vsub.f32 %v3883_v14, %v1770_v59 }
 0x6cc   : > { %v1776_v44 = vsub.f32 %v1772_v42, %v1774_v25  ;;  %v1780_v23 = vadd.f32 1e-06, %v1775_v24  ;;  %v1812_v24 = vpop.permute.xlu1 %1811 }
 0x6ce   : > { %v1781_v54 = vadd.f32 1e-06, %v1776_v44  ;;  %2368 = vrsqrt.f32 %v1780_v23 }
 0x6d0   : > { %2370 = vrsqrt.f32 %v1781_v54 }
 0x6db   : > { %v2369_v41 = vpop.eup %2368 }
 0x6dc   : > { %v1784_v32 = vmul.f32 %v2369_v41, %v1778_v27 }
 0x6dd   : > { %v2371_v57 = vpop.eup %2370 }
 0x6de   : > { %v1785_v21 = vmul.f32 %v2371_v57, %v1779_v20  ;;  %v1791_v51 = vmul.f32 %v1789_v2, %v1784_v32  ;;  %v2058_v20 = vpop.permute.xlu1 %2057 }
 0x6e0   : > { %v1792_v28 = vmul.f32 %v1789_v2, %v1785_v21  ;;  %v1799_v53 = vadd.f32 %v1797_v15, %v1791_v51  ;;  %v2053_v2 = vld [vmem:[%s3967_s1 + $0x80] sm:$0xff] }
 0x6e2   : > { %v1800_v8 = vadd.f32 %v1797_v15, %v1792_v28  ;;  %v2138_v21 = vpop.permute.xlu1 %2137 }
 0x6e4   : > { %1871 = vmatprep.subr.mxu1 %v1800_v8 }
 0x6e5   : > { %1872 = vmatpush1.msra.mxu1 %v1799_v53 }
 0x6e6   : > { %2246 = vmatmul.mubr.msk.f32.vlgmr.msra.gmra.mxu1 %vm365_vm0, %v1801_v50 }
 0x6e7   : > { %1911 = vmatprep.mubr.f32.mxu1 %v4153_v60 }
 0x6ea   : > { %2247 = vmatmul.mubr.msk.f32.gmra.mxu1 %vm365_vm0, %v1802_v1 }
 0x6eb   : > { %1917 = vmatprep.mubr.f32.mxu1 %v4153_v60 }
 0x6ee   : > { %2248 = vmatmul.mubr.msk.f32.gmra.mxu1 %vm365_vm0, %v1803_v40 }
 0x6ef   : > { %1923 = vmatprep.mubr.f32.mxu1 %v4153_v60 }
 0x6f2   : > { %2249 = vmatmul.mubr.msk.f32.gmra.mxu1 %vm365_vm0, %v1804_v52 }
 0x7a6   : > { %v1907_v62 = vpop.f32.mrf.mxu1 }
 0x7a7   : > { %v1908_v54 = vadd.f32 %v1907_v62, %v1812_v24 }
 0x7a8   : > { %v1909_v19 = vpop.f32.mrf.mxu1 }
 0x7a9   : > { %v1910_v44 = vadd.f32 %v1909_v19, %v1812_v24 }
 0x7aa   : > { %v1913_v36 = vpop.f32.mrf.mxu1 }
 0x7ab   : > { %v1914_v5 = vadd.f32 %v1913_v36, %v1817_v4 }
 0x7ac   : > { %v1915_v55 = vpop.f32.mrf.mxu1 }
 0x7ad   : > { %v1916_v0 = vadd.f32 %v1915_v55, %v1817_v4 }
 0x7ae   : > { %v1919_v22 = vpop.f32.mrf.mxu1 }
 0x7af   : > { %v1920_v35 = vadd.f32 %v1919_v22, %v1822_v17 }
 0x7b0   : > { %v1921_v16 = vpop.f32.mrf.mxu1 }
 0x7b1   : > { %v1922_v33 = vadd.f32 %v1921_v16, %v1822_v17  ;;  %v1930_v3 = vmul.f32 %v1920_v35, %v1914_v5 }
 0x7b2   : > { %v1925_v37 = vpop.f32.mrf.mxu1 }
 0x7b3   : > { %v1926_v45 = vadd.f32 %v1925_v37, %v1827_v43  ;;  %v1931_v31 = vmul.f32 %v1922_v33, %v1916_v0 }
 0x7b4   : > { %v1927_v34 = vpop.f32.mrf.mxu1 }
 0x7b5   : > { %v1928_v39 = vadd.f32 %v1927_v34, %v1827_v43  ;;  %v1932_v30 = vadd.f32 %v1930_v3, %v1926_v45 }
 0x7b7   : > { %v1933_v7 = vadd.f32 %v1931_v31, %v1928_v39 }
 0x7b9   : > { %1994 = vmatprep.subr.mxu0 %v1933_v7 }
 0x7ba   : > { %1995 = vmatpush1.msra.mxu0 %v1932_v30 }
 0x7bb   : > { %2250 = vmatmul.mubr.msk.f32.vlgmr.msra.gmra.mxu0 %vm365_vm0, %v1934_v6 }
 0x7bc   : > { %2034 = vmatprep.mubr.f32.mxu0 %v4153_v60 }
 0x7bf   : > { %2251 = vmatmul.mubr.msk.f32.gmra.mxu0 %vm365_vm0, %v1935_v29 }
 0x7c0   : > { %2040 = vmatprep.mubr.f32.mxu0 %v4153_v60 }
 0x7c3   : > { %2252 = vmatmul.mubr.msk.f32.gmra.mxu0 %vm365_vm0, %v1936_v9 }
 0x7c4   : > { %2127 = vmatprep.mubr.f32.mxu0 %v4153_v60 }
 0x87b   : > { %v2030_v46 = vpop.f32.mrf.mxu0 }
 0x87c   : > { %v2031_v63 = vadd.f32 %v2030_v46, %v1943_v56 }
 0x87d   : > { %v2032_v10 = vpop.f32.mrf.mxu0 }
 0x87e   : > { %v2033_v47 = vadd.f32 %v2032_v10, %v1943_v56 }
 0x87f   : > { %v2036_v26 = vpop.f32.mrf.mxu0 }
 0x880   : > { %v2037_v12 = vadd.f32 %v2036_v26, %v1948_v11 }
 0x881   : > { %v2038_v58 = vpop.f32.mrf.mxu0 }
 0x882   : > { %v2039_v61 = vadd.f32 %v2038_v58, %v1948_v11  ;;  %v2047_v38 = vmul.f32 %v2037_v12, %v2031_v63 }
 0x883   : > { %v2042_v18 = vpop.f32.mrf.mxu0 }
 0x884   : > { %v2043_v59 = vadd.f32 %v2042_v18, %v1953_v13  ;;  %v2048_v42 = vmul.f32 %v2039_v61, %v2033_v47 }
 0x885   : > { %v2044_v48 = vpop.f32.mrf.mxu0 }
 0x886   : > { %v2045_v25 = vadd.f32 %v2044_v48, %v1953_v13  ;;  %v2049_v60 = vadd.f32 %v2047_v38, %v2043_v59 }
 0x888   : > { %v2050_v23 = vadd.f32 %v2048_v42, %v2045_v25  ;;  %v2051_v41 = vmul.f32 %v2049_v60, %v1908_v54 }
 0x88a   : > { %v2052_v27 = vmul.f32 %v2050_v23, %v1910_v44 }
 0x88c   : > { %2093 = vmatprep.subr.mxu0 %v2052_v27 }
 0x88d   : > { %2094 = vmatpush1.msra.mxu0 %v2051_v41 }
 0x88e   : > { %2253 = vmatmul.mubr.msk.f32.vlgmr.msra.gmra.mxu0 %vm365_vm0, %v2053_v2 }
 0x94e   : > { %v2129_v32 = vpop.f32.mrf.mxu0 }
 0x94f   : > { %v2130_v57 = vadd.f32 %v2129_v32, %v2058_v20 }
 0x950   : > { %v2131_v51 = vpop.f32.mrf.mxu0 }
 0x951   : > { %v2140_v28 = vmul.f32 %v2138_v21, %v2130_v57  ;;  %v2132_v15 = vadd.f32 %v2131_v51, %v2058_v20 }
 0x953   : > { %v2141_v8 = vmul.f32 %v2138_v21, %v2132_v15  ;;  %v2142_v53 = vadd.f32 %v2140_v28, %v3877_v49 }
 0x955   : > { %v2143_v50 = vadd.f32 %v2141_v8, %v3883_v14 }
 0x957   : > { %v2146_v1 = vcombine.low %v2142_v53, %v2143_v50 }
 0x959   : > { %2148 = vst [vmem:[%s271_s29] sm:$0xff] %v2146_v1 }
 0x95a   : > { %2387 = shalt.err (!%p2384_p3)
}
 0x95b   : > { %s2388_s17 = scalar_lea.hbm %s2162_s21, 128  ;;  %s2392_s8 = scalar_lea.hbm %s3973_s7, 256 }
 0x95c   : > { %p2389_p4 = scmp.ne.s32.totalorder %s2162_s21, %s2388_s17  ;;  %p2393_p9 = scmp.lt.s32.totalorder %s2162_s21, %s3973_s7 }
 0x95d   : > { %p2394_p10 = scmp.lt.s32.totalorder %s2392_s8, %s2388_s17 }
 0x95e   : > { %p2390_p7 = pnand %p2389_p4, %p2534_p5 }
 0x95f   : > { %p2395_p11 = por %p2394_p10, %p2393_p9 }
 0x960   : > { %p2391_p8 = pneg %p2390_p7 }
 0x962   : > { %p2396_p12 = pnand %p2395_p11, %p2391_p8 }
 0x964   : > { %2399 = shalt.err (!%p2396_p12)
}
 0x965   : > { %2268 = dma.vmem_to_hbm [thread:$0]  (%p2534_p5), %s2165_s16, 128, %s2162_s21, %s2150_s22  }
 0x966 PF: > { %p2274_p13 = scmp.ge.s32.totalorder %s2434_s27, 2  ;;  %s2176_s18 = sand.u32 1, %s2422_s24  }
 0x967   : > { %s2177_s20 = scalar_lea.sflag [#allocation3], %s2176_s18 }
 0x968   : > { %p2271_p0 = pnand %p2274_p13, %p2538_p6 }
 0x96a   : > { %p2272_p1 = pneg %p2271_p0 }
 0x96c   : > { %2417 = dma.done.wait (%p2272_p1), %s2177_s20, 128  }
 0x96d   : > { %2419 = vsyncadd (%p2272_p1), %s2177_s20, 4294967168  ;;  %p17_p2 = scmp.ge.s32.totalorder %s2521_s30, 4   ;;  %s4154_s24 = smov %s2426_s25 }
 0x96e   : > { %s4155_s25 = smov %s2430_s26  ;;  %s4156_s26 = smov %s2532_s10 }
 0x96f   : > { %s4157_s27 = smov %s2521_s30  ;;  %19 = sbr.rel (!%p17_p2) target bundleno = 3 (0x3), region = 90 }
 0x974   :  { %2182 = vsyncpa [#allocation3], 1 }
 0x975   :  { %2184 = vsyncpa [#allocation3 + $0x1], 1 }

// kernel: tpu_custom_call.1
= control target key start
LH: loop header
LB: loop body
LE: loop exit
PB: predicated region body
PF: predicated region fallthrough
CT: control target
= control target key end

     0   :  { %12 = vsyncpa [#allocation3], 0  ;;  %s3966_s0 = inlined_call_operand.vmem [shape: f32[2,8,256], index: 0, kind: input, shape index: {}]   ;;  %s3967_s1 = inlined_call_operand.vmem [shape: f32[136,8], index: 1, kind: input, shape index: {}]   ;;  %s3968_s2 = inlined_call_operand.vmem [shape: f32[136,1], index: 2, kind: input, shape index: {}]   ;;  %s3969_s3 = inlined_call_operand.vmem [shape: f32[48,9], index: 3, kind: input, shape index: {}]   ;;  %s3970_s4 = inlined_call_operand.vmem [shape: f32[48,1], index: 4, kind: input, shape index: {}]   ;;  %s3971_s5 = inlined_call_operand.vmem [shape: f32[48,1], index: 5, kind: input, shape index: {}]   ;;  %s3972_s6 = inlined_call_operand.vmem [shape: f32[9,1,256], index: 6, kind: input, shape index: {}]   ;;  %s3973_s7 = inlined_call_operand.hbm [shape: f32[2,4,256], index: 7, kind: output, shape index: {}]  }
   0x1   :  { %14 = vsyncpa [#allocation3 + $0x1], 0  ;;  %s2496_s24 = smov 0   ;;  %s2498_s25 = smov 0  }
   0x2   :  { %s2500_s26 = smov 0   ;;  %s2502_s27 = smov 0  }
   0x3 LB: > { %s2517_s28 = sadd.s32 4294967295, %s2434_s27   ;;  %s2223_s29 = sadd.s32 4294967294, %s2434_s27   ;;  %s2434_s27 = sphi %s2502_s27, %s4157_s27   ;;  %s2430_s26 = sphi %s2500_s26, %s4156_s26   ;;  %s2426_s25 = sphi %s2498_s25, %s4155_s25   ;;  %s2422_s24 = sphi %s2496_s24, %s4154_s24  }
   0x4   : > { %s2521_s30 = sadd.s32 1, %s2434_s27   ;;  %s179_s8 = sadd.s32 1, %s2430_s26 }
   0x5   : > { %s176_s9 = ssub.s32 %s2434_s27, %s2521_s30  ;;  %p189_p0 = scmp.ne.s32.totalorder %s2430_s26, %s2426_s25 }
   0x6   : > { %p177_p1 = scmp.eq.s32.totalorder %s176_s9, 0  ;;  %p190_p2 = scmp.eq.s32.totalorder %s2517_s28, 1 }
   0x7   : > { %p195_p3 = scmp.ne.s32.totalorder %s2426_s25, %s2422_s24  ;;  %p196_p4 = scmp.eq.s32.totalorder %s2223_s29, 1 }
   0x8   : > { %s2532_s10 = scalar_select %p177_p1, %s2430_s26, %s179_s8  }
   0x9   : > { %p2534_p5 = por %p190_p2, %p189_p0  ;;  %p2538_p6 = por %p196_p4, %p195_p3 }
   0xa   : > { %p2226_p7 = scmp.ge.s32.totalorder %s2434_s27, 1  ;;  %p240_p8 = scmp.lt.s32.totalorder %s2434_s27, 3 }
   0xc   : > { %p241_p9 = pnand %p2226_p7, %p240_p8 }
   0xe   : > { %244 = sbr.rel (%p241_p9) target bundleno = 2406 (0x966), region = 48 }
  0x13   : > { %v313_v0 = vld [vmem:[%s3971_s5] sm:$0xff]  ;;  %v3981_v1 = vmov 0   ;;  %v329_v2 = vld [vmem:[%s3971_s5 + $0x8] sm:$0xff]  ;;  %v3978_v3 = vmov 0.0   ;;  %v2438_v6 = vmov 1   ;;  %v343_v7 = vld [vmem:[%s3968_s2 + $0x10] sm:$0xff] }
  0x14   : > { %2326 = vset.pattern.permute.xlu0 %v3981_v1  ;;  %2327 = vset.pattern.permute.xlu1 %v3981_v1  ;;  %v2557_v4 = vld [vmem:[%s3969_s3 + $0x8] sm:$0xff]  ;;  %v2570_v8 = vld [vmem:[%s3969_s3] sm:$0xff]  ;;  %v2439_v9 = vmov 2   ;;  %v2440_v10 = vmov 4   ;;  %v2441_v11 = vmov 3   ;;  %v868_v12 = vld [vmem:[%s3969_s3 + $0x10] sm:$0xff] }
  0x15   : > { %324 = vperm.xlu0 %2326, %v313_v0   ;;  %442 = vmatprep.mubr.f32.mxu0 %v3978_v3  ;;  %v342_v5 = vld [vmem:[%s3968_s2 + $0x8] sm:$0xff]  ;;  %v3987_v13 = vmov 5   ;;  %p272_p10 = scmp.lt.s32.totalorder %s2517_s28, 1  ;;  %v3985_v14 = vmov 6   ;;  %v3983_v15 = vmov 7   ;;  %v3980_v22 = vmov 8  }
  0x16   : > { %1110 = vmatprep.mubr.f32.mxu1 %v3978_v3  ;;  %352 = vperm.xlu1 %2327, %v342_v5   ;;  %v716_v33 = vld [vmem:[%s3970_s4] sm:$0xff]  ;;  %v344_v36 = vld [vmem:[%s3968_s2 + $0x18] sm:$0xff]  ;;  %vm365_vm0 = vcmask 64512   ;;  %s2446_s16 = smov 16   ;;  %s2447_s18 = smov 17   ;;  %vm2454_vm9 = vmmov 0  }
  0x17   : > { %s273_s13 = scalar_select %p272_p10, %s2517_s28, 1 }
  0x18   : > { %s3974_s19 = smov 15   ;;  %s2449_s20 = smov 1  }
  0x19   : > { %332 = vperm.xlu0 %2326, %v329_v2   ;;  %s2259_s14 = sshll.u32 %s273_s13, 4  ;;  %s2450_s21 = smov 127  }
  0x1a   : > { %357 = vperm.xlu1 %2327, %v343_v7   ;;  %s2602_s17 = scalar_lea.vmem %s3966_s0, %s2259_s14  ;;  %s2451_s22 = smov 113  }
  0x1b   : > { %v2607_v16 = vld [vmem:[%s2602_s17 + $0x8] sm:$0xff]  ;;  %v2610_v17 = vld [vmem:[%s2602_s17] sm:$0xff]  ;;  %s2452_s23 = smov 112   ;;  %s3976_s29 = smov 111  }
  0x1c   : > { %v285_v18 = vrot.slane %v2607_v16, 4  ;;  %v292_v19 = vmul.f32 %v2607_v16, %v2607_v16  ;;  %v279_v20 = vrot.slane %v2610_v17, 4  ;;  %v291_v21 = vmul.f32 %v2610_v17, %v2610_v17  ;;  %s4144_s14 = smov 111   ;;  %s269_s15 = sand.u32 1, %s2426_s25  }
  0x1d   : > { %2330 = vset.pattern.permute.xlu0 %v2438_v6  ;;  %s2227_s8 = sshll.u32 %s269_s15, 3  ;;  %s2260_s9 = sshll.u32 %s2517_s28, 7 }
  0x1e   : > { %757 = vperm.xlu0 %2330, %v2557_v4   ;;  %2328 = vset.pattern.permute.xlu1 %v2440_v10  ;;  %v286_v23 = vadd.f32 %v285_v18, %v2607_v16  ;;  %v299_v24 = vrot.slane %v292_v19, 4  ;;  %v280_v25 = vadd.f32 %v279_v20, %v2610_v17  ;;  %v293_v26 = vrot.slane %v291_v21, 4  ;;  %s2455_s28 = smov [#allocation2]  }
  0x1f   : > { %470 = vperm.xlu1 %2328, %v2570_v8  }
  0x20   : > { %v287_v27 = vrot.slane %v286_v23, 2  ;;  %v300_v28 = vadd.f32 %v299_v24, %v292_v19  ;;  %v281_v29 = vrot.slane %v280_v25, 2  ;;  %v294_v30 = vadd.f32 %v293_v26, %v291_v21 }
  0x22   : > { %2333 = vset.pattern.permute.xlu0 %v2439_v9  ;;  %v288_v31 = vadd.f32 %v287_v27, %v286_v23  ;;  %v301_v32 = vrot.slane %v300_v28, 2  ;;  %v282_v34 = vadd.f32 %v281_v29, %v280_v25  ;;  %v295_v35 = vrot.slane %v294_v30, 2 }
  0x23   : > { %559 = vperm.xlu0 %2333, %v2570_v8   ;;  %727 = vperm.xlu1 %2328, %v2557_v4  }
  0x24   : > { %v289_v37 = vrot.slane %v288_v31, 1  ;;  %v302_v38 = vadd.f32 %v301_v32, %v300_v28  ;;  %v283_v39 = vrot.slane %v282_v34, 1  ;;  %v296_v40 = vadd.f32 %v295_v35, %v294_v30 }
  0x26   : > { %v290_v41 = vadd.f32 %v289_v37, %v288_v31  ;;  %v303_v42 = vrot.slane %v302_v38, 1  ;;  %v284_v43 = vadd.f32 %v283_v39, %v282_v34  ;;  %v297_v44 = vrot.slane %v296_v40, 1 }
  0x27   : > { %773 = vperm.xlu0 %2333, %v2557_v4   ;;  %2329 = vset.pattern.permute.xlu1 %v2438_v6 }
  0x28   : > { %529 = vperm.xlu1 %2329, %v2570_v8   ;;  %v304_v45 = vadd.f32 %v303_v42, %v302_v38  ;;  %v306_v46 = vmul.f32 0.25, %v290_v41  ;;  %v298_v47 = vadd.f32 %v297_v44, %v296_v40  ;;  %v305_v48 = vmul.f32 0.25, %v284_v43 }
  0x2a   : > { %v308_v49 = vmul.f32 0.25, %v304_v45  ;;  %v310_v50 = vmul.f32 %v306_v46, %v306_v46  ;;  %v307_v51 = vmul.f32 0.25, %v298_v47  ;;  %v309_v52 = vmul.f32 %v305_v48, %v305_v48 }
  0x2b   : > { %2335 = vset.pattern.permute.xlu0 %v2441_v11  ;;  %v315_v58 = vsub.f32 %v2607_v16, %v306_v46  ;;  %v314_v59 = vsub.f32 %v2610_v17, %v305_v48  ;;  %v339_v16 = vld [vmem:[%s3967_s1 + $0x10] sm:$0xff]  ;;  %v340_v17 = vld [vmem:[%s3967_s1 + $0x18] sm:$0xff] }
  0x2c   : > { %589 = vperm.xlu0 %2335, %v2570_v8   ;;  %2331 = vset.pattern.permute.xlu1 %v2440_v10  ;;  %v312_v53 = vsub.f32 %v308_v49, %v310_v50  ;;  %v311_v54 = vsub.f32 %v307_v51, %v309_v52 }
  0x2d   : > { %871 = vperm.xlu1 %2331, %v868_v12  }
  0x2e   : > { %v317_v55 = vadd.f32 1e-06, %v312_v53  ;;  %v316_v56 = vadd.f32 1e-06, %v311_v54  ;;  %v860_v54 = vld [vmem:[%s3970_s4 + $0x8] sm:$0xff] }
  0x30   : > { %789 = vperm.xlu0 %2335, %v2557_v4   ;;  %2364 = vrsqrt.f32 %v317_v55 }
  0x31   : > { %2332 = vset.pattern.permute.xlu1 %v3981_v1  ;;  %2366 = vrsqrt.f32 %v316_v56  ;;  %v1004_v56 = vld [vmem:[%s3970_s4 + $0x10] sm:$0xff] }
  0x32   : > { %885 = vperm.xlu1 %2332, %v868_v12  }
  0x34   : > { %2337 = vset.pattern.permute.xlu0 %v3987_v13 }
  0x35   : > { %619 = vperm.xlu0 %2337, %v2570_v8  }
  0x36   : > { %2334 = vset.pattern.permute.xlu1 %v2438_v6 }
  0x37   : > { %901 = vperm.xlu1 %2334, %v868_v12  }
  0x39   : > { %805 = vperm.xlu0 %2337, %v2557_v4  }
  0x3b   : > { %2336 = vset.pattern.permute.xlu1 %v2439_v9 }
  0x3c   : > { %917 = vperm.xlu1 %2336, %v868_v12  }
  0x3d   : > { %2339 = vset.pattern.permute.xlu0 %v3985_v14  ;;  %v2365_v57 = vpop.eup %2364 }
  0x3e   : > { %649 = vperm.xlu0 %2339, %v2570_v8   ;;  %v2367_v60 = vpop.eup %2366  ;;  %v321_v61 = vmul.f32 %v2365_v57, %v315_v58  ;;  %v1020_v58 = vld [vmem:[%s3968_s2 + $0x28] sm:$0xff] }
  0x3f   : > { %v320_v62 = vmul.f32 %v2367_v60, %v314_v59  ;;  %v2805_v60 = vld [vmem:[%s3969_s3 + $0x18] sm:$0xff] }
  0x40   : > { %2338 = vset.pattern.permute.xlu1 %v2441_v11 }
  0x41   : > { %933 = vperm.xlu1 %2338, %v868_v12  }
  0x42   : > { %821 = vperm.xlu0 %2339, %v2557_v4  }
  0x45   : > { %2340 = vset.pattern.permute.xlu1 %v3987_v13 }
  0x46   : > { %2341 = vset.pattern.permute.xlu0 %v3983_v15  ;;  %949 = vperm.xlu1 %2340, %v868_v12  }
  0x47   : > { %679 = vperm.xlu0 %2341, %v2570_v8  }
  0x4a   : > { %2342 = vset.pattern.permute.xlu1 %v3985_v14 }
  0x4b   : > { %837 = vperm.xlu0 %2341, %v2557_v4   ;;  %965 = vperm.xlu1 %2342, %v868_v12  }
  0x4f   : > { %2343 = vset.pattern.permute.xlu0 %v3980_v22  ;;  %2344 = vset.pattern.permute.xlu1 %v3983_v15 }
  0x50   : > { %709 = vperm.xlu0 %2343, %v2570_v8   ;;  %981 = vperm.xlu1 %2344, %v868_v12  }
  0x54   : > { %853 = vperm.xlu0 %2343, %v2557_v4   ;;  %2346 = vset.pattern.permute.xlu1 %v3981_v1 }
  0x55   : > { %719 = vperm.xlu1 %2346, %v716_v33  }
  0x58   : > { %997 = vperm.xlu0 %2343, %v868_v12   ;;  %v338_v12 = vld [vmem:[%s3967_s1 + $0x8] sm:$0xff] }
  0x5c   : > { %2345 = vset.pattern.permute.xlu0 %v3981_v1  ;;  %v479_v1 = vlaneseq }
  0x5d   : > { %362 = vperm.xlu0 %2345, %v344_v36  }
  0x5e   : > { %v2921_v14 = vshrl.u32 %v479_v1, 7 }
  0x61   : > { %499 = vperm.xlu0 %2345, %v2570_v8   ;;  %v337_v8 = vld [vmem:[%s3967_s1] sm:$0xff] }
  0x65   : > { %741 = vperm.xlu0 %2345, %v2557_v4  }
  0x90   : > { %v325_v63 = vpop.permute.xlu0 %324 }
  0x91   : > { %v328_v0 = vmul.f32 %v325_v63, %v321_v61  ;;  %v327_v2 = vmul.f32 %v325_v63, %v320_v62  ;;  %v353_v29 = vpop.permute.xlu1 %352 }
  0x94   : > { %v333_v4 = vpop.permute.xlu0 %332 }
  0x95   : > { %v336_v5 = vadd.f32 %v333_v4, %v328_v0  ;;  %v335_v7 = vadd.f32 %v333_v4, %v327_v2  ;;  %v358_v41 = vpop.permute.xlu1 %357 }
  0x97   : > { %408 = vmatprep.subr.mxu0 %v336_v5 }
  0x98   : > { %409 = vmatpush1.msra.mxu0 %v335_v7 }
  0x99   : > { %2230 = vmatmul.mubr.msk.f32.vlgmr.msra.gmra.mxu0 %vm365_vm0, %v337_v8  ;;  %v2659_v18 = vpop.permute.xlu0 %757 }
  0x9a   : > { %448 = vmatprep.mubr.f32.mxu0 %v3978_v3  ;;  %v2745_v49 = vpop.permute.xlu1 %470 }
  0x9d   : > { %2231 = vmatmul.mubr.msk.f32.gmra.mxu0 %vm365_vm0, %v338_v12 }
  0x9e   : > { %454 = vmatprep.mubr.f32.mxu0 %v3978_v3  ;;  %v2661_v19 = vpop.permute.xlu0 %559  ;;  %v2755_v50 = vpop.permute.xlu1 %727 }
  0xa1   : > { %2232 = vmatmul.mubr.msk.f32.gmra.mxu0 %vm365_vm0, %v339_v16 }
  0xa2   : > { %460 = vmatprep.mubr.f32.mxu0 %v3978_v3  ;;  %v2663_v20 = vpop.permute.xlu0 %773 }
  0xa3   : > { %v2763_v52 = vpop.permute.xlu1 %529 }
  0xa5   : > { %2233 = vmatmul.mubr.msk.f32.gmra.mxu0 %vm365_vm0, %v340_v17  ;;  %v1019_v17 = vld [vmem:[%s3968_s2 + $0x20] sm:$0xff] }
  0xa6   : > { %1726 = vmatprep.mubr.f32.mxu0 %v3978_v3 }
  0xa7   : > { %v2665_v21 = vpop.permute.xlu0 %589 }
  0xa8   : > { %v2773_v53 = vpop.permute.xlu1 %871 }
  0xa9   : > { %4056 = vst [vmem:[#allocation16_spill] sm:$0xff] %v2773_v53 }
  0xab   : > { %v2667_v23 = vpop.permute.xlu0 %789 }
  0xad   : > { %v2782_v55 = vpop.permute.xlu1 %885 }
  0xae   : > { %4057 = vst [vmem:[#allocation17_spill] sm:$0xff] %v2782_v55 }
  0xb0   : > { %v2669_v24 = vpop.permute.xlu0 %619 }
  0xb2   : > { %v2791_v57 = vpop.permute.xlu1 %901 }
  0xb3   : > { %4058 = vst [vmem:[#allocation18_spill] sm:$0xff] %v2791_v57 }
  0xb4   : > { %v2671_v25 = vpop.permute.xlu0 %805 }
  0xb7   : > { %v2798_v59 = vpop.permute.xlu1 %917 }
  0xb8   : > { %4059 = vst [vmem:[#allocation19_spill] sm:$0xff] %v2798_v59 }
  0xb9   : > { %v2673_v26 = vpop.permute.xlu0 %649 }
  0xbc   : > { %v2811_v61 = vpop.permute.xlu1 %933 }
  0xbd   : > { %v2679_v31 = vpop.permute.xlu0 %821  ;;  %4060 = vst [vmem:[#allocation20_spill] sm:$0xff] %v2811_v61  ;;  %v2959_v61 = vld [vmem:[%s3972_s6 + $0x2] sm:$0x3] }
  0xbe   : > { %4047 = vst [vmem:[#allocation7_spill] sm:$0xff] %v2679_v31 }
  0xc1   : > { %v2817_v62 = vpop.permute.xlu1 %949 }
  0xc2   : > { %v2689_v35 = vpop.permute.xlu0 %679  ;;  %4061 = vst [vmem:[#allocation21_spill] sm:$0xff] %v2817_v62 }
  0xc3   : > { %4048 = vst [vmem:[#allocation8_spill] sm:$0xff] %v2689_v35 }
  0xc6   : > { %v2699_v36 = vpop.permute.xlu0 %837  ;;  %v2823_v63 = vpop.permute.xlu1 %965 }
  0xc7   : > { %4049 = vst [vmem:[#allocation9_spill] sm:$0xff] %v2699_v36  ;;  %4063 = vst [vmem:[#allocation22_spill] sm:$0xff] %v2823_v63 }
  0xcb   : > { %v2705_v37 = vpop.permute.xlu0 %709  ;;  %v2827_v0 = vpop.permute.xlu1 %981 }
  0xcc   : > { %4050 = vst [vmem:[#allocation10_spill] sm:$0xff] %v2705_v37  ;;  %4064 = vst [vmem:[#allocation23_spill] sm:$0xff] %v2827_v0  ;;  %v2937_v0 = vsub.s32 0, %v2921_v14 }
  0xce   : > { %v2968_v57 = vrot.slane %v2959_v61, %v2937_v0 }
  0xcf   : > { %v2715_v38 = vpop.permute.xlu0 %853 }
  0xd0   : > { %4051 = vst [vmem:[#allocation11_spill] sm:$0xff] %v2715_v38  ;;  %v2835_v4 = vpop.permute.xlu1 %719  ;;  %4080 = vst [vmem:[#allocation37_spill] sm:$0xff] %v2968_v57  ;;  %v1265_v38 = vld [vmem:[%s3970_s4 + $0x18] sm:$0xff] }
  0xd1   : > { %4065 = vst [vmem:[#allocation24_spill] sm:$0xff] %v2835_v4 }
  0xd3   : > { %v2721_v40 = vpop.permute.xlu0 %997 }
  0xd4   : > { %4052 = vst [vmem:[#allocation12_spill] sm:$0xff] %v2721_v40  ;;  %v4076_v40 = vmov 6  }
  0xd8   : > { %v363_v44 = vpop.permute.xlu0 %362 }
  0xdc   : > { %v2829_v2 = vpop.permute.xlu0 %499 }
  0xe0   : > { %v2837_v5 = vpop.permute.xlu0 %741 }
  0xe1   : > { %4066 = vst [vmem:[#allocation25_spill] sm:$0xff] %v2837_v5 }
 0x159   : > { %v2675_v27 = vpop.f32.mrf.mxu0 }
 0x15a   : > { %4045 = vst [vmem:[#allocation5_spill] sm:$0xff] %v2675_v27  ;;  %v2932_v27 = vld [vmem:[%s3972_s6] sm:$0x3] }
 0x15b   : > { %v2677_v28 = vpop.f32.mrf.mxu0  ;;  %v2946_v63 = vrot.slane %v2932_v27, %v2937_v0 }
 0x15c   : > { %4046 = vst [vmem:[#allocation6_spill] sm:$0xff] %v2677_v28 }
 0x15d   : > { %v450_v30 = vpop.f32.mrf.mxu0  ;;  %4078 = vst [vmem:[#allocation35_spill] sm:$0xff] %v2946_v63 }
 0x15e   : > { %v2681_v32 = vadd.f32 %v450_v30, %v353_v29 }
 0x15f   : > { %v452_v33 = vpop.f32.mrf.mxu0 }
 0x160   : > { %506 = vrot.lane.b32.xlu0 %v2681_v32, %s2446_s16  ;;  %475 = vrot.lane.b32.xlu1 %v2681_v32, %s2447_s18  ;;  %v2687_v34 = vadd.f32 %v452_v33, %v353_v29  ;;  %v1021_v33 = vld [vmem:[%s3968_s2 + $0x30] sm:$0xff] }
 0x161   : > { %v456_v39 = vpop.f32.mrf.mxu0 }
 0x162   : > { %v2727_v42 = vadd.f32 %v456_v39, %v358_v41 }
 0x163   : > { %v458_v43 = vpop.f32.mrf.mxu0 }
 0x164   : > { %536 = vrot.lane.b32.xlu0 %v2681_v32, %s3974_s19  ;;  %508 = vrot.lane.b32.xlu1 %v2687_v34, %s2446_s16  ;;  %v2761_v51 = vadd.f32 %v458_v43, %v358_v41  ;;  %v2870_v43 = vld [vmem:[%s3969_s3 + $0x20] sm:$0xff] }
 0x165   : > { %v462_v45 = vpop.f32.mrf.mxu0 }
 0x166   : > { %v2737_v46 = vadd.f32 %v462_v45, %v363_v44  ;;  %4055 = vst [vmem:[#allocation15_spill] sm:$0xff] %v2761_v51 }
 0x167   : > { %v464_v47 = vpop.f32.mrf.mxu0 }
 0x168   : > { %566 = vrot.lane.b32.xlu0 %v2681_v32, %s2449_s20  ;;  %538 = vrot.lane.b32.xlu1 %v2687_v34, %s3974_s19  ;;  %4053 = vst [vmem:[#allocation13_spill] sm:$0xff] %v2737_v46  ;;  %v2743_v48 = vadd.f32 %v464_v47, %v363_v44 }
 0x16a   : > { %4054 = vst [vmem:[#allocation14_spill] sm:$0xff] %v2743_v48 }
 0x16c   : > { %596 = vrot.lane.b32.xlu0 %v2681_v32, %s2450_s21  ;;  %568 = vrot.lane.b32.xlu1 %v2687_v34, %s2449_s20 }
 0x170   : > { %626 = vrot.lane.b32.xlu0 %v2681_v32, %s2451_s22  ;;  %598 = vrot.lane.b32.xlu1 %v2687_v34, %s2450_s21 }
 0x174   : > { %656 = vrot.lane.b32.xlu0 %v2681_v32, %s2452_s23  ;;  %628 = vrot.lane.b32.xlu1 %v2687_v34, %s2451_s22 }
 0x178   : > { %686 = vrot.lane.b32.xlu0 %v2681_v32, %s3976_s29  ;;  %658 = vrot.lane.b32.xlu1 %v2687_v34, %s2452_s23 }
 0x17c   : > { %477 = vrot.lane.b32.xlu0 %v2687_v34, %s2447_s18  ;;  %688 = vrot.lane.b32.xlu1 %v2687_v34, %s3976_s29 }
 0x180   : > { %732 = vrot.lane.b32.xlu0 %v2727_v42, %s2447_s18  ;;  %748 = vrot.lane.b32.xlu1 %v2727_v42, %s2446_s16 }
 0x184   : > { %844 = vrot.lane.b32.xlu0 %v2727_v42, %s3976_s29  ;;  %764 = vrot.lane.b32.xlu1 %v2727_v42, %s3974_s19 }
 0x188   : > { %972 = vrot.lane.b32.xlu0 %v2737_v46, %s2452_s23  ;;  %780 = vrot.lane.b32.xlu1 %v2727_v42, %s2449_s20 }
 0x18c   : > { %878 = vrot.lane.b32.xlu0 %v2743_v48, %s2447_s18  ;;  %796 = vrot.lane.b32.xlu1 %v2727_v42, %s2450_s21 }
 0x190   : > { %894 = vrot.lane.b32.xlu0 %v2743_v48, %s2446_s16  ;;  %812 = vrot.lane.b32.xlu1 %v2727_v42, %s2451_s22 }
 0x194   : > { %910 = vrot.lane.b32.xlu0 %v2743_v48, %s3974_s19  ;;  %828 = vrot.lane.b32.xlu1 %v2727_v42, %s2452_s23 }
 0x198   : > { %926 = vrot.lane.b32.xlu0 %v2743_v48, %s2449_s20  ;;  %734 = vrot.lane.b32.xlu1 %v2761_v51, %s2447_s18 }
 0x19c   : > { %942 = vrot.lane.b32.xlu0 %v2743_v48, %s2450_s21  ;;  %750 = vrot.lane.b32.xlu1 %v2761_v51, %s2446_s16 }
 0x1a0   : > { %958 = vrot.lane.b32.xlu0 %v2743_v48, %s2451_s22  ;;  %766 = vrot.lane.b32.xlu1 %v2761_v51, %s3974_s19  ;;  %s4062_s19 = smov 15  }
 0x1a4   : > { %863 = vperm.xlu0 %2345, %v860_v54   ;;  %782 = vrot.lane.b32.xlu1 %v2761_v51, %s2449_s20 }
 0x1a8   : > { %1007 = vperm.xlu0 %2345, %v1004_v56   ;;  %798 = vrot.lane.b32.xlu1 %v2761_v51, %s2450_s21 }
 0x1ac   : > { %1029 = vperm.xlu0 %2345, %v1020_v58   ;;  %814 = vrot.lane.b32.xlu1 %v2761_v51, %s2451_s22  ;;  %v2891_v58 = vld [vmem:[%s3969_s3 + $0x28] sm:$0xff] }
 0x1b0   : > { %830 = vrot.lane.b32.xlu1 %v2761_v51, %s2452_s23  ;;  %2347 = vset.pattern.permute.xlu0 %v2440_v10 }
 0x1b1   : > { %1132 = vperm.xlu0 %2347, %v2805_v60  }
 0x1b4   : > { %846 = vrot.lane.b32.xlu1 %v2761_v51, %s3976_s29  ;;  %v2980_v51 = vld [vmem:[%s3972_s6 + $0x4] sm:$0x3] }
 0x1b5   : > { %2349 = vset.pattern.permute.xlu0 %v2438_v6  ;;  %v2994_v4 = vrot.slane %v2980_v51, %v2937_v0 }
 0x1b6   : > { %1162 = vperm.xlu0 %2349, %v2805_v60  }
 0x1b7   : > { %4084 = vst [vmem:[#allocation40_spill] sm:$0xff] %v2994_v4 }
 0x1b8   : > { %876 = vrot.lane.b32.xlu1 %v2737_v46, %s2447_s18 }
 0x1ba   : > { %1306 = vperm.xlu0 %2349, %v2870_v43  }
 0x1bc   : > { %892 = vrot.lane.b32.xlu1 %v2737_v46, %s2446_s16 }
 0x1be   : > { %2350 = vset.pattern.permute.xlu0 %v2439_v9 }
 0x1bf   : > { %1178 = vperm.xlu0 %2350, %v2805_v60  }
 0x1c0   : > { %908 = vrot.lane.b32.xlu1 %v2737_v46, %s4062_s19 }
 0x1c3   : > { %1322 = vperm.xlu0 %2350, %v2870_v43  }
 0x1c4   : > { %924 = vrot.lane.b32.xlu1 %v2737_v46, %s2449_s20 }
 0x1c7   : > { %2352 = vset.pattern.permute.xlu0 %v2441_v11 }
 0x1c8   : > { %940 = vrot.lane.b32.xlu1 %v2737_v46, %s2450_s21  ;;  %1194 = vperm.xlu0 %2352, %v2805_v60  }
 0x1cc   : > { %956 = vrot.lane.b32.xlu1 %v2737_v46, %s2451_s22  ;;  %1338 = vperm.xlu0 %2352, %v2870_v43  }
 0x1d0   : > { %988 = vrot.lane.b32.xlu1 %v2737_v46, %s3976_s29  ;;  %2354 = vset.pattern.permute.xlu0 %v3987_v13  ;;  %v2925_v13 = vand.u32 127, %v479_v1 }
 0x1d1   : > { %1210 = vperm.xlu0 %2354, %v2805_v60  }
 0x1d2   : > { %v2841_v7 = vpop.permute.xlu0 %506  ;;  %v2843_v8 = vpop.permute.xlu1 %475  ;;  %vm481_vm1 = vcmp.lt.s32.totalorder %v2925_v13, 17  ;;  %vm510_vm2 = vcmp.lt.s32.totalorder %v2925_v13, 16  ;;  %vm540_vm3 = vcmp.lt.s32.totalorder %v2925_v13, 15  ;;  %vm570_vm4 = vcmp.lt.s32.totalorder %v2925_v13, 1 }
 0x1d3   : > { %vm600_vm5 = vcmp.lt.s32.totalorder %v2925_v13, 127  ;;  %vm630_vm6 = vcmp.lt.s32.totalorder %v2925_v13, 113  ;;  %vm660_vm7 = vcmp.lt.s32.totalorder %v2925_v13, 112  ;;  %vm690_vm8 = vcmp.lt.s32.totalorder %v2925_v13, 111 }
 0x1d4   : > { %974 = vrot.lane.b32.xlu1 %v2743_v48, %s2452_s23 }
 0x1d5   : > { %1354 = vperm.xlu0 %2354, %v2870_v43  }
 0x1d6   : > { %v2847_v12 = vpop.permute.xlu0 %536  ;;  %v2849_v16 = vpop.permute.xlu1 %508 }
 0x1d7   : > { %4067 = vst [vmem:[#allocation26_spill] sm:$0xff] %v2847_v12 }
 0x1d8   : > { %990 = vrot.lane.b32.xlu1 %v2743_v48, %s3976_s29  ;;  %v512_v48 = vsel %vm510_vm2, %v2849_v16, %v2841_v7  ;;  %s271_s29 = scalar_lea.vmem [#allocation2], %s2227_s8 }
 0x1d9   : > { %2356 = vset.pattern.permute.xlu0 %v4076_v40  ;;  %v526_v46 = vmul.f32 %v2968_v57, %v512_v48 }
 0x1da   : > { %v2856_v29 = vpop.permute.xlu0 %566  ;;  %v2858_v30 = vpop.permute.xlu1 %538  ;;  %1226 = vperm.xlu0 %2356, %v2805_v60  }
 0x1db   : > { %4068 = vst [vmem:[#allocation27_spill] sm:$0xff] %v2856_v29  ;;  %4069 = vst [vmem:[#allocation28_spill] sm:$0xff] %v2858_v30  ;;  %v532_v36 = vmul.f32 %v2763_v52, %v526_v46 }
 0x1dc   : > { %1024 = vperm.xlu1 %2346, %v1019_v17  }
 0x1de   : > { %v2863_v39 = vpop.permute.xlu0 %596  ;;  %v2865_v41 = vpop.permute.xlu1 %568  ;;  %1370 = vperm.xlu0 %2356, %v2870_v43  }
 0x1df   : > { %4070 = vst [vmem:[#allocation29_spill] sm:$0xff] %v2865_v41 }
 0x1e0   : > { %1034 = vperm.xlu1 %2346, %v1021_v33  }
 0x1e2   : > { %v2873_v44 = vpop.permute.xlu0 %626  ;;  %v2875_v45 = vpop.permute.xlu1 %598 }
 0x1e4   : > { %1146 = vperm.xlu1 %2346, %v2805_v60  }
 0x1e6   : > { %v2879_v47 = vpop.permute.xlu1 %628  ;;  %v2882_v54 = vpop.permute.xlu0 %656 }
 0x1e8   : > { %2348 = vset.pattern.permute.xlu1 %v2440_v10 }
 0x1e9   : > { %1276 = vperm.xlu1 %2348, %v2870_v43  }
 0x1ea   : > { %v2886_v56 = vpop.permute.xlu1 %658  ;;  %v2894_v17 = vpop.permute.xlu0 %686 }
 0x1ed   : > { %1420 = vperm.xlu1 %2348, %v2891_v58  }
 0x1ee   : > { %v2897_v33 = vpop.permute.xlu1 %688  ;;  %v2905_v3 = vpop.permute.xlu0 %477 }
 0x1f1   : > { %2351 = vset.pattern.permute.xlu1 %v2438_v6 }
 0x1f2   : > { %v2902_v10 = vpop.permute.xlu1 %748  ;;  %1450 = vperm.xlu1 %2351, %v2891_v58   ;;  %v2914_v6 = vpop.permute.xlu0 %732 }
 0x1f3   : > { %4071 = vst [vmem:[#allocation30_spill] sm:$0xff] %v2902_v10  ;;  %4073 = vst [vmem:[#allocation32_spill] sm:$0xff] %v2914_v6 }
 0x1f6   : > { %v2908_v22 = vpop.permute.xlu1 %764  ;;  %2353 = vset.pattern.permute.xlu1 %v2439_v9  ;;  %v2927_v28 = vpop.permute.xlu0 %844 }
 0x1f7   : > { %4072 = vst [vmem:[#allocation31_spill] sm:$0xff] %v2908_v22  ;;  %1466 = vperm.xlu1 %2353, %v2891_v58   ;;  %4075 = vst [vmem:[#allocation34_spill] sm:$0xff] %v2927_v28  ;;  %v4086_v28 = vmov 0  }
 0x1fa   : > { %v2916_v15 = vpop.permute.xlu1 %780  ;;  %v2948_v62 = vpop.permute.xlu0 %972 }
 0x1fb   : > { %4074 = vst [vmem:[#allocation33_spill] sm:$0xff] %v2916_v15  ;;  %2355 = vset.pattern.permute.xlu1 %v2441_v11  ;;  %v4077_v11 = vmov 5   ;;  %4079 = vst [vmem:[#allocation36_spill] sm:$0xff] %v2948_v62 }
 0x1fc   : > { %1482 = vperm.xlu1 %2355, %v2891_v58  }
 0x1fe   : > { %v2923_v9 = vpop.permute.xlu1 %796  ;;  %v2970_v55 = vpop.permute.xlu0 %878 }
 0x1ff   : > { %4081 = vst [vmem:[#allocation38_spill] sm:$0xff] %v2970_v55  ;;  %v473_v55 = vmul.f32 %v2745_v49, %v2681_v32 }
 0x200   : > { %2357 = vset.pattern.permute.xlu1 %v4077_v11  ;;  %v483_v11 = vsel %vm481_vm1, %v2905_v3, %v2843_v8 }
 0x201   : > { %1498 = vperm.xlu1 %2357, %v2891_v58   ;;  %v496_v62 = vmul.f32 %v2946_v63, %v483_v11 }
 0x202   : > { %v2942_v1 = vpop.permute.xlu1 %812  ;;  %v3012_v37 = vpop.permute.xlu0 %894 }
 0x203   : > { %v502_v11 = vmul.f32 %v2829_v2, %v496_v62  ;;  %v542_v62 = vsel %vm540_vm3, %v2858_v30, %v2847_v12  ;;  %4085 = vst [vmem:[#allocation41_spill] sm:$0xff] %v3012_v37  ;;  %v572_v30 = vsel %vm570_vm4, %v2865_v41, %v2856_v29 }
 0x204   : > { %v556_v35 = vmul.f32 %v2994_v4, %v542_v62 }
 0x205   : > { %2359 = vset.pattern.permute.xlu1 %v4076_v40  ;;  %v4082_v40 = vmov 7   ;;  %v504_v48 = vadd.f32 %v502_v11, %v473_v55  ;;  %v3028_v55 = vld [vmem:[%s3972_s6 + $0xa] sm:$0x3] }
 0x206   : > { %v2961_v59 = vpop.permute.xlu1 %828  ;;  %1514 = vperm.xlu1 %2359, %v2891_v58   ;;  %2358 = vset.pattern.permute.xlu0 %v4082_v40  ;;  %v562_v37 = vmul.f32 %v2661_v19, %v556_v35  ;;  %v3043_v41 = vrot.slane %v3028_v55, %v2937_v0  ;;  %v601_v35 = vsel %vm600_vm5, %v2863_v39, %v2875_v45 }
 0x207   : > { %1242 = vperm.xlu0 %2358, %v2805_v60   ;;  %v534_v46 = vadd.f32 %v532_v36, %v504_v48  ;;  %v3054_v48 = vpop.permute.xlu0 %910 }
 0x208   : > { %4090 = vst [vmem:[#allocation44_spill] sm:$0xff] %v3043_v41  ;;  %4091 = vst [vmem:[#allocation45_spill] sm:$0xff] %v3054_v48  ;;  %v3070_v48 = vsub.s32 1, %v2921_v14  ;;  %v631_v14 = vsel %vm630_vm6, %v2873_v44, %v2879_v47 }
 0x20a   : > { %v2982_v53 = vpop.permute.xlu1 %734  ;;  %2361 = vset.pattern.permute.xlu1 %v4082_v40  ;;  %v3006_v40 = vld [vmem:[%s3972_s6 + $0x6] sm:$0x3] }
 0x20b   : > { %4083 = vst [vmem:[#allocation39_spill] sm:$0xff] %v2982_v53  ;;  %1530 = vperm.xlu1 %2361, %v2891_v58   ;;  %1386 = vperm.xlu0 %2358, %v2870_v43   ;;  %v3019_v12 = vrot.slane %v3006_v40, %v2937_v0  ;;  %v737_v62 = vsel %vm481_vm1, %v2982_v53, %v2914_v6 }
 0x20c   : > { %v564_v6 = vadd.f32 %v562_v37, %v534_v46  ;;  %v616_v37 = vmul.f32 %v3043_v41, %v601_v35 }
 0x20d   : > { %4087 = vst [vmem:[#allocation42_spill] sm:$0xff] %v3019_v12  ;;  %v586_v29 = vmul.f32 %v3019_v12, %v572_v30 }
 0x20e   : > { %v3008_v32 = vpop.permute.xlu1 %750 }
 0x20f   : > { %2363 = vset.pattern.permute.xlu1 %v4086_v28  ;;  %v753_v36 = vsel %vm510_vm2, %v3008_v32, %v2902_v10 }
 0x210   : > { %1268 = vperm.xlu1 %2363, %v1265_v38   ;;  %v4089_v38 = vmov 8  }
 0x211   : > { %2360 = vset.pattern.permute.xlu0 %v4089_v38  ;;  %v3048_v38 = vld [vmem:[%s3972_s6 + $0xc] sm:$0x3] }
 0x212   : > { %v3030_v11 = vpop.permute.xlu1 %766  ;;  %1258 = vperm.xlu0 %2360, %v2805_v60   ;;  %v738_v60 = vmul.f32 %v737_v62, %v2946_v63  ;;  %v3074_v10 = vrot.slane %v3048_v38, %v2937_v0  ;;  %v754_v62 = vmul.f32 %v753_v36, %v2968_v57  ;;  %v592_v63 = vmul.f32 %v2665_v21, %v586_v29  ;;  %v3091_v36 = vld [vmem:[%s3972_s6 + $0xe] sm:$0x3] }
 0x213   : > { %4088 = vst [vmem:[#allocation43_spill] sm:$0xff] %v3030_v11  ;;  %v769_v53 = vsel %vm540_vm3, %v3030_v11, %v2908_v22  ;;  %v3095_v29 = vrot.slane %v2932_v27, %v3070_v48  ;;  %v3105_v11 = vpop.permute.xlu0 %926 }
 0x214   : > { %4093 = vst [vmem:[#allocation47_spill] sm:$0xff] %v3074_v10  ;;  %v744_v35 = vmul.f32 %v2837_v5, %v738_v60  ;;  %v770_v57 = vmul.f32 %v769_v53, %v2994_v4  ;;  %4094 = vst [vmem:[#allocation48_spill] sm:$0xff] %v3105_v11  ;;  %v730_v53 = vmul.f32 %v2755_v50, %v2727_v42  ;;  %v3130_v42 = vld [vmem:[%s3972_s6 + $0x10] sm:$0x3] }
 0x215   : > { %v760_v60 = vmul.f32 %v2659_v18, %v754_v62  ;;  %v622_v5 = vmul.f32 %v2669_v24, %v616_v37  ;;  %v3144_v11 = vrot.slane %v2959_v61, %v3070_v48  ;;  %v3157_v61 = vrot.slane %v3130_v42, %v2937_v0 }
 0x216   : > { %v3061_v30 = vpop.permute.xlu1 %782  ;;  %1402 = vperm.xlu0 %2360, %v2870_v43   ;;  %v746_v62 = vadd.f32 %v744_v35, %v730_v53  ;;  %v776_v37 = vmul.f32 %v2663_v20, %v770_v57  ;;  %v511_v53 = vsel %vm510_vm2, %v2841_v7, %v2849_v16 }
 0x217   : > { %4092 = vst [vmem:[#allocation46_spill] sm:$0xff] %v3061_v30  ;;  %v785_v46 = vsel %vm570_vm4, %v3061_v30, %v2916_v15  ;;  %v482_v15 = vsel %vm481_vm1, %v2843_v8, %v2905_v3  ;;  %v594_v30 = vadd.f32 %v592_v63, %v564_v6  ;;  %v646_v3 = vmul.f32 %v3074_v10, %v631_v14 }
 0x218   : > { %v786_v4 = vmul.f32 %v785_v46, %v3019_v12  ;;  %v3120_v63 = vrot.slane %v3091_v36, %v2937_v0  ;;  %v661_v8 = vsel %vm660_vm7, %v2882_v54, %v2886_v56  ;;  %v497_v6 = vmul.f32 %v3095_v29, %v482_v15 }
 0x219   : > { %v624_v15 = vadd.f32 %v622_v5, %v594_v30  ;;  %v762_v35 = vadd.f32 %v760_v60, %v746_v62  ;;  %v652_v5 = vmul.f32 %v2673_v26, %v646_v3  ;;  %v3159_v30 = vpop.permute.xlu0 %942  ;;  %v3171_v60 = vrot.slane %v2980_v51, %v3070_v48  ;;  %v4096_v51 = vld [vmem:[#allocation28_spill] sm:$0xff] }
 0x21a   : > { %v3099_v22 = vpop.permute.xlu1 %798  ;;  %1546 = vperm.xlu0 %2360, %v2891_v58   ;;  %4095 = vst [vmem:[#allocation49_spill] sm:$0xff] %v3120_v63  ;;  %v792_v57 = vmul.f32 %v2667_v23, %v786_v4  ;;  %v503_v4 = vmul.f32 %v2829_v2, %v497_v6  ;;  %v474_v0 = vmul.f32 %v2745_v49, %v2687_v34  ;;  %v4098_v49 = vld [vmem:[#allocation8_spill] sm:$0xff] }
 0x21b   : > { %v800_v27 = vsel %vm600_vm5, %v2923_v9, %v3099_v22  ;;  %v654_v3 = vadd.f32 %v652_v5, %v624_v15  ;;  %v4099_v5 = vld [vmem:[#allocation9_spill] sm:$0xff] }
 0x21c   : > { %v802_v46 = vmul.f32 %v800_v27, %v3043_v41  ;;  %v505_v41 = vadd.f32 %v503_v4, %v474_v0 }
 0x21e   : > { %v3134_v14 = vpop.permute.xlu1 %814  ;;  %2362 = vset.pattern.permute.xlu0 %v4086_v28  ;;  %v676_v28 = vmul.f32 %v3120_v63, %v661_v8  ;;  %v808_v7 = vmul.f32 %v2671_v25, %v802_v46  ;;  %v527_v8 = vmul.f32 %v3144_v11, %v511_v53  ;;  %v4097_v46 = vld [vmem:[#allocation26_spill] sm:$0xff] }
 0x21f   : > { %v816_v12 = vsel %vm630_vm6, %v2942_v1, %v3134_v14  ;;  %1290 = vperm.xlu0 %2362, %v2870_v43   ;;  %v778_v43 = vadd.f32 %v776_v37, %v762_v35  ;;  %v541_v34 = vsel %vm540_vm3, %v4097_v46, %v4096_v51  ;;  %v4104_v51 = vld [vmem:[#allocation10_spill] sm:$0xff] }
 0x220   : > { %v818_v27 = vmul.f32 %v816_v12, %v3074_v10  ;;  %v691_v12 = vsel %vm690_vm8, %v2894_v17, %v2897_v33  ;;  %v682_v35 = vmul.f32 %v4098_v49, %v676_v28  ;;  %v557_v4 = vmul.f32 %v3171_v60, %v541_v34  ;;  %v4106_v34 = vld [vmem:[#allocation39_spill] sm:$0xff] }
 0x221   : > { %v794_v6 = vadd.f32 %v792_v57, %v778_v43  ;;  %v706_v10 = vmul.f32 %v3157_v61, %v691_v12  ;;  %v4101_v43 = vld [vmem:[#allocation34_spill] sm:$0xff]  ;;  %v533_v12 = vmul.f32 %v2763_v52, %v527_v8  ;;  %v3213_v52 = vrot.slane %v3028_v55, %v3070_v48 }
 0x222   : > { %v3167_v16 = vpop.permute.xlu1 %830  ;;  %v824_v62 = vmul.f32 %v2679_v31, %v818_v27  ;;  %v3194_v27 = vrot.slane %v3006_v40, %v3070_v48  ;;  %v684_v28 = vadd.f32 %v682_v35, %v654_v3  ;;  %v563_v8 = vmul.f32 %v2661_v19, %v557_v4  ;;  %v4107_v35 = vld [vmem:[#allocation32_spill] sm:$0xff] }
 0x223   : > { %v832_v2 = vsel %vm660_vm7, %v2961_v59, %v3167_v16  ;;  %1434 = vperm.xlu0 %2362, %v2891_v58   ;;  %v810_v15 = vadd.f32 %v808_v7, %v794_v6  ;;  %v3196_v58 = vpop.permute.xlu0 %958  ;;  %v4102_v6 = vld [vmem:[#allocation29_spill] sm:$0xff]  ;;  %v712_v46 = vmul.f32 %v4104_v51, %v706_v10  ;;  %v3229_v55 = vrot.slane %v3048_v38, %v3070_v48 }
 0x224   : > { %v834_v37 = vmul.f32 %v832_v2, %v3120_v63  ;;  %4100 = vst [vmem:[#allocation28_spill] sm:$0xff] %v3196_v58  ;;  %v535_v63 = vadd.f32 %v533_v12, %v505_v41  ;;  %v602_v41 = vsel %vm600_vm5, %v2875_v45, %v2863_v39  ;;  %v632_v39 = vsel %vm630_vm6, %v2879_v47, %v2873_v44  ;;  %v4112_v47 = vld [vmem:[#allocation46_spill] sm:$0xff] }
 0x225   : > { %v826_v7 = vadd.f32 %v824_v62, %v810_v15  ;;  %v714_v3 = vadd.f32 %v712_v46, %v684_v28  ;;  %v736_v15 = vsel %vm481_vm1, %v4107_v35, %v4106_v34  ;;  %v4113_v46 = vld [vmem:[#allocation33_spill] sm:$0xff]  ;;  %v4116_v35 = vld [vmem:[#allocation15_spill] sm:$0xff] }
 0x226   : > { %v840_v53 = vmul.f32 %v4099_v5, %v834_v37  ;;  %v3190_v57 = vpop.permute.xlu1 %846  ;;  %v4103_v37 = vld [vmem:[#allocation27_spill] sm:$0xff]  ;;  %v565_v19 = vadd.f32 %v563_v8, %v535_v63  ;;  %v739_v45 = vmul.f32 %v736_v15, %v3095_v29  ;;  %v617_v63 = vmul.f32 %v3213_v52, %v602_v41  ;;  %v4114_v8 = vld [vmem:[#allocation13_spill] sm:$0xff] }
 0x227   : > { %v848_v2 = vsel %vm690_vm8, %v4101_v43, %v3190_v57  ;;  %v571_v40 = vsel %vm570_vm4, %v4103_v37, %v4102_v6  ;;  %v4105_v5 = vld [vmem:[#allocation11_spill] sm:$0xff]  ;;  %v731_v15 = vmul.f32 %v2755_v50, %v4116_v35 }
 0x228   : > { %v850_v0 = vmul.f32 %v848_v2, %v3157_v61  ;;  %v842_v49 = vadd.f32 %v840_v53, %v826_v7  ;;  %v587_v62 = vmul.f32 %v3194_v27, %v571_v40  ;;  %v3225_v53 = vpop.permute.xlu0 %863  ;;  %v4108_v2 = vld [vmem:[#allocation30_spill] sm:$0xff]  ;;  %v4110_v7 = vld [vmem:[#allocation43_spill] sm:$0xff]  ;;  %v647_v40 = vmul.f32 %v3229_v55, %v632_v39 }
 0x229   : > { %v752_v28 = vsel %vm510_vm2, %v4108_v2, %v3008_v32  ;;  %v3267_v39 = vrot.slane %v3091_v36, %v3070_v48 }
 0x22a   : > { %v856_v58 = vmul.f32 %v4105_v5, %v850_v0  ;;  %v877_v31 = vpop.permute.xlu1 %876  ;;  %v593_v38 = vmul.f32 %v2665_v21, %v587_v62  ;;  %v4111_v0 = vld [vmem:[#allocation31_spill] sm:$0xff]  ;;  %v755_v6 = vmul.f32 %v752_v28, %v3144_v11  ;;  %v4115_v62 = vld [vmem:[#allocation16_spill] sm:$0xff]  ;;  %v4118_v28 = vld [vmem:[#allocation14_spill] sm:$0xff]  ;;  %v653_v36 = vmul.f32 %v2673_v26, %v647_v40 }
 0x22b   : > { %v768_v32 = vsel %vm540_vm3, %v4111_v0, %v4110_v7  ;;  %v874_v34 = vmul.f32 %v4115_v62, %v4114_v8 }
 0x22c   : > { %v858_v10 = vadd.f32 %v856_v58, %v842_v49  ;;  %v4109_v58 = vld [vmem:[#allocation24_spill] sm:$0xff]  ;;  %v595_v44 = vadd.f32 %v593_v38, %v565_v19  ;;  %v771_v2 = vmul.f32 %v768_v32, %v3171_v60  ;;  %v623_v19 = vmul.f32 %v2669_v24, %v617_v63  ;;  %v4119_v38 = vld [vmem:[#allocation38_spill] sm:$0xff] }
 0x22d   : > { %v722_v4 = vadd.f32 %v4109_v58, %v714_v3  ;;  %v784_v3 = vsel %vm570_vm4, %v4113_v46, %v4112_v47  ;;  %v761_v50 = vmul.f32 %v2659_v18, %v755_v6  ;;  %v880_v7 = vsel %vm481_vm1, %v877_v31, %v4119_v38  ;;  %v4120_v6 = vld [vmem:[#allocation41_spill] sm:$0xff] }
 0x22e   : > { %v893_v12 = vpop.permute.xlu1 %892  ;;  %v866_v49 = vadd.f32 %v3225_v53, %v858_v10  ;;  %v4117_v10 = vld [vmem:[#allocation25_spill] sm:$0xff]  ;;  %v881_v24 = vsel %vm481_vm1, %v4119_v38, %v877_v31  ;;  %v3284_v63 = vrot.slane %v3130_v42, %v3070_v48  ;;  %v801_v18 = vsel %vm600_vm5, %v3099_v22, %v2923_v9  ;;  %v4121_v9 = vld [vmem:[#allocation35_spill] sm:$0xff] }
 0x22f   : > { %v745_v41 = vmul.f32 %v4117_v10, %v739_v45  ;;  %v787_v45 = vmul.f32 %v784_v3, %v3194_v27  ;;  %v777_v32 = vmul.f32 %v2663_v20, %v771_v2  ;;  %v896_v31 = vsel %vm510_vm2, %v893_v12, %v4120_v6  ;;  %v4122_v46 = vld [vmem:[#allocation37_spill] sm:$0xff] }
 0x230   : > { %v3249_v37 = vmul.f32 %v866_v49, %v722_v4  ;;  %v875_v49 = vmul.f32 %v4115_v62, %v4118_v28  ;;  %v662_v4 = vsel %vm660_vm7, %v2886_v56, %v2882_v54  ;;  %v625_v56 = vadd.f32 %v623_v19, %v595_v44  ;;  %v4123_v62 = vld [vmem:[#allocation45_spill] sm:$0xff]  ;;  %v4125_v28 = vld [vmem:[#allocation48_spill] sm:$0xff] }
 0x231   : > { %v747_v0 = vadd.f32 %v745_v41, %v731_v15  ;;  %v897_v26 = vsel %vm510_vm2, %v4120_v6, %v893_v12  ;;  %v677_v48 = vmul.f32 %v3267_v39, %v662_v4  ;;  %v817_v22 = vsel %vm630_vm6, %v3134_v14, %v2942_v1  ;;  %v4124_v10 = vld [vmem:[#allocation17_spill] sm:$0xff] }
 0x232   : > { %v909_v21 = vpop.permute.xlu1 %908  ;;  %v882_v42 = vmul.f32 %v881_v24, %v4121_v9  ;;  %v883_v40 = vmul.f32 %v880_v7, %v3095_v29  ;;  %v692_v20 = vsel %vm690_vm8, %v2897_v33, %v2894_v17  ;;  %v793_v47 = vmul.f32 %v2667_v23, %v787_v45  ;;  %v4127_v24 = vld [vmem:[#allocation18_spill] sm:$0xff] }
 0x233   : > { %v763_v44 = vadd.f32 %v761_v50, %v747_v0  ;;  %v803_v12 = vmul.f32 %v801_v18, %v3213_v52  ;;  %v898_v3 = vmul.f32 %v897_v26, %v4122_v46  ;;  %v899_v8 = vmul.f32 %v896_v31, %v3144_v11 }
 0x234   : > { %v912_v1 = vsel %vm540_vm3, %v909_v21, %v4123_v62  ;;  %v913_v14 = vsel %vm540_vm3, %v4123_v62, %v909_v21  ;;  %v819_v17 = vmul.f32 %v817_v22, %v3229_v55  ;;  %v833_v23 = vsel %vm660_vm7, %v3167_v16, %v2961_v59  ;;  %v4126_v59 = vld [vmem:[#allocation40_spill] sm:$0xff] }
 0x235   : > { %v779_v15 = vadd.f32 %v777_v32, %v763_v44  ;;  %v655_v33 = vadd.f32 %v653_v36, %v625_v56  ;;  %v888_v41 = vmul.f32 %v4124_v10, %v882_v42  ;;  %v889_v2 = vmul.f32 %v4124_v10, %v883_v40  ;;  %v4130_v42 = vld [vmem:[#allocation19_spill] sm:$0xff] }
 0x236   : > { %v925_v54 = vpop.permute.xlu1 %924  ;;  %v849_v50 = vsel %vm690_vm8, %v3190_v57, %v4101_v43  ;;  %v914_v16 = vmul.f32 %v913_v14, %v4126_v59  ;;  %v915_v45 = vmul.f32 %v912_v1, %v3171_v60  ;;  %v809_v38 = vmul.f32 %v2671_v25, %v803_v12  ;;  %v4129_v25 = vld [vmem:[#allocation7_spill] sm:$0xff]  ;;  %v4133_v1 = vld [vmem:[#allocation44_spill] sm:$0xff] }
 0x237   : > { %v928_v19 = vsel %vm570_vm4, %v925_v54, %v4125_v28  ;;  %v929_v21 = vsel %vm570_vm4, %v4125_v28, %v925_v54  ;;  %v795_v4 = vadd.f32 %v793_v47, %v779_v15  ;;  %v835_v7 = vmul.f32 %v833_v23, %v3267_v39  ;;  %v4128_v54 = vld [vmem:[#allocation42_spill] sm:$0xff]  ;;  %v4131_v47 = vld [vmem:[#allocation28_spill] sm:$0xff] }
 0x238   : > { %v904_v36 = vmul.f32 %v4127_v24, %v898_v3  ;;  %v905_v18 = vmul.f32 %v4127_v24, %v899_v8  ;;  %v930_v0 = vmul.f32 %v929_v21, %v4128_v54  ;;  %v931_v32 = vmul.f32 %v928_v19, %v3194_v27  ;;  %v4136_v19 = vld [vmem:[#allocation47_spill] sm:$0xff] }
 0x239   : > { %v825_v6 = vmul.f32 %v4129_v25, %v819_v17  ;;  %v851_v31 = vmul.f32 %v849_v50, %v3284_v63  ;;  %v890_v26 = vadd.f32 %v888_v41, %v874_v34  ;;  %v891_v22 = vadd.f32 %v889_v2, %v875_v49  ;;  %v4134_v17 = vld [vmem:[#allocation20_spill] sm:$0xff] }
 0x23a   : > { %v941_v35 = vpop.permute.xlu1 %940  ;;  %v920_v40 = vmul.f32 %v4130_v42, %v914_v16  ;;  %v921_v44 = vmul.f32 %v4130_v42, %v915_v45  ;;  %v811_v8 = vadd.f32 %v809_v38, %v795_v4  ;;  %v936_v23 = vmul.f32 %v4134_v17, %v930_v0  ;;  %v4135_v41 = vld [vmem:[#allocation8_spill] sm:$0xff] }
 0x23b   : > { %v944_v57 = vsel %vm600_vm5, %v941_v35, %v3159_v30  ;;  %v945_v43 = vsel %vm600_vm5, %v3159_v30, %v941_v35  ;;  %v4132_v30 = vld [vmem:[#allocation9_spill] sm:$0xff]  ;;  %v906_v35 = vadd.f32 %v904_v36, %v890_v26  ;;  %v907_v15 = vadd.f32 %v905_v18, %v891_v22 }
 0x23c   : > { %v841_v62 = vmul.f32 %v4132_v30, %v835_v7  ;;  %v946_v14 = vmul.f32 %v944_v57, %v4133_v1  ;;  %v947_v34 = vmul.f32 %v945_v43, %v3213_v52  ;;  %v937_v10 = vmul.f32 %v4134_v17, %v931_v32  ;;  %v4137_v7 = vld [vmem:[#allocation21_spill] sm:$0xff]  ;;  %v4138_v57 = vld [vmem:[#allocation36_spill] sm:$0xff] }
 0x23d   : > { %v683_v2 = vmul.f32 %v4135_v41, %v677_v48  ;;  %v827_v28 = vadd.f32 %v825_v6, %v811_v8  ;;  %v707_v50 = vmul.f32 %v3284_v63, %v692_v20  ;;  %v857_v16 = vmul.f32 %v4105_v5, %v851_v31  ;;  %v4139_v5 = vld [vmem:[#allocation22_spill] sm:$0xff]  ;;  %v4140_v31 = vld [vmem:[#allocation49_spill] sm:$0xff] }
 0x23e   : > { %v957_v56 = vpop.permute.xlu1 %956  ;;  %v922_v45 = vadd.f32 %v920_v40, %v906_v35  ;;  %v923_v38 = vadd.f32 %v921_v44, %v907_v15  ;;  %v952_v24 = vmul.f32 %v4137_v7, %v946_v14  ;;  %v953_v36 = vmul.f32 %v4137_v7, %v947_v34 }
 0x23f   : > { %v960_v12 = vsel %vm630_vm6, %v957_v56, %v4131_v47  ;;  %v961_v3 = vsel %vm630_vm6, %v4131_v47, %v957_v56  ;;  %v685_v56 = vadd.f32 %v683_v2, %v655_v33  ;;  %v843_v0 = vadd.f32 %v841_v62, %v827_v28  ;;  %v4141_v47 = vld [vmem:[#allocation23_spill] sm:$0xff] }
 0x240   : > { %v962_v21 = vmul.f32 %v960_v12, %v4136_v19  ;;  %v963_v4 = vmul.f32 %v961_v3, %v3229_v55  ;;  %v938_v32 = vadd.f32 %v936_v23, %v922_v45  ;;  %v939_v48 = vadd.f32 %v937_v10, %v923_v38  ;;  %v4142_v23 = vld [vmem:[#allocation12_spill] sm:$0xff] }
 0x241   : > { %v713_v33 = vmul.f32 %v4104_v51, %v707_v50  ;;  %v859_v42 = vadd.f32 %v857_v16, %v843_v0 }
 0x242   : > { %v989_v49 = vpop.permute.xlu1 %988  ;;  %v968_v25 = vmul.f32 %v4139_v5, %v962_v21  ;;  %v969_v6 = vmul.f32 %v4139_v5, %v963_v4  ;;  %v954_v40 = vadd.f32 %v952_v24, %v938_v32  ;;  %v955_v44 = vadd.f32 %v953_v36, %v939_v48 }
 0x243   : > { %v715_v14 = vadd.f32 %v713_v33, %v685_v56  ;;  %v867_v17 = vadd.f32 %v3225_v53, %v859_v42  ;;  %v1016_v53 = vld [vmem:[%s3967_s1 + $0x20] sm:$0xff]  ;;  %v4143_v36 = vmov 0.0  }
 0x244   : > { %v970_v34 = vadd.f32 %v968_v25, %v954_v40  ;;  %v971_v15 = vadd.f32 %v969_v6, %v955_v44 }
 0x245   : > { %v723_v21 = vadd.f32 %v4109_v58, %v715_v14  ;;  %v1017_v58 = vld [vmem:[%s3967_s1 + $0x28] sm:$0xff] }
 0x246   : > { %v975_v18 = vpop.permute.xlu1 %974  ;;  %v1553_v14 = vld [vmem:[%s3970_s4 + $0x28] sm:$0xff] }
 0x247   : > { %v976_v43 = vsel %vm660_vm7, %v4138_v57, %v975_v18  ;;  %v977_v20 = vsel %vm660_vm7, %v975_v18, %v4138_v57  ;;  %v1013_v45 = vmul.f32 %v867_v17, %v723_v21 }
 0x248   : > { %v978_v26 = vmul.f32 %v976_v43, %v4140_v31  ;;  %v979_v22 = vmul.f32 %v977_v20, %v3267_v39 }
 0x24a   : > { %v984_v12 = vmul.f32 %v4141_v47, %v978_v26  ;;  %v985_v3 = vmul.f32 %v4141_v47, %v979_v22  ;;  %v991_v8 = vpop.permute.xlu1 %990 }
 0x24b   : > { %v992_v30 = vsel %vm690_vm8, %v989_v49, %v991_v8  ;;  %v993_v62 = vsel %vm690_vm8, %v991_v8, %v989_v49  ;;  %v1008_v49 = vpop.permute.xlu0 %1007 }
 0x24c   : > { %v994_v35 = vmul.f32 %v992_v30, %v3157_v61  ;;  %v995_v51 = vmul.f32 %v993_v62, %v3284_v63  ;;  %v987_v41 = vadd.f32 %v985_v3, %v971_v15  ;;  %v986_v28 = vadd.f32 %v984_v12, %v970_v34  ;;  %v1409_v30 = vld [vmem:[%s3970_s4 + $0x20] sm:$0xff] }
 0x24e   : > { %v1000_v10 = vmul.f32 %v4142_v23, %v994_v35  ;;  %v1001_v2 = vmul.f32 %v4142_v23, %v995_v51 }
 0x24f   : > { %v1030_v57 = vpop.permute.xlu0 %1029 }
 0x250   : > { %v1003_v4 = vadd.f32 %v1001_v2, %v987_v41  ;;  %v1002_v50 = vadd.f32 %v1000_v10, %v986_v28 }
 0x252   : > { %v1011_v16 = vadd.f32 %v1008_v49, %v1003_v4  ;;  %v1010_v38 = vadd.f32 %v1008_v49, %v1002_v50 }
 0x253   : > { %v3430_v43 = vpop.permute.xlu0 %1132 }
 0x254   : > { %v1015_v7 = vadd.f32 %v1013_v45, %v1011_v16  ;;  %v1014_v24 = vadd.f32 %v3249_v37, %v1010_v38  ;;  %v1018_v37 = vld [vmem:[%s3967_s1 + $0x30] sm:$0xff] }
 0x256   : > { %1076 = vmatprep.subr.mxu1 %v1015_v7 }
 0x257   : > { %1077 = vmatpush1.msra.mxu1 %v1014_v24  ;;  %v1025_v18 = vpop.permute.xlu1 %1024  ;;  %v3436_v5 = vpop.permute.xlu0 %1162 }
 0x258   : > { %2241 = vmatmul.mubr.msk.f32.vlgmr.msra.gmra.mxu1 %vm365_vm0, %v1016_v53  ;;  %2263 = vmatprep.subr.mxu1 %v4143_v36 }
 0x259   : > { %1116 = vmatprep.mubr.f32.mxu1 %v4143_v36 }
 0x25b   : > { %v3448_v22 = vpop.permute.xlu0 %1306  ;;  %v1035_v33 = vpop.permute.xlu1 %1034 }
 0x25c   : > { %2242 = vmatmul.mubr.msk.f32.gmra.mxu1 %vm365_vm0, %v1017_v58 }
 0x25d   : > { %1122 = vmatprep.mubr.f32.mxu1 %v4143_v36 }
 0x25f   : > { %v3458_v47 = vpop.permute.xlu0 %1178  ;;  %v1147_v34 = vpop.permute.xlu1 %1146 }
 0x260   : > { %2243 = vmatmul.mubr.msk.f32.gmra.mxu1 %vm365_vm0, %v1018_v37 }
 0x263   : > { %v3468_v12 = vpop.permute.xlu0 %1322 }
 0x264   : > { %v3504_v51 = vpop.permute.xlu1 %1276 }
 0x267   : > { %v3474_v3 = vpop.permute.xlu0 %1194 }
 0x268   : > { %v3512_v23 = vpop.permute.xlu1 %1420 }
 0x26b   : > { %v3484_v8 = vpop.permute.xlu0 %1338 }
 0x26d   : > { %v3520_v41 = vpop.permute.xlu1 %1450 }
 0x26f   : > { %v3493_v62 = vpop.permute.xlu0 %1210 }
 0x272   : > { %v3526_v28 = vpop.permute.xlu1 %1466 }
 0x273   : > { %v3502_v35 = vpop.permute.xlu0 %1354 }
 0x277   : > { %v3510_v17 = vpop.permute.xlu0 %1226  ;;  %v3534_v4 = vpop.permute.xlu1 %1482 }
 0x27b   : > { %v3518_v10 = vpop.permute.xlu0 %1370 }
 0x27c   : > { %v3540_v49 = vpop.permute.xlu1 %1498 }
 0x281   : > { %v3548_v45 = vpop.permute.xlu1 %1514 }
 0x282   : > { %v3524_v2 = vpop.permute.xlu0 %1242  ;;  %4145 = vst [vmem:[#allocation26_spill] sm:$0xff] %v3548_v45 }
 0x286   : > { %v3532_v21 = vpop.permute.xlu0 %1386  ;;  %v3554_v7 = vpop.permute.xlu1 %1530 }
 0x287   : > { %4147 = vst [vmem:[#allocation29_spill] sm:$0xff] %v3554_v7 }
 0x28b   : > { %v3562_v53 = vpop.permute.xlu1 %1268 }
 0x28d   : > { %v3538_v50 = vpop.permute.xlu0 %1258 }
 0x291   : > { %v3546_v16 = vpop.permute.xlu0 %1402 }
 0x295   : > { %v3552_v38 = vpop.permute.xlu0 %1546 }
 0x296   : > { %4146 = vst [vmem:[#allocation34_spill] sm:$0xff] %v3552_v38 }
 0x29a   : > { %v3558_v24 = vpop.permute.xlu0 %1290 }
 0x29e   : > { %v3566_v58 = vpop.permute.xlu0 %1434 }
 0x318   : > { %v1112_v56 = vpop.f32.mrf.mxu1 }
 0x319   : > { %v3410_v0 = vadd.f32 %v1112_v56, %v1025_v18 }
 0x31a   : > { %v1114_v32 = vpop.f32.mrf.mxu1 }
 0x31b   : > { %1169 = vrot.lane.b32.xlu0 %v3410_v0, %s4062_s19  ;;  %1137 = vrot.lane.b32.xlu1 %v3410_v0, %s2447_s18  ;;  %v3420_v48 = vadd.f32 %v1114_v32, %v1025_v18 }
 0x31c   : > { %v1118_v20 = vpop.f32.mrf.mxu1 }
 0x31d   : > { %v3442_v6 = vadd.f32 %v1118_v20, %v1030_v57 }
 0x31e   : > { %v1120_v25 = vpop.f32.mrf.mxu1 }
 0x31f   : > { %1185 = vrot.lane.b32.xlu0 %v3410_v0, %s2449_s20  ;;  %1153 = vrot.lane.b32.xlu1 %v3410_v0, %s2446_s16  ;;  %v3508_v15 = vadd.f32 %v1120_v25, %v1030_v57 }
 0x320   : > { %v1124_v26 = vpop.f32.mrf.mxu1 }
 0x321   : > { %v3450_v42 = vadd.f32 %v1124_v26, %v1035_v33 }
 0x322   : > { %v1126_v40 = vpop.f32.mrf.mxu1 }
 0x323   : > { %1201 = vrot.lane.b32.xlu0 %v3410_v0, %s2450_s21  ;;  %1139 = vrot.lane.b32.xlu1 %v3420_v48, %s2447_s18  ;;  %v3456_v44 = vadd.f32 %v1126_v40, %v1035_v33  ;;  %v1135_v33 = vmul.f32 %v3430_v43, %v3410_v0 }
 0x327   : > { %1217 = vrot.lane.b32.xlu0 %v3410_v0, %s2451_s22  ;;  %1155 = vrot.lane.b32.xlu1 %v3420_v48, %s2446_s16 }
 0x32b   : > { %1233 = vrot.lane.b32.xlu0 %v3410_v0, %s2452_s23  ;;  %1171 = vrot.lane.b32.xlu1 %v3420_v48, %s4062_s19 }
 0x32f   : > { %1249 = vrot.lane.b32.xlu0 %v3410_v0, %s4144_s14  ;;  %1187 = vrot.lane.b32.xlu1 %v3420_v48, %s2449_s20 }
 0x333   : > { %1393 = vrot.lane.b32.xlu0 %v3442_v6, %s4144_s14  ;;  %1203 = vrot.lane.b32.xlu1 %v3420_v48, %s2450_s21 }
 0x337   : > { %1521 = vrot.lane.b32.xlu0 %v3450_v42, %s2452_s23  ;;  %1219 = vrot.lane.b32.xlu1 %v3420_v48, %s2451_s22 }
 0x33b   : > { %1427 = vrot.lane.b32.xlu0 %v3456_v44, %s2447_s18  ;;  %1235 = vrot.lane.b32.xlu1 %v3420_v48, %s2452_s23 }
 0x33f   : > { %1443 = vrot.lane.b32.xlu0 %v3456_v44, %s2446_s16  ;;  %1251 = vrot.lane.b32.xlu1 %v3420_v48, %s4144_s14 }
 0x343   : > { %1459 = vrot.lane.b32.xlu0 %v3456_v44, %s4062_s19  ;;  %1281 = vrot.lane.b32.xlu1 %v3442_v6, %s2447_s18 }
 0x347   : > { %1475 = vrot.lane.b32.xlu0 %v3456_v44, %s2449_s20  ;;  %1297 = vrot.lane.b32.xlu1 %v3442_v6, %s2446_s16 }
 0x34b   : > { %1491 = vrot.lane.b32.xlu0 %v3456_v44, %s2450_s21  ;;  %1313 = vrot.lane.b32.xlu1 %v3442_v6, %s4062_s19 }
 0x34f   : > { %1507 = vrot.lane.b32.xlu0 %v3456_v44, %s2451_s22  ;;  %1329 = vrot.lane.b32.xlu1 %v3442_v6, %s2449_s20 }
 0x353   : > { %1345 = vrot.lane.b32.xlu1 %v3442_v6, %s2450_s21  ;;  %1412 = vperm.xlu0 %2362, %v1409_v30   ;;  %v1136_v30 = vmul.f32 %v3430_v43, %v3420_v48 }
 0x357   : > { %1361 = vrot.lane.b32.xlu1 %v3442_v6, %s2451_s22  ;;  %1556 = vperm.xlu0 %2362, %v1553_v14  }
 0x35b   : > { %1377 = vrot.lane.b32.xlu1 %v3442_v6, %s2452_s23 }
 0x35f   : > { %1283 = vrot.lane.b32.xlu1 %v3508_v15, %s2447_s18 }
 0x363   : > { %1299 = vrot.lane.b32.xlu1 %v3508_v15, %s2446_s16 }
 0x367   : > { %1315 = vrot.lane.b32.xlu1 %v3508_v15, %s4062_s19 }
 0x36b   : > { %1331 = vrot.lane.b32.xlu1 %v3508_v15, %s2449_s20 }
 0x36f   : > { %1347 = vrot.lane.b32.xlu1 %v3508_v15, %s2450_s21 }
 0x373   : > { %1363 = vrot.lane.b32.xlu1 %v3508_v15, %s2451_s22 }
 0x377   : > { %1379 = vrot.lane.b32.xlu1 %v3508_v15, %s2452_s23 }
 0x37b   : > { %1395 = vrot.lane.b32.xlu1 %v3508_v15, %s4144_s14 }
 0x37f   : > { %1425 = vrot.lane.b32.xlu1 %v3450_v42, %s2447_s18 }
 0x383   : > { %1441 = vrot.lane.b32.xlu1 %v3450_v42, %s2446_s16  ;;  %s2164_s16 = sshll.u32 %s271_s29, 4  ;;  %s2165_s16 = int_to_ptr.vmem [resolvable:$true] %s2164_s16 }
 0x387   : > { %1457 = vrot.lane.b32.xlu1 %v3450_v42, %s4062_s19  ;;  %s2378_s19 = sshll.u32 %s2455_s28, 4  ;;  %s2379_s19 = int_to_ptr.vmem [resolvable:$false] %s2378_s19 }
 0x388   : > { %s2380_s13 = scalar_lea.vmem %s2379_s19, 256  ;;  %p2381_p0 = scmp.lt.s32.totalorder %s2165_s16, %s2379_s19 }
 0x38b   : > { %1473 = vrot.lane.b32.xlu1 %v3450_v42, %s2449_s20 }
 0x38d   : > { %v1138_v37 = vpop.permute.xlu1 %1137  ;;  %v1170_v56 = vpop.permute.xlu0 %1169 }
 0x38f   : > { %1489 = vrot.lane.b32.xlu1 %v3450_v42, %s2450_s21  ;;  %s2162_s21 = scalar_lea.hbm %s3973_s7, %s2260_s9 }
 0x391   : > { %v1154_v18 = vpop.permute.xlu1 %1153  ;;  %v1186_v40 = vpop.permute.xlu0 %1185 }
 0x393   : > { %1505 = vrot.lane.b32.xlu1 %v3450_v42, %s2451_s22  ;;  %s2150_s22 = scalar_lea.sflag [#allocation3], %s269_s15 }
 0x395   : > { %v1140_v32 = vpop.permute.xlu1 %1139 }
 0x396   : > { %v1141_v57 = vsel %vm481_vm1, %v1138_v37, %v1140_v32  ;;  %v1142_v20 = vsel %vm481_vm1, %v1140_v32, %v1138_v37 }
 0x397   : > { %v1143_v25 = vmul.f32 %v1142_v20, %v4121_v9  ;;  %v1144_v26 = vmul.f32 %v1141_v57, %v3095_v29  ;;  %1537 = vrot.lane.b32.xlu1 %v3450_v42, %s4144_s14 }
 0x399   : > { %v1149_v14 = vmul.f32 %v1147_v34, %v1143_v25  ;;  %v1150_v36 = vmul.f32 %v1147_v34, %v1144_v26  ;;  %v1156_v38 = vpop.permute.xlu1 %1155 }
 0x39a   : > { %v1157_v37 = vsel %vm510_vm2, %v1154_v18, %v1156_v38  ;;  %v1158_v32 = vsel %vm510_vm2, %v1156_v38, %v1154_v18  ;;  %v1202_v18 = vpop.permute.xlu0 %1201 }
 0x39b   : > { %v1151_v57 = vadd.f32 %v1149_v14, %v1135_v33  ;;  %v1152_v20 = vadd.f32 %v1150_v36, %v1136_v30  ;;  %v1159_v7 = vmul.f32 %v1158_v32, %v4122_v46  ;;  %v1160_v45 = vmul.f32 %v1157_v37, %v3144_v11  ;;  %1523 = vrot.lane.b32.xlu1 %v3456_v44, %s2452_s23  ;;  %s2374_s23 = scalar_lea.vmem %s2165_s16, 128 }
 0x39c   : > { %p2375_p11 = scmp.ne.s32.totalorder %s2165_s16, %s2374_s23  ;;  %p2382_p1 = scmp.lt.s32.totalorder %s2380_s13, %s2374_s23 }
 0x39d   : > { %v1165_v0 = vmul.f32 %v3436_v5, %v1159_v7  ;;  %v1166_v48 = vmul.f32 %v3436_v5, %v1160_v45  ;;  %v1172_v43 = vpop.permute.xlu1 %1171  ;;  %v341_v5 = vld [vmem:[%s3968_s2] sm:$0xff] }
 0x39e   : > { %v1173_v34 = vsel %vm540_vm3, %v1170_v56, %v1172_v43  ;;  %v1174_v38 = vsel %vm540_vm3, %v1172_v43, %v1170_v56  ;;  %p2376_p12 = pnand %p2375_p11, %p2534_p5  ;;  %p2383_p2 = por %p2382_p1, %p2381_p0 }
 0x39f   : > { %v1167_v36 = vadd.f32 %v1165_v0, %v1151_v57  ;;  %v1168_v25 = vadd.f32 %v1166_v48, %v1152_v20  ;;  %v1175_v26 = vmul.f32 %v1174_v38, %v4126_v59  ;;  %v1176_v33 = vmul.f32 %v1173_v34, %v3171_v60  ;;  %1539 = vrot.lane.b32.xlu1 %v3456_v44, %s4144_s14  ;;  %v1218_v0 = vpop.permute.xlu0 %1217 }
 0x3a0   : > { %p2377_p13 = pneg %p2376_p12 }
 0x3a1   : > { %v1181_v45 = vmul.f32 %v3458_v47, %v1175_v26  ;;  %v1182_v7 = vmul.f32 %v3458_v47, %v1176_v33  ;;  %v1188_v30 = vpop.permute.xlu1 %1187 }
 0x3a2   : > { %v1189_v56 = vsel %vm570_vm4, %v1186_v40, %v1188_v30  ;;  %v1190_v14 = vsel %vm570_vm4, %v1188_v30, %v1186_v40  ;;  %p2384_p3 = pnand %p2383_p2, %p2377_p13 }
 0x3a3   : > { %v1183_v37 = vadd.f32 %v1181_v45, %v1167_v36  ;;  %v1184_v32 = vadd.f32 %v1182_v7, %v1168_v25  ;;  %v1191_v57 = vmul.f32 %v1190_v14, %v4128_v54  ;;  %v1192_v20 = vmul.f32 %v1189_v56, %v3194_v27  ;;  %347 = vperm.xlu1 %2363, %v341_v5   ;;  %v1234_v30 = vpop.permute.xlu0 %1233 }
 0x3a5   : > { %v1197_v48 = vmul.f32 %v3474_v3, %v1191_v57  ;;  %v1198_v43 = vmul.f32 %v3474_v3, %v1192_v20  ;;  %v1204_v47 = vpop.permute.xlu1 %1203 }
 0x3a6   : > { %v1205_v34 = vsel %vm600_vm5, %v1202_v18, %v1204_v47  ;;  %v1206_v38 = vsel %vm600_vm5, %v1204_v47, %v1202_v18 }
 0x3a7   : > { %v1199_v40 = vadd.f32 %v1197_v48, %v1183_v37  ;;  %v1200_v36 = vadd.f32 %v1198_v43, %v1184_v32  ;;  %v1207_v25 = vmul.f32 %v1205_v34, %v4133_v1  ;;  %v1208_v26 = vmul.f32 %v1206_v38, %v3213_v52  ;;  %v1250_v38 = vpop.permute.xlu0 %1249 }
 0x3a9   : > { %v1213_v33 = vmul.f32 %v3493_v62, %v1207_v25  ;;  %v1214_v5 = vmul.f32 %v3493_v62, %v1208_v26  ;;  %v1220_v45 = vpop.permute.xlu1 %1219 }
 0x3aa   : > { %v1221_v3 = vsel %vm630_vm6, %v1218_v0, %v1220_v45  ;;  %v1222_v7 = vsel %vm630_vm6, %v1220_v45, %v1218_v0 }
 0x3ab   : > { %v1215_v56 = vadd.f32 %v1213_v33, %v1199_v40  ;;  %v1216_v18 = vadd.f32 %v1214_v5, %v1200_v36  ;;  %v1223_v14 = vmul.f32 %v1221_v3, %v4136_v19  ;;  %v1224_v37 = vmul.f32 %v1222_v7, %v3229_v55 }
 0x3ad   : > { %v1229_v32 = vmul.f32 %v3510_v17, %v1223_v14  ;;  %v1230_v57 = vmul.f32 %v3510_v17, %v1224_v37  ;;  %v1236_v20 = vpop.permute.xlu1 %1235 }
 0x3ae   : > { %v1237_v62 = vsel %vm660_vm7, %v1234_v30, %v1236_v20  ;;  %v1238_v48 = vsel %vm660_vm7, %v1236_v20, %v1234_v30 }
 0x3af   : > { %v1231_v43 = vadd.f32 %v1229_v32, %v1215_v56  ;;  %v1232_v0 = vadd.f32 %v1230_v57, %v1216_v18  ;;  %v1239_v47 = vmul.f32 %v1237_v62, %v4140_v31  ;;  %v1240_v34 = vmul.f32 %v1238_v48, %v3267_v39  ;;  %v3653_v48 = vpop.permute.xlu0 %1393 }
 0x3b1   : > { %v1245_v40 = vmul.f32 %v3524_v2, %v1239_v47  ;;  %v1246_v36 = vmul.f32 %v3524_v2, %v1240_v34  ;;  %v1252_v25 = vpop.permute.xlu1 %1251 }
 0x3b2   : > { %v1253_v17 = vsel %vm690_vm8, %v1250_v38, %v1252_v25  ;;  %v1254_v26 = vsel %vm690_vm8, %v1252_v25, %v1250_v38  ;;  %v1279_v25 = vmul.f32 %v3504_v51, %v3442_v6 }
 0x3b3   : > { %v1247_v33 = vadd.f32 %v1245_v40, %v1231_v43  ;;  %v1248_v5 = vadd.f32 %v1246_v36, %v1232_v0  ;;  %v1255_v45 = vmul.f32 %v1253_v17, %v3157_v61  ;;  %v1256_v3 = vmul.f32 %v1254_v26, %v3284_v63  ;;  %v3655_v0 = vpop.permute.xlu0 %1521 }
 0x3b5   : > { %v1261_v7 = vmul.f32 %v3538_v50, %v1255_v45  ;;  %v1262_v30 = vmul.f32 %v3538_v50, %v1256_v3  ;;  %v1282_v56 = vpop.permute.xlu1 %1281  ;;  %v1280_v3 = vmul.f32 %v3504_v51, %v3508_v15 }
 0x3b7   : > { %v1263_v18 = vadd.f32 %v1261_v7, %v1247_v33  ;;  %v1264_v2 = vadd.f32 %v1262_v30, %v1248_v5  ;;  %v3659_v34 = vpop.permute.xlu0 %1427 }
 0x3b9   : > { %v3648_v14 = vadd.f32 %v3562_v53, %v1263_v18  ;;  %v3651_v37 = vadd.f32 %v3562_v53, %v1264_v2  ;;  %v1298_v32 = vpop.permute.xlu1 %1297 }
 0x3bb   : > { %v3679_v6 = vpop.permute.xlu0 %1443 }
 0x3bd   : > { %v1314_v57 = vpop.permute.xlu1 %1313 }
 0x3c1   : > { %v1330_v20 = vpop.permute.xlu1 %1329 }
 0x3c5   : > { %v1346_v62 = vpop.permute.xlu1 %1345 }
 0x3c9   : > { %v1362_v43 = vpop.permute.xlu1 %1361 }
 0x3cd   : > { %v3657_v47 = vpop.permute.xlu1 %1377 }
 0x3d1   : > { %v1284_v50 = vpop.permute.xlu1 %1283 }
 0x3d2   : > { %v1285_v38 = vsel %vm481_vm1, %v1282_v56, %v1284_v50  ;;  %v1286_v53 = vsel %vm481_vm1, %v1284_v50, %v1282_v56 }
 0x3d3   : > { %v1287_v40 = vmul.f32 %v1286_v53, %v4121_v9  ;;  %v1288_v36 = vmul.f32 %v1285_v38, %v3095_v29 }
 0x3d5   : > { %v1293_v17 = vmul.f32 %v3558_v24, %v1287_v40  ;;  %v1294_v26 = vmul.f32 %v3558_v24, %v1288_v36  ;;  %v1300_v33 = vpop.permute.xlu1 %1299 }
 0x3d6   : > { %v1301_v5 = vsel %vm510_vm2, %v1298_v32, %v1300_v33  ;;  %v1302_v45 = vsel %vm510_vm2, %v1300_v33, %v1298_v32 }
 0x3d7   : > { %v1295_v7 = vadd.f32 %v1293_v17, %v1279_v25  ;;  %v1303_v30 = vmul.f32 %v1302_v45, %v4122_v46  ;;  %v1304_v56 = vmul.f32 %v1301_v5, %v3144_v11  ;;  %v1296_v18 = vadd.f32 %v1294_v26, %v1280_v3  ;;  %v3691_v26 = vpop.permute.xlu0 %1459 }
 0x3d9   : > { %v1309_v24 = vmul.f32 %v3448_v22, %v1303_v30  ;;  %v1310_v2 = vmul.f32 %v3448_v22, %v1304_v56  ;;  %v1316_v50 = vpop.permute.xlu1 %1315 }
 0x3da   : > { %v1317_v38 = vsel %vm540_vm3, %v1314_v57, %v1316_v50  ;;  %v1318_v32 = vsel %vm540_vm3, %v1316_v50, %v1314_v57 }
 0x3db   : > { %v1311_v51 = vadd.f32 %v1309_v24, %v1295_v7  ;;  %v1312_v15 = vadd.f32 %v1310_v2, %v1296_v18  ;;  %v1319_v53 = vmul.f32 %v1318_v32, %v4126_v59  ;;  %v1320_v40 = vmul.f32 %v1317_v38, %v3171_v60  ;;  %v1476_v38 = vpop.permute.xlu0 %1475 }
 0x3dd   : > { %v1325_v36 = vmul.f32 %v3468_v12, %v1319_v53  ;;  %v1326_v25 = vmul.f32 %v3468_v12, %v1320_v40  ;;  %v1332_v17 = vpop.permute.xlu1 %1331 }
 0x3de   : > { %v1333_v22 = vsel %vm570_vm4, %v1330_v20, %v1332_v17  ;;  %v1334_v33 = vsel %vm570_vm4, %v1332_v17, %v1330_v20 }
 0x3df   : > { %v1327_v57 = vadd.f32 %v1325_v36, %v1311_v51  ;;  %v1328_v5 = vadd.f32 %v1326_v25, %v1312_v15  ;;  %v1335_v45 = vmul.f32 %v1334_v33, %v4128_v54  ;;  %v1336_v3 = vmul.f32 %v1333_v22, %v3194_v27 }
 0x3e1   : > { %v1341_v7 = vmul.f32 %v3484_v8, %v1335_v45  ;;  %v1342_v30 = vmul.f32 %v3484_v8, %v1336_v3  ;;  %v1348_v12 = vpop.permute.xlu1 %1347 }
 0x3e2   : > { %v1349_v56 = vsel %vm600_vm5, %v1346_v62, %v1348_v12  ;;  %v1350_v18 = vsel %vm600_vm5, %v1348_v12, %v1346_v62 }
 0x3e3   : > { %v1343_v24 = vadd.f32 %v1341_v7, %v1327_v57  ;;  %v1344_v2 = vadd.f32 %v1342_v30, %v1328_v5  ;;  %v1351_v20 = vmul.f32 %v1349_v56, %v4133_v1  ;;  %v1352_v50 = vmul.f32 %v1350_v18, %v3213_v52  ;;  %v1492_v57 = vpop.permute.xlu0 %1491 }
 0x3e5   : > { %v1357_v32 = vmul.f32 %v3502_v35, %v1351_v20  ;;  %v1358_v51 = vmul.f32 %v3502_v35, %v1352_v50  ;;  %v1364_v15 = vpop.permute.xlu1 %1363 }
 0x3e6   : > { %v1365_v8 = vsel %vm630_vm6, %v1362_v43, %v1364_v15  ;;  %v1366_v53 = vsel %vm630_vm6, %v1364_v15, %v1362_v43 }
 0x3e7   : > { %v1359_v40 = vadd.f32 %v1357_v32, %v1343_v24  ;;  %v1360_v62 = vadd.f32 %v1358_v51, %v1344_v2  ;;  %v1367_v36 = vmul.f32 %v1365_v8, %v4136_v19  ;;  %v1368_v25 = vmul.f32 %v1366_v53, %v3229_v55  ;;  %v1508_v50 = vpop.permute.xlu0 %1507 }
 0x3e9   : > { %v1373_v17 = vmul.f32 %v3518_v10, %v1367_v36  ;;  %v1374_v22 = vmul.f32 %v3518_v10, %v1368_v25  ;;  %v1380_v33 = vpop.permute.xlu1 %1379 }
 0x3ea   : > { %v1381_v35 = vsel %vm660_vm7, %v3657_v47, %v1380_v33  ;;  %v1382_v43 = vsel %vm660_vm7, %v1380_v33, %v3657_v47 }
 0x3eb   : > { %v1375_v5 = vadd.f32 %v1373_v17, %v1359_v40  ;;  %v1376_v45 = vadd.f32 %v1374_v22, %v1360_v62  ;;  %v1383_v3 = vmul.f32 %v1381_v35, %v4140_v31  ;;  %v1384_v7 = vmul.f32 %v1382_v43, %v3267_v39  ;;  %v1413_v53 = vpop.permute.xlu0 %1412 }
 0x3ed   : > { %v1389_v30 = vmul.f32 %v3532_v21, %v1383_v3  ;;  %v1390_v10 = vmul.f32 %v3532_v21, %v1384_v7  ;;  %v1396_v12 = vpop.permute.xlu1 %1395 }
 0x3ee   : > { %v1397_v56 = vsel %vm690_vm8, %v3653_v48, %v1396_v12  ;;  %v1398_v18 = vsel %vm690_vm8, %v1396_v12, %v3653_v48 }
 0x3ef   : > { %v1391_v47 = vadd.f32 %v1389_v30, %v1375_v5  ;;  %v1392_v24 = vadd.f32 %v1390_v10, %v1376_v45  ;;  %v1399_v2 = vmul.f32 %v1397_v56, %v3157_v61  ;;  %v1400_v20 = vmul.f32 %v1398_v18, %v3284_v63 }
 0x3f0   : > { %v1423_v10 = vmul.f32 %v3512_v23, %v3450_v42 }
 0x3f1   : > { %v1405_v32 = vmul.f32 %v3546_v16, %v1399_v2  ;;  %v1406_v21 = vmul.f32 %v3546_v16, %v1400_v20  ;;  %v1426_v51 = vpop.permute.xlu1 %1425 }
 0x3f2   : > { %v1429_v22 = vsel %vm481_vm1, %v1426_v51, %v3659_v34  ;;  %v1430_v16 = vsel %vm481_vm1, %v3659_v34, %v1426_v51 }
 0x3f3   : > { %v1407_v15 = vadd.f32 %v1405_v32, %v1391_v47  ;;  %v1408_v8 = vadd.f32 %v1406_v21, %v1392_v24  ;;  %v1432_v43 = vmul.f32 %v1429_v22, %v3095_v29 }
 0x3f5   : > { %v1415_v40 = vadd.f32 %v1413_v53, %v1407_v15  ;;  %v1416_v62 = vadd.f32 %v1413_v53, %v1408_v8  ;;  %v1442_v36 = vpop.permute.xlu1 %1441 }
 0x3f6   : > { %v1445_v35 = vsel %vm510_vm2, %v1442_v36, %v3679_v6 }
 0x3f7   : > { %v3738_v48 = vmul.f32 %v1416_v62, %v3651_v37  ;;  %v3741_v25 = vmul.f32 %v1415_v40, %v3648_v14  ;;  %v1446_v37 = vsel %vm510_vm2, %v3679_v6, %v1442_v36  ;;  %v1431_v14 = vmul.f32 %v1430_v16, %v4121_v9 }
 0x3f8   : > { %v1447_v5 = vmul.f32 %v1446_v37, %v4122_v46  ;;  %v1448_v45 = vmul.f32 %v1445_v35, %v3144_v11  ;;  %v1438_v6 = vmul.f32 %v3566_v58, %v1432_v43 }
 0x3f9   : > { %v1458_v17 = vpop.permute.xlu1 %1457  ;;  %v1437_v30 = vmul.f32 %v3566_v58, %v1431_v14 }
 0x3fa   : > { %v1461_v34 = vsel %vm540_vm3, %v1458_v17, %v3691_v26  ;;  %v1462_v3 = vsel %vm540_vm3, %v3691_v26, %v1458_v17  ;;  %v1424_v26 = vmul.f32 %v3512_v23, %v3456_v44  ;;  %v1453_v12 = vmul.f32 %v3520_v41, %v1447_v5 }
 0x3fb   : > { %v1463_v11 = vmul.f32 %v1462_v3, %v4126_v59  ;;  %v1464_v46 = vmul.f32 %v1461_v34, %v3171_v60  ;;  %v1454_v58 = vmul.f32 %v3520_v41, %v1448_v45 }
 0x3fc   : > { %v1440_v42 = vadd.f32 %v1438_v6, %v1424_v26 }
 0x3fd   : > { %v1474_v33 = vpop.permute.xlu1 %1473  ;;  %v1469_v24 = vmul.f32 %v3526_v28, %v1463_v11  ;;  %v1470_v44 = vmul.f32 %v3526_v28, %v1464_v46  ;;  %v1557_v11 = vpop.permute.xlu0 %1556 }
 0x3fe   : > { %v1477_v29 = vsel %vm570_vm4, %v1474_v33, %v1476_v38  ;;  %v1478_v9 = vsel %vm570_vm4, %v1476_v38, %v1474_v33  ;;  %v1439_v38 = vadd.f32 %v1437_v30, %v1423_v10  ;;  %v1456_v32 = vadd.f32 %v1454_v58, %v1440_v42  ;;  %v4149_v33 = vld [vmem:[#allocation29_spill] sm:$0xff] }
 0x3ff   : > { %v1479_v18 = vmul.f32 %v1478_v9, %v4128_v54  ;;  %v1480_v47 = vmul.f32 %v1477_v29, %v3194_v27 }
 0x400   : > { %v1455_v20 = vadd.f32 %v1453_v12, %v1439_v38  ;;  %v1472_v8 = vadd.f32 %v1470_v44, %v1456_v32  ;;  %v4151_v12 = vld [vmem:[#allocation5_spill] sm:$0xff]  ;;  %v1937_v38 = vld [vmem:[%s3968_s2 + $0x68] sm:$0xff]  ;;  %v1807_v32 = vld [vmem:[%s3968_s2 + $0x58] sm:$0xff] }
 0x401   : > { %v1490_v7 = vpop.permute.xlu1 %1489  ;;  %v1486_v21 = vmul.f32 %v3534_v4, %v1480_v47 }
 0x402   : > { %v1493_v59 = vsel %vm600_vm5, %v1490_v7, %v1492_v57  ;;  %v1494_v60 = vsel %vm600_vm5, %v1492_v57, %v1490_v7  ;;  %v1485_v57 = vmul.f32 %v3534_v4, %v1479_v18  ;;  %v1471_v15 = vadd.f32 %v1469_v24, %v1455_v20  ;;  %v4150_v7 = vld [vmem:[#allocation34_spill] sm:$0xff]  ;;  %v1806_v20 = vld [vmem:[%s3968_s2 + $0x50] sm:$0xff] }
 0x403   : > { %v1495_v27 = vmul.f32 %v1493_v59, %v4133_v1  ;;  %v1496_v41 = vmul.f32 %v1494_v60, %v3213_v52  ;;  %v1488_v52 = vadd.f32 %v1486_v21, %v1472_v8  ;;  %v4153_v60 = vmov 0.0   ;;  %v1938_v21 = vld [vmem:[%s3968_s2 + $0x70] sm:$0xff]  ;;  %v2134_v8 = vld [vmem:[%s3971_s5 + $0x28] sm:$0xff] }
 0x404   : > { %v1487_v40 = vadd.f32 %v1485_v57, %v1471_v15  ;;  %2265 = vmatprep.mubr.msk.f32.mxu1 %vm2454_vm9, %v4153_v60  ;;  %v1808_v57 = vld [vmem:[%s3968_s2 + $0x60] sm:$0xff] }
 0x405   : > { %v1506_v56 = vpop.permute.xlu1 %1505  ;;  %v1501_v53 = vmul.f32 %v3540_v49, %v1495_v27  ;;  %v1733_v27 = vld [vmem:[%s3971_s5 + $0x20] sm:$0xff] }
 0x406   : > { %v1509_v23 = vsel %vm630_vm6, %v1506_v56, %v1508_v50  ;;  %v1510_v54 = vsel %vm630_vm6, %v1508_v50, %v1506_v56  ;;  %v1502_v50 = vmul.f32 %v3540_v49, %v1496_v41  ;;  %v4152_v56 = vld [vmem:[#allocation6_spill] sm:$0xff]  ;;  %v1777_v41 = vld [vmem:[%s3971_s5 + $0x10] sm:$0xff]  ;;  %v2054_v15 = vld [vmem:[%s3968_s2 + $0x80] sm:$0xff] }
 0x407   : > { %v1511_v51 = vmul.f32 %v1509_v23, %v4136_v19  ;;  %v1512_v28 = vmul.f32 %v1510_v54, %v3229_v55  ;;  %v4148_v19 = vld [vmem:[#allocation26_spill] sm:$0xff]  ;;  %v1503_v49 = vadd.f32 %v1501_v53, %v1487_v40  ;;  %v1653_v54 = vld [vmem:[%s3968_s2 + $0x40] sm:$0xff] }
 0x408   : > { %v1504_v16 = vadd.f32 %v1502_v50, %v1488_v52  ;;  %v1652_v40 = vld [vmem:[%s3967_s1 + $0x40] sm:$0xff] }
 0x409   : > { %v1538_v2 = vpop.permute.xlu1 %1537  ;;  %v1517_v36 = vmul.f32 %v4148_v19, %v1511_v51  ;;  %v1518_v55 = vmul.f32 %v4148_v19, %v1512_v28  ;;  %v1939_v51 = vld [vmem:[%s3968_s2 + $0x78] sm:$0xff]  ;;  %v1805_v28 = vld [vmem:[%s3968_s2 + $0x48] sm:$0xff] }
 0x40b   : > { %v1519_v5 = vadd.f32 %v1517_v36, %v1503_v49  ;;  %v1520_v45 = vadd.f32 %v1518_v55, %v1504_v16 }
 0x40d   : > { %v1524_v1 = vpop.permute.xlu1 %1523 }
 0x40e   : > { %v1525_v62 = vsel %vm660_vm7, %v3655_v0, %v1524_v1  ;;  %v1526_v4 = vsel %vm660_vm7, %v1524_v1, %v3655_v0 }
 0x40f   : > { %v1527_v17 = vmul.f32 %v1525_v62, %v4140_v31  ;;  %v1528_v22 = vmul.f32 %v1526_v4, %v3267_v39 }
 0x411   : > { %v1533_v35 = vmul.f32 %v4149_v33, %v1527_v17  ;;  %v1534_v37 = vmul.f32 %v4149_v33, %v1528_v22  ;;  %v1540_v14 = vpop.permute.xlu1 %1539  ;;  %v2372_v22 = vld [vmem:[%s2602_s17] sm:$0xff] }
 0x412   : > { %v1541_v43 = vsel %vm690_vm8, %v1538_v2, %v1540_v14  ;;  %v1542_v0 = vsel %vm690_vm8, %v1540_v14, %v1538_v2  ;;  %v1793_v2 = vld [vmem:[%s3971_s5 + $0x18] sm:$0xff] }
 0x413   : > { %v1543_v34 = vmul.f32 %v1541_v43, %v3157_v61  ;;  %v1544_v31 = vmul.f32 %v1542_v0, %v3284_v63  ;;  %v1535_v39 = vadd.f32 %v1533_v35, %v1519_v5  ;;  %v1536_v3 = vadd.f32 %v1534_v37, %v1520_v45  ;;  %v2373_v37 = vld [vmem:[%s2602_s17 + $0x8] sm:$0xff] }
 0x415   : > { %v1549_v30 = vmul.f32 %v4150_v7, %v1543_v34  ;;  %v1550_v6 = vmul.f32 %v4150_v7, %v1544_v31 }
 0x417   : > { %v1551_v29 = vadd.f32 %v1549_v30, %v1535_v39  ;;  %v1552_v9 = vadd.f32 %v1550_v6, %v1536_v3 }
 0x419   : > { %v1559_v46 = vadd.f32 %v1557_v11, %v1551_v29  ;;  %v1560_v10 = vadd.f32 %v1557_v11, %v1552_v9 }
 0x41b   : > { %v1564_v13 = vadd.f32 %v3738_v48, %v1560_v10  ;;  %v1563_v63 = vadd.f32 %v3741_v25, %v1559_v46  ;;  %v1570_v48 = vld [vmem:[%s3967_s1 + $0x38] sm:$0xff] }
 0x41c   : > { %v1571_v25 = vld [vmem:[%s3968_s2 + $0x38] sm:$0xff] }
 0x41e   : > { %v348_v26 = vpop.permute.xlu1 %347 }
 0x41f   : > { %v445_v58 = vadd.f32 %v4151_v12, %v348_v26  ;;  %v447_v61 = vadd.f32 %v4152_v56, %v348_v26 }
 0x421   : > { %v1565_v18 = vmul.f32 %v1563_v63, %v445_v58  ;;  %v1566_v47 = vmul.f32 %v1564_v13, %v447_v61 }
 0x423   : > { %v1567_v59 = vadd.f32 %v1566_v47, %v1565_v18 }
 0x425   : > { %1568 = vadd.xlane.f32.xlu0 %v1567_v59 }
 0x43b   : > { %1942 = vperm.xlu0 %2362, %v1937_v38  }
 0x4ae   : > { %v1569_v42 = vpop.xlane.xlu0 %1568 }
 0x4af   : > { %2264 = vmatpush3.msra.mxu1 %v1569_v42 }
 0x4b0   : > { %2266 = vmatmul.mubr.msk.f32.vlgmr.msra.gmra.mxu1 %vm365_vm0, %v1570_v48 }
 0x4b1   : > { %1905 = vmatprep.mubr.f32.mxu1 %v4153_v60 }
 0x570   : > { %v1641_v24 = vpop.f32.mrf.mxu1 }
 0x571   : > { %v1642_v44 = vadd.f32 %v1641_v24, %v1571_v25 }
 0x572   : > { %v2267_v23 = vpop.f32.mrf.mxu1 }
 0x573   : > { %1647 = vperm.xlu1 %2363, %v1642_v44  }
 0x577   : > { %1656 = vperm.xlu1 %2363, %v1653_v54  }
 0x57b   : > { %1736 = vperm.xlu1 %2363, %v1733_v27  }
 0x57f   : > { %1788 = vperm.xlu1 %2363, %v1777_v41  }
 0x583   : > { %1796 = vperm.xlu1 %2363, %v1793_v2  }
 0x587   : > { %1816 = vperm.xlu1 %2363, %v1806_v20  }
 0x58b   : > { %1821 = vperm.xlu1 %2363, %v1807_v32  }
 0x58f   : > { %1826 = vperm.xlu1 %2363, %v1808_v57  }
 0x593   : > { %1947 = vperm.xlu1 %2363, %v1938_v21  }
 0x597   : > { %1952 = vperm.xlu1 %2363, %v1939_v51  }
 0x59b   : > { %1811 = vperm.xlu1 %2363, %v1805_v28  }
 0x59f   : > { %2057 = vperm.xlu1 %2363, %v2054_v15  }
 0x5a3   : > { %2137 = vperm.xlu1 %2363, %v2134_v8  }
 0x5ee   : > { %v1648_v53 = vpop.permute.xlu1 %1647 }
 0x5ef   : > { %v1650_v50 = vmul.f32 %v1648_v53, %v1565_v18  ;;  %v1651_v1 = vmul.f32 %v1648_v53, %v1566_v47 }
 0x5f1   : > { %1692 = vmatprep.subr.mxu0 %v1651_v1  ;;  %v1802_v1 = vld [vmem:[%s3967_s1 + $0x50] sm:$0xff] }
 0x5f2   : > { %1693 = vmatpush1.msra.mxu0 %v1650_v50  ;;  %v1657_v52 = vpop.permute.xlu1 %1656  ;;  %v1801_v50 = vld [vmem:[%s3967_s1 + $0x48] sm:$0xff] }
 0x5f3   : > { %2245 = vmatmul.mubr.msk.f32.vlgmr.msra.gmra.mxu0 %vm365_vm0, %v1652_v40  ;;  %v1803_v40 = vld [vmem:[%s3967_s1 + $0x58] sm:$0xff] }
 0x5f4   : > { %2028 = vmatprep.mubr.f32.mxu0 %v4153_v60 }
 0x5f6   : > { %v1737_v19 = vpop.permute.xlu1 %1736 }
 0x5fa   : > { %v1789_v2 = vpop.permute.xlu1 %1788 }
 0x5fe   : > { %v1797_v15 = vpop.permute.xlu1 %1796 }
 0x6b3   : > { %v1728_v62 = vpop.f32.mrf.mxu0 }
 0x6b4   : > { %v1729_v4 = vadd.f32 %v1728_v62, %v1657_v52 }
 0x6b5   : > { %v1730_v36 = vpop.f32.mrf.mxu0 }
 0x6b6   : > { %v1739_v55 = vmul.f32 %v1737_v19, %v1729_v4  ;;  %v1731_v17 = vadd.f32 %v1730_v36, %v1657_v52  ;;  %v1804_v52 = vld [vmem:[%s3967_s1 + $0x60] sm:$0xff]  ;;  %v1817_v4 = vpop.permute.xlu1 %1816 }
 0x6b8   : > { %v3877_v49 = vadd.f32 %v2372_v22, %v1739_v55  ;;  %v1740_v16 = vmul.f32 %v1737_v19, %v1731_v17 }
 0x6ba   : > { %v1743_v33 = vrot.slane %v3877_v49, 4  ;;  %v1755_v35 = vmul.f32 %v3877_v49, %v3877_v49  ;;  %v3883_v14 = vadd.f32 %v2373_v37, %v1740_v16  ;;  %v1822_v17 = vpop.permute.xlu1 %1821 }
 0x6bc   : > { %v1744_v43 = vadd.f32 %v1743_v33, %v3877_v49  ;;  %v1757_v0 = vrot.slane %v1755_v35, 4  ;;  %v1749_v5 = vrot.slane %v3883_v14, 4  ;;  %v1756_v45 = vmul.f32 %v3883_v14, %v3883_v14 }
 0x6be   : > { %v1745_v34 = vrot.slane %v1744_v43, 2  ;;  %v1758_v31 = vadd.f32 %v1757_v0, %v1755_v35  ;;  %v1763_v39 = vrot.slane %v1756_v45, 4  ;;  %v1750_v3 = vadd.f32 %v1749_v5, %v3883_v14 }
 0x6c0   : > { %v1759_v7 = vrot.slane %v1758_v31, 2  ;;  %v1764_v30 = vadd.f32 %v1763_v39, %v1756_v45  ;;  %v1751_v6 = vrot.slane %v1750_v3, 2  ;;  %v1746_v29 = vadd.f32 %v1745_v34, %v1744_v43  ;;  %v1827_v43 = vpop.permute.xlu1 %1826 }
 0x6c2   : > { %v1760_v9 = vadd.f32 %v1759_v7, %v1758_v31  ;;  %v1765_v11 = vrot.slane %v1764_v30, 2  ;;  %v1752_v46 = vadd.f32 %v1751_v6, %v1750_v3  ;;  %v1747_v10 = vrot.slane %v1746_v29, 1  ;;  %v1934_v6 = vld [vmem:[%s3967_s1 + $0x68] sm:$0xff] }
 0x6c4   : > { %v1761_v26 = vrot.slane %v1760_v9, 1  ;;  %v1753_v13 = vrot.slane %v1752_v46, 1  ;;  %v1766_v12 = vadd.f32 %v1765_v11, %v1764_v30  ;;  %v1748_v58 = vadd.f32 %v1747_v10, %v1746_v29  ;;  %v1935_v29 = vld [vmem:[%s3967_s1 + $0x70] sm:$0xff]  ;;  %v1948_v11 = vpop.permute.xlu1 %1947 }
 0x6c6   : > { %v1754_v56 = vadd.f32 %v1753_v13, %v1752_v46  ;;  %v1767_v61 = vrot.slane %v1766_v12, 1  ;;  %v1762_v63 = vadd.f32 %v1761_v26, %v1760_v9  ;;  %v1769_v18 = vmul.f32 0.25, %v1748_v58  ;;  %v1936_v9 = vld [vmem:[%s3967_s1 + $0x78] sm:$0xff] }
 0x6c8   : > { %v1768_v47 = vadd.f32 %v1767_v61, %v1766_v12  ;;  %v1770_v59 = vmul.f32 0.25, %v1754_v56  ;;  %v1771_v38 = vmul.f32 0.25, %v1762_v63  ;;  %v1773_v48 = vmul.f32 %v1769_v18, %v1769_v18  ;;  %v1953_v13 = vpop.permute.xlu1 %1952  ;;  %v1943_v56 = vpop.permute.xlu0 %1942 }
 0x6c9   : > { %v1778_v27 = vsub.f32 %v3877_v49, %v1769_v18 }
 0x6ca   : > { %v1772_v42 = vmul.f32 0.25, %v1768_v47  ;;  %v1774_v25 = vmul.f32 %v1770_v59, %v1770_v59  ;;  %v1775_v24 = vsub.f32 %v1771_v38, %v1773_v48  ;;  %v1779_v20 = vsub.f32 %v3883_v14, %v1770_v59 }
 0x6cc   : > { %v1776_v44 = vsub.f32 %v1772_v42, %v1774_v25  ;;  %v1780_v23 = vadd.f32 1e-06, %v1775_v24  ;;  %v1812_v24 = vpop.permute.xlu1 %1811 }
 0x6ce   : > { %v1781_v54 = vadd.f32 1e-06, %v1776_v44  ;;  %2368 = vrsqrt.f32 %v1780_v23 }
 0x6d0   : > { %2370 = vrsqrt.f32 %v1781_v54 }
 0x6db   : > { %v2369_v41 = vpop.eup %2368 }
 0x6dc   : > { %v1784_v32 = vmul.f32 %v2369_v41, %v1778_v27 }
 0x6dd   : > { %v2371_v57 = vpop.eup %2370 }
 0x6de   : > { %v1785_v21 = vmul.f32 %v2371_v57, %v1779_v20  ;;  %v1791_v51 = vmul.f32 %v1789_v2, %v1784_v32  ;;  %v2058_v20 = vpop.permute.xlu1 %2057 }
 0x6e0   : > { %v1792_v28 = vmul.f32 %v1789_v2, %v1785_v21  ;;  %v1799_v53 = vadd.f32 %v1797_v15, %v1791_v51  ;;  %v2053_v2 = vld [vmem:[%s3967_s1 + $0x80] sm:$0xff] }
 0x6e2   : > { %v1800_v8 = vadd.f32 %v1797_v15, %v1792_v28  ;;  %v2138_v21 = vpop.permute.xlu1 %2137 }
 0x6e4   : > { %1871 = vmatprep.subr.mxu1 %v1800_v8 }
 0x6e5   : > { %1872 = vmatpush1.msra.mxu1 %v1799_v53 }
 0x6e6   : > { %2246 = vmatmul.mubr.msk.f32.vlgmr.msra.gmra.mxu1 %vm365_vm0, %v1801_v50 }
 0x6e7   : > { %1911 = vmatprep.mubr.f32.mxu1 %v4153_v60 }
 0x6ea   : > { %2247 = vmatmul.mubr.msk.f32.gmra.mxu1 %vm365_vm0, %v1802_v1 }
 0x6eb   : > { %1917 = vmatprep.mubr.f32.mxu1 %v4153_v60 }
 0x6ee   : > { %2248 = vmatmul.mubr.msk.f32.gmra.mxu1 %vm365_vm0, %v1803_v40 }
 0x6ef   : > { %1923 = vmatprep.mubr.f32.mxu1 %v4153_v60 }
 0x6f2   : > { %2249 = vmatmul.mubr.msk.f32.gmra.mxu1 %vm365_vm0, %v1804_v52 }
 0x7a6   : > { %v1907_v62 = vpop.f32.mrf.mxu1 }
 0x7a7   : > { %v1908_v54 = vadd.f32 %v1907_v62, %v1812_v24 }
 0x7a8   : > { %v1909_v19 = vpop.f32.mrf.mxu1 }
 0x7a9   : > { %v1910_v44 = vadd.f32 %v1909_v19, %v1812_v24 }
 0x7aa   : > { %v1913_v36 = vpop.f32.mrf.mxu1 }
 0x7ab   : > { %v1914_v5 = vadd.f32 %v1913_v36, %v1817_v4 }
 0x7ac   : > { %v1915_v55 = vpop.f32.mrf.mxu1 }
 0x7ad   : > { %v1916_v0 = vadd.f32 %v1915_v55, %v1817_v4 }
 0x7ae   : > { %v1919_v22 = vpop.f32.mrf.mxu1 }
 0x7af   : > { %v1920_v35 = vadd.f32 %v1919_v22, %v1822_v17 }
 0x7b0   : > { %v1921_v16 = vpop.f32.mrf.mxu1 }
 0x7b1   : > { %v1922_v33 = vadd.f32 %v1921_v16, %v1822_v17  ;;  %v1930_v3 = vmul.f32 %v1920_v35, %v1914_v5 }
 0x7b2   : > { %v1925_v37 = vpop.f32.mrf.mxu1 }
 0x7b3   : > { %v1926_v45 = vadd.f32 %v1925_v37, %v1827_v43  ;;  %v1931_v31 = vmul.f32 %v1922_v33, %v1916_v0 }
 0x7b4   : > { %v1927_v34 = vpop.f32.mrf.mxu1 }
 0x7b5   : > { %v1928_v39 = vadd.f32 %v1927_v34, %v1827_v43  ;;  %v1932_v30 = vadd.f32 %v1930_v3, %v1926_v45 }
 0x7b7   : > { %v1933_v7 = vadd.f32 %v1931_v31, %v1928_v39 }
 0x7b9   : > { %1994 = vmatprep.subr.mxu0 %v1933_v7 }
 0x7ba   : > { %1995 = vmatpush1.msra.mxu0 %v1932_v30 }
 0x7bb   : > { %2250 = vmatmul.mubr.msk.f32.vlgmr.msra.gmra.mxu0 %vm365_vm0, %v1934_v6 }
 0x7bc   : > { %2034 = vmatprep.mubr.f32.mxu0 %v4153_v60 }
 0x7bf   : > { %2251 = vmatmul.mubr.msk.f32.gmra.mxu0 %vm365_vm0, %v1935_v29 }
 0x7c0   : > { %2040 = vmatprep.mubr.f32.mxu0 %v4153_v60 }
 0x7c3   : > { %2252 = vmatmul.mubr.msk.f32.gmra.mxu0 %vm365_vm0, %v1936_v9 }
 0x7c4   : > { %2127 = vmatprep.mubr.f32.mxu0 %v4153_v60 }
 0x87b   : > { %v2030_v46 = vpop.f32.mrf.mxu0 }
 0x87c   : > { %v2031_v63 = vadd.f32 %v2030_v46, %v1943_v56 }
 0x87d   : > { %v2032_v10 = vpop.f32.mrf.mxu0 }
 0x87e   : > { %v2033_v47 = vadd.f32 %v2032_v10, %v1943_v56 }
 0x87f   : > { %v2036_v26 = vpop.f32.mrf.mxu0 }
 0x880   : > { %v2037_v12 = vadd.f32 %v2036_v26, %v1948_v11 }
 0x881   : > { %v2038_v58 = vpop.f32.mrf.mxu0 }
 0x882   : > { %v2039_v61 = vadd.f32 %v2038_v58, %v1948_v11  ;;  %v2047_v38 = vmul.f32 %v2037_v12, %v2031_v63 }
 0x883   : > { %v2042_v18 = vpop.f32.mrf.mxu0 }
 0x884   : > { %v2043_v59 = vadd.f32 %v2042_v18, %v1953_v13  ;;  %v2048_v42 = vmul.f32 %v2039_v61, %v2033_v47 }
 0x885   : > { %v2044_v48 = vpop.f32.mrf.mxu0 }
 0x886   : > { %v2045_v25 = vadd.f32 %v2044_v48, %v1953_v13  ;;  %v2049_v60 = vadd.f32 %v2047_v38, %v2043_v59 }
 0x888   : > { %v2050_v23 = vadd.f32 %v2048_v42, %v2045_v25  ;;  %v2051_v41 = vmul.f32 %v2049_v60, %v1908_v54 }
 0x88a   : > { %v2052_v27 = vmul.f32 %v2050_v23, %v1910_v44 }
 0x88c   : > { %2093 = vmatprep.subr.mxu0 %v2052_v27 }
 0x88d   : > { %2094 = vmatpush1.msra.mxu0 %v2051_v41 }
 0x88e   : > { %2253 = vmatmul.mubr.msk.f32.vlgmr.msra.gmra.mxu0 %vm365_vm0, %v2053_v2 }
 0x94e   : > { %v2129_v32 = vpop.f32.mrf.mxu0 }
 0x94f   : > { %v2130_v57 = vadd.f32 %v2129_v32, %v2058_v20 }
 0x950   : > { %v2131_v51 = vpop.f32.mrf.mxu0 }
 0x951   : > { %v2140_v28 = vmul.f32 %v2138_v21, %v2130_v57  ;;  %v2132_v15 = vadd.f32 %v2131_v51, %v2058_v20 }
 0x953   : > { %v2141_v8 = vmul.f32 %v2138_v21, %v2132_v15  ;;  %v2142_v53 = vadd.f32 %v2140_v28, %v3877_v49 }
 0x955   : > { %v2143_v50 = vadd.f32 %v2141_v8, %v3883_v14 }
 0x957   : > { %v2146_v1 = vcombine.low %v2142_v53, %v2143_v50 }
 0x959   : > { %2148 = vst [vmem:[%s271_s29] sm:$0xff] %v2146_v1 }
 0x95a   : > { %2387 = shalt.err (!%p2384_p3)
}
 0x95b   : > { %s2388_s17 = scalar_lea.hbm %s2162_s21, 128  ;;  %s2392_s8 = scalar_lea.hbm %s3973_s7, 256 }
 0x95c   : > { %p2389_p4 = scmp.ne.s32.totalorder %s2162_s21, %s2388_s17  ;;  %p2393_p9 = scmp.lt.s32.totalorder %s2162_s21, %s3973_s7 }
 0x95d   : > { %p2394_p10 = scmp.lt.s32.totalorder %s2392_s8, %s2388_s17 }
 0x95e   : > { %p2390_p7 = pnand %p2389_p4, %p2534_p5 }
 0x95f   : > { %p2395_p11 = por %p2394_p10, %p2393_p9 }
 0x960   : > { %p2391_p8 = pneg %p2390_p7 }
 0x962   : > { %p2396_p12 = pnand %p2395_p11, %p2391_p8 }
 0x964   : > { %2399 = shalt.err (!%p2396_p12)
}
 0x965   : > { %2268 = dma.vmem_to_hbm [thread:$0]  (%p2534_p5), %s2165_s16, 128, %s2162_s21, %s2150_s22  }
 0x966 PF: > { %p2274_p13 = scmp.ge.s32.totalorder %s2434_s27, 2  ;;  %s2176_s18 = sand.u32 1, %s2422_s24  }
 0x967   : > { %s2177_s20 = scalar_lea.sflag [#allocation3], %s2176_s18 }
 0x968   : > { %p2271_p0 = pnand %p2274_p13, %p2538_p6 }
 0x96a   : > { %p2272_p1 = pneg %p2271_p0 }
 0x96c   : > { %2417 = dma.done.wait (%p2272_p1), %s2177_s20, 128  }
 0x96d   : > { %2419 = vsyncadd (%p2272_p1), %s2177_s20, 4294967168  ;;  %p17_p2 = scmp.ge.s32.totalorder %s2521_s30, 4   ;;  %s4154_s24 = smov %s2426_s25 }
 0x96e   : > { %s4155_s25 = smov %s2430_s26  ;;  %s4156_s26 = smov %s2532_s10 }
 0x96f   : > { %s4157_s27 = smov %s2521_s30  ;;  %19 = sbr.rel (!%p17_p2) target bundleno = 3 (0x3), region = 90 }
 0x974   :  { %2182 = vsyncpa [#allocation3], 1 }
 0x975   :  { %2184 = vsyncpa [#allocation3 + $0x1], 1 }

</bundles_post_ra>
